<compile_context>
chip_gen: v7x
topology: tpu7x:2x2x1
jax: 0.10.0
libtpu: 0.0.40
codegen_flags: <defaults>
</compile_context>

<pallas_src>
import math

import jax
import jax.numpy as jnp
from jax import lax
from jax.experimental import pallas as pl
from jax.experimental.pallas import tpu as pltpu

EPS = 1e-5                 # nn.LayerNorm default eps
GATE_PERM = (0, 1, 3, 2)   # packed gate order [i, f, o, g] drawn from PyTorch [i, f, g, o]


def _round_up(n, m):
    return (n + m - 1) // m * m


def _pack_group(entries, buf_idx, layout, row_align=8):
    """Stack (name, (rows, width)) blocks into one buffer of common width.

    Every block starts at a sublane-aligned (multiple of `row_align`) row offset and
    spans the full buffer width, so in-kernel reads are clean full-tile views.
    Records name -> (buf_idx, row_offset, rows) in `layout`.
    """
    width = entries[0][1].shape[1]
    parts, off = [], 0
    for name, a in entries:
        assert a.shape[1] == width
        r = a.shape[0]
        rp = _round_up(r, row_align)
        block = jnp.zeros((rp, width), jnp.float32).at[:r, :].set(a.astype(jnp.float32))
        parts.append(block)
        layout[name] = (buf_idx, off, r)
        off += rp
    return jnp.concatenate(parts, axis=0)


def _make_kernel(layout, S, E, HP):
    H1, H2, H3 = 32 * E, 8 * E, E          # real hidden widths (LayerNorm divisors)
    G3 = 3 * HP                            # width of the packed [i | f | o] block

    def kernel(x_ref, wide_ref, narrow_ref, o_ref, hseq_ref):
        bufs = (wide_ref, narrow_ref)

        def get(name):
            b, off, rows = layout[name]
            return bufs[b][off:off + rows, :]

        def layer_norm(xv, prefix, H):
            # Pad lanes of xv are exactly 0; stats divide by the real H and pad lanes
            # of gamma/beta are 0, so pad lanes stay 0 on output.
            gamma = get(prefix + "_g")
            beta = get(prefix + "_be")
            inv_h = 1.0 / float(H)
            mu = jnp.sum(xv, axis=-1, keepdims=True) * inv_h
            ms = jnp.sum(xv * xv, axis=-1, keepdims=True) * inv_h
            inv = lax.rsqrt(ms - mu * mu + EPS)
            return (xv - mu) * inv * gamma + beta

        def lstm(x_seq, prefix, store_seq=True):
            """Batch-1 LSTM with 128-lane padded gates in packed order [i, f, o, g].
            Zero-initialized (h, c); writes the hidden sequence into hseq_ref."""
            w_ih = get(prefix + "_wih")    # (HP, 4*HP)
            w_hh = get(prefix + "_whh")    # (HP, 4*HP)
            b = get(prefix + "_b")         # (1,  4*HP)   (b_ih + b_hh)
            # Hoisted input projection: one (S, HP) x (HP, 4*HP) matmul per layer.
            xw = jnp.dot(x_seq, w_ih, preferred_element_type=jnp.float32) + b
            h = jnp.zeros((1, HP), jnp.float32)
            c = jnp.zeros((1, HP), jnp.float32)
            # TODO(synk): hold w_hh in MXU weight regs across the S serial steps
            #             (matmul_push_rhs/acc_lhs/pop) once a portable per-chip split
            #             of the 512-wide RHS is worth the complexity.
            for t in range(S):             # statically unrolled: S == 8
                gates = xw[t:t + 1, :] + jnp.dot(
                    h, w_hh, preferred_element_type=jnp.float32)
                sg = jax.nn.sigmoid(gates[:, :G3])     # [i | f | o], 128-aligned slices
                g = jnp.tanh(gates[:, G3:])            # g gate
                c = sg[:, HP:2 * HP] * c + sg[:, :HP] * g
                h = sg[:, 2 * HP:G3] * jnp.tanh(c)
                if store_seq:
                    hseq_ref[t:t + 1, :] = h           # full-lane (1, 128) store
            return (hseq_ref[...] if store_seq else None), h

        # ---------------- Encoder ----------------
        hs, _ = lstm(x_ref[...], "e1")
        hs = layer_norm(hs, "e1", H1)                  # dropout: identity (eval)
        hs, _ = lstm(hs, "e2")
        hs = layer_norm(hs, "e2", H2)                  # dropout: identity (eval)
        _, h_n = lstm(hs, "e3", store_seq=False)
        # Encoder layer_norm3/dropout act on the discarded sequence output -> skipped.

        # ---------------- Decoder ----------------
        z = jnp.broadcast_to(h_n, (S, HP))             # x.repeat(1, seq_len, 1)
        hs, _ = lstm(z, "d1")
        hs = layer_norm(hs, "d1", H3)                  # dropout: identity (eval)
        hs, _ = lstm(hs, "d2")
        hs = layer_norm(hs, "d2", H2)                  # dropout: identity (eval)
        hs, _ = lstm(hs, "d3")
        hs = layer_norm(hs, "d3", H1)                  # dropout: identity (eval)

        # Lane-dense output store; the wrapper slices back to n_features.
        o_ref[...] = (jnp.dot(hs, get("out_w"), preferred_element_type=jnp.float32)
                      + get("out_b"))

    return kernel


def recurrent_autoencoder(x, params):
    S = params["seq_len"]
    F = params["n_features"]
    E = params["embedding_dim"]
    HP = params["hp"]
    layout = params["layout"]
    bufs = params["buffers"]

    x2d = x.reshape(S, F).astype(jnp.float32)
    x_pad = jnp.zeros((S, HP), jnp.float32).at[:, :F].set(x2d)

    kernel = _make_kernel(layout, S, E, HP)
    out = pl.pallas_call(
        kernel,
        out_shape=jax.ShapeDtypeStruct((S, HP), jnp.float32),
        in_specs=[pl.BlockSpec(memory_space=pltpu.MemorySpace.VMEM)] * (1 + len(bufs)),
        out_specs=pl.BlockSpec(memory_space=pltpu.MemorySpace.VMEM),
        scratch_shapes=[pltpu.VMEM((S, HP), jnp.float32)],   # reused hidden-seq buffer
    )(x_pad, *bufs)
    return out[:, :F].reshape(1, S, F)


def _uniform(key, shape, bound):
    return jax.random.uniform(key, shape, jnp.float32, -bound, bound)


def init_params(key, seq_len, n_features, embedding_dim):
    """Deterministic synthetic weights matching the PyTorch module's shapes.

    `raw` holds the plain PyTorch-layout weights (used by the non-Pallas reference);
    `buffers` hold the same weights pre-transposed, gate-reordered to [i, f, o, g],
    zero-padded to 128 lanes per gate and packed into two contiguous buffers.
    """
    E, F = embedding_dim, n_features
    HP = _round_up(max(32 * E, F, 1), 128)     # padded hidden / lane width
    keys = iter(jax.random.split(key, 64))

    raw = {}

    def add_lstm(prefix, in_dim, hid):
        bound = 1.0 / math.sqrt(hid)
        raw[prefix + "_wih"] = _uniform(next(keys), (in_dim, 4 * hid), bound)   # W_ih^T
        raw[prefix + "_whh"] = _uniform(next(keys), (hid, 4 * hid), bound)      # W_hh^T
        raw[prefix + "_b"] = (_uniform(next(keys), (1, 4 * hid), bound)
                              + _uniform(next(keys), (1, 4 * hid), bound))      # b_ih+b_hh

    def add_ln(prefix, dim):                   # nn.LayerNorm defaults: weight=1, bias=0
        raw[prefix + "_g"] = jnp.ones((1, dim), jnp.float32)
        raw[prefix + "_be"] = jnp.zeros((1, dim), jnp.float32)

    # Encoder: LSTM(F->32E), LN(32E), LSTM(32E->8E), LN(8E), LSTM(8E->E)
    add_lstm("e1", F, 32 * E); add_ln("e1", 32 * E)
    add_lstm("e2", 32 * E, 8 * E); add_ln("e2", 8 * E)
    add_lstm("e3", 8 * E, E)                   # encoder LN3 output is discarded
    # Decoder: LSTM(E->E), LN(E), LSTM(E->8E), LN(8E), LSTM(8E->32E), LN(32E)
    add_lstm("d1", E, E); add_ln("d1", E)
    add_lstm("d2", E, 8 * E); add_ln("d2", 8 * E)
    add_lstm("d3", 8 * E, 32 * E); add_ln("d3", 32 * E)
    # Output Linear(32E -> F)
    bound = 1.0 / math.sqrt(32 * E)
    raw["out_w"] = _uniform(next(keys), (32 * E, F), bound)
    raw["out_b"] = _uniform(next(keys), (1, F), bound)

    # ---- pad / gate-reorder for the kernel ----
    def pad_gate_mat(a, hid):
        rows = a.shape[0]
        out = jnp.zeros((HP, 4 * HP), jnp.float32)
        for k_new, k_raw in enumerate(GATE_PERM):
            out = out.at[:rows, k_new * HP:k_new * HP + hid].set(
                a[:, k_raw * hid:(k_raw + 1) * hid])
        return out

    def pad_gate_vec(a, hid):
        out = jnp.zeros((1, 4 * HP), jnp.float32)
        for k_new, k_raw in enumerate(GATE_PERM):
            out = out.at[:, k_new * HP:k_new * HP + hid].set(
                a[:, k_raw * hid:(k_raw + 1) * hid])
        return out

    def pad_vec(a):
        return jnp.zeros((1, HP), jnp.float32).at[:, :a.shape[1]].set(a)

    lstm_layers = [("e1", 32 * E), ("e2", 8 * E), ("e3", E),
                   ("d1", E), ("d2", 8 * E), ("d3", 32 * E)]
    wide_entries = []
    for name, hid in lstm_layers:
        wide_entries.append((name + "_wih", pad_gate_mat(raw[name + "_wih"], hid)))
        wide_entries.append((name + "_whh", pad_gate_mat(raw[name + "_whh"], hid)))
        wide_entries.append((name + "_b", pad_gate_vec(raw[name + "_b"], hid)))

    out_w_p = jnp.zeros((HP, HP), jnp.float32).at[:32 * E, :F].set(raw["out_w"])
    narrow_entries = [("out_w", out_w_p)]
    for name in ["e1", "e2", "d1", "d2", "d3"]:
        narrow_entries.append((name + "_g", pad_vec(raw[name + "_g"])))
        narrow_entries.append((name + "_be", pad_vec(raw[name + "_be"])))
    narrow_entries.append(("out_b", pad_vec(raw["out_b"])))

    layout = {}
    wide_buf = _pack_group(wide_entries, 0, layout)       # (rows, 4*HP) blocks
    narrow_buf = _pack_group(narrow_entries, 1, layout)   # (rows, HP) blocks

    return {"seq_len": seq_len, "n_features": F, "embedding_dim": E, "hp": HP,
            "buffers": (wide_buf, narrow_buf), "layout": layout, "raw": raw}


def _reference_forward(x2d, params):
    """Pure-JAX (non-Pallas) reference on the raw, PyTorch-layout weights."""
    S = params["seq_len"]; E = params["embedding_dim"]
    raw = params["raw"]

    def lstm(x_seq, prefix, H):
        w_ih, w_hh, b = raw[prefix + "_wih"], raw[prefix + "_whh"], raw[prefix + "_b"]
        h = jnp.zeros((1, H), jnp.float32)
        c = jnp.zeros((1, H), jnp.float32)
        outs = []
        for t in range(S):
            g = x_seq[t:t + 1] @ w_ih + h @ w_hh + b
            i = jax.nn.sigmoid(g[:, 0:H])
            f = jax.nn.sigmoid(g[:, H:2 * H])
            gg = jnp.tanh(g[:, 2 * H:3 * H])
            o = jax.nn.sigmoid(g[:, 3 * H:4 * H])
            c = f * c + i * gg
            h = o * jnp.tanh(c)
            outs.append(h)
        return jnp.concatenate(outs, axis=0), h

    def ln(xv, prefix):
        g, be = raw[prefix + "_g"], raw[prefix + "_be"]
        mu = jnp.mean(xv, -1, keepdims=True)
        var = jnp.mean((xv - mu) ** 2, -1, keepdims=True)
        return (xv - mu) / jnp.sqrt(var + EPS) * g + be

    hs, _ = lstm(x2d, "e1", 32 * E); hs = ln(hs, "e1")
    hs, _ = lstm(hs, "e2", 8 * E); hs = ln(hs, "e2")
    _, hn = lstm(hs, "e3", E)
    z = jnp.broadcast_to(hn, (S, E))
    hs, _ = lstm(z, "d1", E); hs = ln(hs, "d1")
    hs, _ = lstm(hs, "d2", 8 * E); hs = ln(hs, "d2")
    hs, _ = lstm(hs, "d3", 32 * E); hs = ln(hs, "d3")
    return hs @ raw["out_w"] + raw["out_b"]


if __name__ == "__main__":
    seq_len, n_features, embedding_dim = 8, 4, 4

    key = jax.random.PRNGKey(0)
    pkey, xkey = jax.random.split(key)
    params = init_params(pkey, seq_len, n_features, embedding_dim)

    # Module input: anything reshapeable to (1, seq_len, n_features)
    x = jax.random.normal(xkey, (1, seq_len, n_features), jnp.float32)

    y = recurrent_autoencoder(x, params)
    y = jax.block_until_ready(y)
    assert y.shape == (1, seq_len, n_features)
    assert bool(jnp.all(jnp.isfinite(y)))

    # Parity: padded / gate-reordered Pallas kernel vs plain-JAX PyTorch-layout math.
    ref = _reference_forward(x.reshape(seq_len, n_features).astype(jnp.float32), params)
    err = float(jnp.max(jnp.abs(y.reshape(seq_len, n_features) - ref)))
    assert err < 1e-3, f"max abs err vs reference = {err}"

    print("KERNEL_OK")
</pallas_src>

<mosaic_0001>
module attributes {stable_mosaic.version = 11 : i64} {
  func.func @kernel(%arg0: memref<8x128xf32, #tpu.memory_space<vmem>>, %arg1: memref<1584x512xf32, #tpu.memory_space<vmem>>, %arg2: memref<216x128xf32, #tpu.memory_space<vmem>>, %arg3: memref<8x128xf32, #tpu.memory_space<vmem>>, %arg4: memref<8x128xf32, #tpu.memory_space<vmem>>) attributes {dimension_semantics = [], scalar_prefetch = 0 : i64, scratch_operands = 1 : i64, tpu.core_type = #tpu.core_type<tc>} {
    %c0 = arith.constant 0 : index
    %c0_0 = arith.constant 0 : index
    %0 = vector.load %arg0[%c0, %c0_0] : memref<8x128xf32, #tpu.memory_space<vmem>>, vector<8x128xf32>
    %c0_1 = arith.constant 0 : index
    %c0_2 = arith.constant 0 : index
    %1 = vector.load %arg1[%c0_1, %c0_2] : memref<1584x512xf32, #tpu.memory_space<vmem>>, vector<128x512xf32>
    %c128 = arith.constant 128 : index
    %c0_3 = arith.constant 0 : index
    %2 = vector.load %arg1[%c128, %c0_3] : memref<1584x512xf32, #tpu.memory_space<vmem>>, vector<128x512xf32>
    %c256 = arith.constant 256 : index
    %c0_4 = arith.constant 0 : index
    %3 = vector.load %arg1[%c256, %c0_4] : memref<1584x512xf32, #tpu.memory_space<vmem>>, vector<1x512xf32>
    %cst = arith.constant dense<0.000000e+00> : vector<8x512xf32>
    %4 = tpu.matmul %0, %1, %cst {dimension_numbers = #tpu.dot_dimension_numbers<[1], [0], [0], [1], [0, 0, 1, 1], [], []>} : vector<8x128xf32>, vector<128x512xf32>, vector<8x512xf32> -> vector<8x512xf32>
    %5 = vector.broadcast %3 : vector<1x512xf32> to vector<8x512xf32>
    %6 = arith.addf %4, %5 : vector<8x512xf32>
    %cst_5 = arith.constant 0.000000e+00 : f32
    %7 = vector.broadcast %cst_5 : f32 to vector<1x128xf32>
    %cst_6 = arith.constant 0.000000e+00 : f32
    %8 = vector.broadcast %cst_6 : f32 to vector<1x128xf32>
    %9 = vector.extract_strided_slice %6 {offsets = [0, 0], sizes = [1, 512], strides = [1, 1]} : vector<8x512xf32> to vector<1x512xf32>
    %cst_7 = arith.constant dense<0.000000e+00> : vector<1x512xf32>
    %10 = tpu.matmul %7, %2, %cst_7 {dimension_numbers = #tpu.dot_dimension_numbers<[1], [0], [0], [1], [0, 0, 1, 1], [], []>} : vector<1x128xf32>, vector<128x512xf32>, vector<1x512xf32> -> vector<1x512xf32>
    %11 = arith.addf %9, %10 : vector<1x512xf32>
    %12 = vector.extract_strided_slice %11 {offsets = [0, 0], sizes = [1, 384], strides = [1, 1]} : vector<1x512xf32> to vector<1x384xf32>
    %13 = arith.negf %12 : vector<1x384xf32>
    %14 = math.exp %13 : vector<1x384xf32>
    %cst_8 = arith.constant 1.000000e+00 : f32
    %15 = vector.broadcast %cst_8 : f32 to vector<1x384xf32>
    %16 = arith.addf %15, %14 : vector<1x384xf32>
    %17 = arith.divf %15, %16 : vector<1x384xf32>
    %18 = vector.extract_strided_slice %11 {offsets = [0, 384], sizes = [1, 128], strides = [1, 1]} : vector<1x512xf32> to vector<1x128xf32>
    %19 = math.tanh %18 : vector<1x128xf32>
    %20 = vector.extract_strided_slice %17 {offsets = [0, 128], sizes = [1, 128], strides = [1, 1]} : vector<1x384xf32> to vector<1x128xf32>
    %21 = arith.mulf %20, %8 : vector<1x128xf32>
    %22 = vector.extract_strided_slice %17 {offsets = [0, 0], sizes = [1, 128], strides = [1, 1]} : vector<1x384xf32> to vector<1x128xf32>
    %23 = arith.mulf %22, %19 : vector<1x128xf32>
    %24 = arith.addf %21, %23 : vector<1x128xf32>
    %25 = vector.extract_strided_slice %17 {offsets = [0, 256], sizes = [1, 128], strides = [1, 1]} : vector<1x384xf32> to vector<1x128xf32>
    %26 = math.tanh %24 : vector<1x128xf32>
    %27 = arith.mulf %25, %26 : vector<1x128xf32>
    %c0_9 = arith.constant 0 : index
    %c0_10 = arith.constant 0 : index
    %28 = vector.load %arg4[%c0_9, %c0_10] : memref<8x128xf32, #tpu.memory_space<vmem>>, vector<1x128xf32>
    tpu.vector_store %arg4[%c0_9, %c0_10], %27 {strides = array<i32>} : memref<8x128xf32, #tpu.memory_space<vmem>>, vector<1x128xf32>,
    %29 = vector.extract_strided_slice %6 {offsets = [1, 0], sizes = [1, 512], strides = [1, 1]} : vector<8x512xf32> to vector<1x512xf32>
    %cst_11 = arith.constant dense<0.000000e+00> : vector<1x512xf32>
    %30 = tpu.matmul %27, %2, %cst_11 {dimension_numbers = #tpu.dot_dimension_numbers<[1], [0], [0], [1], [0, 0, 1, 1], [], []>} : vector<1x128xf32>, vector<128x512xf32>, vector<1x512xf32> -> vector<1x512xf32>
    %31 = arith.addf %29, %30 : vector<1x512xf32>
    %32 = vector.extract_strided_slice %31 {offsets = [0, 0], sizes = [1, 384], strides = [1, 1]} : vector<1x512xf32> to vector<1x384xf32>
    %33 = arith.negf %32 : vector<1x384xf32>
    %34 = math.exp %33 : vector<1x384xf32>
    %cst_12 = arith.constant 1.000000e+00 : f32
    %35 = vector.broadcast %cst_12 : f32 to vector<1x384xf32>
    %36 = arith.addf %35, %34 : vector<1x384xf32>
    %37 = arith.divf %35, %36 : vector<1x384xf32>
    %38 = vector.extract_strided_slice %31 {offsets = [0, 384], sizes = [1, 128], strides = [1, 1]} : vector<1x512xf32> to vector<1x128xf32>
    %39 = math.tanh %38 : vector<1x128xf32>
    %40 = vector.extract_strided_slice %37 {offsets = [0, 128], sizes = [1, 128], strides = [1, 1]} : vector<1x384xf32> to vector<1x128xf32>
    %41 = arith.mulf %40, %24 : vector<1x128xf32>
    %42 = vector.extract_strided_slice %37 {offsets = [0, 0], sizes = [1, 128], strides = [1, 1]} : vector<1x384xf32> to vector<1x128xf32>
    %43 = arith.mulf %42, %39 : vector<1x128xf32>
    %44 = arith.addf %41, %43 : vector<1x128xf32>
    %45 = vector.extract_strided_slice %37 {offsets = [0, 256], sizes = [1, 128], strides = [1, 1]} : vector<1x384xf32> to vector<1x128xf32>
    %46 = math.tanh %44 : vector<1x128xf32>
    %47 = arith.mulf %45, %46 : vector<1x128xf32>
    %c1 = arith.constant 1 : index
    %c0_13 = arith.constant 0 : index
    %48 = vector.load %arg4[%c1, %c0_13] : memref<8x128xf32, #tpu.memory_space<vmem>>, vector<1x128xf32>
    tpu.vector_store %arg4[%c1, %c0_13], %47 {strides = array<i32>} : memref<8x128xf32, #tpu.memory_space<vmem>>, vector<1x128xf32>,
    %49 = vector.extract_strided_slice %6 {offsets = [2, 0], sizes = [1, 512], strides = [1, 1]} : vector<8x512xf32> to vector<1x512xf32>
    %cst_14 = arith.constant dense<0.000000e+00> : vector<1x512xf32>
    %50 = tpu.matmul %47, %2, %cst_14 {dimension_numbers = #tpu.dot_dimension_numbers<[1], [0], [0], [1], [0, 0, 1, 1], [], []>} : vector<1x128xf32>, vector<128x512xf32>, vector<1x512xf32> -> vector<1x512xf32>
    %51 = arith.addf %49, %50 : vector<1x512xf32>
    %52 = vector.extract_strided_slice %51 {offsets = [0, 0], sizes = [1, 384], strides = [1, 1]} : vector<1x512xf32> to vector<1x384xf32>
    %53 = arith.negf %52 : vector<1x384xf32>
    %54 = math.exp %53 : vector<1x384xf32>
    %cst_15 = arith.constant 1.000000e+00 : f32
    %55 = vector.broadcast %cst_15 : f32 to vector<1x384xf32>
    %56 = arith.addf %55, %54 : vector<1x384xf32>
    %57 = arith.divf %55, %56 : vector<1x384xf32>
    %58 = vector.extract_strided_slice %51 {offsets = [0, 384], sizes = [1, 128], strides = [1, 1]} : vector<1x512xf32> to vector<1x128xf32>
    %59 = math.tanh %58 : vector<1x128xf32>
    %60 = vector.extract_strided_slice %57 {offsets = [0, 128], sizes = [1, 128], strides = [1, 1]} : vector<1x384xf32> to vector<1x128xf32>
    %61 = arith.mulf %60, %44 : vector<1x128xf32>
    %62 = vector.extract_strided_slice %57 {offsets = [0, 0], sizes = [1, 128], strides = [1, 1]} : vector<1x384xf32> to vector<1x128xf32>
    %63 = arith.mulf %62, %59 : vector<1x128xf32>
    %64 = arith.addf %61, %63 : vector<1x128xf32>
    %65 = vector.extract_strided_slice %57 {offsets = [0, 256], sizes = [1, 128], strides = [1, 1]} : vector<1x384xf32> to vector<1x128xf32>
    %66 = math.tanh %64 : vector<1x128xf32>
    %67 = arith.mulf %65, %66 : vector<1x128xf32>
    %c2 = arith.constant 2 : index
    %c0_16 = arith.constant 0 : index
    %68 = vector.load %arg4[%c2, %c0_16] : memref<8x128xf32, #tpu.memory_space<vmem>>, vector<1x128xf32>
    tpu.vector_store %arg4[%c2, %c0_16], %67 {strides = array<i32>} : memref<8x128xf32, #tpu.memory_space<vmem>>, vector<1x128xf32>,
    %69 = vector.extract_strided_slice %6 {offsets = [3, 0], sizes = [1, 512], strides = [1, 1]} : vector<8x512xf32> to vector<1x512xf32>
    %cst_17 = arith.constant dense<0.000000e+00> : vector<1x512xf32>
    %70 = tpu.matmul %67, %2, %cst_17 {dimension_numbers = #tpu.dot_dimension_numbers<[1], [0], [0], [1], [0, 0, 1, 1], [], []>} : vector<1x128xf32>, vector<128x512xf32>, vector<1x512xf32> -> vector<1x512xf32>
    %71 = arith.addf %69, %70 : vector<1x512xf32>
    %72 = vector.extract_strided_slice %71 {offsets = [0, 0], sizes = [1, 384], strides = [1, 1]} : vector<1x512xf32> to vector<1x384xf32>
    %73 = arith.negf %72 : vector<1x384xf32>
    %74 = math.exp %73 : vector<1x384xf32>
    %cst_18 = arith.constant 1.000000e+00 : f32
    %75 = vector.broadcast %cst_18 : f32 to vector<1x384xf32>
    %76 = arith.addf %75, %74 : vector<1x384xf32>
    %77 = arith.divf %75, %76 : vector<1x384xf32>
    %78 = vector.extract_strided_slice %71 {offsets = [0, 384], sizes = [1, 128], strides = [1, 1]} : vector<1x512xf32> to vector<1x128xf32>
    %79 = math.tanh %78 : vector<1x128xf32>
    %80 = vector.extract_strided_slice %77 {offsets = [0, 128], sizes = [1, 128], strides = [1, 1]} : vector<1x384xf32> to vector<1x128xf32>
    %81 = arith.mulf %80, %64 : vector<1x128xf32>
    %82 = vector.extract_strided_slice %77 {offsets = [0, 0], sizes = [1, 128], strides = [1, 1]} : vector<1x384xf32> to vector<1x128xf32>
    %83 = arith.mulf %82, %79 : vector<1x128xf32>
    %84 = arith.addf %81, %83 : vector<1x128xf32>
    %85 = vector.extract_strided_slice %77 {offsets = [0, 256], sizes = [1, 128], strides = [1, 1]} : vector<1x384xf32> to vector<1x128xf32>
    %86 = math.tanh %84 : vector<1x128xf32>
    %87 = arith.mulf %85, %86 : vector<1x128xf32>
    %c3 = arith.constant 3 : index
    %c0_19 = arith.constant 0 : index
    %88 = vector.load %arg4[%c3, %c0_19] : memref<8x128xf32, #tpu.memory_space<vmem>>, vector<1x128xf32>
    tpu.vector_store %arg4[%c3, %c0_19], %87 {strides = array<i32>} : memref<8x128xf32, #tpu.memory_space<vmem>>, vector<1x128xf32>,
    %89 = vector.extract_strided_slice %6 {offsets = [4, 0], sizes = [1, 512], strides = [1, 1]} : vector<8x512xf32> to vector<1x512xf32>
    %cst_20 = arith.constant dense<0.000000e+00> : vector<1x512xf32>
    %90 = tpu.matmul %87, %2, %cst_20 {dimension_numbers = #tpu.dot_dimension_numbers<[1], [0], [0], [1], [0, 0, 1, 1], [], []>} : vector<1x128xf32>, vector<128x512xf32>, vector<1x512xf32> -> vector<1x512xf32>
    %91 = arith.addf %89, %90 : vector<1x512xf32>
    %92 = vector.extract_strided_slice %91 {offsets = [0, 0], sizes = [1, 384], strides = [1, 1]} : vector<1x512xf32> to vector<1x384xf32>
    %93 = arith.negf %92 : vector<1x384xf32>
    %94 = math.exp %93 : vector<1x384xf32>
    %cst_21 = arith.constant 1.000000e+00 : f32
    %95 = vector.broadcast %cst_21 : f32 to vector<1x384xf32>
    %96 = arith.addf %95, %94 : vector<1x384xf32>
    %97 = arith.divf %95, %96 : vector<1x384xf32>
    %98 = vector.extract_strided_slice %91 {offsets = [0, 384], sizes = [1, 128], strides = [1, 1]} : vector<1x512xf32> to vector<1x128xf32>
    %99 = math.tanh %98 : vector<1x128xf32>
    %100 = vector.extract_strided_slice %97 {offsets = [0, 128], sizes = [1, 128], strides = [1, 1]} : vector<1x384xf32> to vector<1x128xf32>
    %101 = arith.mulf %100, %84 : vector<1x128xf32>
    %102 = vector.extract_strided_slice %97 {offsets = [0, 0], sizes = [1, 128], strides = [1, 1]} : vector<1x384xf32> to vector<1x128xf32>
    %103 = arith.mulf %102, %99 : vector<1x128xf32>
    %104 = arith.addf %101, %103 : vector<1x128xf32>
    %105 = vector.extract_strided_slice %97 {offsets = [0, 256], sizes = [1, 128], strides = [1, 1]} : vector<1x384xf32> to vector<1x128xf32>
    %106 = math.tanh %104 : vector<1x128xf32>
    %107 = arith.mulf %105, %106 : vector<1x128xf32>
    %c4 = arith.constant 4 : index
    %c0_22 = arith.constant 0 : index
    %108 = vector.load %arg4[%c4, %c0_22] : memref<8x128xf32, #tpu.memory_space<vmem>>, vector<1x128xf32>
    tpu.vector_store %arg4[%c4, %c0_22], %107 {strides = array<i32>} : memref<8x128xf32, #tpu.memory_space<vmem>>, vector<1x128xf32>,
    %109 = vector.extract_strided_slice %6 {offsets = [5, 0], sizes = [1, 512], strides = [1, 1]} : vector<8x512xf32> to vector<1x512xf32>
    %cst_23 = arith.constant dense<0.000000e+00> : vector<1x512xf32>
    %110 = tpu.matmul %107, %2, %cst_23 {dimension_numbers = #tpu.dot_dimension_numbers<[1], [0], [0], [1], [0, 0, 1, 1], [], []>} : vector<1x128xf32>, vector<128x512xf32>, vector<1x512xf32> -> vector<1x512xf32>
    %111 = arith.addf %109, %110 : vector<1x512xf32>
    %112 = vector.extract_strided_slice %111 {offsets = [0, 0], sizes = [1, 384], strides = [1, 1]} : vector<1x512xf32> to vector<1x384xf32>
    %113 = arith.negf %112 : vector<1x384xf32>
    %114 = math.exp %113 : vector<1x384xf32>
    %cst_24 = arith.constant 1.000000e+00 : f32
    %115 = vector.broadcast %cst_24 : f32 to vector<1x384xf32>
    %116 = arith.addf %115, %114 : vector<1x384xf32>
    %117 = arith.divf %115, %116 : vector<1x384xf32>
    %118 = vector.extract_strided_slice %111 {offsets = [0, 384], sizes = [1, 128], strides = [1, 1]} : vector<1x512xf32> to vector<1x128xf32>
    %119 = math.tanh %118 : vector<1x128xf32>
    %120 = vector.extract_strided_slice %117 {offsets = [0, 128], sizes = [1, 128], strides = [1, 1]} : vector<1x384xf32> to vector<1x128xf32>
    %121 = arith.mulf %120, %104 : vector<1x128xf32>
    %122 = vector.extract_strided_slice %117 {offsets = [0, 0], sizes = [1, 128], strides = [1, 1]} : vector<1x384xf32> to vector<1x128xf32>
    %123 = arith.mulf %122, %119 : vector<1x128xf32>
    %124 = arith.addf %121, %123 : vector<1x128xf32>
    %125 = vector.extract_strided_slice %117 {offsets = [0, 256], sizes = [1, 128], strides = [1, 1]} : vector<1x384xf32> to vector<1x128xf32>
    %126 = math.tanh %124 : vector<1x128xf32>
    %127 = arith.mulf %125, %126 : vector<1x128xf32>
    %c5 = arith.constant 5 : index
    %c0_25 = arith.constant 0 : index
    %128 = vector.load %arg4[%c5, %c0_25] : memref<8x128xf32, #tpu.memory_space<vmem>>, vector<1x128xf32>
    tpu.vector_store %arg4[%c5, %c0_25], %127 {strides = array<i32>} : memref<8x128xf32, #tpu.memory_space<vmem>>, vector<1x128xf32>,
    %129 = vector.extract_strided_slice %6 {offsets = [6, 0], sizes = [1, 512], strides = [1, 1]} : vector<8x512xf32> to vector<1x512xf32>
    %cst_26 = arith.constant dense<0.000000e+00> : vector<1x512xf32>
    %130 = tpu.matmul %127, %2, %cst_26 {dimension_numbers = #tpu.dot_dimension_numbers<[1], [0], [0], [1], [0, 0, 1, 1], [], []>} : vector<1x128xf32>, vector<128x512xf32>, vector<1x512xf32> -> vector<1x512xf32>
    %131 = arith.addf %129, %130 : vector<1x512xf32>
    %132 = vector.extract_strided_slice %131 {offsets = [0, 0], sizes = [1, 384], strides = [1, 1]} : vector<1x512xf32> to vector<1x384xf32>
    %133 = arith.negf %132 : vector<1x384xf32>
    %134 = math.exp %133 : vector<1x384xf32>
    %cst_27 = arith.constant 1.000000e+00 : f32
    %135 = vector.broadcast %cst_27 : f32 to vector<1x384xf32>
    %136 = arith.addf %135, %134 : vector<1x384xf32>
    %137 = arith.divf %135, %136 : vector<1x384xf32>
    %138 = vector.extract_strided_slice %131 {offsets = [0, 384], sizes = [1, 128], strides = [1, 1]} : vector<1x512xf32> to vector<1x128xf32>
    %139 = math.tanh %138 : vector<1x128xf32>
    %140 = vector.extract_strided_slice %137 {offsets = [0, 128], sizes = [1, 128], strides = [1, 1]} : vector<1x384xf32> to vector<1x128xf32>
    %141 = arith.mulf %140, %124 : vector<1x128xf32>
    %142 = vector.extract_strided_slice %137 {offsets = [0, 0], sizes = [1, 128], strides = [1, 1]} : vector<1x384xf32> to vector<1x128xf32>
    %143 = arith.mulf %142, %139 : vector<1x128xf32>
    %144 = arith.addf %141, %143 : vector<1x128xf32>
    %145 = vector.extract_strided_slice %137 {offsets = [0, 256], sizes = [1, 128], strides = [1, 1]} : vector<1x384xf32> to vector<1x128xf32>
    %146 = math.tanh %144 : vector<1x128xf32>
    %147 = arith.mulf %145, %146 : vector<1x128xf32>
    %c6 = arith.constant 6 : index
    %c0_28 = arith.constant 0 : index
    %148 = vector.load %arg4[%c6, %c0_28] : memref<8x128xf32, #tpu.memory_space<vmem>>, vector<1x128xf32>
    tpu.vector_store %arg4[%c6, %c0_28], %147 {strides = array<i32>} : memref<8x128xf32, #tpu.memory_space<vmem>>, vector<1x128xf32>,
    %149 = vector.extract_strided_slice %6 {offsets = [7, 0], sizes = [1, 512], strides = [1, 1]} : vector<8x512xf32> to vector<1x512xf32>
    %cst_29 = arith.constant dense<0.000000e+00> : vector<1x512xf32>
    %150 = tpu.matmul %147, %2, %cst_29 {dimension_numbers = #tpu.dot_dimension_numbers<[1], [0], [0], [1], [0, 0, 1, 1], [], []>} : vector<1x128xf32>, vector<128x512xf32>, vector<1x512xf32> -> vector<1x512xf32>
    %151 = arith.addf %149, %150 : vector<1x512xf32>
    %152 = vector.extract_strided_slice %151 {offsets = [0, 0], sizes = [1, 384], strides = [1, 1]} : vector<1x512xf32> to vector<1x384xf32>
    %153 = arith.negf %152 : vector<1x384xf32>
    %154 = math.exp %153 : vector<1x384xf32>
    %cst_30 = arith.constant 1.000000e+00 : f32
    %155 = vector.broadcast %cst_30 : f32 to vector<1x384xf32>
    %156 = arith.addf %155, %154 : vector<1x384xf32>
    %157 = arith.divf %155, %156 : vector<1x384xf32>
    %158 = vector.extract_strided_slice %151 {offsets = [0, 384], sizes = [1, 128], strides = [1, 1]} : vector<1x512xf32> to vector<1x128xf32>
    %159 = math.tanh %158 : vector<1x128xf32>
    %160 = vector.extract_strided_slice %157 {offsets = [0, 128], sizes = [1, 128], strides = [1, 1]} : vector<1x384xf32> to vector<1x128xf32>
    %161 = arith.mulf %160, %144 : vector<1x128xf32>
    %162 = vector.extract_strided_slice %157 {offsets = [0, 0], sizes = [1, 128], strides = [1, 1]} : vector<1x384xf32> to vector<1x128xf32>
    %163 = arith.mulf %162, %159 : vector<1x128xf32>
    %164 = arith.addf %161, %163 : vector<1x128xf32>
    %165 = vector.extract_strided_slice %157 {offsets = [0, 256], sizes = [1, 128], strides = [1, 1]} : vector<1x384xf32> to vector<1x128xf32>
    %166 = math.tanh %164 : vector<1x128xf32>
    %167 = arith.mulf %165, %166 : vector<1x128xf32>
    %c7 = arith.constant 7 : index
    %c0_31 = arith.constant 0 : index
    %168 = vector.load %arg4[%c7, %c0_31] : memref<8x128xf32, #tpu.memory_space<vmem>>, vector<1x128xf32>
    tpu.vector_store %arg4[%c7, %c0_31], %167 {strides = array<i32>} : memref<8x128xf32, #tpu.memory_space<vmem>>, vector<1x128xf32>,
    %c0_32 = arith.constant 0 : index
    %c0_33 = arith.constant 0 : index
    %169 = vector.load %arg4[%c0_32, %c0_33] : memref<8x128xf32, #tpu.memory_space<vmem>>, vector<8x128xf32>
    %c128_34 = arith.constant 128 : index
    %c0_35 = arith.constant 0 : index
    %170 = vector.load %arg2[%c128_34, %c0_35] : memref<216x128xf32, #tpu.memory_space<vmem>>, vector<1x128xf32>
    %c136 = arith.constant 136 : index
    %c0_36 = arith.constant 0 : index
    %171 = vector.load %arg2[%c136, %c0_36] : memref<216x128xf32, #tpu.memory_space<vmem>>, vector<1x128xf32>
    %cst_37 = arith.constant dense<0.000000e+00> : vector<8xf32>
    %172 = vector.multi_reduction <add>, %169, %cst_37 [1] : vector<8x128xf32> to vector<8xf32>
    %173 = vector.shape_cast %172 : vector<8xf32> to vector<8x1xf32>
    %cst_38 = arith.constant 7.812500e-03 : f32
    %174 = vector.broadcast %cst_38 : f32 to vector<8x1xf32>
    %175 = arith.mulf %173, %174 : vector<8x1xf32>
    %176 = arith.mulf %169, %169 : vector<8x128xf32>
    %cst_39 = arith.constant dense<0.000000e+00> : vector<8xf32>
    %177 = vector.multi_reduction <add>, %176, %cst_39 [1] : vector<8x128xf32> to vector<8xf32>
    %178 = vector.shape_cast %177 : vector<8xf32> to vector<8x1xf32>
    %cst_40 = arith.constant 7.812500e-03 : f32
    %179 = vector.broadcast %cst_40 : f32 to vector<8x1xf32>
    %180 = arith.mulf %178, %179 : vector<8x1xf32>
    %181 = arith.mulf %175, %175 : vector<8x1xf32>
    %182 = arith.subf %180, %181 : vector<8x1xf32>
    %cst_41 = arith.constant 9.99999974E-6 : f32
    %183 = vector.broadcast %cst_41 : f32 to vector<8x1xf32>
    %184 = arith.addf %182, %183 : vector<8x1xf32>
    %185 = math.rsqrt %184 : vector<8x1xf32>
    %186 = vector.broadcast %175 : vector<8x1xf32> to vector<8x128xf32>
    %187 = arith.subf %169, %186 : vector<8x128xf32>
    %188 = vector.broadcast %185 : vector<8x1xf32> to vector<8x128xf32>
    %189 = arith.mulf %187, %188 : vector<8x128xf32>
    %190 = vector.broadcast %170 : vector<1x128xf32> to vector<8x128xf32>
    %191 = arith.mulf %189, %190 : vector<8x128xf32>
    %192 = vector.broadcast %171 : vector<1x128xf32> to vector<8x128xf32>
    %193 = arith.addf %191, %192 : vector<8x128xf32>
    %c264 = arith.constant 264 : index
    %c0_42 = arith.constant 0 : index
    %194 = vector.load %arg1[%c264, %c0_42] : memref<1584x512xf32, #tpu.memory_space<vmem>>, vector<128x512xf32>
    %c392 = arith.constant 392 : index
    %c0_43 = arith.constant 0 : index
    %195 = vector.load %arg1[%c392, %c0_43] : memref<1584x512xf32, #tpu.memory_space<vmem>>, vector<128x512xf32>
    %c520 = arith.constant 520 : index
    %c0_44 = arith.constant 0 : index
    %196 = vector.load %arg1[%c520, %c0_44] : memref<1584x512xf32, #tpu.memory_space<vmem>>, vector<1x512xf32>
    %cst_45 = arith.constant dense<0.000000e+00> : vector<8x512xf32>
    %197 = tpu.matmul %193, %194, %cst_45 {dimension_numbers = #tpu.dot_dimension_numbers<[1], [0], [0], [1], [0, 0, 1, 1], [], []>} : vector<8x128xf32>, vector<128x512xf32>, vector<8x512xf32> -> vector<8x512xf32>
    %198 = vector.broadcast %196 : vector<1x512xf32> to vector<8x512xf32>
    %199 = arith.addf %197, %198 : vector<8x512xf32>
    %cst_46 = arith.constant 0.000000e+00 : f32
    %200 = vector.broadcast %cst_46 : f32 to vector<1x128xf32>
    %cst_47 = arith.constant 0.000000e+00 : f32
    %201 = vector.broadcast %cst_47 : f32 to vector<1x128xf32>
    %202 = vector.extract_strided_slice %199 {offsets = [0, 0], sizes = [1, 512], strides = [1, 1]} : vector<8x512xf32> to vector<1x512xf32>
    %cst_48 = arith.constant dense<0.000000e+00> : vector<1x512xf32>
    %203 = tpu.matmul %200, %195, %cst_48 {dimension_numbers = #tpu.dot_dimension_numbers<[1], [0], [0], [1], [0, 0, 1, 1], [], []>} : vector<1x128xf32>, vector<128x512xf32>, vector<1x512xf32> -> vector<1x512xf32>
    %204 = arith.addf %202, %203 : vector<1x512xf32>
    %205 = vector.extract_strided_slice %204 {offsets = [0, 0], sizes = [1, 384], strides = [1, 1]} : vector<1x512xf32> to vector<1x384xf32>
    %206 = arith.negf %205 : vector<1x384xf32>
    %207 = math.exp %206 : vector<1x384xf32>
    %cst_49 = arith.constant 1.000000e+00 : f32
    %208 = vector.broadcast %cst_49 : f32 to vector<1x384xf32>
    %209 = arith.addf %208, %207 : vector<1x384xf32>
    %210 = arith.divf %208, %209 : vector<1x384xf32>
    %211 = vector.extract_strided_slice %204 {offsets = [0, 384], sizes = [1, 128], strides = [1, 1]} : vector<1x512xf32> to vector<1x128xf32>
    %212 = math.tanh %211 : vector<1x128xf32>
    %213 = vector.extract_strided_slice %210 {offsets = [0, 128], sizes = [1, 128], strides = [1, 1]} : vector<1x384xf32> to vector<1x128xf32>
    %214 = arith.mulf %213, %201 : vector<1x128xf32>
    %215 = vector.extract_strided_slice %210 {offsets = [0, 0], sizes = [1, 128], strides = [1, 1]} : vector<1x384xf32> to vector<1x128xf32>
    %216 = arith.mulf %215, %212 : vector<1x128xf32>
    %217 = arith.addf %214, %216 : vector<1x128xf32>
    %218 = vector.extract_strided_slice %210 {offsets = [0, 256], sizes = [1, 128], strides = [1, 1]} : vector<1x384xf32> to vector<1x128xf32>
    %219 = math.tanh %217 : vector<1x128xf32>
    %220 = arith.mulf %218, %219 : vector<1x128xf32>
    %c0_50 = arith.constant 0 : index
    %c0_51 = arith.constant 0 : index
    %221 = vector.load %arg4[%c0_50, %c0_51] : memref<8x128xf32, #tpu.memory_space<vmem>>, vector<1x128xf32>
    tpu.vector_store %arg4[%c0_50, %c0_51], %220 {strides = array<i32>} : memref<8x128xf32, #tpu.memory_space<vmem>>, vector<1x128xf32>,
    %222 = vector.extract_strided_slice %199 {offsets = [1, 0], sizes = [1, 512], strides = [1, 1]} : vector<8x512xf32> to vector<1x512xf32>
    %cst_52 = arith.constant dense<0.000000e+00> : vector<1x512xf32>
    %223 = tpu.matmul %220, %195, %cst_52 {dimension_numbers = #tpu.dot_dimension_numbers<[1], [0], [0], [1], [0, 0, 1, 1], [], []>} : vector<1x128xf32>, vector<128x512xf32>, vector<1x512xf32> -> vector<1x512xf32>
    %224 = arith.addf %222, %223 : vector<1x512xf32>
    %225 = vector.extract_strided_slice %224 {offsets = [0, 0], sizes = [1, 384], strides = [1, 1]} : vector<1x512xf32> to vector<1x384xf32>
    %226 = arith.negf %225 : vector<1x384xf32>
    %227 = math.exp %226 : vector<1x384xf32>
    %cst_53 = arith.constant 1.000000e+00 : f32
    %228 = vector.broadcast %cst_53 : f32 to vector<1x384xf32>
    %229 = arith.addf %228, %227 : vector<1x384xf32>
    %230 = arith.divf %228, %229 : vector<1x384xf32>
    %231 = vector.extract_strided_slice %224 {offsets = [0, 384], sizes = [1, 128], strides = [1, 1]} : vector<1x512xf32> to vector<1x128xf32>
    %232 = math.tanh %231 : vector<1x128xf32>
    %233 = vector.extract_strided_slice %230 {offsets = [0, 128], sizes = [1, 128], strides = [1, 1]} : vector<1x384xf32> to vector<1x128xf32>
    %234 = arith.mulf %233, %217 : vector<1x128xf32>
    %235 = vector.extract_strided_slice %230 {offsets = [0, 0], sizes = [1, 128], strides = [1, 1]} : vector<1x384xf32> to vector<1x128xf32>
    %236 = arith.mulf %235, %232 : vector<1x128xf32>
    %237 = arith.addf %234, %236 : vector<1x128xf32>
    %238 = vector.extract_strided_slice %230 {offsets = [0, 256], sizes = [1, 128], strides = [1, 1]} : vector<1x384xf32> to vector<1x128xf32>
    %239 = math.tanh %237 : vector<1x128xf32>
    %240 = arith.mulf %238, %239 : vector<1x128xf32>
    %c1_54 = arith.constant 1 : index
    %c0_55 = arith.constant 0 : index
    %241 = vector.load %arg4[%c1_54, %c0_55] : memref<8x128xf32, #tpu.memory_space<vmem>>, vector<1x128xf32>
    tpu.vector_store %arg4[%c1_54, %c0_55], %240 {strides = array<i32>} : memref<8x128xf32, #tpu.memory_space<vmem>>, vector<1x128xf32>,
    %242 = vector.extract_strided_slice %199 {offsets = [2, 0], sizes = [1, 512], strides = [1, 1]} : vector<8x512xf32> to vector<1x512xf32>
    %cst_56 = arith.constant dense<0.000000e+00> : vector<1x512xf32>
    %243 = tpu.matmul %240, %195, %cst_56 {dimension_numbers = #tpu.dot_dimension_numbers<[1], [0], [0], [1], [0, 0, 1, 1], [], []>} : vector<1x128xf32>, vector<128x512xf32>, vector<1x512xf32> -> vector<1x512xf32>
    %244 = arith.addf %242, %243 : vector<1x512xf32>
    %245 = vector.extract_strided_slice %244 {offsets = [0, 0], sizes = [1, 384], strides = [1, 1]} : vector<1x512xf32> to vector<1x384xf32>
    %246 = arith.negf %245 : vector<1x384xf32>
    %247 = math.exp %246 : vector<1x384xf32>
    %cst_57 = arith.constant 1.000000e+00 : f32
    %248 = vector.broadcast %cst_57 : f32 to vector<1x384xf32>
    %249 = arith.addf %248, %247 : vector<1x384xf32>
    %250 = arith.divf %248, %249 : vector<1x384xf32>
    %251 = vector.extract_strided_slice %244 {offsets = [0, 384], sizes = [1, 128], strides = [1, 1]} : vector<1x512xf32> to vector<1x128xf32>
    %252 = math.tanh %251 : vector<1x128xf32>
    %253 = vector.extract_strided_slice %250 {offsets = [0, 128], sizes = [1, 128], strides = [1, 1]} : vector<1x384xf32> to vector<1x128xf32>
    %254 = arith.mulf %253, %237 : vector<1x128xf32>
    %255 = vector.extract_strided_slice %250 {offsets = [0, 0], sizes = [1, 128], strides = [1, 1]} : vector<1x384xf32> to vector<1x128xf32>
    %256 = arith.mulf %255, %252 : vector<1x128xf32>
    %257 = arith.addf %254, %256 : vector<1x128xf32>
    %258 = vector.extract_strided_slice %250 {offsets = [0, 256], sizes = [1, 128], strides = [1, 1]} : vector<1x384xf32> to vector<1x128xf32>
    %259 = math.tanh %257 : vector<1x128xf32>
    %260 = arith.mulf %258, %259 : vector<1x128xf32>
    %c2_58 = arith.constant 2 : index
    %c0_59 = arith.constant 0 : index
    %261 = vector.load %arg4[%c2_58, %c0_59] : memref<8x128xf32, #tpu.memory_space<vmem>>, vector<1x128xf32>
    tpu.vector_store %arg4[%c2_58, %c0_59], %260 {strides = array<i32>} : memref<8x128xf32, #tpu.memory_space<vmem>>, vector<1x128xf32>,
    %262 = vector.extract_strided_slice %199 {offsets = [3, 0], sizes = [1, 512], strides = [1, 1]} : vector<8x512xf32> to vector<1x512xf32>
    %cst_60 = arith.constant dense<0.000000e+00> : vector<1x512xf32>
    %263 = tpu.matmul %260, %195, %cst_60 {dimension_numbers = #tpu.dot_dimension_numbers<[1], [0], [0], [1], [0, 0, 1, 1], [], []>} : vector<1x128xf32>, vector<128x512xf32>, vector<1x512xf32> -> vector<1x512xf32>
    %264 = arith.addf %262, %263 : vector<1x512xf32>
    %265 = vector.extract_strided_slice %264 {offsets = [0, 0], sizes = [1, 384], strides = [1, 1]} : vector<1x512xf32> to vector<1x384xf32>
    %266 = arith.negf %265 : vector<1x384xf32>
    %267 = math.exp %266 : vector<1x384xf32>
    %cst_61 = arith.constant 1.000000e+00 : f32
    %268 = vector.broadcast %cst_61 : f32 to vector<1x384xf32>
    %269 = arith.addf %268, %267 : vector<1x384xf32>
    %270 = arith.divf %268, %269 : vector<1x384xf32>
    %271 = vector.extract_strided_slice %264 {offsets = [0, 384], sizes = [1, 128], strides = [1, 1]} : vector<1x512xf32> to vector<1x128xf32>
    %272 = math.tanh %271 : vector<1x128xf32>
    %273 = vector.extract_strided_slice %270 {offsets = [0, 128], sizes = [1, 128], strides = [1, 1]} : vector<1x384xf32> to vector<1x128xf32>
    %274 = arith.mulf %273, %257 : vector<1x128xf32>
    %275 = vector.extract_strided_slice %270 {offsets = [0, 0], sizes = [1, 128], strides = [1, 1]} : vector<1x384xf32> to vector<1x128xf32>
    %276 = arith.mulf %275, %272 : vector<1x128xf32>
    %277 = arith.addf %274, %276 : vector<1x128xf32>
    %278 = vector.extract_strided_slice %270 {offsets = [0, 256], sizes = [1, 128], strides = [1, 1]} : vector<1x384xf32> to vector<1x128xf32>
    %279 = math.tanh %277 : vector<1x128xf32>
    %280 = arith.mulf %278, %279 : vector<1x128xf32>
    %c3_62 = arith.constant 3 : index
    %c0_63 = arith.constant 0 : index
    %281 = vector.load %arg4[%c3_62, %c0_63] : memref<8x128xf32, #tpu.memory_space<vmem>>, vector<1x128xf32>
    tpu.vector_store %arg4[%c3_62, %c0_63], %280 {strides = array<i32>} : memref<8x128xf32, #tpu.memory_space<vmem>>, vector<1x128xf32>,
    %282 = vector.extract_strided_slice %199 {offsets = [4, 0], sizes = [1, 512], strides = [1, 1]} : vector<8x512xf32> to vector<1x512xf32>
    %cst_64 = arith.constant dense<0.000000e+00> : vector<1x512xf32>
    %283 = tpu.matmul %280, %195, %cst_64 {dimension_numbers = #tpu.dot_dimension_numbers<[1], [0], [0], [1], [0, 0, 1, 1], [], []>} : vector<1x128xf32>, vector<128x512xf32>, vector<1x512xf32> -> vector<1x512xf32>
    %284 = arith.addf %282, %283 : vector<1x512xf32>
    %285 = vector.extract_strided_slice %284 {offsets = [0, 0], sizes = [1, 384], strides = [1, 1]} : vector<1x512xf32> to vector<1x384xf32>
    %286 = arith.negf %285 : vector<1x384xf32>
    %287 = math.exp %286 : vector<1x384xf32>
    %cst_65 = arith.constant 1.000000e+00 : f32
    %288 = vector.broadcast %cst_65 : f32 to vector<1x384xf32>
    %289 = arith.addf %288, %287 : vector<1x384xf32>
    %290 = arith.divf %288, %289 : vector<1x384xf32>
    %291 = vector.extract_strided_slice %284 {offsets = [0, 384], sizes = [1, 128], strides = [1, 1]} : vector<1x512xf32> to vector<1x128xf32>
    %292 = math.tanh %291 : vector<1x128xf32>
    %293 = vector.extract_strided_slice %290 {offsets = [0, 128], sizes = [1, 128], strides = [1, 1]} : vector<1x384xf32> to vector<1x128xf32>
    %294 = arith.mulf %293, %277 : vector<1x128xf32>
    %295 = vector.extract_strided_slice %290 {offsets = [0, 0], sizes = [1, 128], strides = [1, 1]} : vector<1x384xf32> to vector<1x128xf32>
    %296 = arith.mulf %295, %292 : vector<1x128xf32>
    %297 = arith.addf %294, %296 : vector<1x128xf32>
    %298 = vector.extract_strided_slice %290 {offsets = [0, 256], sizes = [1, 128], strides = [1, 1]} : vector<1x384xf32> to vector<1x128xf32>
    %299 = math.tanh %297 : vector<1x128xf32>
    %300 = arith.mulf %298, %299 : vector<1x128xf32>
    %c4_66 = arith.constant 4 : index
    %c0_67 = arith.constant 0 : index
    %301 = vector.load %arg4[%c4_66, %c0_67] : memref<8x128xf32, #tpu.memory_space<vmem>>, vector<1x128xf32>
    tpu.vector_store %arg4[%c4_66, %c0_67], %300 {strides = array<i32>} : memref<8x128xf32, #tpu.memory_space<vmem>>, vector<1x128xf32>,
    %302 = vector.extract_strided_slice %199 {offsets = [5, 0], sizes = [1, 512], strides = [1, 1]} : vector<8x512xf32> to vector<1x512xf32>
    %cst_68 = arith.constant dense<0.000000e+00> : vector<1x512xf32>
    %303 = tpu.matmul %300, %195, %cst_68 {dimension_numbers = #tpu.dot_dimension_numbers<[1], [0], [0], [1], [0, 0, 1, 1], [], []>} : vector<1x128xf32>, vector<128x512xf32>, vector<1x512xf32> -> vector<1x512xf32>
    %304 = arith.addf %302, %303 : vector<1x512xf32>
    %305 = vector.extract_strided_slice %304 {offsets = [0, 0], sizes = [1, 384], strides = [1, 1]} : vector<1x512xf32> to vector<1x384xf32>
    %306 = arith.negf %305 : vector<1x384xf32>
    %307 = math.exp %306 : vector<1x384xf32>
    %cst_69 = arith.constant 1.000000e+00 : f32
    %308 = vector.broadcast %cst_69 : f32 to vector<1x384xf32>
    %309 = arith.addf %308, %307 : vector<1x384xf32>
    %310 = arith.divf %308, %309 : vector<1x384xf32>
    %311 = vector.extract_strided_slice %304 {offsets = [0, 384], sizes = [1, 128], strides = [1, 1]} : vector<1x512xf32> to vector<1x128xf32>
    %312 = math.tanh %311 : vector<1x128xf32>
    %313 = vector.extract_strided_slice %310 {offsets = [0, 128], sizes = [1, 128], strides = [1, 1]} : vector<1x384xf32> to vector<1x128xf32>
    %314 = arith.mulf %313, %297 : vector<1x128xf32>
    %315 = vector.extract_strided_slice %310 {offsets = [0, 0], sizes = [1, 128], strides = [1, 1]} : vector<1x384xf32> to vector<1x128xf32>
    %316 = arith.mulf %315, %312 : vector<1x128xf32>
    %317 = arith.addf %314, %316 : vector<1x128xf32>
    %318 = vector.extract_strided_slice %310 {offsets = [0, 256], sizes = [1, 128], strides = [1, 1]} : vector<1x384xf32> to vector<1x128xf32>
    %319 = math.tanh %317 : vector<1x128xf32>
    %320 = arith.mulf %318, %319 : vector<1x128xf32>
    %c5_70 = arith.constant 5 : index
    %c0_71 = arith.constant 0 : index
    %321 = vector.load %arg4[%c5_70, %c0_71] : memref<8x128xf32, #tpu.memory_space<vmem>>, vector<1x128xf32>
    tpu.vector_store %arg4[%c5_70, %c0_71], %320 {strides = array<i32>} : memref<8x128xf32, #tpu.memory_space<vmem>>, vector<1x128xf32>,
    %322 = vector.extract_strided_slice %199 {offsets = [6, 0], sizes = [1, 512], strides = [1, 1]} : vector<8x512xf32> to vector<1x512xf32>
    %cst_72 = arith.constant dense<0.000000e+00> : vector<1x512xf32>
    %323 = tpu.matmul %320, %195, %cst_72 {dimension_numbers = #tpu.dot_dimension_numbers<[1], [0], [0], [1], [0, 0, 1, 1], [], []>} : vector<1x128xf32>, vector<128x512xf32>, vector<1x512xf32> -> vector<1x512xf32>
    %324 = arith.addf %322, %323 : vector<1x512xf32>
    %325 = vector.extract_strided_slice %324 {offsets = [0, 0], sizes = [1, 384], strides = [1, 1]} : vector<1x512xf32> to vector<1x384xf32>
    %326 = arith.negf %325 : vector<1x384xf32>
    %327 = math.exp %326 : vector<1x384xf32>
    %cst_73 = arith.constant 1.000000e+00 : f32
    %328 = vector.broadcast %cst_73 : f32 to vector<1x384xf32>
    %329 = arith.addf %328, %327 : vector<1x384xf32>
    %330 = arith.divf %328, %329 : vector<1x384xf32>
    %331 = vector.extract_strided_slice %324 {offsets = [0, 384], sizes = [1, 128], strides = [1, 1]} : vector<1x512xf32> to vector<1x128xf32>
    %332 = math.tanh %331 : vector<1x128xf32>
    %333 = vector.extract_strided_slice %330 {offsets = [0, 128], sizes = [1, 128], strides = [1, 1]} : vector<1x384xf32> to vector<1x128xf32>
    %334 = arith.mulf %333, %317 : vector<1x128xf32>
    %335 = vector.extract_strided_slice %330 {offsets = [0, 0], sizes = [1, 128], strides = [1, 1]} : vector<1x384xf32> to vector<1x128xf32>
    %336 = arith.mulf %335, %332 : vector<1x128xf32>
    %337 = arith.addf %334, %336 : vector<1x128xf32>
    %338 = vector.extract_strided_slice %330 {offsets = [0, 256], sizes = [1, 128], strides = [1, 1]} : vector<1x384xf32> to vector<1x128xf32>
    %339 = math.tanh %337 : vector<1x128xf32>
    %340 = arith.mulf %338, %339 : vector<1x128xf32>
    %c6_74 = arith.constant 6 : index
    %c0_75 = arith.constant 0 : index
    %341 = vector.load %arg4[%c6_74, %c0_75] : memref<8x128xf32, #tpu.memory_space<vmem>>, vector<1x128xf32>
    tpu.vector_store %arg4[%c6_74, %c0_75], %340 {strides = array<i32>} : memref<8x128xf32, #tpu.memory_space<vmem>>, vector<1x128xf32>,
    %342 = vector.extract_strided_slice %199 {offsets = [7, 0], sizes = [1, 512], strides = [1, 1]} : vector<8x512xf32> to vector<1x512xf32>
    %cst_76 = arith.constant dense<0.000000e+00> : vector<1x512xf32>
    %343 = tpu.matmul %340, %195, %cst_76 {dimension_numbers = #tpu.dot_dimension_numbers<[1], [0], [0], [1], [0, 0, 1, 1], [], []>} : vector<1x128xf32>, vector<128x512xf32>, vector<1x512xf32> -> vector<1x512xf32>
    %344 = arith.addf %342, %343 : vector<1x512xf32>
    %345 = vector.extract_strided_slice %344 {offsets = [0, 0], sizes = [1, 384], strides = [1, 1]} : vector<1x512xf32> to vector<1x384xf32>
    %346 = arith.negf %345 : vector<1x384xf32>
    %347 = math.exp %346 : vector<1x384xf32>
    %cst_77 = arith.constant 1.000000e+00 : f32
    %348 = vector.broadcast %cst_77 : f32 to vector<1x384xf32>
    %349 = arith.addf %348, %347 : vector<1x384xf32>
    %350 = arith.divf %348, %349 : vector<1x384xf32>
    %351 = vector.extract_strided_slice %344 {offsets = [0, 384], sizes = [1, 128], strides = [1, 1]} : vector<1x512xf32> to vector<1x128xf32>
    %352 = math.tanh %351 : vector<1x128xf32>
    %353 = vector.extract_strided_slice %350 {offsets = [0, 128], sizes = [1, 128], strides = [1, 1]} : vector<1x384xf32> to vector<1x128xf32>
    %354 = arith.mulf %353, %337 : vector<1x128xf32>
    %355 = vector.extract_strided_slice %350 {offsets = [0, 0], sizes = [1, 128], strides = [1, 1]} : vector<1x384xf32> to vector<1x128xf32>
    %356 = arith.mulf %355, %352 : vector<1x128xf32>
    %357 = arith.addf %354, %356 : vector<1x128xf32>
    %358 = vector.extract_strided_slice %350 {offsets = [0, 256], sizes = [1, 128], strides = [1, 1]} : vector<1x384xf32> to vector<1x128xf32>
    %359 = math.tanh %357 : vector<1x128xf32>
    %360 = arith.mulf %358, %359 : vector<1x128xf32>
    %c7_78 = arith.constant 7 : index
    %c0_79 = arith.constant 0 : index
    %361 = vector.load %arg4[%c7_78, %c0_79] : memref<8x128xf32, #tpu.memory_space<vmem>>, vector<1x128xf32>
    tpu.vector_store %arg4[%c7_78, %c0_79], %360 {strides = array<i32>} : memref<8x128xf32, #tpu.memory_space<vmem>>, vector<1x128xf32>,
    %c0_80 = arith.constant 0 : index
    %c0_81 = arith.constant 0 : index
    %362 = vector.load %arg4[%c0_80, %c0_81] : memref<8x128xf32, #tpu.memory_space<vmem>>, vector<8x128xf32>
    %c144 = arith.constant 144 : index
    %c0_82 = arith.constant 0 : index
    %363 = vector.load %arg2[%c144, %c0_82] : memref<216x128xf32, #tpu.memory_space<vmem>>, vector<1x128xf32>
    %c152 = arith.constant 152 : index
    %c0_83 = arith.constant 0 : index
    %364 = vector.load %arg2[%c152, %c0_83] : memref<216x128xf32, #tpu.memory_space<vmem>>, vector<1x128xf32>
    %cst_84 = arith.constant dense<0.000000e+00> : vector<8xf32>
    %365 = vector.multi_reduction <add>, %362, %cst_84 [1] : vector<8x128xf32> to vector<8xf32>
    %366 = vector.shape_cast %365 : vector<8xf32> to vector<8x1xf32>
    %cst_85 = arith.constant 3.125000e-02 : f32
    %367 = vector.broadcast %cst_85 : f32 to vector<8x1xf32>
    %368 = arith.mulf %366, %367 : vector<8x1xf32>
    %369 = arith.mulf %362, %362 : vector<8x128xf32>
    %cst_86 = arith.constant dense<0.000000e+00> : vector<8xf32>
    %370 = vector.multi_reduction <add>, %369, %cst_86 [1] : vector<8x128xf32> to vector<8xf32>
    %371 = vector.shape_cast %370 : vector<8xf32> to vector<8x1xf32>
    %cst_87 = arith.constant 3.125000e-02 : f32
    %372 = vector.broadcast %cst_87 : f32 to vector<8x1xf32>
    %373 = arith.mulf %371, %372 : vector<8x1xf32>
    %374 = arith.mulf %368, %368 : vector<8x1xf32>
    %375 = arith.subf %373, %374 : vector<8x1xf32>
    %cst_88 = arith.constant 9.99999974E-6 : f32
    %376 = vector.broadcast %cst_88 : f32 to vector<8x1xf32>
    %377 = arith.addf %375, %376 : vector<8x1xf32>
    %378 = math.rsqrt %377 : vector<8x1xf32>
    %379 = vector.broadcast %368 : vector<8x1xf32> to vector<8x128xf32>
    %380 = arith.subf %362, %379 : vector<8x128xf32>
    %381 = vector.broadcast %378 : vector<8x1xf32> to vector<8x128xf32>
    %382 = arith.mulf %380, %381 : vector<8x128xf32>
    %383 = vector.broadcast %363 : vector<1x128xf32> to vector<8x128xf32>
    %384 = arith.mulf %382, %383 : vector<8x128xf32>
    %385 = vector.broadcast %364 : vector<1x128xf32> to vector<8x128xf32>
    %386 = arith.addf %384, %385 : vector<8x128xf32>
    %c528 = arith.constant 528 : index
    %c0_89 = arith.constant 0 : index
    %387 = vector.load %arg1[%c528, %c0_89] : memref<1584x512xf32, #tpu.memory_space<vmem>>, vector<128x512xf32>
    %c656 = arith.constant 656 : index
    %c0_90 = arith.constant 0 : index
    %388 = vector.load %arg1[%c656, %c0_90] : memref<1584x512xf32, #tpu.memory_space<vmem>>, vector<128x512xf32>
    %c784 = arith.constant 784 : index
    %c0_91 = arith.constant 0 : index
    %389 = vector.load %arg1[%c784, %c0_91] : memref<1584x512xf32, #tpu.memory_space<vmem>>, vector<1x512xf32>
    %cst_92 = arith.constant dense<0.000000e+00> : vector<8x512xf32>
    %390 = tpu.matmul %386, %387, %cst_92 {dimension_numbers = #tpu.dot_dimension_numbers<[1], [0], [0], [1], [0, 0, 1, 1], [], []>} : vector<8x128xf32>, vector<128x512xf32>, vector<8x512xf32> -> vector<8x512xf32>
    %391 = vector.broadcast %389 : vector<1x512xf32> to vector<8x512xf32>
    %392 = arith.addf %390, %391 : vector<8x512xf32>
    %cst_93 = arith.constant 0.000000e+00 : f32
    %393 = vector.broadcast %cst_93 : f32 to vector<1x128xf32>
    %cst_94 = arith.constant 0.000000e+00 : f32
    %394 = vector.broadcast %cst_94 : f32 to vector<1x128xf32>
    %395 = vector.extract_strided_slice %392 {offsets = [0, 0], sizes = [1, 512], strides = [1, 1]} : vector<8x512xf32> to vector<1x512xf32>
    %cst_95 = arith.constant dense<0.000000e+00> : vector<1x512xf32>
    %396 = tpu.matmul %393, %388, %cst_95 {dimension_numbers = #tpu.dot_dimension_numbers<[1], [0], [0], [1], [0, 0, 1, 1], [], []>} : vector<1x128xf32>, vector<128x512xf32>, vector<1x512xf32> -> vector<1x512xf32>
    %397 = arith.addf %395, %396 : vector<1x512xf32>
    %398 = vector.extract_strided_slice %397 {offsets = [0, 0], sizes = [1, 384], strides = [1, 1]} : vector<1x512xf32> to vector<1x384xf32>
    %399 = arith.negf %398 : vector<1x384xf32>
    %400 = math.exp %399 : vector<1x384xf32>
    %cst_96 = arith.constant 1.000000e+00 : f32
    %401 = vector.broadcast %cst_96 : f32 to vector<1x384xf32>
    %402 = arith.addf %401, %400 : vector<1x384xf32>
    %403 = arith.divf %401, %402 : vector<1x384xf32>
    %404 = vector.extract_strided_slice %397 {offsets = [0, 384], sizes = [1, 128], strides = [1, 1]} : vector<1x512xf32> to vector<1x128xf32>
    %405 = math.tanh %404 : vector<1x128xf32>
    %406 = vector.extract_strided_slice %403 {offsets = [0, 128], sizes = [1, 128], strides = [1, 1]} : vector<1x384xf32> to vector<1x128xf32>
    %407 = arith.mulf %406, %394 : vector<1x128xf32>
    %408 = vector.extract_strided_slice %403 {offsets = [0, 0], sizes = [1, 128], strides = [1, 1]} : vector<1x384xf32> to vector<1x128xf32>
    %409 = arith.mulf %408, %405 : vector<1x128xf32>
    %410 = arith.addf %407, %409 : vector<1x128xf32>
    %411 = vector.extract_strided_slice %403 {offsets = [0, 256], sizes = [1, 128], strides = [1, 1]} : vector<1x384xf32> to vector<1x128xf32>
    %412 = math.tanh %410 : vector<1x128xf32>
    %413 = arith.mulf %411, %412 : vector<1x128xf32>
    %414 = vector.extract_strided_slice %392 {offsets = [1, 0], sizes = [1, 512], strides = [1, 1]} : vector<8x512xf32> to vector<1x512xf32>
    %cst_97 = arith.constant dense<0.000000e+00> : vector<1x512xf32>
    %415 = tpu.matmul %413, %388, %cst_97 {dimension_numbers = #tpu.dot_dimension_numbers<[1], [0], [0], [1], [0, 0, 1, 1], [], []>} : vector<1x128xf32>, vector<128x512xf32>, vector<1x512xf32> -> vector<1x512xf32>
    %416 = arith.addf %414, %415 : vector<1x512xf32>
    %417 = vector.extract_strided_slice %416 {offsets = [0, 0], sizes = [1, 384], strides = [1, 1]} : vector<1x512xf32> to vector<1x384xf32>
    %418 = arith.negf %417 : vector<1x384xf32>
    %419 = math.exp %418 : vector<1x384xf32>
    %cst_98 = arith.constant 1.000000e+00 : f32
    %420 = vector.broadcast %cst_98 : f32 to vector<1x384xf32>
    %421 = arith.addf %420, %419 : vector<1x384xf32>
    %422 = arith.divf %420, %421 : vector<1x384xf32>
    %423 = vector.extract_strided_slice %416 {offsets = [0, 384], sizes = [1, 128], strides = [1, 1]} : vector<1x512xf32> to vector<1x128xf32>
    %424 = math.tanh %423 : vector<1x128xf32>
    %425 = vector.extract_strided_slice %422 {offsets = [0, 128], sizes = [1, 128], strides = [1, 1]} : vector<1x384xf32> to vector<1x128xf32>
    %426 = arith.mulf %425, %410 : vector<1x128xf32>
    %427 = vector.extract_strided_slice %422 {offsets = [0, 0], sizes = [1, 128], strides = [1, 1]} : vector<1x384xf32> to vector<1x128xf32>
    %428 = arith.mulf %427, %424 : vector<1x128xf32>
    %429 = arith.addf %426, %428 : vector<1x128xf32>
    %430 = vector.extract_strided_slice %422 {offsets = [0, 256], sizes = [1, 128], strides = [1, 1]} : vector<1x384xf32> to vector<1x128xf32>
    %431 = math.tanh %429 : vector<1x128xf32>
    %432 = arith.mulf %430, %431 : vector<1x128xf32>
    %433 = vector.extract_strided_slice %392 {offsets = [2, 0], sizes = [1, 512], strides = [1, 1]} : vector<8x512xf32> to vector<1x512xf32>
    %cst_99 = arith.constant dense<0.000000e+00> : vector<1x512xf32>
    %434 = tpu.matmul %432, %388, %cst_99 {dimension_numbers = #tpu.dot_dimension_numbers<[1], [0], [0], [1], [0, 0, 1, 1], [], []>} : vector<1x128xf32>, vector<128x512xf32>, vector<1x512xf32> -> vector<1x512xf32>
    %435 = arith.addf %433, %434 : vector<1x512xf32>
    %436 = vector.extract_strided_slice %435 {offsets = [0, 0], sizes = [1, 384], strides = [1, 1]} : vector<1x512xf32> to vector<1x384xf32>
    %437 = arith.negf %436 : vector<1x384xf32>
    %438 = math.exp %437 : vector<1x384xf32>
    %cst_100 = arith.constant 1.000000e+00 : f32
    %439 = vector.broadcast %cst_100 : f32 to vector<1x384xf32>
    %440 = arith.addf %439, %438 : vector<1x384xf32>
    %441 = arith.divf %439, %440 : vector<1x384xf32>
    %442 = vector.extract_strided_slice %435 {offsets = [0, 384], sizes = [1, 128], strides = [1, 1]} : vector<1x512xf32> to vector<1x128xf32>
    %443 = math.tanh %442 : vector<1x128xf32>
    %444 = vector.extract_strided_slice %441 {offsets = [0, 128], sizes = [1, 128], strides = [1, 1]} : vector<1x384xf32> to vector<1x128xf32>
    %445 = arith.mulf %444, %429 : vector<1x128xf32>
    %446 = vector.extract_strided_slice %441 {offsets = [0, 0], sizes = [1, 128], strides = [1, 1]} : vector<1x384xf32> to vector<1x128xf32>
    %447 = arith.mulf %446, %443 : vector<1x128xf32>
    %448 = arith.addf %445, %447 : vector<1x128xf32>
    %449 = vector.extract_strided_slice %441 {offsets = [0, 256], sizes = [1, 128], strides = [1, 1]} : vector<1x384xf32> to vector<1x128xf32>
    %450 = math.tanh %448 : vector<1x128xf32>
    %451 = arith.mulf %449, %450 : vector<1x128xf32>
    %452 = vector.extract_strided_slice %392 {offsets = [3, 0], sizes = [1, 512], strides = [1, 1]} : vector<8x512xf32> to vector<1x512xf32>
    %cst_101 = arith.constant dense<0.000000e+00> : vector<1x512xf32>
    %453 = tpu.matmul %451, %388, %cst_101 {dimension_numbers = #tpu.dot_dimension_numbers<[1], [0], [0], [1], [0, 0, 1, 1], [], []>} : vector<1x128xf32>, vector<128x512xf32>, vector<1x512xf32> -> vector<1x512xf32>
    %454 = arith.addf %452, %453 : vector<1x512xf32>
    %455 = vector.extract_strided_slice %454 {offsets = [0, 0], sizes = [1, 384], strides = [1, 1]} : vector<1x512xf32> to vector<1x384xf32>
    %456 = arith.negf %455 : vector<1x384xf32>
    %457 = math.exp %456 : vector<1x384xf32>
    %cst_102 = arith.constant 1.000000e+00 : f32
    %458 = vector.broadcast %cst_102 : f32 to vector<1x384xf32>
    %459 = arith.addf %458, %457 : vector<1x384xf32>
    %460 = arith.divf %458, %459 : vector<1x384xf32>
    %461 = vector.extract_strided_slice %454 {offsets = [0, 384], sizes = [1, 128], strides = [1, 1]} : vector<1x512xf32> to vector<1x128xf32>
    %462 = math.tanh %461 : vector<1x128xf32>
    %463 = vector.extract_strided_slice %460 {offsets = [0, 128], sizes = [1, 128], strides = [1, 1]} : vector<1x384xf32> to vector<1x128xf32>
    %464 = arith.mulf %463, %448 : vector<1x128xf32>
    %465 = vector.extract_strided_slice %460 {offsets = [0, 0], sizes = [1, 128], strides = [1, 1]} : vector<1x384xf32> to vector<1x128xf32>
    %466 = arith.mulf %465, %462 : vector<1x128xf32>
    %467 = arith.addf %464, %466 : vector<1x128xf32>
    %468 = vector.extract_strided_slice %460 {offsets = [0, 256], sizes = [1, 128], strides = [1, 1]} : vector<1x384xf32> to vector<1x128xf32>
    %469 = math.tanh %467 : vector<1x128xf32>
    %470 = arith.mulf %468, %469 : vector<1x128xf32>
    %471 = vector.extract_strided_slice %392 {offsets = [4, 0], sizes = [1, 512], strides = [1, 1]} : vector<8x512xf32> to vector<1x512xf32>
    %cst_103 = arith.constant dense<0.000000e+00> : vector<1x512xf32>
    %472 = tpu.matmul %470, %388, %cst_103 {dimension_numbers = #tpu.dot_dimension_numbers<[1], [0], [0], [1], [0, 0, 1, 1], [], []>} : vector<1x128xf32>, vector<128x512xf32>, vector<1x512xf32> -> vector<1x512xf32>
    %473 = arith.addf %471, %472 : vector<1x512xf32>
    %474 = vector.extract_strided_slice %473 {offsets = [0, 0], sizes = [1, 384], strides = [1, 1]} : vector<1x512xf32> to vector<1x384xf32>
    %475 = arith.negf %474 : vector<1x384xf32>
    %476 = math.exp %475 : vector<1x384xf32>
    %cst_104 = arith.constant 1.000000e+00 : f32
    %477 = vector.broadcast %cst_104 : f32 to vector<1x384xf32>
    %478 = arith.addf %477, %476 : vector<1x384xf32>
    %479 = arith.divf %477, %478 : vector<1x384xf32>
    %480 = vector.extract_strided_slice %473 {offsets = [0, 384], sizes = [1, 128], strides = [1, 1]} : vector<1x512xf32> to vector<1x128xf32>
    %481 = math.tanh %480 : vector<1x128xf32>
    %482 = vector.extract_strided_slice %479 {offsets = [0, 128], sizes = [1, 128], strides = [1, 1]} : vector<1x384xf32> to vector<1x128xf32>
    %483 = arith.mulf %482, %467 : vector<1x128xf32>
    %484 = vector.extract_strided_slice %479 {offsets = [0, 0], sizes = [1, 128], strides = [1, 1]} : vector<1x384xf32> to vector<1x128xf32>
    %485 = arith.mulf %484, %481 : vector<1x128xf32>
    %486 = arith.addf %483, %485 : vector<1x128xf32>
    %487 = vector.extract_strided_slice %479 {offsets = [0, 256], sizes = [1, 128], strides = [1, 1]} : vector<1x384xf32> to vector<1x128xf32>
    %488 = math.tanh %486 : vector<1x128xf32>
    %489 = arith.mulf %487, %488 : vector<1x128xf32>
    %490 = vector.extract_strided_slice %392 {offsets = [5, 0], sizes = [1, 512], strides = [1, 1]} : vector<8x512xf32> to vector<1x512xf32>
    %cst_105 = arith.constant dense<0.000000e+00> : vector<1x512xf32>
    %491 = tpu.matmul %489, %388, %cst_105 {dimension_numbers = #tpu.dot_dimension_numbers<[1], [0], [0], [1], [0, 0, 1, 1], [], []>} : vector<1x128xf32>, vector<128x512xf32>, vector<1x512xf32> -> vector<1x512xf32>
    %492 = arith.addf %490, %491 : vector<1x512xf32>
    %493 = vector.extract_strided_slice %492 {offsets = [0, 0], sizes = [1, 384], strides = [1, 1]} : vector<1x512xf32> to vector<1x384xf32>
    %494 = arith.negf %493 : vector<1x384xf32>
    %495 = math.exp %494 : vector<1x384xf32>
    %cst_106 = arith.constant 1.000000e+00 : f32
    %496 = vector.broadcast %cst_106 : f32 to vector<1x384xf32>
    %497 = arith.addf %496, %495 : vector<1x384xf32>
    %498 = arith.divf %496, %497 : vector<1x384xf32>
    %499 = vector.extract_strided_slice %492 {offsets = [0, 384], sizes = [1, 128], strides = [1, 1]} : vector<1x512xf32> to vector<1x128xf32>
    %500 = math.tanh %499 : vector<1x128xf32>
    %501 = vector.extract_strided_slice %498 {offsets = [0, 128], sizes = [1, 128], strides = [1, 1]} : vector<1x384xf32> to vector<1x128xf32>
    %502 = arith.mulf %501, %486 : vector<1x128xf32>
    %503 = vector.extract_strided_slice %498 {offsets = [0, 0], sizes = [1, 128], strides = [1, 1]} : vector<1x384xf32> to vector<1x128xf32>
    %504 = arith.mulf %503, %500 : vector<1x128xf32>
    %505 = arith.addf %502, %504 : vector<1x128xf32>
    %506 = vector.extract_strided_slice %498 {offsets = [0, 256], sizes = [1, 128], strides = [1, 1]} : vector<1x384xf32> to vector<1x128xf32>
    %507 = math.tanh %505 : vector<1x128xf32>
    %508 = arith.mulf %506, %507 : vector<1x128xf32>
    %509 = vector.extract_strided_slice %392 {offsets = [6, 0], sizes = [1, 512], strides = [1, 1]} : vector<8x512xf32> to vector<1x512xf32>
    %cst_107 = arith.constant dense<0.000000e+00> : vector<1x512xf32>
    %510 = tpu.matmul %508, %388, %cst_107 {dimension_numbers = #tpu.dot_dimension_numbers<[1], [0], [0], [1], [0, 0, 1, 1], [], []>} : vector<1x128xf32>, vector<128x512xf32>, vector<1x512xf32> -> vector<1x512xf32>
    %511 = arith.addf %509, %510 : vector<1x512xf32>
    %512 = vector.extract_strided_slice %511 {offsets = [0, 0], sizes = [1, 384], strides = [1, 1]} : vector<1x512xf32> to vector<1x384xf32>
    %513 = arith.negf %512 : vector<1x384xf32>
    %514 = math.exp %513 : vector<1x384xf32>
    %cst_108 = arith.constant 1.000000e+00 : f32
    %515 = vector.broadcast %cst_108 : f32 to vector<1x384xf32>
    %516 = arith.addf %515, %514 : vector<1x384xf32>
    %517 = arith.divf %515, %516 : vector<1x384xf32>
    %518 = vector.extract_strided_slice %511 {offsets = [0, 384], sizes = [1, 128], strides = [1, 1]} : vector<1x512xf32> to vector<1x128xf32>
    %519 = math.tanh %518 : vector<1x128xf32>
    %520 = vector.extract_strided_slice %517 {offsets = [0, 128], sizes = [1, 128], strides = [1, 1]} : vector<1x384xf32> to vector<1x128xf32>
    %521 = arith.mulf %520, %505 : vector<1x128xf32>
    %522 = vector.extract_strided_slice %517 {offsets = [0, 0], sizes = [1, 128], strides = [1, 1]} : vector<1x384xf32> to vector<1x128xf32>
    %523 = arith.mulf %522, %519 : vector<1x128xf32>
    %524 = arith.addf %521, %523 : vector<1x128xf32>
    %525 = vector.extract_strided_slice %517 {offsets = [0, 256], sizes = [1, 128], strides = [1, 1]} : vector<1x384xf32> to vector<1x128xf32>
    %526 = math.tanh %524 : vector<1x128xf32>
    %527 = arith.mulf %525, %526 : vector<1x128xf32>
    %528 = vector.extract_strided_slice %392 {offsets = [7, 0], sizes = [1, 512], strides = [1, 1]} : vector<8x512xf32> to vector<1x512xf32>
    %cst_109 = arith.constant dense<0.000000e+00> : vector<1x512xf32>
    %529 = tpu.matmul %527, %388, %cst_109 {dimension_numbers = #tpu.dot_dimension_numbers<[1], [0], [0], [1], [0, 0, 1, 1], [], []>} : vector<1x128xf32>, vector<128x512xf32>, vector<1x512xf32> -> vector<1x512xf32>
    %530 = arith.addf %528, %529 : vector<1x512xf32>
    %531 = vector.extract_strided_slice %530 {offsets = [0, 0], sizes = [1, 384], strides = [1, 1]} : vector<1x512xf32> to vector<1x384xf32>
    %532 = arith.negf %531 : vector<1x384xf32>
    %533 = math.exp %532 : vector<1x384xf32>
    %cst_110 = arith.constant 1.000000e+00 : f32
    %534 = vector.broadcast %cst_110 : f32 to vector<1x384xf32>
    %535 = arith.addf %534, %533 : vector<1x384xf32>
    %536 = arith.divf %534, %535 : vector<1x384xf32>
    %537 = vector.extract_strided_slice %530 {offsets = [0, 384], sizes = [1, 128], strides = [1, 1]} : vector<1x512xf32> to vector<1x128xf32>
    %538 = math.tanh %537 : vector<1x128xf32>
    %539 = vector.extract_strided_slice %536 {offsets = [0, 128], sizes = [1, 128], strides = [1, 1]} : vector<1x384xf32> to vector<1x128xf32>
    %540 = arith.mulf %539, %524 : vector<1x128xf32>
    %541 = vector.extract_strided_slice %536 {offsets = [0, 0], sizes = [1, 128], strides = [1, 1]} : vector<1x384xf32> to vector<1x128xf32>
    %542 = arith.mulf %541, %538 : vector<1x128xf32>
    %543 = arith.addf %540, %542 : vector<1x128xf32>
    %544 = vector.extract_strided_slice %536 {offsets = [0, 256], sizes = [1, 128], strides = [1, 1]} : vector<1x384xf32> to vector<1x128xf32>
    %545 = math.tanh %543 : vector<1x128xf32>
    %546 = arith.mulf %544, %545 : vector<1x128xf32>
    %547 = vector.shape_cast %546 : vector<1x128xf32> to vector<1x128xf32>
    %548 = vector.broadcast %547 : vector<1x128xf32> to vector<8x128xf32>
    %c792 = arith.constant 792 : index
    %c0_111 = arith.constant 0 : index
    %549 = vector.load %arg1[%c792, %c0_111] : memref<1584x512xf32, #tpu.memory_space<vmem>>, vector<128x512xf32>
    %c920 = arith.constant 920 : index
    %c0_112 = arith.constant 0 : index
    %550 = vector.load %arg1[%c920, %c0_112] : memref<1584x512xf32, #tpu.memory_space<vmem>>, vector<128x512xf32>
    %c1048 = arith.constant 1048 : index
    %c0_113 = arith.constant 0 : index
    %551 = vector.load %arg1[%c1048, %c0_113] : memref<1584x512xf32, #tpu.memory_space<vmem>>, vector<1x512xf32>
    %cst_114 = arith.constant dense<0.000000e+00> : vector<8x512xf32>
    %552 = tpu.matmul %548, %549, %cst_114 {dimension_numbers = #tpu.dot_dimension_numbers<[1], [0], [0], [1], [0, 0, 1, 1], [], []>} : vector<8x128xf32>, vector<128x512xf32>, vector<8x512xf32> -> vector<8x512xf32>
    %553 = vector.broadcast %551 : vector<1x512xf32> to vector<8x512xf32>
    %554 = arith.addf %552, %553 : vector<8x512xf32>
    %cst_115 = arith.constant 0.000000e+00 : f32
    %555 = vector.broadcast %cst_115 : f32 to vector<1x128xf32>
    %cst_116 = arith.constant 0.000000e+00 : f32
    %556 = vector.broadcast %cst_116 : f32 to vector<1x128xf32>
    %557 = vector.extract_strided_slice %554 {offsets = [0, 0], sizes = [1, 512], strides = [1, 1]} : vector<8x512xf32> to vector<1x512xf32>
    %cst_117 = arith.constant dense<0.000000e+00> : vector<1x512xf32>
    %558 = tpu.matmul %555, %550, %cst_117 {dimension_numbers = #tpu.dot_dimension_numbers<[1], [0], [0], [1], [0, 0, 1, 1], [], []>} : vector<1x128xf32>, vector<128x512xf32>, vector<1x512xf32> -> vector<1x512xf32>
    %559 = arith.addf %557, %558 : vector<1x512xf32>
    %560 = vector.extract_strided_slice %559 {offsets = [0, 0], sizes = [1, 384], strides = [1, 1]} : vector<1x512xf32> to vector<1x384xf32>
    %561 = arith.negf %560 : vector<1x384xf32>
    %562 = math.exp %561 : vector<1x384xf32>
    %cst_118 = arith.constant 1.000000e+00 : f32
    %563 = vector.broadcast %cst_118 : f32 to vector<1x384xf32>
    %564 = arith.addf %563, %562 : vector<1x384xf32>
    %565 = arith.divf %563, %564 : vector<1x384xf32>
    %566 = vector.extract_strided_slice %559 {offsets = [0, 384], sizes = [1, 128], strides = [1, 1]} : vector<1x512xf32> to vector<1x128xf32>
    %567 = math.tanh %566 : vector<1x128xf32>
    %568 = vector.extract_strided_slice %565 {offsets = [0, 128], sizes = [1, 128], strides = [1, 1]} : vector<1x384xf32> to vector<1x128xf32>
    %569 = arith.mulf %568, %556 : vector<1x128xf32>
    %570 = vector.extract_strided_slice %565 {offsets = [0, 0], sizes = [1, 128], strides = [1, 1]} : vector<1x384xf32> to vector<1x128xf32>
    %571 = arith.mulf %570, %567 : vector<1x128xf32>
    %572 = arith.addf %569, %571 : vector<1x128xf32>
    %573 = vector.extract_strided_slice %565 {offsets = [0, 256], sizes = [1, 128], strides = [1, 1]} : vector<1x384xf32> to vector<1x128xf32>
    %574 = math.tanh %572 : vector<1x128xf32>
    %575 = arith.mulf %573, %574 : vector<1x128xf32>
    %c0_119 = arith.constant 0 : index
    %c0_120 = arith.constant 0 : index
    %576 = vector.load %arg4[%c0_119, %c0_120] : memref<8x128xf32, #tpu.memory_space<vmem>>, vector<1x128xf32>
    tpu.vector_store %arg4[%c0_119, %c0_120], %575 {strides = array<i32>} : memref<8x128xf32, #tpu.memory_space<vmem>>, vector<1x128xf32>,
    %577 = vector.extract_strided_slice %554 {offsets = [1, 0], sizes = [1, 512], strides = [1, 1]} : vector<8x512xf32> to vector<1x512xf32>
    %cst_121 = arith.constant dense<0.000000e+00> : vector<1x512xf32>
    %578 = tpu.matmul %575, %550, %cst_121 {dimension_numbers = #tpu.dot_dimension_numbers<[1], [0], [0], [1], [0, 0, 1, 1], [], []>} : vector<1x128xf32>, vector<128x512xf32>, vector<1x512xf32> -> vector<1x512xf32>
    %579 = arith.addf %577, %578 : vector<1x512xf32>
    %580 = vector.extract_strided_slice %579 {offsets = [0, 0], sizes = [1, 384], strides = [1, 1]} : vector<1x512xf32> to vector<1x384xf32>
    %581 = arith.negf %580 : vector<1x384xf32>
    %582 = math.exp %581 : vector<1x384xf32>
    %cst_122 = arith.constant 1.000000e+00 : f32
    %583 = vector.broadcast %cst_122 : f32 to vector<1x384xf32>
    %584 = arith.addf %583, %582 : vector<1x384xf32>
    %585 = arith.divf %583, %584 : vector<1x384xf32>
    %586 = vector.extract_strided_slice %579 {offsets = [0, 384], sizes = [1, 128], strides = [1, 1]} : vector<1x512xf32> to vector<1x128xf32>
    %587 = math.tanh %586 : vector<1x128xf32>
    %588 = vector.extract_strided_slice %585 {offsets = [0, 128], sizes = [1, 128], strides = [1, 1]} : vector<1x384xf32> to vector<1x128xf32>
    %589 = arith.mulf %588, %572 : vector<1x128xf32>
    %590 = vector.extract_strided_slice %585 {offsets = [0, 0], sizes = [1, 128], strides = [1, 1]} : vector<1x384xf32> to vector<1x128xf32>
    %591 = arith.mulf %590, %587 : vector<1x128xf32>
    %592 = arith.addf %589, %591 : vector<1x128xf32>
    %593 = vector.extract_strided_slice %585 {offsets = [0, 256], sizes = [1, 128], strides = [1, 1]} : vector<1x384xf32> to vector<1x128xf32>
    %594 = math.tanh %592 : vector<1x128xf32>
    %595 = arith.mulf %593, %594 : vector<1x128xf32>
    %c1_123 = arith.constant 1 : index
    %c0_124 = arith.constant 0 : index
    %596 = vector.load %arg4[%c1_123, %c0_124] : memref<8x128xf32, #tpu.memory_space<vmem>>, vector<1x128xf32>
    tpu.vector_store %arg4[%c1_123, %c0_124], %595 {strides = array<i32>} : memref<8x128xf32, #tpu.memory_space<vmem>>, vector<1x128xf32>,
    %597 = vector.extract_strided_slice %554 {offsets = [2, 0], sizes = [1, 512], strides = [1, 1]} : vector<8x512xf32> to vector<1x512xf32>
    %cst_125 = arith.constant dense<0.000000e+00> : vector<1x512xf32>
    %598 = tpu.matmul %595, %550, %cst_125 {dimension_numbers = #tpu.dot_dimension_numbers<[1], [0], [0], [1], [0, 0, 1, 1], [], []>} : vector<1x128xf32>, vector<128x512xf32>, vector<1x512xf32> -> vector<1x512xf32>
    %599 = arith.addf %597, %598 : vector<1x512xf32>
    %600 = vector.extract_strided_slice %599 {offsets = [0, 0], sizes = [1, 384], strides = [1, 1]} : vector<1x512xf32> to vector<1x384xf32>
    %601 = arith.negf %600 : vector<1x384xf32>
    %602 = math.exp %601 : vector<1x384xf32>
    %cst_126 = arith.constant 1.000000e+00 : f32
    %603 = vector.broadcast %cst_126 : f32 to vector<1x384xf32>
    %604 = arith.addf %603, %602 : vector<1x384xf32>
    %605 = arith.divf %603, %604 : vector<1x384xf32>
    %606 = vector.extract_strided_slice %599 {offsets = [0, 384], sizes = [1, 128], strides = [1, 1]} : vector<1x512xf32> to vector<1x128xf32>
    %607 = math.tanh %606 : vector<1x128xf32>
    %608 = vector.extract_strided_slice %605 {offsets = [0, 128], sizes = [1, 128], strides = [1, 1]} : vector<1x384xf32> to vector<1x128xf32>
    %609 = arith.mulf %608, %592 : vector<1x128xf32>
    %610 = vector.extract_strided_slice %605 {offsets = [0, 0], sizes = [1, 128], strides = [1, 1]} : vector<1x384xf32> to vector<1x128xf32>
    %611 = arith.mulf %610, %607 : vector<1x128xf32>
    %612 = arith.addf %609, %611 : vector<1x128xf32>
    %613 = vector.extract_strided_slice %605 {offsets = [0, 256], sizes = [1, 128], strides = [1, 1]} : vector<1x384xf32> to vector<1x128xf32>
    %614 = math.tanh %612 : vector<1x128xf32>
    %615 = arith.mulf %613, %614 : vector<1x128xf32>
    %c2_127 = arith.constant 2 : index
    %c0_128 = arith.constant 0 : index
    %616 = vector.load %arg4[%c2_127, %c0_128] : memref<8x128xf32, #tpu.memory_space<vmem>>, vector<1x128xf32>
    tpu.vector_store %arg4[%c2_127, %c0_128], %615 {strides = array<i32>} : memref<8x128xf32, #tpu.memory_space<vmem>>, vector<1x128xf32>,
    %617 = vector.extract_strided_slice %554 {offsets = [3, 0], sizes = [1, 512], strides = [1, 1]} : vector<8x512xf32> to vector<1x512xf32>
    %cst_129 = arith.constant dense<0.000000e+00> : vector<1x512xf32>
    %618 = tpu.matmul %615, %550, %cst_129 {dimension_numbers = #tpu.dot_dimension_numbers<[1], [0], [0], [1], [0, 0, 1, 1], [], []>} : vector<1x128xf32>, vector<128x512xf32>, vector<1x512xf32> -> vector<1x512xf32>
    %619 = arith.addf %617, %618 : vector<1x512xf32>
    %620 = vector.extract_strided_slice %619 {offsets = [0, 0], sizes = [1, 384], strides = [1, 1]} : vector<1x512xf32> to vector<1x384xf32>
    %621 = arith.negf %620 : vector<1x384xf32>
    %622 = math.exp %621 : vector<1x384xf32>
    %cst_130 = arith.constant 1.000000e+00 : f32
    %623 = vector.broadcast %cst_130 : f32 to vector<1x384xf32>
    %624 = arith.addf %623, %622 : vector<1x384xf32>
    %625 = arith.divf %623, %624 : vector<1x384xf32>
    %626 = vector.extract_strided_slice %619 {offsets = [0, 384], sizes = [1, 128], strides = [1, 1]} : vector<1x512xf32> to vector<1x128xf32>
    %627 = math.tanh %626 : vector<1x128xf32>
    %628 = vector.extract_strided_slice %625 {offsets = [0, 128], sizes = [1, 128], strides = [1, 1]} : vector<1x384xf32> to vector<1x128xf32>
    %629 = arith.mulf %628, %612 : vector<1x128xf32>
    %630 = vector.extract_strided_slice %625 {offsets = [0, 0], sizes = [1, 128], strides = [1, 1]} : vector<1x384xf32> to vector<1x128xf32>
    %631 = arith.mulf %630, %627 : vector<1x128xf32>
    %632 = arith.addf %629, %631 : vector<1x128xf32>
    %633 = vector.extract_strided_slice %625 {offsets = [0, 256], sizes = [1, 128], strides = [1, 1]} : vector<1x384xf32> to vector<1x128xf32>
    %634 = math.tanh %632 : vector<1x128xf32>
    %635 = arith.mulf %633, %634 : vector<1x128xf32>
    %c3_131 = arith.constant 3 : index
    %c0_132 = arith.constant 0 : index
    %636 = vector.load %arg4[%c3_131, %c0_132] : memref<8x128xf32, #tpu.memory_space<vmem>>, vector<1x128xf32>
    tpu.vector_store %arg4[%c3_131, %c0_132], %635 {strides = array<i32>} : memref<8x128xf32, #tpu.memory_space<vmem>>, vector<1x128xf32>,
    %637 = vector.extract_strided_slice %554 {offsets = [4, 0], sizes = [1, 512], strides = [1, 1]} : vector<8x512xf32> to vector<1x512xf32>
    %cst_133 = arith.constant dense<0.000000e+00> : vector<1x512xf32>
    %638 = tpu.matmul %635, %550, %cst_133 {dimension_numbers = #tpu.dot_dimension_numbers<[1], [0], [0], [1], [0, 0, 1, 1], [], []>} : vector<1x128xf32>, vector<128x512xf32>, vector<1x512xf32> -> vector<1x512xf32>
    %639 = arith.addf %637, %638 : vector<1x512xf32>
    %640 = vector.extract_strided_slice %639 {offsets = [0, 0], sizes = [1, 384], strides = [1, 1]} : vector<1x512xf32> to vector<1x384xf32>
    %641 = arith.negf %640 : vector<1x384xf32>
    %642 = math.exp %641 : vector<1x384xf32>
    %cst_134 = arith.constant 1.000000e+00 : f32
    %643 = vector.broadcast %cst_134 : f32 to vector<1x384xf32>
    %644 = arith.addf %643, %642 : vector<1x384xf32>
    %645 = arith.divf %643, %644 : vector<1x384xf32>
    %646 = vector.extract_strided_slice %639 {offsets = [0, 384], sizes = [1, 128], strides = [1, 1]} : vector<1x512xf32> to vector<1x128xf32>
    %647 = math.tanh %646 : vector<1x128xf32>
    %648 = vector.extract_strided_slice %645 {offsets = [0, 128], sizes = [1, 128], strides = [1, 1]} : vector<1x384xf32> to vector<1x128xf32>
    %649 = arith.mulf %648, %632 : vector<1x128xf32>
    %650 = vector.extract_strided_slice %645 {offsets = [0, 0], sizes = [1, 128], strides = [1, 1]} : vector<1x384xf32> to vector<1x128xf32>
    %651 = arith.mulf %650, %647 : vector<1x128xf32>
    %652 = arith.addf %649, %651 : vector<1x128xf32>
    %653 = vector.extract_strided_slice %645 {offsets = [0, 256], sizes = [1, 128], strides = [1, 1]} : vector<1x384xf32> to vector<1x128xf32>
    %654 = math.tanh %652 : vector<1x128xf32>
    %655 = arith.mulf %653, %654 : vector<1x128xf32>
    %c4_135 = arith.constant 4 : index
    %c0_136 = arith.constant 0 : index
    %656 = vector.load %arg4[%c4_135, %c0_136] : memref<8x128xf32, #tpu.memory_space<vmem>>, vector<1x128xf32>
    tpu.vector_store %arg4[%c4_135, %c0_136], %655 {strides = array<i32>} : memref<8x128xf32, #tpu.memory_space<vmem>>, vector<1x128xf32>,
    %657 = vector.extract_strided_slice %554 {offsets = [5, 0], sizes = [1, 512], strides = [1, 1]} : vector<8x512xf32> to vector<1x512xf32>
    %cst_137 = arith.constant dense<0.000000e+00> : vector<1x512xf32>
    %658 = tpu.matmul %655, %550, %cst_137 {dimension_numbers = #tpu.dot_dimension_numbers<[1], [0], [0], [1], [0, 0, 1, 1], [], []>} : vector<1x128xf32>, vector<128x512xf32>, vector<1x512xf32> -> vector<1x512xf32>
    %659 = arith.addf %657, %658 : vector<1x512xf32>
    %660 = vector.extract_strided_slice %659 {offsets = [0, 0], sizes = [1, 384], strides = [1, 1]} : vector<1x512xf32> to vector<1x384xf32>
    %661 = arith.negf %660 : vector<1x384xf32>
    %662 = math.exp %661 : vector<1x384xf32>
    %cst_138 = arith.constant 1.000000e+00 : f32
    %663 = vector.broadcast %cst_138 : f32 to vector<1x384xf32>
    %664 = arith.addf %663, %662 : vector<1x384xf32>
    %665 = arith.divf %663, %664 : vector<1x384xf32>
    %666 = vector.extract_strided_slice %659 {offsets = [0, 384], sizes = [1, 128], strides = [1, 1]} : vector<1x512xf32> to vector<1x128xf32>
    %667 = math.tanh %666 : vector<1x128xf32>
    %668 = vector.extract_strided_slice %665 {offsets = [0, 128], sizes = [1, 128], strides = [1, 1]} : vector<1x384xf32> to vector<1x128xf32>
    %669 = arith.mulf %668, %652 : vector<1x128xf32>
    %670 = vector.extract_strided_slice %665 {offsets = [0, 0], sizes = [1, 128], strides = [1, 1]} : vector<1x384xf32> to vector<1x128xf32>
    %671 = arith.mulf %670, %667 : vector<1x128xf32>
    %672 = arith.addf %669, %671 : vector<1x128xf32>
    %673 = vector.extract_strided_slice %665 {offsets = [0, 256], sizes = [1, 128], strides = [1, 1]} : vector<1x384xf32> to vector<1x128xf32>
    %674 = math.tanh %672 : vector<1x128xf32>
    %675 = arith.mulf %673, %674 : vector<1x128xf32>
    %c5_139 = arith.constant 5 : index
    %c0_140 = arith.constant 0 : index
    %676 = vector.load %arg4[%c5_139, %c0_140] : memref<8x128xf32, #tpu.memory_space<vmem>>, vector<1x128xf32>
    tpu.vector_store %arg4[%c5_139, %c0_140], %675 {strides = array<i32>} : memref<8x128xf32, #tpu.memory_space<vmem>>, vector<1x128xf32>,
    %677 = vector.extract_strided_slice %554 {offsets = [6, 0], sizes = [1, 512], strides = [1, 1]} : vector<8x512xf32> to vector<1x512xf32>
    %cst_141 = arith.constant dense<0.000000e+00> : vector<1x512xf32>
    %678 = tpu.matmul %675, %550, %cst_141 {dimension_numbers = #tpu.dot_dimension_numbers<[1], [0], [0], [1], [0, 0, 1, 1], [], []>} : vector<1x128xf32>, vector<128x512xf32>, vector<1x512xf32> -> vector<1x512xf32>
    %679 = arith.addf %677, %678 : vector<1x512xf32>
    %680 = vector.extract_strided_slice %679 {offsets = [0, 0], sizes = [1, 384], strides = [1, 1]} : vector<1x512xf32> to vector<1x384xf32>
    %681 = arith.negf %680 : vector<1x384xf32>
    %682 = math.exp %681 : vector<1x384xf32>
    %cst_142 = arith.constant 1.000000e+00 : f32
    %683 = vector.broadcast %cst_142 : f32 to vector<1x384xf32>
    %684 = arith.addf %683, %682 : vector<1x384xf32>
    %685 = arith.divf %683, %684 : vector<1x384xf32>
    %686 = vector.extract_strided_slice %679 {offsets = [0, 384], sizes = [1, 128], strides = [1, 1]} : vector<1x512xf32> to vector<1x128xf32>
    %687 = math.tanh %686 : vector<1x128xf32>
    %688 = vector.extract_strided_slice %685 {offsets = [0, 128], sizes = [1, 128], strides = [1, 1]} : vector<1x384xf32> to vector<1x128xf32>
    %689 = arith.mulf %688, %672 : vector<1x128xf32>
    %690 = vector.extract_strided_slice %685 {offsets = [0, 0], sizes = [1, 128], strides = [1, 1]} : vector<1x384xf32> to vector<1x128xf32>
    %691 = arith.mulf %690, %687 : vector<1x128xf32>
    %692 = arith.addf %689, %691 : vector<1x128xf32>
    %693 = vector.extract_strided_slice %685 {offsets = [0, 256], sizes = [1, 128], strides = [1, 1]} : vector<1x384xf32> to vector<1x128xf32>
    %694 = math.tanh %692 : vector<1x128xf32>
    %695 = arith.mulf %693, %694 : vector<1x128xf32>
    %c6_143 = arith.constant 6 : index
    %c0_144 = arith.constant 0 : index
    %696 = vector.load %arg4[%c6_143, %c0_144] : memref<8x128xf32, #tpu.memory_space<vmem>>, vector<1x128xf32>
    tpu.vector_store %arg4[%c6_143, %c0_144], %695 {strides = array<i32>} : memref<8x128xf32, #tpu.memory_space<vmem>>, vector<1x128xf32>,
    %697 = vector.extract_strided_slice %554 {offsets = [7, 0], sizes = [1, 512], strides = [1, 1]} : vector<8x512xf32> to vector<1x512xf32>
    %cst_145 = arith.constant dense<0.000000e+00> : vector<1x512xf32>
    %698 = tpu.matmul %695, %550, %cst_145 {dimension_numbers = #tpu.dot_dimension_numbers<[1], [0], [0], [1], [0, 0, 1, 1], [], []>} : vector<1x128xf32>, vector<128x512xf32>, vector<1x512xf32> -> vector<1x512xf32>
    %699 = arith.addf %697, %698 : vector<1x512xf32>
    %700 = vector.extract_strided_slice %699 {offsets = [0, 0], sizes = [1, 384], strides = [1, 1]} : vector<1x512xf32> to vector<1x384xf32>
    %701 = arith.negf %700 : vector<1x384xf32>
    %702 = math.exp %701 : vector<1x384xf32>
    %cst_146 = arith.constant 1.000000e+00 : f32
    %703 = vector.broadcast %cst_146 : f32 to vector<1x384xf32>
    %704 = arith.addf %703, %702 : vector<1x384xf32>
    %705 = arith.divf %703, %704 : vector<1x384xf32>
    %706 = vector.extract_strided_slice %699 {offsets = [0, 384], sizes = [1, 128], strides = [1, 1]} : vector<1x512xf32> to vector<1x128xf32>
    %707 = math.tanh %706 : vector<1x128xf32>
    %708 = vector.extract_strided_slice %705 {offsets = [0, 128], sizes = [1, 128], strides = [1, 1]} : vector<1x384xf32> to vector<1x128xf32>
    %709 = arith.mulf %708, %692 : vector<1x128xf32>
    %710 = vector.extract_strided_slice %705 {offsets = [0, 0], sizes = [1, 128], strides = [1, 1]} : vector<1x384xf32> to vector<1x128xf32>
    %711 = arith.mulf %710, %707 : vector<1x128xf32>
    %712 = arith.addf %709, %711 : vector<1x128xf32>
    %713 = vector.extract_strided_slice %705 {offsets = [0, 256], sizes = [1, 128], strides = [1, 1]} : vector<1x384xf32> to vector<1x128xf32>
    %714 = math.tanh %712 : vector<1x128xf32>
    %715 = arith.mulf %713, %714 : vector<1x128xf32>
    %c7_147 = arith.constant 7 : index
    %c0_148 = arith.constant 0 : index
    %716 = vector.load %arg4[%c7_147, %c0_148] : memref<8x128xf32, #tpu.memory_space<vmem>>, vector<1x128xf32>
    tpu.vector_store %arg4[%c7_147, %c0_148], %715 {strides = array<i32>} : memref<8x128xf32, #tpu.memory_space<vmem>>, vector<1x128xf32>,
    %c0_149 = arith.constant 0 : index
    %c0_150 = arith.constant 0 : index
    %717 = vector.load %arg4[%c0_149, %c0_150] : memref<8x128xf32, #tpu.memory_space<vmem>>, vector<8x128xf32>
    %c160 = arith.constant 160 : index
    %c0_151 = arith.constant 0 : index
    %718 = vector.load %arg2[%c160, %c0_151] : memref<216x128xf32, #tpu.memory_space<vmem>>, vector<1x128xf32>
    %c168 = arith.constant 168 : index
    %c0_152 = arith.constant 0 : index
    %719 = vector.load %arg2[%c168, %c0_152] : memref<216x128xf32, #tpu.memory_space<vmem>>, vector<1x128xf32>
    %cst_153 = arith.constant dense<0.000000e+00> : vector<8xf32>
    %720 = vector.multi_reduction <add>, %717, %cst_153 [1] : vector<8x128xf32> to vector<8xf32>
    %721 = vector.shape_cast %720 : vector<8xf32> to vector<8x1xf32>
    %cst_154 = arith.constant 2.500000e-01 : f32
    %722 = vector.broadcast %cst_154 : f32 to vector<8x1xf32>
    %723 = arith.mulf %721, %722 : vector<8x1xf32>
    %724 = arith.mulf %717, %717 : vector<8x128xf32>
    %cst_155 = arith.constant dense<0.000000e+00> : vector<8xf32>
    %725 = vector.multi_reduction <add>, %724, %cst_155 [1] : vector<8x128xf32> to vector<8xf32>
    %726 = vector.shape_cast %725 : vector<8xf32> to vector<8x1xf32>
    %cst_156 = arith.constant 2.500000e-01 : f32
    %727 = vector.broadcast %cst_156 : f32 to vector<8x1xf32>
    %728 = arith.mulf %726, %727 : vector<8x1xf32>
    %729 = arith.mulf %723, %723 : vector<8x1xf32>
    %730 = arith.subf %728, %729 : vector<8x1xf32>
    %cst_157 = arith.constant 9.99999974E-6 : f32
    %731 = vector.broadcast %cst_157 : f32 to vector<8x1xf32>
    %732 = arith.addf %730, %731 : vector<8x1xf32>
    %733 = math.rsqrt %732 : vector<8x1xf32>
    %734 = vector.broadcast %723 : vector<8x1xf32> to vector<8x128xf32>
    %735 = arith.subf %717, %734 : vector<8x128xf32>
    %736 = vector.broadcast %733 : vector<8x1xf32> to vector<8x128xf32>
    %737 = arith.mulf %735, %736 : vector<8x128xf32>
    %738 = vector.broadcast %718 : vector<1x128xf32> to vector<8x128xf32>
    %739 = arith.mulf %737, %738 : vector<8x128xf32>
    %740 = vector.broadcast %719 : vector<1x128xf32> to vector<8x128xf32>
    %741 = arith.addf %739, %740 : vector<8x128xf32>
    %c1056 = arith.constant 1056 : index
    %c0_158 = arith.constant 0 : index
    %742 = vector.load %arg1[%c1056, %c0_158] : memref<1584x512xf32, #tpu.memory_space<vmem>>, vector<128x512xf32>
    %c1184 = arith.constant 1184 : index
    %c0_159 = arith.constant 0 : index
    %743 = vector.load %arg1[%c1184, %c0_159] : memref<1584x512xf32, #tpu.memory_space<vmem>>, vector<128x512xf32>
    %c1312 = arith.constant 1312 : index
    %c0_160 = arith.constant 0 : index
    %744 = vector.load %arg1[%c1312, %c0_160] : memref<1584x512xf32, #tpu.memory_space<vmem>>, vector<1x512xf32>
    %cst_161 = arith.constant dense<0.000000e+00> : vector<8x512xf32>
    %745 = tpu.matmul %741, %742, %cst_161 {dimension_numbers = #tpu.dot_dimension_numbers<[1], [0], [0], [1], [0, 0, 1, 1], [], []>} : vector<8x128xf32>, vector<128x512xf32>, vector<8x512xf32> -> vector<8x512xf32>
    %746 = vector.broadcast %744 : vector<1x512xf32> to vector<8x512xf32>
    %747 = arith.addf %745, %746 : vector<8x512xf32>
    %cst_162 = arith.constant 0.000000e+00 : f32
    %748 = vector.broadcast %cst_162 : f32 to vector<1x128xf32>
    %cst_163 = arith.constant 0.000000e+00 : f32
    %749 = vector.broadcast %cst_163 : f32 to vector<1x128xf32>
    %750 = vector.extract_strided_slice %747 {offsets = [0, 0], sizes = [1, 512], strides = [1, 1]} : vector<8x512xf32> to vector<1x512xf32>
    %cst_164 = arith.constant dense<0.000000e+00> : vector<1x512xf32>
    %751 = tpu.matmul %748, %743, %cst_164 {dimension_numbers = #tpu.dot_dimension_numbers<[1], [0], [0], [1], [0, 0, 1, 1], [], []>} : vector<1x128xf32>, vector<128x512xf32>, vector<1x512xf32> -> vector<1x512xf32>
    %752 = arith.addf %750, %751 : vector<1x512xf32>
    %753 = vector.extract_strided_slice %752 {offsets = [0, 0], sizes = [1, 384], strides = [1, 1]} : vector<1x512xf32> to vector<1x384xf32>
    %754 = arith.negf %753 : vector<1x384xf32>
    %755 = math.exp %754 : vector<1x384xf32>
    %cst_165 = arith.constant 1.000000e+00 : f32
    %756 = vector.broadcast %cst_165 : f32 to vector<1x384xf32>
    %757 = arith.addf %756, %755 : vector<1x384xf32>
    %758 = arith.divf %756, %757 : vector<1x384xf32>
    %759 = vector.extract_strided_slice %752 {offsets = [0, 384], sizes = [1, 128], strides = [1, 1]} : vector<1x512xf32> to vector<1x128xf32>
    %760 = math.tanh %759 : vector<1x128xf32>
    %761 = vector.extract_strided_slice %758 {offsets = [0, 128], sizes = [1, 128], strides = [1, 1]} : vector<1x384xf32> to vector<1x128xf32>
    %762 = arith.mulf %761, %749 : vector<1x128xf32>
    %763 = vector.extract_strided_slice %758 {offsets = [0, 0], sizes = [1, 128], strides = [1, 1]} : vector<1x384xf32> to vector<1x128xf32>
    %764 = arith.mulf %763, %760 : vector<1x128xf32>
    %765 = arith.addf %762, %764 : vector<1x128xf32>
    %766 = vector.extract_strided_slice %758 {offsets = [0, 256], sizes = [1, 128], strides = [1, 1]} : vector<1x384xf32> to vector<1x128xf32>
    %767 = math.tanh %765 : vector<1x128xf32>
    %768 = arith.mulf %766, %767 : vector<1x128xf32>
    %c0_166 = arith.constant 0 : index
    %c0_167 = arith.constant 0 : index
    %769 = vector.load %arg4[%c0_166, %c0_167] : memref<8x128xf32, #tpu.memory_space<vmem>>, vector<1x128xf32>
    tpu.vector_store %arg4[%c0_166, %c0_167], %768 {strides = array<i32>} : memref<8x128xf32, #tpu.memory_space<vmem>>, vector<1x128xf32>,
    %770 = vector.extract_strided_slice %747 {offsets = [1, 0], sizes = [1, 512], strides = [1, 1]} : vector<8x512xf32> to vector<1x512xf32>
    %cst_168 = arith.constant dense<0.000000e+00> : vector<1x512xf32>
    %771 = tpu.matmul %768, %743, %cst_168 {dimension_numbers = #tpu.dot_dimension_numbers<[1], [0], [0], [1], [0, 0, 1, 1], [], []>} : vector<1x128xf32>, vector<128x512xf32>, vector<1x512xf32> -> vector<1x512xf32>
    %772 = arith.addf %770, %771 : vector<1x512xf32>
    %773 = vector.extract_strided_slice %772 {offsets = [0, 0], sizes = [1, 384], strides = [1, 1]} : vector<1x512xf32> to vector<1x384xf32>
    %774 = arith.negf %773 : vector<1x384xf32>
    %775 = math.exp %774 : vector<1x384xf32>
    %cst_169 = arith.constant 1.000000e+00 : f32
    %776 = vector.broadcast %cst_169 : f32 to vector<1x384xf32>
    %777 = arith.addf %776, %775 : vector<1x384xf32>
    %778 = arith.divf %776, %777 : vector<1x384xf32>
    %779 = vector.extract_strided_slice %772 {offsets = [0, 384], sizes = [1, 128], strides = [1, 1]} : vector<1x512xf32> to vector<1x128xf32>
    %780 = math.tanh %779 : vector<1x128xf32>
    %781 = vector.extract_strided_slice %778 {offsets = [0, 128], sizes = [1, 128], strides = [1, 1]} : vector<1x384xf32> to vector<1x128xf32>
    %782 = arith.mulf %781, %765 : vector<1x128xf32>
    %783 = vector.extract_strided_slice %778 {offsets = [0, 0], sizes = [1, 128], strides = [1, 1]} : vector<1x384xf32> to vector<1x128xf32>
    %784 = arith.mulf %783, %780 : vector<1x128xf32>
    %785 = arith.addf %782, %784 : vector<1x128xf32>
    %786 = vector.extract_strided_slice %778 {offsets = [0, 256], sizes = [1, 128], strides = [1, 1]} : vector<1x384xf32> to vector<1x128xf32>
    %787 = math.tanh %785 : vector<1x128xf32>
    %788 = arith.mulf %786, %787 : vector<1x128xf32>
    %c1_170 = arith.constant 1 : index
    %c0_171 = arith.constant 0 : index
    %789 = vector.load %arg4[%c1_170, %c0_171] : memref<8x128xf32, #tpu.memory_space<vmem>>, vector<1x128xf32>
    tpu.vector_store %arg4[%c1_170, %c0_171], %788 {strides = array<i32>} : memref<8x128xf32, #tpu.memory_space<vmem>>, vector<1x128xf32>,
    %790 = vector.extract_strided_slice %747 {offsets = [2, 0], sizes = [1, 512], strides = [1, 1]} : vector<8x512xf32> to vector<1x512xf32>
    %cst_172 = arith.constant dense<0.000000e+00> : vector<1x512xf32>
    %791 = tpu.matmul %788, %743, %cst_172 {dimension_numbers = #tpu.dot_dimension_numbers<[1], [0], [0], [1], [0, 0, 1, 1], [], []>} : vector<1x128xf32>, vector<128x512xf32>, vector<1x512xf32> -> vector<1x512xf32>
    %792 = arith.addf %790, %791 : vector<1x512xf32>
    %793 = vector.extract_strided_slice %792 {offsets = [0, 0], sizes = [1, 384], strides = [1, 1]} : vector<1x512xf32> to vector<1x384xf32>
    %794 = arith.negf %793 : vector<1x384xf32>
    %795 = math.exp %794 : vector<1x384xf32>
    %cst_173 = arith.constant 1.000000e+00 : f32
    %796 = vector.broadcast %cst_173 : f32 to vector<1x384xf32>
    %797 = arith.addf %796, %795 : vector<1x384xf32>
    %798 = arith.divf %796, %797 : vector<1x384xf32>
    %799 = vector.extract_strided_slice %792 {offsets = [0, 384], sizes = [1, 128], strides = [1, 1]} : vector<1x512xf32> to vector<1x128xf32>
    %800 = math.tanh %799 : vector<1x128xf32>
    %801 = vector.extract_strided_slice %798 {offsets = [0, 128], sizes = [1, 128], strides = [1, 1]} : vector<1x384xf32> to vector<1x128xf32>
    %802 = arith.mulf %801, %785 : vector<1x128xf32>
    %803 = vector.extract_strided_slice %798 {offsets = [0, 0], sizes = [1, 128], strides = [1, 1]} : vector<1x384xf32> to vector<1x128xf32>
    %804 = arith.mulf %803, %800 : vector<1x128xf32>
    %805 = arith.addf %802, %804 : vector<1x128xf32>
    %806 = vector.extract_strided_slice %798 {offsets = [0, 256], sizes = [1, 128], strides = [1, 1]} : vector<1x384xf32> to vector<1x128xf32>
    %807 = math.tanh %805 : vector<1x128xf32>
    %808 = arith.mulf %806, %807 : vector<1x128xf32>
    %c2_174 = arith.constant 2 : index
    %c0_175 = arith.constant 0 : index
    %809 = vector.load %arg4[%c2_174, %c0_175] : memref<8x128xf32, #tpu.memory_space<vmem>>, vector<1x128xf32>
    tpu.vector_store %arg4[%c2_174, %c0_175], %808 {strides = array<i32>} : memref<8x128xf32, #tpu.memory_space<vmem>>, vector<1x128xf32>,
    %810 = vector.extract_strided_slice %747 {offsets = [3, 0], sizes = [1, 512], strides = [1, 1]} : vector<8x512xf32> to vector<1x512xf32>
    %cst_176 = arith.constant dense<0.000000e+00> : vector<1x512xf32>
    %811 = tpu.matmul %808, %743, %cst_176 {dimension_numbers = #tpu.dot_dimension_numbers<[1], [0], [0], [1], [0, 0, 1, 1], [], []>} : vector<1x128xf32>, vector<128x512xf32>, vector<1x512xf32> -> vector<1x512xf32>
    %812 = arith.addf %810, %811 : vector<1x512xf32>
    %813 = vector.extract_strided_slice %812 {offsets = [0, 0], sizes = [1, 384], strides = [1, 1]} : vector<1x512xf32> to vector<1x384xf32>
    %814 = arith.negf %813 : vector<1x384xf32>
    %815 = math.exp %814 : vector<1x384xf32>
    %cst_177 = arith.constant 1.000000e+00 : f32
    %816 = vector.broadcast %cst_177 : f32 to vector<1x384xf32>
    %817 = arith.addf %816, %815 : vector<1x384xf32>
    %818 = arith.divf %816, %817 : vector<1x384xf32>
    %819 = vector.extract_strided_slice %812 {offsets = [0, 384], sizes = [1, 128], strides = [1, 1]} : vector<1x512xf32> to vector<1x128xf32>
    %820 = math.tanh %819 : vector<1x128xf32>
    %821 = vector.extract_strided_slice %818 {offsets = [0, 128], sizes = [1, 128], strides = [1, 1]} : vector<1x384xf32> to vector<1x128xf32>
    %822 = arith.mulf %821, %805 : vector<1x128xf32>
    %823 = vector.extract_strided_slice %818 {offsets = [0, 0], sizes = [1, 128], strides = [1, 1]} : vector<1x384xf32> to vector<1x128xf32>
    %824 = arith.mulf %823, %820 : vector<1x128xf32>
    %825 = arith.addf %822, %824 : vector<1x128xf32>
    %826 = vector.extract_strided_slice %818 {offsets = [0, 256], sizes = [1, 128], strides = [1, 1]} : vector<1x384xf32> to vector<1x128xf32>
    %827 = math.tanh %825 : vector<1x128xf32>
    %828 = arith.mulf %826, %827 : vector<1x128xf32>
    %c3_178 = arith.constant 3 : index
    %c0_179 = arith.constant 0 : index
    %829 = vector.load %arg4[%c3_178, %c0_179] : memref<8x128xf32, #tpu.memory_space<vmem>>, vector<1x128xf32>
    tpu.vector_store %arg4[%c3_178, %c0_179], %828 {strides = array<i32>} : memref<8x128xf32, #tpu.memory_space<vmem>>, vector<1x128xf32>,
    %830 = vector.extract_strided_slice %747 {offsets = [4, 0], sizes = [1, 512], strides = [1, 1]} : vector<8x512xf32> to vector<1x512xf32>
    %cst_180 = arith.constant dense<0.000000e+00> : vector<1x512xf32>
    %831 = tpu.matmul %828, %743, %cst_180 {dimension_numbers = #tpu.dot_dimension_numbers<[1], [0], [0], [1], [0, 0, 1, 1], [], []>} : vector<1x128xf32>, vector<128x512xf32>, vector<1x512xf32> -> vector<1x512xf32>
    %832 = arith.addf %830, %831 : vector<1x512xf32>
    %833 = vector.extract_strided_slice %832 {offsets = [0, 0], sizes = [1, 384], strides = [1, 1]} : vector<1x512xf32> to vector<1x384xf32>
    %834 = arith.negf %833 : vector<1x384xf32>
    %835 = math.exp %834 : vector<1x384xf32>
    %cst_181 = arith.constant 1.000000e+00 : f32
    %836 = vector.broadcast %cst_181 : f32 to vector<1x384xf32>
    %837 = arith.addf %836, %835 : vector<1x384xf32>
    %838 = arith.divf %836, %837 : vector<1x384xf32>
    %839 = vector.extract_strided_slice %832 {offsets = [0, 384], sizes = [1, 128], strides = [1, 1]} : vector<1x512xf32> to vector<1x128xf32>
    %840 = math.tanh %839 : vector<1x128xf32>
    %841 = vector.extract_strided_slice %838 {offsets = [0, 128], sizes = [1, 128], strides = [1, 1]} : vector<1x384xf32> to vector<1x128xf32>
    %842 = arith.mulf %841, %825 : vector<1x128xf32>
    %843 = vector.extract_strided_slice %838 {offsets = [0, 0], sizes = [1, 128], strides = [1, 1]} : vector<1x384xf32> to vector<1x128xf32>
    %844 = arith.mulf %843, %840 : vector<1x128xf32>
    %845 = arith.addf %842, %844 : vector<1x128xf32>
    %846 = vector.extract_strided_slice %838 {offsets = [0, 256], sizes = [1, 128], strides = [1, 1]} : vector<1x384xf32> to vector<1x128xf32>
    %847 = math.tanh %845 : vector<1x128xf32>
    %848 = arith.mulf %846, %847 : vector<1x128xf32>
    %c4_182 = arith.constant 4 : index
    %c0_183 = arith.constant 0 : index
    %849 = vector.load %arg4[%c4_182, %c0_183] : memref<8x128xf32, #tpu.memory_space<vmem>>, vector<1x128xf32>
    tpu.vector_store %arg4[%c4_182, %c0_183], %848 {strides = array<i32>} : memref<8x128xf32, #tpu.memory_space<vmem>>, vector<1x128xf32>,
    %850 = vector.extract_strided_slice %747 {offsets = [5, 0], sizes = [1, 512], strides = [1, 1]} : vector<8x512xf32> to vector<1x512xf32>
    %cst_184 = arith.constant dense<0.000000e+00> : vector<1x512xf32>
    %851 = tpu.matmul %848, %743, %cst_184 {dimension_numbers = #tpu.dot_dimension_numbers<[1], [0], [0], [1], [0, 0, 1, 1], [], []>} : vector<1x128xf32>, vector<128x512xf32>, vector<1x512xf32> -> vector<1x512xf32>
    %852 = arith.addf %850, %851 : vector<1x512xf32>
    %853 = vector.extract_strided_slice %852 {offsets = [0, 0], sizes = [1, 384], strides = [1, 1]} : vector<1x512xf32> to vector<1x384xf32>
    %854 = arith.negf %853 : vector<1x384xf32>
    %855 = math.exp %854 : vector<1x384xf32>
    %cst_185 = arith.constant 1.000000e+00 : f32
    %856 = vector.broadcast %cst_185 : f32 to vector<1x384xf32>
    %857 = arith.addf %856, %855 : vector<1x384xf32>
    %858 = arith.divf %856, %857 : vector<1x384xf32>
    %859 = vector.extract_strided_slice %852 {offsets = [0, 384], sizes = [1, 128], strides = [1, 1]} : vector<1x512xf32> to vector<1x128xf32>
    %860 = math.tanh %859 : vector<1x128xf32>
    %861 = vector.extract_strided_slice %858 {offsets = [0, 128], sizes = [1, 128], strides = [1, 1]} : vector<1x384xf32> to vector<1x128xf32>
    %862 = arith.mulf %861, %845 : vector<1x128xf32>
    %863 = vector.extract_strided_slice %858 {offsets = [0, 0], sizes = [1, 128], strides = [1, 1]} : vector<1x384xf32> to vector<1x128xf32>
    %864 = arith.mulf %863, %860 : vector<1x128xf32>
    %865 = arith.addf %862, %864 : vector<1x128xf32>
    %866 = vector.extract_strided_slice %858 {offsets = [0, 256], sizes = [1, 128], strides = [1, 1]} : vector<1x384xf32> to vector<1x128xf32>
    %867 = math.tanh %865 : vector<1x128xf32>
    %868 = arith.mulf %866, %867 : vector<1x128xf32>
    %c5_186 = arith.constant 5 : index
    %c0_187 = arith.constant 0 : index
    %869 = vector.load %arg4[%c5_186, %c0_187] : memref<8x128xf32, #tpu.memory_space<vmem>>, vector<1x128xf32>
    tpu.vector_store %arg4[%c5_186, %c0_187], %868 {strides = array<i32>} : memref<8x128xf32, #tpu.memory_space<vmem>>, vector<1x128xf32>,
    %870 = vector.extract_strided_slice %747 {offsets = [6, 0], sizes = [1, 512], strides = [1, 1]} : vector<8x512xf32> to vector<1x512xf32>
    %cst_188 = arith.constant dense<0.000000e+00> : vector<1x512xf32>
    %871 = tpu.matmul %868, %743, %cst_188 {dimension_numbers = #tpu.dot_dimension_numbers<[1], [0], [0], [1], [0, 0, 1, 1], [], []>} : vector<1x128xf32>, vector<128x512xf32>, vector<1x512xf32> -> vector<1x512xf32>
    %872 = arith.addf %870, %871 : vector<1x512xf32>
    %873 = vector.extract_strided_slice %872 {offsets = [0, 0], sizes = [1, 384], strides = [1, 1]} : vector<1x512xf32> to vector<1x384xf32>
    %874 = arith.negf %873 : vector<1x384xf32>
    %875 = math.exp %874 : vector<1x384xf32>
    %cst_189 = arith.constant 1.000000e+00 : f32
    %876 = vector.broadcast %cst_189 : f32 to vector<1x384xf32>
    %877 = arith.addf %876, %875 : vector<1x384xf32>
    %878 = arith.divf %876, %877 : vector<1x384xf32>
    %879 = vector.extract_strided_slice %872 {offsets = [0, 384], sizes = [1, 128], strides = [1, 1]} : vector<1x512xf32> to vector<1x128xf32>
    %880 = math.tanh %879 : vector<1x128xf32>
    %881 = vector.extract_strided_slice %878 {offsets = [0, 128], sizes = [1, 128], strides = [1, 1]} : vector<1x384xf32> to vector<1x128xf32>
    %882 = arith.mulf %881, %865 : vector<1x128xf32>
    %883 = vector.extract_strided_slice %878 {offsets = [0, 0], sizes = [1, 128], strides = [1, 1]} : vector<1x384xf32> to vector<1x128xf32>
    %884 = arith.mulf %883, %880 : vector<1x128xf32>
    %885 = arith.addf %882, %884 : vector<1x128xf32>
    %886 = vector.extract_strided_slice %878 {offsets = [0, 256], sizes = [1, 128], strides = [1, 1]} : vector<1x384xf32> to vector<1x128xf32>
    %887 = math.tanh %885 : vector<1x128xf32>
    %888 = arith.mulf %886, %887 : vector<1x128xf32>
    %c6_190 = arith.constant 6 : index
    %c0_191 = arith.constant 0 : index
    %889 = vector.load %arg4[%c6_190, %c0_191] : memref<8x128xf32, #tpu.memory_space<vmem>>, vector<1x128xf32>
    tpu.vector_store %arg4[%c6_190, %c0_191], %888 {strides = array<i32>} : memref<8x128xf32, #tpu.memory_space<vmem>>, vector<1x128xf32>,
    %890 = vector.extract_strided_slice %747 {offsets = [7, 0], sizes = [1, 512], strides = [1, 1]} : vector<8x512xf32> to vector<1x512xf32>
    %cst_192 = arith.constant dense<0.000000e+00> : vector<1x512xf32>
    %891 = tpu.matmul %888, %743, %cst_192 {dimension_numbers = #tpu.dot_dimension_numbers<[1], [0], [0], [1], [0, 0, 1, 1], [], []>} : vector<1x128xf32>, vector<128x512xf32>, vector<1x512xf32> -> vector<1x512xf32>
    %892 = arith.addf %890, %891 : vector<1x512xf32>
    %893 = vector.extract_strided_slice %892 {offsets = [0, 0], sizes = [1, 384], strides = [1, 1]} : vector<1x512xf32> to vector<1x384xf32>
    %894 = arith.negf %893 : vector<1x384xf32>
    %895 = math.exp %894 : vector<1x384xf32>
    %cst_193 = arith.constant 1.000000e+00 : f32
    %896 = vector.broadcast %cst_193 : f32 to vector<1x384xf32>
    %897 = arith.addf %896, %895 : vector<1x384xf32>
    %898 = arith.divf %896, %897 : vector<1x384xf32>
    %899 = vector.extract_strided_slice %892 {offsets = [0, 384], sizes = [1, 128], strides = [1, 1]} : vector<1x512xf32> to vector<1x128xf32>
    %900 = math.tanh %899 : vector<1x128xf32>
    %901 = vector.extract_strided_slice %898 {offsets = [0, 128], sizes = [1, 128], strides = [1, 1]} : vector<1x384xf32> to vector<1x128xf32>
    %902 = arith.mulf %901, %885 : vector<1x128xf32>
    %903 = vector.extract_strided_slice %898 {offsets = [0, 0], sizes = [1, 128], strides = [1, 1]} : vector<1x384xf32> to vector<1x128xf32>
    %904 = arith.mulf %903, %900 : vector<1x128xf32>
    %905 = arith.addf %902, %904 : vector<1x128xf32>
    %906 = vector.extract_strided_slice %898 {offsets = [0, 256], sizes = [1, 128], strides = [1, 1]} : vector<1x384xf32> to vector<1x128xf32>
    %907 = math.tanh %905 : vector<1x128xf32>
    %908 = arith.mulf %906, %907 : vector<1x128xf32>
    %c7_194 = arith.constant 7 : index
    %c0_195 = arith.constant 0 : index
    %909 = vector.load %arg4[%c7_194, %c0_195] : memref<8x128xf32, #tpu.memory_space<vmem>>, vector<1x128xf32>
    tpu.vector_store %arg4[%c7_194, %c0_195], %908 {strides = array<i32>} : memref<8x128xf32, #tpu.memory_space<vmem>>, vector<1x128xf32>,
    %c0_196 = arith.constant 0 : index
    %c0_197 = arith.constant 0 : index
    %910 = vector.load %arg4[%c0_196, %c0_197] : memref<8x128xf32, #tpu.memory_space<vmem>>, vector<8x128xf32>
    %c176 = arith.constant 176 : index
    %c0_198 = arith.constant 0 : index
    %911 = vector.load %arg2[%c176, %c0_198] : memref<216x128xf32, #tpu.memory_space<vmem>>, vector<1x128xf32>
    %c184 = arith.constant 184 : index
    %c0_199 = arith.constant 0 : index
    %912 = vector.load %arg2[%c184, %c0_199] : memref<216x128xf32, #tpu.memory_space<vmem>>, vector<1x128xf32>
    %cst_200 = arith.constant dense<0.000000e+00> : vector<8xf32>
    %913 = vector.multi_reduction <add>, %910, %cst_200 [1] : vector<8x128xf32> to vector<8xf32>
    %914 = vector.shape_cast %913 : vector<8xf32> to vector<8x1xf32>
    %cst_201 = arith.constant 3.125000e-02 : f32
    %915 = vector.broadcast %cst_201 : f32 to vector<8x1xf32>
    %916 = arith.mulf %914, %915 : vector<8x1xf32>
    %917 = arith.mulf %910, %910 : vector<8x128xf32>
    %cst_202 = arith.constant dense<0.000000e+00> : vector<8xf32>
    %918 = vector.multi_reduction <add>, %917, %cst_202 [1] : vector<8x128xf32> to vector<8xf32>
    %919 = vector.shape_cast %918 : vector<8xf32> to vector<8x1xf32>
    %cst_203 = arith.constant 3.125000e-02 : f32
    %920 = vector.broadcast %cst_203 : f32 to vector<8x1xf32>
    %921 = arith.mulf %919, %920 : vector<8x1xf32>
    %922 = arith.mulf %916, %916 : vector<8x1xf32>
    %923 = arith.subf %921, %922 : vector<8x1xf32>
    %cst_204 = arith.constant 9.99999974E-6 : f32
    %924 = vector.broadcast %cst_204 : f32 to vector<8x1xf32>
    %925 = arith.addf %923, %924 : vector<8x1xf32>
    %926 = math.rsqrt %925 : vector<8x1xf32>
    %927 = vector.broadcast %916 : vector<8x1xf32> to vector<8x128xf32>
    %928 = arith.subf %910, %927 : vector<8x128xf32>
    %929 = vector.broadcast %926 : vector<8x1xf32> to vector<8x128xf32>
    %930 = arith.mulf %928, %929 : vector<8x128xf32>
    %931 = vector.broadcast %911 : vector<1x128xf32> to vector<8x128xf32>
    %932 = arith.mulf %930, %931 : vector<8x128xf32>
    %933 = vector.broadcast %912 : vector<1x128xf32> to vector<8x128xf32>
    %934 = arith.addf %932, %933 : vector<8x128xf32>
    %c1320 = arith.constant 1320 : index
    %c0_205 = arith.constant 0 : index
    %935 = vector.load %arg1[%c1320, %c0_205] : memref<1584x512xf32, #tpu.memory_space<vmem>>, vector<128x512xf32>
    %c1448 = arith.constant 1448 : index
    %c0_206 = arith.constant 0 : index
    %936 = vector.load %arg1[%c1448, %c0_206] : memref<1584x512xf32, #tpu.memory_space<vmem>>, vector<128x512xf32>
    %c1576 = arith.constant 1576 : index
    %c0_207 = arith.constant 0 : index
    %937 = vector.load %arg1[%c1576, %c0_207] : memref<1584x512xf32, #tpu.memory_space<vmem>>, vector<1x512xf32>
    %cst_208 = arith.constant dense<0.000000e+00> : vector<8x512xf32>
    %938 = tpu.matmul %934, %935, %cst_208 {dimension_numbers = #tpu.dot_dimension_numbers<[1], [0], [0], [1], [0, 0, 1, 1], [], []>} : vector<8x128xf32>, vector<128x512xf32>, vector<8x512xf32> -> vector<8x512xf32>
    %939 = vector.broadcast %937 : vector<1x512xf32> to vector<8x512xf32>
    %940 = arith.addf %938, %939 : vector<8x512xf32>
    %cst_209 = arith.constant 0.000000e+00 : f32
    %941 = vector.broadcast %cst_209 : f32 to vector<1x128xf32>
    %cst_210 = arith.constant 0.000000e+00 : f32
    %942 = vector.broadcast %cst_210 : f32 to vector<1x128xf32>
    %943 = vector.extract_strided_slice %940 {offsets = [0, 0], sizes = [1, 512], strides = [1, 1]} : vector<8x512xf32> to vector<1x512xf32>
    %cst_211 = arith.constant dense<0.000000e+00> : vector<1x512xf32>
    %944 = tpu.matmul %941, %936, %cst_211 {dimension_numbers = #tpu.dot_dimension_numbers<[1], [0], [0], [1], [0, 0, 1, 1], [], []>} : vector<1x128xf32>, vector<128x512xf32>, vector<1x512xf32> -> vector<1x512xf32>
    %945 = arith.addf %943, %944 : vector<1x512xf32>
    %946 = vector.extract_strided_slice %945 {offsets = [0, 0], sizes = [1, 384], strides = [1, 1]} : vector<1x512xf32> to vector<1x384xf32>
    %947 = arith.negf %946 : vector<1x384xf32>
    %948 = math.exp %947 : vector<1x384xf32>
    %cst_212 = arith.constant 1.000000e+00 : f32
    %949 = vector.broadcast %cst_212 : f32 to vector<1x384xf32>
    %950 = arith.addf %949, %948 : vector<1x384xf32>
    %951 = arith.divf %949, %950 : vector<1x384xf32>
    %952 = vector.extract_strided_slice %945 {offsets = [0, 384], sizes = [1, 128], strides = [1, 1]} : vector<1x512xf32> to vector<1x128xf32>
    %953 = math.tanh %952 : vector<1x128xf32>
    %954 = vector.extract_strided_slice %951 {offsets = [0, 128], sizes = [1, 128], strides = [1, 1]} : vector<1x384xf32> to vector<1x128xf32>
    %955 = arith.mulf %954, %942 : vector<1x128xf32>
    %956 = vector.extract_strided_slice %951 {offsets = [0, 0], sizes = [1, 128], strides = [1, 1]} : vector<1x384xf32> to vector<1x128xf32>
    %957 = arith.mulf %956, %953 : vector<1x128xf32>
    %958 = arith.addf %955, %957 : vector<1x128xf32>
    %959 = vector.extract_strided_slice %951 {offsets = [0, 256], sizes = [1, 128], strides = [1, 1]} : vector<1x384xf32> to vector<1x128xf32>
    %960 = math.tanh %958 : vector<1x128xf32>
    %961 = arith.mulf %959, %960 : vector<1x128xf32>
    %c0_213 = arith.constant 0 : index
    %c0_214 = arith.constant 0 : index
    %962 = vector.load %arg4[%c0_213, %c0_214] : memref<8x128xf32, #tpu.memory_space<vmem>>, vector<1x128xf32>
    tpu.vector_store %arg4[%c0_213, %c0_214], %961 {strides = array<i32>} : memref<8x128xf32, #tpu.memory_space<vmem>>, vector<1x128xf32>,
    %963 = vector.extract_strided_slice %940 {offsets = [1, 0], sizes = [1, 512], strides = [1, 1]} : vector<8x512xf32> to vector<1x512xf32>
    %cst_215 = arith.constant dense<0.000000e+00> : vector<1x512xf32>
    %964 = tpu.matmul %961, %936, %cst_215 {dimension_numbers = #tpu.dot_dimension_numbers<[1], [0], [0], [1], [0, 0, 1, 1], [], []>} : vector<1x128xf32>, vector<128x512xf32>, vector<1x512xf32> -> vector<1x512xf32>
    %965 = arith.addf %963, %964 : vector<1x512xf32>
    %966 = vector.extract_strided_slice %965 {offsets = [0, 0], sizes = [1, 384], strides = [1, 1]} : vector<1x512xf32> to vector<1x384xf32>
    %967 = arith.negf %966 : vector<1x384xf32>
    %968 = math.exp %967 : vector<1x384xf32>
    %cst_216 = arith.constant 1.000000e+00 : f32
    %969 = vector.broadcast %cst_216 : f32 to vector<1x384xf32>
    %970 = arith.addf %969, %968 : vector<1x384xf32>
    %971 = arith.divf %969, %970 : vector<1x384xf32>
    %972 = vector.extract_strided_slice %965 {offsets = [0, 384], sizes = [1, 128], strides = [1, 1]} : vector<1x512xf32> to vector<1x128xf32>
    %973 = math.tanh %972 : vector<1x128xf32>
    %974 = vector.extract_strided_slice %971 {offsets = [0, 128], sizes = [1, 128], strides = [1, 1]} : vector<1x384xf32> to vector<1x128xf32>
    %975 = arith.mulf %974, %958 : vector<1x128xf32>
    %976 = vector.extract_strided_slice %971 {offsets = [0, 0], sizes = [1, 128], strides = [1, 1]} : vector<1x384xf32> to vector<1x128xf32>
    %977 = arith.mulf %976, %973 : vector<1x128xf32>
    %978 = arith.addf %975, %977 : vector<1x128xf32>
    %979 = vector.extract_strided_slice %971 {offsets = [0, 256], sizes = [1, 128], strides = [1, 1]} : vector<1x384xf32> to vector<1x128xf32>
    %980 = math.tanh %978 : vector<1x128xf32>
    %981 = arith.mulf %979, %980 : vector<1x128xf32>
    %c1_217 = arith.constant 1 : index
    %c0_218 = arith.constant 0 : index
    %982 = vector.load %arg4[%c1_217, %c0_218] : memref<8x128xf32, #tpu.memory_space<vmem>>, vector<1x128xf32>
    tpu.vector_store %arg4[%c1_217, %c0_218], %981 {strides = array<i32>} : memref<8x128xf32, #tpu.memory_space<vmem>>, vector<1x128xf32>,
    %983 = vector.extract_strided_slice %940 {offsets = [2, 0], sizes = [1, 512], strides = [1, 1]} : vector<8x512xf32> to vector<1x512xf32>
    %cst_219 = arith.constant dense<0.000000e+00> : vector<1x512xf32>
    %984 = tpu.matmul %981, %936, %cst_219 {dimension_numbers = #tpu.dot_dimension_numbers<[1], [0], [0], [1], [0, 0, 1, 1], [], []>} : vector<1x128xf32>, vector<128x512xf32>, vector<1x512xf32> -> vector<1x512xf32>
    %985 = arith.addf %983, %984 : vector<1x512xf32>
    %986 = vector.extract_strided_slice %985 {offsets = [0, 0], sizes = [1, 384], strides = [1, 1]} : vector<1x512xf32> to vector<1x384xf32>
    %987 = arith.negf %986 : vector<1x384xf32>
    %988 = math.exp %987 : vector<1x384xf32>
    %cst_220 = arith.constant 1.000000e+00 : f32
    %989 = vector.broadcast %cst_220 : f32 to vector<1x384xf32>
    %990 = arith.addf %989, %988 : vector<1x384xf32>
    %991 = arith.divf %989, %990 : vector<1x384xf32>
    %992 = vector.extract_strided_slice %985 {offsets = [0, 384], sizes = [1, 128], strides = [1, 1]} : vector<1x512xf32> to vector<1x128xf32>
    %993 = math.tanh %992 : vector<1x128xf32>
    %994 = vector.extract_strided_slice %991 {offsets = [0, 128], sizes = [1, 128], strides = [1, 1]} : vector<1x384xf32> to vector<1x128xf32>
    %995 = arith.mulf %994, %978 : vector<1x128xf32>
    %996 = vector.extract_strided_slice %991 {offsets = [0, 0], sizes = [1, 128], strides = [1, 1]} : vector<1x384xf32> to vector<1x128xf32>
    %997 = arith.mulf %996, %993 : vector<1x128xf32>
    %998 = arith.addf %995, %997 : vector<1x128xf32>
    %999 = vector.extract_strided_slice %991 {offsets = [0, 256], sizes = [1, 128], strides = [1, 1]} : vector<1x384xf32> to vector<1x128xf32>
    %1000 = math.tanh %998 : vector<1x128xf32>
    %1001 = arith.mulf %999, %1000 : vector<1x128xf32>
    %c2_221 = arith.constant 2 : index
    %c0_222 = arith.constant 0 : index
    %1002 = vector.load %arg4[%c2_221, %c0_222] : memref<8x128xf32, #tpu.memory_space<vmem>>, vector<1x128xf32>
    tpu.vector_store %arg4[%c2_221, %c0_222], %1001 {strides = array<i32>} : memref<8x128xf32, #tpu.memory_space<vmem>>, vector<1x128xf32>,
    %1003 = vector.extract_strided_slice %940 {offsets = [3, 0], sizes = [1, 512], strides = [1, 1]} : vector<8x512xf32> to vector<1x512xf32>
    %cst_223 = arith.constant dense<0.000000e+00> : vector<1x512xf32>
    %1004 = tpu.matmul %1001, %936, %cst_223 {dimension_numbers = #tpu.dot_dimension_numbers<[1], [0], [0], [1], [0, 0, 1, 1], [], []>} : vector<1x128xf32>, vector<128x512xf32>, vector<1x512xf32> -> vector<1x512xf32>
    %1005 = arith.addf %1003, %1004 : vector<1x512xf32>
    %1006 = vector.extract_strided_slice %1005 {offsets = [0, 0], sizes = [1, 384], strides = [1, 1]} : vector<1x512xf32> to vector<1x384xf32>
    %1007 = arith.negf %1006 : vector<1x384xf32>
    %1008 = math.exp %1007 : vector<1x384xf32>
    %cst_224 = arith.constant 1.000000e+00 : f32
    %1009 = vector.broadcast %cst_224 : f32 to vector<1x384xf32>
    %1010 = arith.addf %1009, %1008 : vector<1x384xf32>
    %1011 = arith.divf %1009, %1010 : vector<1x384xf32>
    %1012 = vector.extract_strided_slice %1005 {offsets = [0, 384], sizes = [1, 128], strides = [1, 1]} : vector<1x512xf32> to vector<1x128xf32>
    %1013 = math.tanh %1012 : vector<1x128xf32>
    %1014 = vector.extract_strided_slice %1011 {offsets = [0, 128], sizes = [1, 128], strides = [1, 1]} : vector<1x384xf32> to vector<1x128xf32>
    %1015 = arith.mulf %1014, %998 : vector<1x128xf32>
    %1016 = vector.extract_strided_slice %1011 {offsets = [0, 0], sizes = [1, 128], strides = [1, 1]} : vector<1x384xf32> to vector<1x128xf32>
    %1017 = arith.mulf %1016, %1013 : vector<1x128xf32>
    %1018 = arith.addf %1015, %1017 : vector<1x128xf32>
    %1019 = vector.extract_strided_slice %1011 {offsets = [0, 256], sizes = [1, 128], strides = [1, 1]} : vector<1x384xf32> to vector<1x128xf32>
    %1020 = math.tanh %1018 : vector<1x128xf32>
    %1021 = arith.mulf %1019, %1020 : vector<1x128xf32>
    %c3_225 = arith.constant 3 : index
    %c0_226 = arith.constant 0 : index
    %1022 = vector.load %arg4[%c3_225, %c0_226] : memref<8x128xf32, #tpu.memory_space<vmem>>, vector<1x128xf32>
    tpu.vector_store %arg4[%c3_225, %c0_226], %1021 {strides = array<i32>} : memref<8x128xf32, #tpu.memory_space<vmem>>, vector<1x128xf32>,
    %1023 = vector.extract_strided_slice %940 {offsets = [4, 0], sizes = [1, 512], strides = [1, 1]} : vector<8x512xf32> to vector<1x512xf32>
    %cst_227 = arith.constant dense<0.000000e+00> : vector<1x512xf32>
    %1024 = tpu.matmul %1021, %936, %cst_227 {dimension_numbers = #tpu.dot_dimension_numbers<[1], [0], [0], [1], [0, 0, 1, 1], [], []>} : vector<1x128xf32>, vector<128x512xf32>, vector<1x512xf32> -> vector<1x512xf32>
    %1025 = arith.addf %1023, %1024 : vector<1x512xf32>
    %1026 = vector.extract_strided_slice %1025 {offsets = [0, 0], sizes = [1, 384], strides = [1, 1]} : vector<1x512xf32> to vector<1x384xf32>
    %1027 = arith.negf %1026 : vector<1x384xf32>
    %1028 = math.exp %1027 : vector<1x384xf32>
    %cst_228 = arith.constant 1.000000e+00 : f32
    %1029 = vector.broadcast %cst_228 : f32 to vector<1x384xf32>
    %1030 = arith.addf %1029, %1028 : vector<1x384xf32>
    %1031 = arith.divf %1029, %1030 : vector<1x384xf32>
    %1032 = vector.extract_strided_slice %1025 {offsets = [0, 384], sizes = [1, 128], strides = [1, 1]} : vector<1x512xf32> to vector<1x128xf32>
    %1033 = math.tanh %1032 : vector<1x128xf32>
    %1034 = vector.extract_strided_slice %1031 {offsets = [0, 128], sizes = [1, 128], strides = [1, 1]} : vector<1x384xf32> to vector<1x128xf32>
    %1035 = arith.mulf %1034, %1018 : vector<1x128xf32>
    %1036 = vector.extract_strided_slice %1031 {offsets = [0, 0], sizes = [1, 128], strides = [1, 1]} : vector<1x384xf32> to vector<1x128xf32>
    %1037 = arith.mulf %1036, %1033 : vector<1x128xf32>
    %1038 = arith.addf %1035, %1037 : vector<1x128xf32>
    %1039 = vector.extract_strided_slice %1031 {offsets = [0, 256], sizes = [1, 128], strides = [1, 1]} : vector<1x384xf32> to vector<1x128xf32>
    %1040 = math.tanh %1038 : vector<1x128xf32>
    %1041 = arith.mulf %1039, %1040 : vector<1x128xf32>
    %c4_229 = arith.constant 4 : index
    %c0_230 = arith.constant 0 : index
    %1042 = vector.load %arg4[%c4_229, %c0_230] : memref<8x128xf32, #tpu.memory_space<vmem>>, vector<1x128xf32>
    tpu.vector_store %arg4[%c4_229, %c0_230], %1041 {strides = array<i32>} : memref<8x128xf32, #tpu.memory_space<vmem>>, vector<1x128xf32>,
    %1043 = vector.extract_strided_slice %940 {offsets = [5, 0], sizes = [1, 512], strides = [1, 1]} : vector<8x512xf32> to vector<1x512xf32>
    %cst_231 = arith.constant dense<0.000000e+00> : vector<1x512xf32>
    %1044 = tpu.matmul %1041, %936, %cst_231 {dimension_numbers = #tpu.dot_dimension_numbers<[1], [0], [0], [1], [0, 0, 1, 1], [], []>} : vector<1x128xf32>, vector<128x512xf32>, vector<1x512xf32> -> vector<1x512xf32>
    %1045 = arith.addf %1043, %1044 : vector<1x512xf32>
    %1046 = vector.extract_strided_slice %1045 {offsets = [0, 0], sizes = [1, 384], strides = [1, 1]} : vector<1x512xf32> to vector<1x384xf32>
    %1047 = arith.negf %1046 : vector<1x384xf32>
    %1048 = math.exp %1047 : vector<1x384xf32>
    %cst_232 = arith.constant 1.000000e+00 : f32
    %1049 = vector.broadcast %cst_232 : f32 to vector<1x384xf32>
    %1050 = arith.addf %1049, %1048 : vector<1x384xf32>
    %1051 = arith.divf %1049, %1050 : vector<1x384xf32>
    %1052 = vector.extract_strided_slice %1045 {offsets = [0, 384], sizes = [1, 128], strides = [1, 1]} : vector<1x512xf32> to vector<1x128xf32>
    %1053 = math.tanh %1052 : vector<1x128xf32>
    %1054 = vector.extract_strided_slice %1051 {offsets = [0, 128], sizes = [1, 128], strides = [1, 1]} : vector<1x384xf32> to vector<1x128xf32>
    %1055 = arith.mulf %1054, %1038 : vector<1x128xf32>
    %1056 = vector.extract_strided_slice %1051 {offsets = [0, 0], sizes = [1, 128], strides = [1, 1]} : vector<1x384xf32> to vector<1x128xf32>
    %1057 = arith.mulf %1056, %1053 : vector<1x128xf32>
    %1058 = arith.addf %1055, %1057 : vector<1x128xf32>
    %1059 = vector.extract_strided_slice %1051 {offsets = [0, 256], sizes = [1, 128], strides = [1, 1]} : vector<1x384xf32> to vector<1x128xf32>
    %1060 = math.tanh %1058 : vector<1x128xf32>
    %1061 = arith.mulf %1059, %1060 : vector<1x128xf32>
    %c5_233 = arith.constant 5 : index
    %c0_234 = arith.constant 0 : index
    %1062 = vector.load %arg4[%c5_233, %c0_234] : memref<8x128xf32, #tpu.memory_space<vmem>>, vector<1x128xf32>
    tpu.vector_store %arg4[%c5_233, %c0_234], %1061 {strides = array<i32>} : memref<8x128xf32, #tpu.memory_space<vmem>>, vector<1x128xf32>,
    %1063 = vector.extract_strided_slice %940 {offsets = [6, 0], sizes = [1, 512], strides = [1, 1]} : vector<8x512xf32> to vector<1x512xf32>
    %cst_235 = arith.constant dense<0.000000e+00> : vector<1x512xf32>
    %1064 = tpu.matmul %1061, %936, %cst_235 {dimension_numbers = #tpu.dot_dimension_numbers<[1], [0], [0], [1], [0, 0, 1, 1], [], []>} : vector<1x128xf32>, vector<128x512xf32>, vector<1x512xf32> -> vector<1x512xf32>
    %1065 = arith.addf %1063, %1064 : vector<1x512xf32>
    %1066 = vector.extract_strided_slice %1065 {offsets = [0, 0], sizes = [1, 384], strides = [1, 1]} : vector<1x512xf32> to vector<1x384xf32>
    %1067 = arith.negf %1066 : vector<1x384xf32>
    %1068 = math.exp %1067 : vector<1x384xf32>
    %cst_236 = arith.constant 1.000000e+00 : f32
    %1069 = vector.broadcast %cst_236 : f32 to vector<1x384xf32>
    %1070 = arith.addf %1069, %1068 : vector<1x384xf32>
    %1071 = arith.divf %1069, %1070 : vector<1x384xf32>
    %1072 = vector.extract_strided_slice %1065 {offsets = [0, 384], sizes = [1, 128], strides = [1, 1]} : vector<1x512xf32> to vector<1x128xf32>
    %1073 = math.tanh %1072 : vector<1x128xf32>
    %1074 = vector.extract_strided_slice %1071 {offsets = [0, 128], sizes = [1, 128], strides = [1, 1]} : vector<1x384xf32> to vector<1x128xf32>
    %1075 = arith.mulf %1074, %1058 : vector<1x128xf32>
    %1076 = vector.extract_strided_slice %1071 {offsets = [0, 0], sizes = [1, 128], strides = [1, 1]} : vector<1x384xf32> to vector<1x128xf32>
    %1077 = arith.mulf %1076, %1073 : vector<1x128xf32>
    %1078 = arith.addf %1075, %1077 : vector<1x128xf32>
    %1079 = vector.extract_strided_slice %1071 {offsets = [0, 256], sizes = [1, 128], strides = [1, 1]} : vector<1x384xf32> to vector<1x128xf32>
    %1080 = math.tanh %1078 : vector<1x128xf32>
    %1081 = arith.mulf %1079, %1080 : vector<1x128xf32>
    %c6_237 = arith.constant 6 : index
    %c0_238 = arith.constant 0 : index
    %1082 = vector.load %arg4[%c6_237, %c0_238] : memref<8x128xf32, #tpu.memory_space<vmem>>, vector<1x128xf32>
    tpu.vector_store %arg4[%c6_237, %c0_238], %1081 {strides = array<i32>} : memref<8x128xf32, #tpu.memory_space<vmem>>, vector<1x128xf32>,
    %1083 = vector.extract_strided_slice %940 {offsets = [7, 0], sizes = [1, 512], strides = [1, 1]} : vector<8x512xf32> to vector<1x512xf32>
    %cst_239 = arith.constant dense<0.000000e+00> : vector<1x512xf32>
    %1084 = tpu.matmul %1081, %936, %cst_239 {dimension_numbers = #tpu.dot_dimension_numbers<[1], [0], [0], [1], [0, 0, 1, 1], [], []>} : vector<1x128xf32>, vector<128x512xf32>, vector<1x512xf32> -> vector<1x512xf32>
    %1085 = arith.addf %1083, %1084 : vector<1x512xf32>
    %1086 = vector.extract_strided_slice %1085 {offsets = [0, 0], sizes = [1, 384], strides = [1, 1]} : vector<1x512xf32> to vector<1x384xf32>
    %1087 = arith.negf %1086 : vector<1x384xf32>
    %1088 = math.exp %1087 : vector<1x384xf32>
    %cst_240 = arith.constant 1.000000e+00 : f32
    %1089 = vector.broadcast %cst_240 : f32 to vector<1x384xf32>
    %1090 = arith.addf %1089, %1088 : vector<1x384xf32>
    %1091 = arith.divf %1089, %1090 : vector<1x384xf32>
    %1092 = vector.extract_strided_slice %1085 {offsets = [0, 384], sizes = [1, 128], strides = [1, 1]} : vector<1x512xf32> to vector<1x128xf32>
    %1093 = math.tanh %1092 : vector<1x128xf32>
    %1094 = vector.extract_strided_slice %1091 {offsets = [0, 128], sizes = [1, 128], strides = [1, 1]} : vector<1x384xf32> to vector<1x128xf32>
    %1095 = arith.mulf %1094, %1078 : vector<1x128xf32>
    %1096 = vector.extract_strided_slice %1091 {offsets = [0, 0], sizes = [1, 128], strides = [1, 1]} : vector<1x384xf32> to vector<1x128xf32>
    %1097 = arith.mulf %1096, %1093 : vector<1x128xf32>
    %1098 = arith.addf %1095, %1097 : vector<1x128xf32>
    %1099 = vector.extract_strided_slice %1091 {offsets = [0, 256], sizes = [1, 128], strides = [1, 1]} : vector<1x384xf32> to vector<1x128xf32>
    %1100 = math.tanh %1098 : vector<1x128xf32>
    %1101 = arith.mulf %1099, %1100 : vector<1x128xf32>
    %c7_241 = arith.constant 7 : index
    %c0_242 = arith.constant 0 : index
    %1102 = vector.load %arg4[%c7_241, %c0_242] : memref<8x128xf32, #tpu.memory_space<vmem>>, vector<1x128xf32>
    tpu.vector_store %arg4[%c7_241, %c0_242], %1101 {strides = array<i32>} : memref<8x128xf32, #tpu.memory_space<vmem>>, vector<1x128xf32>,
    %c0_243 = arith.constant 0 : index
    %c0_244 = arith.constant 0 : index
    %1103 = vector.load %arg4[%c0_243, %c0_244] : memref<8x128xf32, #tpu.memory_space<vmem>>, vector<8x128xf32>
    %c192 = arith.constant 192 : index
    %c0_245 = arith.constant 0 : index
    %1104 = vector.load %arg2[%c192, %c0_245] : memref<216x128xf32, #tpu.memory_space<vmem>>, vector<1x128xf32>
    %c200 = arith.constant 200 : index
    %c0_246 = arith.constant 0 : index
    %1105 = vector.load %arg2[%c200, %c0_246] : memref<216x128xf32, #tpu.memory_space<vmem>>, vector<1x128xf32>
    %cst_247 = arith.constant dense<0.000000e+00> : vector<8xf32>
    %1106 = vector.multi_reduction <add>, %1103, %cst_247 [1] : vector<8x128xf32> to vector<8xf32>
    %1107 = vector.shape_cast %1106 : vector<8xf32> to vector<8x1xf32>
    %cst_248 = arith.constant 7.812500e-03 : f32
    %1108 = vector.broadcast %cst_248 : f32 to vector<8x1xf32>
    %1109 = arith.mulf %1107, %1108 : vector<8x1xf32>
    %1110 = arith.mulf %1103, %1103 : vector<8x128xf32>
    %cst_249 = arith.constant dense<0.000000e+00> : vector<8xf32>
    %1111 = vector.multi_reduction <add>, %1110, %cst_249 [1] : vector<8x128xf32> to vector<8xf32>
    %1112 = vector.shape_cast %1111 : vector<8xf32> to vector<8x1xf32>
    %cst_250 = arith.constant 7.812500e-03 : f32
    %1113 = vector.broadcast %cst_250 : f32 to vector<8x1xf32>
    %1114 = arith.mulf %1112, %1113 : vector<8x1xf32>
    %1115 = arith.mulf %1109, %1109 : vector<8x1xf32>
    %1116 = arith.subf %1114, %1115 : vector<8x1xf32>
    %cst_251 = arith.constant 9.99999974E-6 : f32
    %1117 = vector.broadcast %cst_251 : f32 to vector<8x1xf32>
    %1118 = arith.addf %1116, %1117 : vector<8x1xf32>
    %1119 = math.rsqrt %1118 : vector<8x1xf32>
    %1120 = vector.broadcast %1109 : vector<8x1xf32> to vector<8x128xf32>
    %1121 = arith.subf %1103, %1120 : vector<8x128xf32>
    %1122 = vector.broadcast %1119 : vector<8x1xf32> to vector<8x128xf32>
    %1123 = arith.mulf %1121, %1122 : vector<8x128xf32>
    %1124 = vector.broadcast %1104 : vector<1x128xf32> to vector<8x128xf32>
    %1125 = arith.mulf %1123, %1124 : vector<8x128xf32>
    %1126 = vector.broadcast %1105 : vector<1x128xf32> to vector<8x128xf32>
    %1127 = arith.addf %1125, %1126 : vector<8x128xf32>
    %c0_252 = arith.constant 0 : index
    %c0_253 = arith.constant 0 : index
    %1128 = vector.load %arg2[%c0_252, %c0_253] : memref<216x128xf32, #tpu.memory_space<vmem>>, vector<128x128xf32>
    %cst_254 = arith.constant dense<0.000000e+00> : vector<8x128xf32>
    %1129 = tpu.matmul %1127, %1128, %cst_254 {dimension_numbers = #tpu.dot_dimension_numbers<[1], [0], [0], [1], [0, 0, 1, 1], [], []>} : vector<8x128xf32>, vector<128x128xf32>, vector<8x128xf32> -> vector<8x128xf32>
    %c208 = arith.constant 208 : index
    %c0_255 = arith.constant 0 : index
    %1130 = vector.load %arg2[%c208, %c0_255] : memref<216x128xf32, #tpu.memory_space<vmem>>, vector<1x128xf32>
    %1131 = vector.broadcast %1130 : vector<1x128xf32> to vector<8x128xf32>
    %1132 = arith.addf %1129, %1131 : vector<8x128xf32>
    %c0_256 = arith.constant 0 : index
    %c0_257 = arith.constant 0 : index
    %1133 = vector.load %arg3[%c0_256, %c0_257] : memref<8x128xf32, #tpu.memory_space<vmem>>, vector<8x128xf32>
    tpu.vector_store %arg3[%c0_256, %c0_257], %1132 {strides = array<i32>} : memref<8x128xf32, #tpu.memory_space<vmem>>, vector<8x128xf32>,
    return
  }
}

</mosaic_0001>

<bundles_post_ra>
// kernel: tpu_custom_call.1
= control target key start
LH: loop header
LB: loop body
LE: loop exit
PB: predicated region body
PF: predicated region fallthrough
CT: control target
= control target key end

     0   :  { %8 = vsyncpa [#allocation4], 0  ;;  %s18158_s0 = inlined_call_operand.hbm [shape: f32[8,128], index: 0, kind: input, shape index: {}]   ;;  %s18159_s1 = inlined_call_operand.hbm [shape: f32[1584,512], index: 1, kind: input, shape index: {}]   ;;  %s18160_s2 = inlined_call_operand.hbm [shape: f32[216,128], index: 2, kind: input, shape index: {}]   ;;  %s18161_s3 = inlined_call_operand.hbm [shape: f32[8,128], index: 3, kind: output, shape index: {}]  }
   0x1   :  { %9 = vsyncpa [#allocation7], 0 }
   0x2   :  { %10 = vsyncpa [#allocation5], 0  ;;  %s15563_s12 = smov [#allocation6]   ;;  %s15469_s16 = scalar_lea.hbm %s18159_s1, 101376 }
   0x3   :  { %s26_s13 = sshll.u32 %s15563_s12, 4  ;;  %p15470_p0 = scmp.ne.s32.totalorder %s18159_s1, %s15469_s16  ;;  %s27_s13 = int_to_ptr.vmem [resolvable:$true] %s26_s13 }
   0x4   :  { %p15473_p1 = scmp.lt.u32.totalorder %s15469_s16, %s18159_s1 }
   0x6   :  { %p15475_p2 = pnand %p15473_p1, %p15470_p0 }
   0x8   :  { %15478 = shalt.err (!%p15475_p2)
}
   0x9   :  { %s15479_s21 = scalar_lea.vmem %s27_s13, 101376  ;;  %p15484_p4 = scmp.lt.s32.totalorder %s27_s13, %s27_s13 }
   0xa   :  { %p15480_p3 = scmp.ne.s32.totalorder %s27_s13, %s15479_s21  ;;  %p15485_p5 = scmp.lt.s32.totalorder %s15479_s21, %s15479_s21 }
   0xc   :  { %p15486_p6 = por %p15485_p5, %p15484_p4 }
   0xe   :  { %p15487_p7 = pnand %p15486_p6, %p15480_p3 }
  0x10   :  { %15490 = shalt.err (!%p15487_p7)
}
  0x11   :  { %s15564_s22 = smov 512   ;;  %s15565_s23 = smov 32  }
  0x12   :  { %32 = dma.hbm_to_vmem [thread:$0]  %s18159_s1, 101376, %s27_s13, [#allocation7], %s15564_s22, %s15564_s22, %s15565_s23  }
  0x13   :  { %s15566_s26 = smov [#allocation3]   ;;  %s15567_s28 = smov [#allocation8]  }
  0x14   :  { %s17_s27 = sshll.u32 %s15566_s26, 4  ;;  %s38_s29 = sshll.u32 %s15567_s28, 4  ;;  %s18_s27 = int_to_ptr.vmem [resolvable:$true] %s17_s27  ;;  %s39_s29 = int_to_ptr.vmem [resolvable:$true] %s38_s29 }
  0x15   :  { %s15491_s5 = scalar_lea.hbm %s18158_s0, 128 }
  0x16   :  { %p15492_p8 = scmp.ne.s32.totalorder %s18158_s0, %s15491_s5  ;;  %p15495_p9 = scmp.lt.u32.totalorder %s15491_s5, %s18158_s0 }
  0x18   :  { %p15497_p10 = pnand %p15495_p9, %p15492_p8 }
  0x1a   :  { %15500 = shalt.err (!%p15497_p10)
}
  0x1b   :  { %s15501_s1 = scalar_lea.vmem %s18_s27, 128  ;;  %p15506_p12 = scmp.lt.s32.totalorder %s18_s27, %s18_s27 }
  0x1c   :  { %p15502_p11 = scmp.ne.s32.totalorder %s18_s27, %s15501_s1  ;;  %p15507_p13 = scmp.lt.s32.totalorder %s15501_s1, %s15501_s1 }
  0x1e   :  { %p15508_p0 = por %p15507_p13, %p15506_p12 }
  0x20   :  { %p15509_p1 = pnand %p15508_p0, %p15502_p11 }
  0x22   :  { %15512 = shalt.err (!%p15509_p1)
}
  0x23   :  { %20 = dma.hbm_to_vmem [thread:$0]  %s18158_s0, 128, %s18_s27, [#allocation4]  }
  0x24   :  { %s15513_s14 = scalar_lea.hbm %s18160_s2, 3456 }
  0x25   :  { %p15514_p2 = scmp.ne.s32.totalorder %s18160_s2, %s15513_s14  ;;  %p15517_p3 = scmp.lt.u32.totalorder %s15513_s14, %s18160_s2 }
  0x27   :  { %p15519_p4 = pnand %p15517_p3, %p15514_p2 }
  0x29   :  { %15522 = shalt.err (!%p15519_p4)
}
  0x2a   :  { %s15523_s19 = scalar_lea.vmem %s39_s29, 3456  ;;  %p15528_p6 = scmp.lt.s32.totalorder %s39_s29, %s39_s29 }
  0x2b   :  { %p15524_p5 = scmp.ne.s32.totalorder %s39_s29, %s15523_s19  ;;  %p15529_p7 = scmp.lt.s32.totalorder %s15523_s19, %s15523_s19 }
  0x2d   :  { %p15530_p8 = por %p15529_p7, %p15528_p6 }
  0x2f   :  { %p15531_p9 = pnand %p15530_p8, %p15524_p5 }
  0x31   :  { %15534 = shalt.err (!%p15531_p9)
}
  0x32   :  { %s15568_s0 = smov 128   ;;  %s15569_s20 = smov 8  }
  0x33   :  { %44 = dma.hbm_to_vmem [thread:$0]  %s18160_s2, 3456, %s39_s29, [#allocation7], %s15568_s0, %s15568_s0, %s15569_s20  }
  0x34   :  { %15557 = dma.done.wait [#allocation4], 128  }
  0x35   :  { %15558 = vsyncadd [#allocation4], 4294967168 }
  0x36   :  { %15559 = dma.done.wait [#allocation7], 104832  }
  0x37   :  { %15560 = vsyncadd [#allocation7], 4294862464  ;;  %v15570_v0 = vmov 0.0   ;;  %v56_v1 = vld [vmem:[#allocation6 + $0x8] sm:$0xff]  ;;  %v58_v3 = vld [vmem:[#allocation6 + $0x18] sm:$0xff]  ;;  %vm15572_vm0 = vmmov 0  }
  0x38   :  { %270 = vmatprep.mubr.f32.mxu0 %v15570_v0  ;;  %341 = vmatprep.mubr.f32.mxu1 %v15570_v0  ;;  %v60_v2 = vld [vmem:[#allocation6 + $0x28] sm:$0xff]  ;;  %v62_v5 = vld [vmem:[#allocation6 + $0x38] sm:$0xff]  ;;  %v55_v6 = vld [vmem:[#allocation6] sm:$0xff]  ;;  %s15573_s2 = smov [#allocation9]  }
  0x39   :  { %v11200_v4 = vpack.c.bf16 %v60_v2, %v56_v1  ;;  %v59_v7 = vld [vmem:[#allocation6 + $0x20] sm:$0xff]  ;;  %v11232_v8 = vpack.c.bf16 %v62_v5, %v58_v3  ;;  %v57_v10 = vld [vmem:[#allocation6 + $0x10] sm:$0xff]  ;;  %v64_v12 = vld [vmem:[#allocation6 + $0x48] sm:$0xff]  ;;  %s10983_s23 = sshll.u32 %s15573_s2, 4  ;;  %s10984_s23 = int_to_ptr.vmem [resolvable:$true] %s10983_s23 }
  0x3a   :  { %v11202_v9 = vpack.c.bf16 %v59_v7, %v55_v6  ;;  %v61_v11 = vld [vmem:[#allocation6 + $0x30] sm:$0xff]  ;;  %v68_v14 = vld [vmem:[#allocation6 + $0x68] sm:$0xff]  ;;  %v66_v15 = vld [vmem:[#allocation6 + $0x58] sm:$0xff]  ;;  %s15535_s24 = scalar_lea.vmem %s10984_s23, 128  ;;  %p15540_p11 = scmp.lt.s32.totalorder %s10984_s23, %s10984_s23 }
  0x3b   :  { %11201 = vmatprep.subr.bf16.mxu0 %v11200_v4  ;;  %v11234_v13 = vpack.c.bf16 %v61_v11, %v57_v10  ;;  %v70_v16 = vld [vmem:[#allocation6 + $0x78] sm:$0xff]  ;;  %11233 = vmatprep.subr.bf16.mxu1 %v11232_v8  ;;  %v11204_v17 = vpack.c.bf16 %v68_v14, %v64_v12  ;;  %v63_v19 = vld [vmem:[#allocation6 + $0x40] sm:$0xff]  ;;  %v65_v21 = vld [vmem:[#allocation6 + $0x50] sm:$0xff]  ;;  %p15536_p10 = scmp.ne.s32.totalorder %s10984_s23, %s15535_s24  ;;  %p15541_p12 = scmp.lt.s32.totalorder %s15535_s24, %s15535_s24 }
  0x3c   :  { %11203 = vmatpush1.bf16.msra.mxu0 %v11202_v9  ;;  %v11236_v18 = vpack.c.bf16 %v70_v16, %v66_v15  ;;  %v67_v20 = vld [vmem:[#allocation6 + $0x60] sm:$0xff]  ;;  %v69_v23 = vld [vmem:[#allocation6 + $0x70] sm:$0xff]  ;;  %v72_v24 = vld [vmem:[#allocation6 + $0x88] sm:$0xff] }
  0x3d   :  { %11235 = vmatpush1.bf16.msra.mxu1 %v11234_v13  ;;  %v11206_v22 = vpack.c.bf16 %v67_v20, %v63_v19  ;;  %v76_v25 = vld [vmem:[#allocation6 + $0xa8] sm:$0xff]  ;;  %11205 = vmatprep.subr.bf16.mxu0 %v11204_v17  ;;  %v11238_v26 = vpack.c.bf16 %v69_v23, %v65_v21  ;;  %v74_v28 = vld [vmem:[#allocation6 + $0x98] sm:$0xff]  ;;  %v71_v30 = vld [vmem:[#allocation6 + $0x80] sm:$0xff]  ;;  %p15542_p13 = por %p15541_p12, %p15540_p11 }
  0x3e   :  { %11237 = vmatprep.subr.bf16.mxu1 %v11236_v18  ;;  %v11208_v27 = vpack.c.bf16 %v76_v25, %v72_v24  ;;  %v78_v29 = vld [vmem:[#allocation6 + $0xb8] sm:$0xff]  ;;  %v75_v32 = vld [vmem:[#allocation6 + $0xa0] sm:$0xff]  ;;  %v73_v33 = vld [vmem:[#allocation6 + $0x90] sm:$0xff] }
  0x3f   :  { %v11240_v31 = vpack.c.bf16 %v78_v29, %v74_v28  ;;  %v77_v34 = vld [vmem:[#allocation6 + $0xb0] sm:$0xff]  ;;  %v11210_v35 = vpack.c.bf16 %v75_v32, %v71_v30  ;;  %v80_v36 = vld [vmem:[#allocation6 + $0xc8] sm:$0xff]  ;;  %v82_v38 = vld [vmem:[#allocation6 + $0xd8] sm:$0xff]  ;;  %p15543_p0 = pnand %p15542_p13, %p15536_p10 }
  0x40   :  { %11207 = vmatpush1.bf16.msra.mxu0 %v11206_v22  ;;  %v84_v37 = vld [vmem:[#allocation6 + $0xe8] sm:$0xff]  ;;  %v11242_v39 = vpack.c.bf16 %v77_v34, %v73_v33  ;;  %v86_v41 = vld [vmem:[#allocation6 + $0xf8] sm:$0xff]  ;;  %v79_v42 = vld [vmem:[#allocation6 + $0xc0] sm:$0xff] }
  0x41   :  { %11239 = vmatpush1.bf16.msra.mxu1 %v11238_v26  ;;  %11209 = vmatprep.subr.bf16.mxu0 %v11208_v27  ;;  %v11212_v40 = vpack.c.bf16 %v84_v37, %v80_v36  ;;  %v83_v43 = vld [vmem:[#allocation6 + $0xe0] sm:$0xff]  ;;  %v11244_v44 = vpack.c.bf16 %v86_v41, %v82_v38  ;;  %v81_v45 = vld [vmem:[#allocation6 + $0xd0] sm:$0xff]  ;;  %v88_v47 = vld [vmem:[#allocation6 + $0x108] sm:$0xff] }
  0x42   :  { %11241 = vmatprep.subr.bf16.mxu1 %v11240_v31  ;;  %v85_v46 = vld [vmem:[#allocation6 + $0xf0] sm:$0xff]  ;;  %v92_v48 = vld [vmem:[#allocation6 + $0x128] sm:$0xff]  ;;  %v90_v49 = vld [vmem:[#allocation6 + $0x118] sm:$0xff]  ;;  %v11214_v51 = vpack.c.bf16 %v83_v43, %v79_v42 }
  0x43   :  { %v94_v50 = vld [vmem:[#allocation6 + $0x138] sm:$0xff]  ;;  %v11246_v52 = vpack.c.bf16 %v85_v46, %v81_v45  ;;  %v11216_v53 = vpack.c.bf16 %v92_v48, %v88_v47  ;;  %v87_v54 = vld [vmem:[#allocation6 + $0x100] sm:$0xff]  ;;  %v89_v56 = vld [vmem:[#allocation6 + $0x110] sm:$0xff] }
  0x44   :  { %11211 = vmatpush1.bf16.msra.mxu0 %v11210_v35  ;;  %v91_v55 = vld [vmem:[#allocation6 + $0x120] sm:$0xff]  ;;  %v11248_v57 = vpack.c.bf16 %v94_v50, %v90_v49  ;;  %v93_v58 = vld [vmem:[#allocation6 + $0x130] sm:$0xff]  ;;  %v96_v59 = vld [vmem:[#allocation6 + $0x148] sm:$0xff] }
  0x45   :  { %11243 = vmatpush1.bf16.msra.mxu1 %v11242_v39  ;;  %11213 = vmatprep.subr.bf16.mxu0 %v11212_v40  ;;  %v100_v60 = vld [vmem:[#allocation6 + $0x168] sm:$0xff]  ;;  %v98_v61 = vld [vmem:[#allocation6 + $0x158] sm:$0xff]  ;;  %v11218_v63 = vpack.c.bf16 %v91_v55, %v87_v54  ;;  %v11250_v1 = vpack.c.bf16 %v93_v58, %v89_v56  ;;  %v95_v3 = vld [vmem:[#allocation6 + $0x140] sm:$0xff] }
  0x46   :  { %11245 = vmatprep.subr.bf16.mxu1 %v11244_v44  ;;  %v102_v62 = vld [vmem:[#allocation6 + $0x178] sm:$0xff]  ;;  %v11220_v2 = vpack.c.bf16 %v100_v60, %v96_v59  ;;  %v99_v4 = vld [vmem:[#allocation6 + $0x160] sm:$0xff]  ;;  %v97_v5 = vld [vmem:[#allocation6 + $0x150] sm:$0xff] }
  0x47   :  { %v11252_v6 = vpack.c.bf16 %v102_v62, %v98_v61  ;;  %v101_v7 = vld [vmem:[#allocation6 + $0x170] sm:$0xff]  ;;  %v104_v8 = vld [vmem:[#allocation6 + $0x188] sm:$0xff]  ;;  %v106_v10 = vld [vmem:[#allocation6 + $0x198] sm:$0xff]  ;;  %v11222_v12 = vpack.c.bf16 %v99_v4, %v95_v3 }
  0x48   :  { %11215 = vmatpush1.bf16.msra.mxu0 %v11214_v51  ;;  %v108_v9 = vld [vmem:[#allocation6 + $0x1a8] sm:$0xff]  ;;  %v110_v11 = vld [vmem:[#allocation6 + $0x1b8] sm:$0xff]  ;;  %v11254_v13 = vpack.c.bf16 %v101_v7, %v97_v5  ;;  %v103_v15 = vld [vmem:[#allocation6 + $0x180] sm:$0xff] }
  0x49   :  { %11247 = vmatpush1.bf16.msra.mxu1 %v11246_v52  ;;  %11217 = vmatprep.subr.bf16.mxu0 %v11216_v53  ;;  %v11224_v14 = vpack.c.bf16 %v108_v9, %v104_v8  ;;  %v107_v16 = vld [vmem:[#allocation6 + $0x1a0] sm:$0xff]  ;;  %v105_v17 = vld [vmem:[#allocation6 + $0x190] sm:$0xff]  ;;  %v11256_v18 = vpack.c.bf16 %v110_v11, %v106_v10  ;;  %v112_v20 = vld [vmem:[#allocation6 + $0x1c8] sm:$0xff] }
  0x4a   :  { %11249 = vmatprep.subr.bf16.mxu1 %v11248_v57  ;;  %v109_v19 = vld [vmem:[#allocation6 + $0x1b0] sm:$0xff]  ;;  %v116_v21 = vld [vmem:[#allocation6 + $0x1e8] sm:$0xff]  ;;  %v114_v22 = vld [vmem:[#allocation6 + $0x1d8] sm:$0xff]  ;;  %v11226_v24 = vpack.c.bf16 %v107_v16, %v103_v15 }
  0x4b   :  { %v118_v23 = vld [vmem:[#allocation6 + $0x1f8] sm:$0xff]  ;;  %v11258_v25 = vpack.c.bf16 %v109_v19, %v105_v17  ;;  %v11228_v26 = vpack.c.bf16 %v116_v21, %v112_v20  ;;  %v111_v27 = vld [vmem:[#allocation6 + $0x1c0] sm:$0xff]  ;;  %v113_v29 = vld [vmem:[#allocation6 + $0x1d0] sm:$0xff] }
  0x4c   :  { %11219 = vmatpush1.bf16.msra.mxu0 %v11218_v63  ;;  %v115_v28 = vld [vmem:[#allocation6 + $0x1e0] sm:$0xff]  ;;  %v11260_v30 = vpack.c.bf16 %v118_v23, %v114_v22  ;;  %v117_v31 = vld [vmem:[#allocation6 + $0x1f0] sm:$0xff]  ;;  %v120_v32 = vld [vmem:[#allocation6 + $0x208] sm:$0xff] }
  0x4d   :  { %11251 = vmatpush1.bf16.msra.mxu1 %v11250_v1  ;;  %11221 = vmatprep.subr.bf16.mxu0 %v11220_v2  ;;  %v124_v33 = vld [vmem:[#allocation6 + $0x228] sm:$0xff]  ;;  %v122_v34 = vld [vmem:[#allocation6 + $0x218] sm:$0xff]  ;;  %v11230_v36 = vpack.c.bf16 %v115_v28, %v111_v27  ;;  %v11262_v37 = vpack.c.bf16 %v117_v31, %v113_v29  ;;  %v119_v39 = vld [vmem:[#allocation6 + $0x200] sm:$0xff] }
  0x4e   :  { %11253 = vmatprep.subr.bf16.mxu1 %v11252_v6  ;;  %v126_v35 = vld [vmem:[#allocation6 + $0x238] sm:$0xff]  ;;  %v15632_v38 = vpack.c.bf16 %v124_v33, %v120_v32  ;;  %v123_v40 = vld [vmem:[#allocation6 + $0x220] sm:$0xff]  ;;  %v121_v41 = vld [vmem:[#allocation6 + $0x210] sm:$0xff] }
  0x4f   :  { %v15634_v42 = vpack.c.bf16 %v126_v35, %v122_v34  ;;  %v125_v43 = vld [vmem:[#allocation6 + $0x230] sm:$0xff]  ;;  %v128_v44 = vld [vmem:[#allocation6 + $0x248] sm:$0xff]  ;;  %v130_v46 = vld [vmem:[#allocation6 + $0x258] sm:$0xff]  ;;  %v15636_v49 = vpack.c.bf16 %v123_v40, %v119_v39 }
  0x50   :  { %11223 = vmatpush1.bf16.msra.mxu0 %v11222_v12  ;;  %v132_v45 = vld [vmem:[#allocation6 + $0x268] sm:$0xff]  ;;  %v134_v47 = vld [vmem:[#allocation6 + $0x278] sm:$0xff]  ;;  %v15639_v50 = vpack.c.bf16 %v125_v43, %v121_v41  ;;  %v127_v52 = vld [vmem:[#allocation6 + $0x240] sm:$0xff] }
  0x51   :  { %11255 = vmatpush1.bf16.msra.mxu1 %v11254_v13  ;;  %11225 = vmatprep.subr.bf16.mxu0 %v11224_v14  ;;  %v54_v48 = vld [vmem:[#allocation3] sm:$0xff]  ;;  %v15641_v51 = vpack.c.bf16 %v132_v45, %v128_v44  ;;  %v131_v53 = vld [vmem:[#allocation6 + $0x260] sm:$0xff]  ;;  %v129_v54 = vld [vmem:[#allocation6 + $0x250] sm:$0xff]  ;;  %v15644_v55 = vpack.c.bf16 %v134_v47, %v130_v46 }
  0x52   :  { %11257 = vmatprep.subr.bf16.mxu1 %v11256_v18  ;;  %v133_v56 = vld [vmem:[#allocation6 + $0x270] sm:$0xff]  ;;  %v136_v57 = vld [vmem:[#allocation6 + $0x288] sm:$0xff]  ;;  %v138_v59 = vld [vmem:[#allocation6 + $0x298] sm:$0xff]  ;;  %v15647_v61 = vpack.c.bf16 %v131_v53, %v127_v52 }
  0x53   :  { %v140_v58 = vld [vmem:[#allocation6 + $0x2a8] sm:$0xff]  ;;  %v142_v60 = vld [vmem:[#allocation6 + $0x2b8] sm:$0xff]  ;;  %v15651_v62 = vpack.c.bf16 %v133_v56, %v129_v54  ;;  %v135_v1 = vld [vmem:[#allocation6 + $0x280] sm:$0xff] }
  0x54   :  { %11227 = vmatpush1.bf16.msra.mxu0 %v11226_v24  ;;  %v15653_v63 = vpack.c.bf16 %v140_v58, %v136_v57  ;;  %v139_v2 = vld [vmem:[#allocation6 + $0x2a0] sm:$0xff]  ;;  %v137_v3 = vld [vmem:[#allocation6 + $0x290] sm:$0xff]  ;;  %v15656_v4 = vpack.c.bf16 %v142_v60, %v138_v59  ;;  %v144_v6 = vld [vmem:[#allocation6 + $0x2c8] sm:$0xff] }
  0x55   :  { %11259 = vmatpush1.bf16.msra.mxu1 %v11258_v25  ;;  %11229 = vmatprep.subr.bf16.mxu0 %v11228_v26  ;;  %v141_v5 = vld [vmem:[#allocation6 + $0x2b0] sm:$0xff]  ;;  %v148_v7 = vld [vmem:[#allocation6 + $0x2e8] sm:$0xff]  ;;  %v146_v8 = vld [vmem:[#allocation6 + $0x2d8] sm:$0xff]  ;;  %v15661_v10 = vpack.c.bf16 %v139_v2, %v135_v1 }
  0x56   :  { %11261 = vmatprep.subr.bf16.mxu1 %v11260_v30  ;;  %v150_v9 = vld [vmem:[#allocation6 + $0x2f8] sm:$0xff]  ;;  %v15665_v11 = vpack.c.bf16 %v141_v5, %v137_v3  ;;  %v15667_v12 = vpack.c.bf16 %v148_v7, %v144_v6  ;;  %v143_v13 = vld [vmem:[#allocation6 + $0x2c0] sm:$0xff]  ;;  %v145_v15 = vld [vmem:[#allocation6 + $0x2d0] sm:$0xff] }
  0x57   :  { %v147_v14 = vld [vmem:[#allocation6 + $0x2e0] sm:$0xff]  ;;  %v15670_v16 = vpack.c.bf16 %v150_v9, %v146_v8  ;;  %v149_v17 = vld [vmem:[#allocation6 + $0x2f0] sm:$0xff]  ;;  %v152_v18 = vld [vmem:[#allocation6 + $0x308] sm:$0xff] }
  0x58   :  { %11231 = vmatpush1.bf16.msra.mxu0 %v11230_v36  ;;  %v156_v19 = vld [vmem:[#allocation6 + $0x328] sm:$0xff]  ;;  %v154_v20 = vld [vmem:[#allocation6 + $0x318] sm:$0xff]  ;;  %v15673_v22 = vpack.c.bf16 %v147_v14, %v143_v13  ;;  %v15677_v23 = vpack.c.bf16 %v149_v17, %v145_v15  ;;  %v151_v25 = vld [vmem:[#allocation6 + $0x300] sm:$0xff] }
  0x59   :  { %11263 = vmatpush1.bf16.msra.mxu1 %v11262_v37  ;;  %11265 = vmatprep.subr.bf16.mxu0 %v15632_v38  ;;  %v158_v21 = vld [vmem:[#allocation6 + $0x338] sm:$0xff]  ;;  %v15679_v24 = vpack.c.bf16 %v156_v19, %v152_v18  ;;  %v155_v26 = vld [vmem:[#allocation6 + $0x320] sm:$0xff]  ;;  %v153_v27 = vld [vmem:[#allocation6 + $0x310] sm:$0xff] }
  0x5a   :  { %11297 = vmatprep.subr.bf16.mxu1 %v15634_v42  ;;  %v15682_v28 = vpack.c.bf16 %v158_v21, %v154_v20  ;;  %v157_v29 = vld [vmem:[#allocation6 + $0x330] sm:$0xff]  ;;  %v160_v30 = vld [vmem:[#allocation6 + $0x348] sm:$0xff]  ;;  %v162_v32 = vld [vmem:[#allocation6 + $0x358] sm:$0xff]  ;;  %v15685_v34 = vpack.c.bf16 %v155_v26, %v151_v25  ;;  %v186_v26 = vlaneseq }
  0x5b   :  { %271 = vmatmul.mubr.f32.vlgmr.msra.gmra.mrb[0].mxu0 %v54_v48  ;;  %v164_v31 = vld [vmem:[#allocation6 + $0x368] sm:$0xff]  ;;  %v166_v33 = vld [vmem:[#allocation6 + $0x378] sm:$0xff]  ;;  %v15689_v35 = vpack.c.bf16 %v157_v29, %v153_v27  ;;  %v159_v37 = vld [vmem:[#allocation6 + $0x340] sm:$0xff] }
  0x5c   :  { %342 = vmatmul.mubr.f32.vlgmr.msra.gmra.mrb[0].mxu1 %v54_v48  ;;  %11267 = vmatpush1.bf16.msra.mxu0 %v15636_v49  ;;  %v15691_v36 = vpack.c.bf16 %v164_v31, %v160_v30  ;;  %v163_v39 = vld [vmem:[#allocation6 + $0x360] sm:$0xff]  ;;  %v161_v40 = vld [vmem:[#allocation6 + $0x350] sm:$0xff]  ;;  %v15694_v41 = vpack.c.bf16 %v166_v33, %v162_v32  ;;  %v168_v44 = vld [vmem:[#allocation6 + $0x388] sm:$0xff]  ;;  %v15768_v27 = vshrl.u32 %v186_v26, 7 }
  0x5d   :  { %11299 = vmatpush1.bf16.msra.mxu1 %v15639_v50  ;;  %11269 = vmatprep.subr.bf16.mxu0 %v15641_v51  ;;  %v165_v43 = vld [vmem:[#allocation6 + $0x370] sm:$0xff]  ;;  %v172_v45 = vld [vmem:[#allocation6 + $0x3a8] sm:$0xff]  ;;  %v170_v46 = vld [vmem:[#allocation6 + $0x398] sm:$0xff]  ;;  %v15697_v48 = vpack.c.bf16 %v163_v39, %v159_v37 }
  0x5e   :  { %11301 = vmatprep.subr.bf16.mxu1 %v15644_v55  ;;  %412 = vmatprep.mubr.f32.mxu0 %v15570_v0  ;;  %v174_v47 = vld [vmem:[#allocation6 + $0x3b8] sm:$0xff]  ;;  %v15701_v52 = vpack.c.bf16 %v165_v43, %v161_v40  ;;  %v15703_v53 = vpack.c.bf16 %v172_v45, %v168_v44  ;;  %v167_v54 = vld [vmem:[#allocation6 + $0x380] sm:$0xff]  ;;  %v169_v57 = vld [vmem:[#allocation6 + $0x390] sm:$0xff]  ;;  %v15771_v29 = vsub.s32 0, %v15768_v27  ;;  %v15774_v31 = vsub.s32 1, %v15768_v27 }
  0x5f   :  { %483 = vmatprep.mubr.f32.mxu1 %v15570_v0  ;;  %v171_v56 = vld [vmem:[#allocation6 + $0x3a0] sm:$0xff]  ;;  %v15706_v58 = vpack.c.bf16 %v174_v47, %v170_v46  ;;  %v173_v59 = vld [vmem:[#allocation6 + $0x3b0] sm:$0xff]  ;;  %v176_v60 = vld [vmem:[#allocation6 + $0x3c8] sm:$0xff]  ;;  %v15779_v37 = vsub.s32 2, %v15768_v27 }
  0x60   :  { %11271 = vmatpush1.bf16.msra.mxu0 %v15647_v61  ;;  %v180_v1 = vld [vmem:[#allocation6 + $0x3e8] sm:$0xff]  ;;  %v178_v2 = vld [vmem:[#allocation6 + $0x3d8] sm:$0xff]  ;;  %v15709_v5 = vpack.c.bf16 %v171_v56, %v167_v54  ;;  %v15713_v6 = vpack.c.bf16 %v173_v59, %v169_v57  ;;  %v175_v8 = vld [vmem:[#allocation6 + $0x3c0] sm:$0xff]  ;;  %v15789_v57 = vsub.s32 3, %v15768_v27 }
  0x61   :  { %11303 = vmatpush1.bf16.msra.mxu1 %v15651_v62  ;;  %11273 = vmatprep.subr.bf16.mxu0 %v15653_v63  ;;  %v182_v3 = vld [vmem:[#allocation6 + $0x3f8] sm:$0xff]  ;;  %v15715_v7 = vpack.c.bf16 %v180_v1, %v176_v60  ;;  %v179_v9 = vld [vmem:[#allocation6 + $0x3e0] sm:$0xff]  ;;  %v177_v14 = vld [vmem:[#allocation6 + $0x3d0] sm:$0xff] }
  0x62   :  { %11305 = vmatprep.subr.bf16.mxu1 %v15656_v4  ;;  %v15718_v13 = vpack.c.bf16 %v182_v3, %v178_v2  ;;  %v181_v15 = vld [vmem:[#allocation6 + $0x3f0] sm:$0xff]  ;;  %v15721_v17 = vpack.c.bf16 %v179_v9, %v175_v8 }
  0x63   :  { %v15725_v18 = vpack.c.bf16 %v181_v15, %v177_v14  ;;  %v184_v30 = vld [vmem:[#allocation6 + $0x400] ss:$8 sm:$0xf] }
  0x64   :  { %11275 = vmatpush1.bf16.msra.mxu0 %v15661_v10  ;;  %v189_v32 = vrot.slane %v184_v30, %v15771_v29  ;;  %v193_v33 = vrot.slane %v184_v30, %v15774_v31  ;;  %v197_v47 = vrot.slane %v184_v30, %v15779_v37  ;;  %v201_v2 = vrot.slane %v184_v30, %v15789_v57 }
  0x65   :  { %11307 = vmatpush1.bf16.msra.mxu1 %v15665_v11  ;;  %11277 = vmatprep.subr.bf16.mxu0 %v15667_v12 }
  0x66   :  { %11309 = vmatprep.subr.bf16.mxu1 %v15670_v16 }
  0x68   :  { %11279 = vmatpush1.bf16.msra.mxu0 %v15673_v22 }
  0x69   :  { %11311 = vmatpush1.bf16.msra.mxu1 %v15677_v23  ;;  %11281 = vmatprep.subr.bf16.mxu0 %v15679_v24 }
  0x6a   :  { %11313 = vmatprep.subr.bf16.mxu1 %v15682_v28 }
  0x6c   :  { %11283 = vmatpush1.bf16.msra.mxu0 %v15685_v34 }
  0x6d   :  { %11315 = vmatpush1.bf16.msra.mxu1 %v15689_v35  ;;  %11285 = vmatprep.subr.bf16.mxu0 %v15691_v36 }
  0x6e   :  { %11317 = vmatprep.subr.bf16.mxu1 %v15694_v41 }
  0x70   :  { %11287 = vmatpush1.bf16.msra.mxu0 %v15697_v48 }
  0x71   :  { %11319 = vmatpush1.bf16.msra.mxu1 %v15701_v52  ;;  %11289 = vmatprep.subr.bf16.mxu0 %v15703_v53 }
  0x72   :  { %11321 = vmatprep.subr.bf16.mxu1 %v15706_v58 }
  0x74   :  { %11291 = vmatpush1.bf16.msra.mxu0 %v15709_v5 }
  0x75   :  { %11323 = vmatpush1.bf16.msra.mxu1 %v15713_v6  ;;  %11293 = vmatprep.subr.bf16.mxu0 %v15715_v7 }
  0x76   :  { %11325 = vmatprep.subr.bf16.mxu1 %v15718_v13 }
  0x78   :  { %11295 = vmatpush1.bf16.msra.mxu0 %v15721_v17 }
  0x79   :  { %11327 = vmatpush1.bf16.msra.mxu1 %v15725_v18  ;;  %11329 = vmatprep.subr.bf16.mxu0 %v15632_v38 }
  0x7a   :  { %11361 = vmatprep.subr.bf16.mxu1 %v15634_v42 }
  0x7b   :  { %413 = vmatmul.mubr.f32.vlgmr.msra.gmra.mrb[2].mxu0 %v15570_v0 }
  0x7c   :  { %484 = vmatmul.mubr.f32.vlgmr.msra.gmra.mrb[2].mxu1 %v15570_v0  ;;  %11331 = vmatpush1.bf16.msra.mxu0 %v15636_v49 }
  0x7d   :  { %11363 = vmatpush1.bf16.msra.mxu1 %v15639_v50  ;;  %11333 = vmatprep.subr.bf16.mxu0 %v15641_v51 }
  0x7e   :  { %11365 = vmatprep.subr.bf16.mxu1 %v15644_v55  ;;  %583 = vmatprep.mubr.f32.mxu0 %v15570_v0 }
  0x7f   :  { %654 = vmatprep.mubr.f32.mxu1 %v15570_v0 }
  0x80   :  { %11335 = vmatpush1.bf16.msra.mxu0 %v15647_v61 }
  0x81   :  { %11367 = vmatpush1.bf16.msra.mxu1 %v15651_v62  ;;  %11337 = vmatprep.subr.bf16.mxu0 %v15653_v63 }
  0x82   :  { %11369 = vmatprep.subr.bf16.mxu1 %v15656_v4 }
  0x84   :  { %11339 = vmatpush1.bf16.msra.mxu0 %v15661_v10 }
  0x85   :  { %11371 = vmatpush1.bf16.msra.mxu1 %v15665_v11  ;;  %11341 = vmatprep.subr.bf16.mxu0 %v15667_v12 }
  0x86   :  { %11373 = vmatprep.subr.bf16.mxu1 %v15670_v16 }
  0x88   :  { %11343 = vmatpush1.bf16.msra.mxu0 %v15673_v22 }
  0x89   :  { %11375 = vmatpush1.bf16.msra.mxu1 %v15677_v23  ;;  %11345 = vmatprep.subr.bf16.mxu0 %v15679_v24 }
  0x8a   :  { %11377 = vmatprep.subr.bf16.mxu1 %v15682_v28 }
  0x8c   :  { %11347 = vmatpush1.bf16.msra.mxu0 %v15685_v34 }
  0x8d   :  { %11379 = vmatpush1.bf16.msra.mxu1 %v15689_v35  ;;  %11349 = vmatprep.subr.bf16.mxu0 %v15691_v36 }
  0x8e   :  { %11381 = vmatprep.subr.bf16.mxu1 %v15694_v41 }
  0x90   :  { %11351 = vmatpush1.bf16.msra.mxu0 %v15697_v48 }
  0x91   :  { %11383 = vmatpush1.bf16.msra.mxu1 %v15701_v52  ;;  %11353 = vmatprep.subr.bf16.mxu0 %v15703_v53 }
  0x92   :  { %11385 = vmatprep.subr.bf16.mxu1 %v15706_v58 }
  0x94   :  { %11355 = vmatpush1.bf16.msra.mxu0 %v15709_v5 }
  0x95   :  { %11387 = vmatpush1.bf16.msra.mxu1 %v15713_v6  ;;  %11357 = vmatprep.subr.bf16.mxu0 %v15715_v7 }
  0x96   :  { %11389 = vmatprep.subr.bf16.mxu1 %v15718_v13 }
  0x98   :  { %11359 = vmatpush1.bf16.msra.mxu0 %v15721_v17 }
  0x99   :  { %11391 = vmatpush1.bf16.msra.mxu1 %v15725_v18  ;;  %11393 = vmatprep.subr.bf16.mxu0 %v15632_v38 }
  0x9a   :  { %11425 = vmatprep.subr.bf16.mxu1 %v15634_v42 }
 0x12e   :  { %v272_v19 = vpop.f32.mrb[0].mxu0 }
 0x12f   :  { %v274_v20 = vpop.f32.mrb[1].mxu0  ;;  %v343_v21 = vpop.f32.mrb[0].mxu1  ;;  %v15781_v39 = vadd.f32 %v272_v19, %v189_v32 }
 0x130   :  { %v345_v25 = vpop.f32.mrb[1].mxu1  ;;  %v15783_v40 = vadd.f32 %v274_v20, %v193_v33  ;;  %v15791_v1 = vadd.f32 %v343_v21, %v197_v47 }
 0x131   :  { %v15795_v8 = vadd.f32 %v345_v25, %v201_v2 }
 0x14e   :  { %v414_v43 = vpop.f32.mrb[2].mxu0 }
 0x14f   :  { %v490_v44 = vadd.f32 %v414_v43, %v15781_v39  ;;  %v485_v45 = vpop.f32.mrb[2].mxu1  ;;  %v416_v46 = vpop.f32.mrb[3].mxu0 }
 0x150   :  { %v491_v54 = vadd.f32 %v416_v46, %v15783_v40  ;;  %v487_v56 = vpop.f32.mrb[3].mxu1  ;;  %v492_v3 = vadd.f32 %v485_v45, %v15791_v1 }
 0x151   :  { %v10993_v59 = vmul.f32 -1.442695, %v490_v44  ;;  %v493_v14 = vadd.f32 %v487_v56, %v15795_v8 }
 0x152   :  { %v10994_v60 = vmul.f32 -1.442695, %v491_v54  ;;  %v10995_v9 = vmul.f32 -1.442695, %v492_v3 }
 0x153   :  { %14691 = vpow2.f32 %v10993_v59 }
 0x154   :  { %14693 = vpow2.f32 %v10994_v60 }
 0x155   :  { %14695 = vpow2.f32 %v10995_v9 }
 0x156   :  { %14697 = vtanh.f32 %v493_v14 }
 0x15d   :  { %v14692_v15 = vpop.eup %14691 }
 0x15e   :  { %v503_v19 = vadd.f32 1.0, %v14692_v15  ;;  %v14694_v20 = vpop.eup %14693 }
 0x15f   :  { %v504_v26 = vadd.f32 1.0, %v14694_v20  ;;  %v14696_v21 = vpop.eup %14695 }
 0x160   :  { %14699 = vrcp.f32 %v503_v19  ;;  %v14698_v32 = vpop.eup %14697  ;;  %v505_v44 = vadd.f32 1.0, %v14696_v21 }
 0x161   :  { %14701 = vrcp.f32 %v504_v26 }
 0x162   :  { %14703 = vrcp.f32 %v505_v44 }
 0x16a   :  { %v14700_v33 = vpop.eup %14699 }
 0x16b   :  { %v514_v30 = vmul.f32 %v14700_v33, %v14698_v32  ;;  %v14702_v43 = vpop.eup %14701 }
 0x16c   :  { %v513_v45 = vmul.f32 0.0, %v14702_v43  ;;  %v14704_v46 = vpop.eup %14703 }
 0x16e   :  { %v15798_v25 = vadd.f32 %v514_v30, %v513_v45 }
 0x170   :  { %14705 = vtanh.f32 %v15798_v25 }
 0x17a   :  { %v14706_v47 = vpop.eup %14705 }
 0x17b   :  { %v517_v54 = vmul.f32 %v14706_v47, %v14704_v46 }
 0x17d   :  { %518 = vst [vmem:[#allocation2] sm:$0x1] %v517_v54  ;;  %584 = vmatmul.mubr.f32.vlgmr.msra.gmra.mrb[4].mxu0 %v517_v54  ;;  %655 = vmatmul.mubr.f32.vlgmr.msra.gmra.mrb[4].mxu1 %v517_v54 }
 0x17e   :  { %11395 = vmatpush1.bf16.msra.mxu0 %v15636_v49  ;;  %11427 = vmatpush1.bf16.msra.mxu1 %v15639_v50 }
 0x17f   :  { %11397 = vmatprep.subr.bf16.mxu0 %v15641_v51  ;;  %11429 = vmatprep.subr.bf16.mxu1 %v15644_v55 }
 0x180   :  { %772 = vmatprep.mubr.f32.mxu0 %v15570_v0  ;;  %843 = vmatprep.mubr.f32.mxu1 %v15570_v0 }
 0x182   :  { %11399 = vmatpush1.bf16.msra.mxu0 %v15647_v61  ;;  %11431 = vmatpush1.bf16.msra.mxu1 %v15651_v62 }
 0x183   :  { %11401 = vmatprep.subr.bf16.mxu0 %v15653_v63  ;;  %11433 = vmatprep.subr.bf16.mxu1 %v15656_v4 }
 0x186   :  { %11403 = vmatpush1.bf16.msra.mxu0 %v15661_v10  ;;  %11435 = vmatpush1.bf16.msra.mxu1 %v15665_v11 }
 0x187   :  { %11405 = vmatprep.subr.bf16.mxu0 %v15667_v12  ;;  %11437 = vmatprep.subr.bf16.mxu1 %v15670_v16 }
 0x18a   :  { %11407 = vmatpush1.bf16.msra.mxu0 %v15673_v22  ;;  %11439 = vmatpush1.bf16.msra.mxu1 %v15677_v23 }
 0x18b   :  { %11409 = vmatprep.subr.bf16.mxu0 %v15679_v24  ;;  %11441 = vmatprep.subr.bf16.mxu1 %v15682_v28 }
 0x18e   :  { %11411 = vmatpush1.bf16.msra.mxu0 %v15685_v34  ;;  %11443 = vmatpush1.bf16.msra.mxu1 %v15689_v35 }
 0x18f   :  { %11413 = vmatprep.subr.bf16.mxu0 %v15691_v36  ;;  %11445 = vmatprep.subr.bf16.mxu1 %v15694_v41 }
 0x192   :  { %11415 = vmatpush1.bf16.msra.mxu0 %v15697_v48  ;;  %11447 = vmatpush1.bf16.msra.mxu1 %v15701_v52 }
 0x193   :  { %11417 = vmatprep.subr.bf16.mxu0 %v15703_v53  ;;  %11449 = vmatprep.subr.bf16.mxu1 %v15706_v58 }
 0x196   :  { %11419 = vmatpush1.bf16.msra.mxu0 %v15709_v5  ;;  %11451 = vmatpush1.bf16.msra.mxu1 %v15713_v6 }
 0x197   :  { %11421 = vmatprep.subr.bf16.mxu0 %v15715_v7  ;;  %11453 = vmatprep.subr.bf16.mxu1 %v15718_v13 }
 0x19a   :  { %11423 = vmatpush1.bf16.msra.mxu0 %v15721_v17  ;;  %11455 = vmatpush1.bf16.msra.mxu1 %v15725_v18 }
 0x19b   :  { %11457 = vmatprep.subr.bf16.mxu0 %v15632_v38  ;;  %11489 = vmatprep.subr.bf16.mxu1 %v15634_v42 }
 0x250   :  { %v585_v56 = vpop.f32.mrb[4].mxu0  ;;  %v656_v59 = vpop.f32.mrb[4].mxu1 }
 0x251   :  { %v665_v60 = vrot.slane %v585_v56, 7  ;;  %v587_v2 = vpop.f32.mrb[5].mxu0  ;;  %v658_v3 = vpop.f32.mrb[5].mxu1  ;;  %v667_v26 = vrot.slane %v656_v59, 7  ;;  %v697_v59 = vrot.slane %v15798_v25, 7 }
 0x252   :  { %v666_v9 = vrot.slane %v587_v2, 7  ;;  %v668_v21 = vrot.slane %v658_v3, 7 }
 0x253   :  { %v673_v14 = vadd.f32 %v665_v60, %v15781_v39  ;;  %v675_v32 = vadd.f32 %v667_v26, %v15791_v1 }
 0x254   :  { %v674_v15 = vadd.f32 %v666_v9, %v15783_v40  ;;  %v676_v33 = vadd.f32 %v668_v21, %v15795_v8 }
 0x255   :  { %v10996_v19 = vmul.f32 -1.442695, %v673_v14  ;;  %v10998_v30 = vmul.f32 -1.442695, %v675_v32 }
 0x256   :  { %v10997_v20 = vmul.f32 -1.442695, %v674_v15 }
 0x257   :  { %14707 = vpow2.f32 %v10996_v19 }
 0x258   :  { %14709 = vpow2.f32 %v10997_v20 }
 0x259   :  { %14711 = vtanh.f32 %v676_v33 }
 0x25a   :  { %14713 = vpow2.f32 %v10998_v30 }
 0x261   :  { %v14708_v43 = vpop.eup %14707 }
 0x262   :  { %v686_v44 = vadd.f32 1.0, %v14708_v43  ;;  %v14710_v45 = vpop.eup %14709 }
 0x263   :  { %v687_v46 = vadd.f32 1.0, %v14710_v45  ;;  %v14712_v47 = vpop.eup %14711 }
 0x264   :  { %14715 = vrcp.f32 %v686_v44  ;;  %v14714_v54 = vpop.eup %14713 }
 0x265   :  { %14717 = vrcp.f32 %v687_v46  ;;  %v688_v3 = vadd.f32 1.0, %v14714_v54 }
 0x267   :  { %14719 = vrcp.f32 %v688_v3 }
 0x26e   :  { %v14716_v56 = vpop.eup %14715 }
 0x26f   :  { %v700_v60 = vmul.f32 %v14716_v56, %v14712_v47  ;;  %v14718_v2 = vpop.eup %14717 }
 0x270   :  { %v699_v9 = vmul.f32 %v14718_v2, %v697_v59 }
 0x271   :  { %v14720_v15 = vpop.eup %14719 }
 0x272   :  { %v15840_v14 = vadd.f32 %v700_v60, %v699_v9 }
 0x274   :  { %14721 = vtanh.f32 %v15840_v14 }
 0x27e   :  { %v14722_v19 = vpop.eup %14721 }
 0x27f   :  { %v703_v20 = vmul.f32 %v14722_v19, %v14720_v15 }
 0x281   :  { %704 = vst [vmem:[#allocation2] sm:$0x2] %v703_v20  ;;  %v706_v26 = vrot.slane %v703_v20, 1 }
 0x283   :  { %773 = vmatmul.mubr.f32.vlgmr.msra.gmra.mrb[6].mxu0 %v706_v26  ;;  %844 = vmatmul.mubr.f32.vlgmr.msra.gmra.mrb[6].mxu1 %v706_v26 }
 0x284   :  { %11459 = vmatpush1.bf16.msra.mxu0 %v15636_v49  ;;  %11491 = vmatpush1.bf16.msra.mxu1 %v15639_v50 }
 0x285   :  { %11461 = vmatprep.subr.bf16.mxu0 %v15641_v51  ;;  %11493 = vmatprep.subr.bf16.mxu1 %v15644_v55 }
 0x286   :  { %961 = vmatprep.mubr.f32.mxu0 %v15570_v0  ;;  %1032 = vmatprep.mubr.f32.mxu1 %v15570_v0 }
 0x288   :  { %11463 = vmatpush1.bf16.msra.mxu0 %v15647_v61  ;;  %11495 = vmatpush1.bf16.msra.mxu1 %v15651_v62 }
 0x289   :  { %11465 = vmatprep.subr.bf16.mxu0 %v15653_v63  ;;  %11497 = vmatprep.subr.bf16.mxu1 %v15656_v4 }
 0x28c   :  { %11467 = vmatpush1.bf16.msra.mxu0 %v15661_v10  ;;  %11499 = vmatpush1.bf16.msra.mxu1 %v15665_v11 }
 0x28d   :  { %11469 = vmatprep.subr.bf16.mxu0 %v15667_v12  ;;  %11501 = vmatprep.subr.bf16.mxu1 %v15670_v16 }
 0x290   :  { %11471 = vmatpush1.bf16.msra.mxu0 %v15673_v22  ;;  %11503 = vmatpush1.bf16.msra.mxu1 %v15677_v23 }
 0x291   :  { %11473 = vmatprep.subr.bf16.mxu0 %v15679_v24  ;;  %11505 = vmatprep.subr.bf16.mxu1 %v15682_v28 }
 0x294   :  { %11475 = vmatpush1.bf16.msra.mxu0 %v15685_v34  ;;  %11507 = vmatpush1.bf16.msra.mxu1 %v15689_v35 }
 0x295   :  { %11477 = vmatprep.subr.bf16.mxu0 %v15691_v36  ;;  %11509 = vmatprep.subr.bf16.mxu1 %v15694_v41 }
 0x298   :  { %11479 = vmatpush1.bf16.msra.mxu0 %v15697_v48  ;;  %11511 = vmatpush1.bf16.msra.mxu1 %v15701_v52 }
 0x299   :  { %11481 = vmatprep.subr.bf16.mxu0 %v15703_v53  ;;  %11513 = vmatprep.subr.bf16.mxu1 %v15706_v58 }
 0x29c   :  { %11483 = vmatpush1.bf16.msra.mxu0 %v15709_v5  ;;  %11515 = vmatpush1.bf16.msra.mxu1 %v15713_v6 }
 0x29d   :  { %11485 = vmatprep.subr.bf16.mxu0 %v15715_v7  ;;  %11517 = vmatprep.subr.bf16.mxu1 %v15718_v13 }
 0x2a0   :  { %11487 = vmatpush1.bf16.msra.mxu0 %v15721_v17  ;;  %11519 = vmatpush1.bf16.msra.mxu1 %v15725_v18 }
 0x2a1   :  { %11521 = vmatprep.subr.bf16.mxu0 %v15632_v38  ;;  %11553 = vmatprep.subr.bf16.mxu1 %v15634_v42 }
 0x356   :  { %v774_v25 = vpop.f32.mrb[6].mxu0  ;;  %v845_v21 = vpop.f32.mrb[6].mxu1 }
 0x357   :  { %v854_v32 = vrot.slane %v774_v25, 6  ;;  %v776_v33 = vpop.f32.mrb[7].mxu0  ;;  %v847_v30 = vpop.f32.mrb[7].mxu1  ;;  %v856_v54 = vrot.slane %v845_v21, 6  ;;  %v886_v21 = vrot.slane %v15840_v14, 7 }
 0x358   :  { %v855_v43 = vrot.slane %v776_v33, 6  ;;  %v857_v56 = vrot.slane %v847_v30, 6 }
 0x359   :  { %v862_v44 = vadd.f32 %v854_v32, %v15781_v39  ;;  %v864_v59 = vadd.f32 %v856_v54, %v15791_v1 }
 0x35a   :  { %v863_v45 = vadd.f32 %v855_v43, %v15783_v40  ;;  %v865_v60 = vadd.f32 %v857_v56, %v15795_v8 }
 0x35b   :  { %v10999_v46 = vmul.f32 -1.442695, %v862_v44  ;;  %v11001_v2 = vmul.f32 -1.442695, %v864_v59 }
 0x35c   :  { %v11000_v47 = vmul.f32 -1.442695, %v863_v45 }
 0x35d   :  { %14723 = vpow2.f32 %v10999_v46 }
 0x35e   :  { %14725 = vpow2.f32 %v11000_v47 }
 0x35f   :  { %14727 = vtanh.f32 %v865_v60 }
 0x360   :  { %14729 = vpow2.f32 %v11001_v2 }
 0x367   :  { %v14724_v3 = vpop.eup %14723 }
 0x368   :  { %v875_v9 = vadd.f32 1.0, %v14724_v3  ;;  %v14726_v15 = vpop.eup %14725 }
 0x369   :  { %v876_v19 = vadd.f32 1.0, %v14726_v15  ;;  %v14728_v20 = vpop.eup %14727 }
 0x36a   :  { %14731 = vrcp.f32 %v875_v9  ;;  %v14730_v26 = vpop.eup %14729 }
 0x36b   :  { %14733 = vrcp.f32 %v876_v19  ;;  %v877_v30 = vadd.f32 1.0, %v14730_v26 }
 0x36d   :  { %14735 = vrcp.f32 %v877_v30 }
 0x374   :  { %v14732_v25 = vpop.eup %14731 }
 0x375   :  { %v889_v32 = vmul.f32 %v14732_v25, %v14728_v20  ;;  %v14734_v33 = vpop.eup %14733 }
 0x376   :  { %v888_v43 = vmul.f32 %v14734_v33, %v886_v21 }
 0x377   :  { %v14736_v45 = vpop.eup %14735 }
 0x378   :  { %v15882_v44 = vadd.f32 %v889_v32, %v888_v43 }
 0x37a   :  { %14737 = vtanh.f32 %v15882_v44 }
 0x384   :  { %v14738_v46 = vpop.eup %14737 }
 0x385   :  { %v892_v47 = vmul.f32 %v14738_v46, %v14736_v45 }
 0x387   :  { %893 = vst [vmem:[#allocation2] sm:$0x4] %v892_v47  ;;  %v895_v54 = vrot.slane %v892_v47, 2 }
 0x389   :  { %962 = vmatmul.mubr.f32.vlgmr.msra.gmra.mrb[8].mxu0 %v895_v54  ;;  %1033 = vmatmul.mubr.f32.vlgmr.msra.gmra.mrb[8].mxu1 %v895_v54 }
 0x38a   :  { %11523 = vmatpush1.bf16.msra.mxu0 %v15636_v49  ;;  %11555 = vmatpush1.bf16.msra.mxu1 %v15639_v50 }
 0x38b   :  { %11525 = vmatprep.subr.bf16.mxu0 %v15641_v51  ;;  %11557 = vmatprep.subr.bf16.mxu1 %v15644_v55 }
 0x38c   :  { %1150 = vmatprep.mubr.f32.mxu0 %v15570_v0  ;;  %1221 = vmatprep.mubr.f32.mxu1 %v15570_v0 }
 0x38e   :  { %11527 = vmatpush1.bf16.msra.mxu0 %v15647_v61  ;;  %11559 = vmatpush1.bf16.msra.mxu1 %v15651_v62 }
 0x38f   :  { %11529 = vmatprep.subr.bf16.mxu0 %v15653_v63  ;;  %11561 = vmatprep.subr.bf16.mxu1 %v15656_v4 }
 0x392   :  { %11531 = vmatpush1.bf16.msra.mxu0 %v15661_v10  ;;  %11563 = vmatpush1.bf16.msra.mxu1 %v15665_v11 }
 0x393   :  { %11533 = vmatprep.subr.bf16.mxu0 %v15667_v12  ;;  %11565 = vmatprep.subr.bf16.mxu1 %v15670_v16 }
 0x396   :  { %11535 = vmatpush1.bf16.msra.mxu0 %v15673_v22  ;;  %11567 = vmatpush1.bf16.msra.mxu1 %v15677_v23 }
 0x397   :  { %11537 = vmatprep.subr.bf16.mxu0 %v15679_v24  ;;  %11569 = vmatprep.subr.bf16.mxu1 %v15682_v28 }
 0x39a   :  { %11539 = vmatpush1.bf16.msra.mxu0 %v15685_v34  ;;  %11571 = vmatpush1.bf16.msra.mxu1 %v15689_v35 }
 0x39b   :  { %11541 = vmatprep.subr.bf16.mxu0 %v15691_v36  ;;  %11573 = vmatprep.subr.bf16.mxu1 %v15694_v41 }
 0x39e   :  { %11543 = vmatpush1.bf16.msra.mxu0 %v15697_v48  ;;  %11575 = vmatpush1.bf16.msra.mxu1 %v15701_v52 }
 0x39f   :  { %11545 = vmatprep.subr.bf16.mxu0 %v15703_v53  ;;  %11577 = vmatprep.subr.bf16.mxu1 %v15706_v58 }
 0x3a2   :  { %11547 = vmatpush1.bf16.msra.mxu0 %v15709_v5  ;;  %11579 = vmatpush1.bf16.msra.mxu1 %v15713_v6 }
 0x3a3   :  { %11549 = vmatprep.subr.bf16.mxu0 %v15715_v7  ;;  %11581 = vmatprep.subr.bf16.mxu1 %v15718_v13 }
 0x3a6   :  { %11551 = vmatpush1.bf16.msra.mxu0 %v15721_v17  ;;  %11583 = vmatpush1.bf16.msra.mxu1 %v15725_v18 }
 0x3a7   :  { %11585 = vmatprep.subr.bf16.mxu0 %v15632_v38  ;;  %11617 = vmatprep.subr.bf16.mxu1 %v15634_v42 }
 0x45c   :  { %v963_v14 = vpop.f32.mrb[8].mxu0  ;;  %v1034_v56 = vpop.f32.mrb[8].mxu1 }
 0x45d   :  { %v1043_v59 = vrot.slane %v963_v14, 5  ;;  %v965_v60 = vpop.f32.mrb[9].mxu0  ;;  %v1036_v2 = vpop.f32.mrb[9].mxu1  ;;  %v1045_v26 = vrot.slane %v1034_v56, 5  ;;  %v1075_v56 = vrot.slane %v15882_v44, 7 }
 0x45e   :  { %v1044_v3 = vrot.slane %v965_v60, 5  ;;  %v1046_v25 = vrot.slane %v1036_v2, 5 }
 0x45f   :  { %v1051_v9 = vadd.f32 %v1043_v59, %v15781_v39  ;;  %v1053_v21 = vadd.f32 %v1045_v26, %v15791_v1 }
 0x460   :  { %v1052_v15 = vadd.f32 %v1044_v3, %v15783_v40  ;;  %v1054_v32 = vadd.f32 %v1046_v25, %v15795_v8 }
 0x461   :  { %v11002_v19 = vmul.f32 -1.442695, %v1051_v9  ;;  %v11004_v33 = vmul.f32 -1.442695, %v1053_v21 }
 0x462   :  { %v11003_v20 = vmul.f32 -1.442695, %v1052_v15 }
 0x463   :  { %14739 = vpow2.f32 %v11002_v19 }
 0x464   :  { %14741 = vpow2.f32 %v11003_v20 }
 0x465   :  { %14743 = vtanh.f32 %v1054_v32 }
 0x466   :  { %14745 = vpow2.f32 %v11004_v33 }
 0x46d   :  { %v14740_v30 = vpop.eup %14739 }
 0x46e   :  { %v1064_v43 = vadd.f32 1.0, %v14740_v30  ;;  %v14742_v45 = vpop.eup %14741 }
 0x46f   :  { %v1065_v46 = vadd.f32 1.0, %v14742_v45  ;;  %v14744_v47 = vpop.eup %14743 }
 0x470   :  { %14747 = vrcp.f32 %v1064_v43  ;;  %v14746_v54 = vpop.eup %14745 }
 0x471   :  { %14749 = vrcp.f32 %v1065_v46  ;;  %v1066_v2 = vadd.f32 1.0, %v14746_v54 }
 0x473   :  { %14751 = vrcp.f32 %v1066_v2 }
 0x47a   :  { %v14748_v14 = vpop.eup %14747 }
 0x47b   :  { %v1078_v59 = vmul.f32 %v14748_v14, %v14744_v47  ;;  %v14750_v60 = vpop.eup %14749 }
 0x47c   :  { %v1077_v3 = vmul.f32 %v14750_v60, %v1075_v56 }
 0x47d   :  { %v14752_v15 = vpop.eup %14751 }
 0x47e   :  { %v15924_v9 = vadd.f32 %v1078_v59, %v1077_v3 }
 0x480   :  { %14753 = vtanh.f32 %v15924_v9 }
 0x48a   :  { %v14754_v19 = vpop.eup %14753 }
 0x48b   :  { %v1081_v20 = vmul.f32 %v14754_v19, %v14752_v15 }
 0x48d   :  { %1082 = vst [vmem:[#allocation2] sm:$0x8] %v1081_v20  ;;  %v1084_v26 = vrot.slane %v1081_v20, 3 }
 0x48f   :  { %1151 = vmatmul.mubr.f32.vlgmr.msra.gmra.mrb[10].mxu0 %v1084_v26  ;;  %1222 = vmatmul.mubr.f32.vlgmr.msra.gmra.mrb[10].mxu1 %v1084_v26 }
 0x490   :  { %11587 = vmatpush1.bf16.msra.mxu0 %v15636_v49  ;;  %11619 = vmatpush1.bf16.msra.mxu1 %v15639_v50 }
 0x491   :  { %11589 = vmatprep.subr.bf16.mxu0 %v15641_v51  ;;  %11621 = vmatprep.subr.bf16.mxu1 %v15644_v55 }
 0x492   :  { %1339 = vmatprep.mubr.f32.mxu0 %v15570_v0  ;;  %1410 = vmatprep.mubr.f32.mxu1 %v15570_v0 }
 0x494   :  { %11591 = vmatpush1.bf16.msra.mxu0 %v15647_v61  ;;  %11623 = vmatpush1.bf16.msra.mxu1 %v15651_v62 }
 0x495   :  { %11593 = vmatprep.subr.bf16.mxu0 %v15653_v63  ;;  %11625 = vmatprep.subr.bf16.mxu1 %v15656_v4 }
 0x498   :  { %11595 = vmatpush1.bf16.msra.mxu0 %v15661_v10  ;;  %11627 = vmatpush1.bf16.msra.mxu1 %v15665_v11 }
 0x499   :  { %11597 = vmatprep.subr.bf16.mxu0 %v15667_v12  ;;  %11629 = vmatprep.subr.bf16.mxu1 %v15670_v16 }
 0x49c   :  { %11599 = vmatpush1.bf16.msra.mxu0 %v15673_v22  ;;  %11631 = vmatpush1.bf16.msra.mxu1 %v15677_v23 }
 0x49d   :  { %11601 = vmatprep.subr.bf16.mxu0 %v15679_v24  ;;  %11633 = vmatprep.subr.bf16.mxu1 %v15682_v28 }
 0x4a0   :  { %11603 = vmatpush1.bf16.msra.mxu0 %v15685_v34  ;;  %11635 = vmatpush1.bf16.msra.mxu1 %v15689_v35 }
 0x4a1   :  { %11605 = vmatprep.subr.bf16.mxu0 %v15691_v36  ;;  %11637 = vmatprep.subr.bf16.mxu1 %v15694_v41 }
 0x4a4   :  { %11607 = vmatpush1.bf16.msra.mxu0 %v15697_v48  ;;  %11639 = vmatpush1.bf16.msra.mxu1 %v15701_v52 }
 0x4a5   :  { %11609 = vmatprep.subr.bf16.mxu0 %v15703_v53  ;;  %11641 = vmatprep.subr.bf16.mxu1 %v15706_v58 }
 0x4a8   :  { %11611 = vmatpush1.bf16.msra.mxu0 %v15709_v5  ;;  %11643 = vmatpush1.bf16.msra.mxu1 %v15713_v6 }
 0x4a9   :  { %11613 = vmatprep.subr.bf16.mxu0 %v15715_v7  ;;  %11645 = vmatprep.subr.bf16.mxu1 %v15718_v13 }
 0x4ac   :  { %11615 = vmatpush1.bf16.msra.mxu0 %v15721_v17  ;;  %11647 = vmatpush1.bf16.msra.mxu1 %v15725_v18 }
 0x4ad   :  { %11649 = vmatprep.subr.bf16.mxu0 %v15632_v38  ;;  %11681 = vmatprep.subr.bf16.mxu1 %v15634_v42 }
 0x562   :  { %v1152_v44 = vpop.f32.mrb[10].mxu0  ;;  %v1223_v25 = vpop.f32.mrb[10].mxu1 }
 0x563   :  { %v1232_v21 = vrot.slane %v1152_v44, 4  ;;  %v1154_v32 = vpop.f32.mrb[11].mxu0  ;;  %v1225_v33 = vpop.f32.mrb[11].mxu1  ;;  %v1234_v54 = vrot.slane %v1223_v25, 4  ;;  %v1264_v25 = vrot.slane %v15924_v9, 7 }
 0x564   :  { %v1233_v30 = vrot.slane %v1154_v32, 4  ;;  %v1235_v14 = vrot.slane %v1225_v33, 4 }
 0x565   :  { %v1240_v43 = vadd.f32 %v1232_v21, %v15781_v39  ;;  %v1242_v56 = vadd.f32 %v1234_v54, %v15791_v1 }
 0x566   :  { %v1241_v45 = vadd.f32 %v1233_v30, %v15783_v40  ;;  %v1243_v59 = vadd.f32 %v1235_v14, %v15795_v8 }
 0x567   :  { %v11005_v46 = vmul.f32 -1.442695, %v1240_v43  ;;  %v11007_v60 = vmul.f32 -1.442695, %v1242_v56 }
 0x568   :  { %v11006_v47 = vmul.f32 -1.442695, %v1241_v45 }
 0x569   :  { %14755 = vpow2.f32 %v11005_v46 }
 0x56a   :  { %14757 = vpow2.f32 %v11006_v47 }
 0x56b   :  { %14759 = vtanh.f32 %v1243_v59 }
 0x56c   :  { %14761 = vpow2.f32 %v11007_v60 }
 0x573   :  { %v14756_v2 = vpop.eup %14755 }
 0x574   :  { %v1253_v3 = vadd.f32 1.0, %v14756_v2  ;;  %v14758_v15 = vpop.eup %14757 }
 0x575   :  { %v1254_v19 = vadd.f32 1.0, %v14758_v15  ;;  %v14760_v20 = vpop.eup %14759 }
 0x576   :  { %14763 = vrcp.f32 %v1253_v3  ;;  %v14762_v26 = vpop.eup %14761 }
 0x577   :  { %14765 = vrcp.f32 %v1254_v19  ;;  %v1255_v33 = vadd.f32 1.0, %v14762_v26 }
 0x579   :  { %14767 = vrcp.f32 %v1255_v33 }
 0x580   :  { %v14764_v44 = vpop.eup %14763 }
 0x581   :  { %v1267_v21 = vmul.f32 %v14764_v44, %v14760_v20  ;;  %v14766_v32 = vpop.eup %14765 }
 0x582   :  { %v1266_v30 = vmul.f32 %v14766_v32, %v1264_v25 }
 0x583   :  { %v14768_v45 = vpop.eup %14767 }
 0x584   :  { %v15966_v43 = vadd.f32 %v1267_v21, %v1266_v30 }
 0x586   :  { %14769 = vtanh.f32 %v15966_v43 }
 0x590   :  { %v14770_v46 = vpop.eup %14769 }
 0x591   :  { %v1270_v47 = vmul.f32 %v14770_v46, %v14768_v45 }
 0x593   :  { %1271 = vst [vmem:[#allocation2] sm:$0x10] %v1270_v47  ;;  %v1273_v54 = vrot.slane %v1270_v47, 4 }
 0x595   :  { %1340 = vmatmul.mubr.f32.vlgmr.msra.gmra.mrb[12].mxu0 %v1273_v54  ;;  %1411 = vmatmul.mubr.f32.vlgmr.msra.gmra.mrb[12].mxu1 %v1273_v54  ;;  %v1453_v54 = vrot.slane %v15966_v43, 7 }
 0x596   :  { %11651 = vmatpush1.bf16.msra.mxu0 %v15636_v49  ;;  %11683 = vmatpush1.bf16.msra.mxu1 %v15639_v50 }
 0x597   :  { %11653 = vmatprep.subr.bf16.mxu0 %v15641_v51  ;;  %11685 = vmatprep.subr.bf16.mxu1 %v15644_v55 }
 0x598   :  { %1528 = vmatprep.mubr.f32.mxu0 %v15570_v0  ;;  %1599 = vmatprep.mubr.f32.mxu1 %v15570_v0 }
 0x59a   :  { %11655 = vmatpush1.bf16.msra.mxu0 %v15647_v61  ;;  %11687 = vmatpush1.bf16.msra.mxu1 %v15651_v62 }
 0x59b   :  { %11657 = vmatprep.subr.bf16.mxu0 %v15653_v63  ;;  %11689 = vmatprep.subr.bf16.mxu1 %v15656_v4 }
 0x59e   :  { %11659 = vmatpush1.bf16.msra.mxu0 %v15661_v10  ;;  %11691 = vmatpush1.bf16.msra.mxu1 %v15665_v11 }
 0x59f   :  { %11661 = vmatprep.subr.bf16.mxu0 %v15667_v12  ;;  %11693 = vmatprep.subr.bf16.mxu1 %v15670_v16 }
 0x5a2   :  { %11663 = vmatpush1.bf16.msra.mxu0 %v15673_v22  ;;  %11695 = vmatpush1.bf16.msra.mxu1 %v15677_v23 }
 0x5a3   :  { %11665 = vmatprep.subr.bf16.mxu0 %v15679_v24  ;;  %11697 = vmatprep.subr.bf16.mxu1 %v15682_v28 }
 0x5a6   :  { %11667 = vmatpush1.bf16.msra.mxu0 %v15685_v34  ;;  %11699 = vmatpush1.bf16.msra.mxu1 %v15689_v35 }
 0x5a7   :  { %11669 = vmatprep.subr.bf16.mxu0 %v15691_v36  ;;  %11701 = vmatprep.subr.bf16.mxu1 %v15694_v41 }
 0x5aa   :  { %11671 = vmatpush1.bf16.msra.mxu0 %v15697_v48  ;;  %11703 = vmatpush1.bf16.msra.mxu1 %v15701_v52 }
 0x5ab   :  { %11673 = vmatprep.subr.bf16.mxu0 %v15703_v53  ;;  %11705 = vmatprep.subr.bf16.mxu1 %v15706_v58 }
 0x5ae   :  { %11675 = vmatpush1.bf16.msra.mxu0 %v15709_v5  ;;  %11707 = vmatpush1.bf16.msra.mxu1 %v15713_v6 }
 0x5af   :  { %11677 = vmatprep.subr.bf16.mxu0 %v15715_v7  ;;  %11709 = vmatprep.subr.bf16.mxu1 %v15718_v13 }
 0x5b2   :  { %11679 = vmatpush1.bf16.msra.mxu0 %v15721_v17  ;;  %11711 = vmatpush1.bf16.msra.mxu1 %v15725_v18 }
 0x5b3   :  { %11713 = vmatprep.subr.bf16.mxu0 %v15632_v38  ;;  %11745 = vmatprep.subr.bf16.mxu1 %v15634_v42 }
 0x668   :  { %v1341_v9 = vpop.f32.mrb[12].mxu0  ;;  %v1412_v14 = vpop.f32.mrb[12].mxu1 }
 0x669   :  { %v1421_v56 = vrot.slane %v1341_v9, 3  ;;  %v1343_v59 = vpop.f32.mrb[13].mxu0  ;;  %v1414_v60 = vpop.f32.mrb[13].mxu1  ;;  %v1423_v26 = vrot.slane %v1412_v14, 3 }
 0x66a   :  { %v1422_v2 = vrot.slane %v1343_v59, 3  ;;  %v1424_v44 = vrot.slane %v1414_v60, 3 }
 0x66b   :  { %v1429_v3 = vadd.f32 %v1421_v56, %v15781_v39  ;;  %v1431_v38 = vadd.f32 %v1423_v26, %v15791_v1  ;;  %v1866_v26 = vld [vmem:[#allocation6 + $0x428] sm:$0xff] }
 0x66c   :  { %v1430_v15 = vadd.f32 %v1422_v2, %v15783_v40  ;;  %v1432_v42 = vadd.f32 %v1424_v44, %v15795_v8  ;;  %v1870_v44 = vld [vmem:[#allocation6 + $0x448] sm:$0xff] }
 0x66d   :  { %v11008_v19 = vmul.f32 -1.442695, %v1429_v3  ;;  %v11010_v25 = vmul.f32 -1.442695, %v1431_v38  ;;  %v1868_v38 = vld [vmem:[#allocation6 + $0x438] sm:$0xff] }
 0x66e   :  { %v11009_v20 = vmul.f32 -1.442695, %v1430_v15 }
 0x66f   :  { %14771 = vpow2.f32 %v11008_v19 }
 0x670   :  { %14773 = vpow2.f32 %v11009_v20 }
 0x671   :  { %14775 = vtanh.f32 %v1432_v42  ;;  %v11776_v42 = vpack.c.bf16 %v1870_v44, %v1866_v26  ;;  %v1886_v26 = vld [vmem:[#allocation6 + $0x4c8] sm:$0xff]  ;;  %v1884_v44 = vld [vmem:[#allocation6 + $0x4b8] sm:$0xff] }
 0x672   :  { %14777 = vpow2.f32 %v11010_v25  ;;  %v1872_v25 = vld [vmem:[#allocation6 + $0x458] sm:$0xff] }
 0x679   :  { %v14772_v21 = vpop.eup %14771 }
 0x67a   :  { %v1442_v32 = vadd.f32 1.0, %v14772_v21  ;;  %v14774_v33 = vpop.eup %14773  ;;  %v1865_v21 = vld [vmem:[#allocation6 + $0x420] sm:$0xff] }
 0x67b   :  { %v1443_v30 = vadd.f32 1.0, %v14774_v33  ;;  %v14776_v45 = vpop.eup %14775  ;;  %v11808_v33 = vpack.c.bf16 %v1872_v25, %v1868_v38  ;;  %v1881_v25 = vld [vmem:[#allocation6 + $0x4a0] sm:$0xff] }
 0x67c   :  { %14779 = vrcp.f32 %v1442_v32  ;;  %v14778_v46 = vpop.eup %14777  ;;  %v1869_v32 = vld [vmem:[#allocation6 + $0x440] sm:$0xff] }
 0x67d   :  { %14781 = vrcp.f32 %v1443_v30  ;;  %v1444_v56 = vadd.f32 1.0, %v14778_v46  ;;  %v11778_v30 = vpack.c.bf16 %v1869_v32, %v1865_v21  ;;  %v1871_v46 = vld [vmem:[#allocation6 + $0x450] sm:$0xff]  ;;  %v1885_v21 = vld [vmem:[#allocation6 + $0x4c0] sm:$0xff] }
 0x67f   :  { %14783 = vrcp.f32 %v1444_v56  ;;  %v1880_v56 = vld [vmem:[#allocation6 + $0x498] sm:$0xff] }
 0x686   :  { %v14780_v47 = vpop.eup %14779 }
 0x687   :  { %v1456_v9 = vmul.f32 %v14780_v47, %v14776_v45  ;;  %v14782_v14 = vpop.eup %14781  ;;  %v1867_v45 = vld [vmem:[#allocation6 + $0x430] sm:$0xff]  ;;  %v1874_v47 = vld [vmem:[#allocation6 + $0x468] sm:$0xff] }
 0x688   :  { %v1455_v59 = vmul.f32 %v14782_v14, %v1453_v54  ;;  %v11810_v54 = vpack.c.bf16 %v1871_v46, %v1867_v45  ;;  %v1876_v14 = vld [vmem:[#allocation6 + $0x478] sm:$0xff]  ;;  %v1887_v45 = vld [vmem:[#allocation6 + $0x4d0] sm:$0xff] }
 0x689   :  { %v14784_v2 = vpop.eup %14783 }
 0x68a   :  { %v16008_v60 = vadd.f32 %v1456_v9, %v1455_v59  ;;  %v1878_v9 = vld [vmem:[#allocation6 + $0x488] sm:$0xff] }
 0x68b   :  { %v11780_v59 = vpack.c.bf16 %v1878_v9, %v1874_v47  ;;  %v1890_v47 = vld [vmem:[#allocation6 + $0x4e8] sm:$0xff]  ;;  %v1892_v9 = vld [vmem:[#allocation6 + $0x4f8] sm:$0xff] }
 0x68c   :  { %14785 = vtanh.f32 %v16008_v60 }
 0x696   :  { %v14786_v3 = vpop.eup %14785 }
 0x697   :  { %v1459_v15 = vmul.f32 %v14786_v3, %v14784_v2  ;;  %v1873_v2 = vld [vmem:[#allocation6 + $0x460] sm:$0xff] }
 0x698   :  { %v1877_v3 = vld [vmem:[#allocation6 + $0x480] sm:$0xff] }
 0x699   :  { %1460 = vst [vmem:[#allocation2] sm:$0x20] %v1459_v15  ;;  %v1462_v19 = vrot.slane %v1459_v15, 5  ;;  %v1875_v15 = vld [vmem:[#allocation6 + $0x470] sm:$0xff] }
 0x69b   :  { %1529 = vmatmul.mubr.f32.vlgmr.msra.gmra.mrb[14].mxu0 %v1462_v19  ;;  %1600 = vmatmul.mubr.f32.vlgmr.msra.gmra.mrb[14].mxu1 %v1462_v19  ;;  %v11782_v19 = vpack.c.bf16 %v1877_v3, %v1873_v2 }
 0x69c   :  { %11715 = vmatpush1.bf16.msra.mxu0 %v15636_v49  ;;  %11747 = vmatpush1.bf16.msra.mxu1 %v15639_v50 }
 0x69d   :  { %11717 = vmatprep.subr.bf16.mxu0 %v15641_v51  ;;  %11749 = vmatprep.subr.bf16.mxu1 %v15644_v55 }
 0x69e   :  { %1717 = vmatprep.mubr.f32.mxu0 %v15570_v0  ;;  %1788 = vmatprep.mubr.f32.mxu1 %v15570_v0 }
 0x6a0   :  { %11719 = vmatpush1.bf16.msra.mxu0 %v15647_v61  ;;  %11751 = vmatpush1.bf16.msra.mxu1 %v15651_v62 }
 0x6a1   :  { %11721 = vmatprep.subr.bf16.mxu0 %v15653_v63  ;;  %11753 = vmatprep.subr.bf16.mxu1 %v15656_v4 }
 0x6a4   :  { %11723 = vmatpush1.bf16.msra.mxu0 %v15661_v10  ;;  %11755 = vmatpush1.bf16.msra.mxu1 %v15665_v11 }
 0x6a5   :  { %11725 = vmatprep.subr.bf16.mxu0 %v15667_v12  ;;  %11757 = vmatprep.subr.bf16.mxu1 %v15670_v16 }
 0x6a8   :  { %11727 = vmatpush1.bf16.msra.mxu0 %v15673_v22  ;;  %11759 = vmatpush1.bf16.msra.mxu1 %v15677_v23 }
 0x6a9   :  { %11729 = vmatprep.subr.bf16.mxu0 %v15679_v24  ;;  %11761 = vmatprep.subr.bf16.mxu1 %v15682_v28 }
 0x6ac   :  { %11731 = vmatpush1.bf16.msra.mxu0 %v15685_v34  ;;  %11763 = vmatpush1.bf16.msra.mxu1 %v15689_v35 }
 0x6ad   :  { %11733 = vmatprep.subr.bf16.mxu0 %v15691_v36  ;;  %11765 = vmatprep.subr.bf16.mxu1 %v15694_v41 }
 0x6b0   :  { %11735 = vmatpush1.bf16.msra.mxu0 %v15697_v48  ;;  %11767 = vmatpush1.bf16.msra.mxu1 %v15701_v52 }
 0x6b1   :  { %11737 = vmatprep.subr.bf16.mxu0 %v15703_v53  ;;  %11769 = vmatprep.subr.bf16.mxu1 %v15706_v58  ;;  %v1642_v53 = vrot.slane %v16008_v60, 7  ;;  %v11812_v60 = vpack.c.bf16 %v1880_v56, %v1876_v14  ;;  %v1896_v56 = vld [vmem:[#allocation6 + $0x518] sm:$0xff] }
 0x6b2   :  { %v11820_v2 = vpack.c.bf16 %v1896_v56, %v1892_v9  ;;  %v1934_v9 = vld [vmem:[#allocation6 + $0x648] sm:$0xff] }
 0x6b4   :  { %11739 = vmatpush1.bf16.msra.mxu0 %v15709_v5  ;;  %11771 = vmatpush1.bf16.msra.mxu1 %v15713_v6 }
 0x6b5   :  { %11741 = vmatprep.subr.bf16.mxu0 %v15715_v7  ;;  %11773 = vmatprep.subr.bf16.mxu1 %v15718_v13 }
 0x6b8   :  { %11743 = vmatpush1.bf16.msra.mxu0 %v15721_v17  ;;  %11775 = vmatpush1.bf16.msra.mxu1 %v15725_v18 }
 0x6b9   :  { %11777 = vmatprep.subr.bf16.mxu0 %v11776_v42  ;;  %11809 = vmatprep.subr.bf16.mxu1 %v11808_v33  ;;  %v1888_v42 = vld [vmem:[#allocation6 + $0x4d8] sm:$0xff]  ;;  %v11786_v33 = vpack.c.bf16 %v1885_v21, %v1881_v25 }
 0x6ba   :  { %v11816_v32 = vpack.c.bf16 %v1888_v42, %v1884_v44  ;;  %v1922_v44 = vld [vmem:[#allocation6 + $0x5e8] sm:$0xff]  ;;  %v1924_v21 = vld [vmem:[#allocation6 + $0x5f8] sm:$0xff] }
 0x76e   :  { %v1530_v49 = vpop.f32.mrb[14].mxu0  ;;  %v1601_v50 = vpop.f32.mrb[14].mxu1 }
 0x76f   :  { %v1610_v51 = vrot.slane %v1530_v49, 2  ;;  %v1532_v55 = vpop.f32.mrb[15].mxu0  ;;  %v1603_v61 = vpop.f32.mrb[15].mxu1  ;;  %v1612_v12 = vrot.slane %v1601_v50, 2  ;;  %v1879_v49 = vld [vmem:[#allocation6 + $0x490] sm:$0xff] }
 0x770   :  { %v1611_v62 = vrot.slane %v1532_v55, 2  ;;  %v1613_v16 = vrot.slane %v1603_v61, 2  ;;  %v11814_v50 = vpack.c.bf16 %v1879_v49, %v1875_v15  ;;  %v1891_v15 = vld [vmem:[#allocation6 + $0x4f0] sm:$0xff] }
 0x771   :  { %v1618_v63 = vadd.f32 %v1610_v51, %v15781_v39  ;;  %v1620_v22 = vadd.f32 %v1612_v12, %v15791_v1 }
 0x772   :  { %v1619_v4 = vadd.f32 %v1611_v62, %v15783_v40  ;;  %v1621_v23 = vadd.f32 %v1613_v16, %v15795_v8 }
 0x773   :  { %v11011_v10 = vmul.f32 -1.442695, %v1618_v63  ;;  %v11013_v24 = vmul.f32 -1.442695, %v1620_v22 }
 0x774   :  { %v11012_v11 = vmul.f32 -1.442695, %v1619_v4 }
 0x775   :  { %14787 = vpow2.f32 %v11011_v10 }
 0x776   :  { %14789 = vpow2.f32 %v11012_v11 }
 0x777   :  { %14791 = vtanh.f32 %v1621_v23 }
 0x778   :  { %14793 = vpow2.f32 %v11013_v24 }
 0x77f   :  { %v14788_v28 = vpop.eup %14787 }
 0x780   :  { %v1631_v34 = vadd.f32 1.0, %v14788_v28  ;;  %v14790_v35 = vpop.eup %14789 }
 0x781   :  { %v1632_v36 = vadd.f32 1.0, %v14790_v35  ;;  %v14792_v41 = vpop.eup %14791 }
 0x782   :  { %14795 = vrcp.f32 %v1631_v34  ;;  %v14794_v48 = vpop.eup %14793 }
 0x783   :  { %14797 = vrcp.f32 %v1632_v36  ;;  %v1633_v6 = vadd.f32 1.0, %v14794_v48 }
 0x785   :  { %14799 = vrcp.f32 %v1633_v6 }
 0x78c   :  { %v14796_v52 = vpop.eup %14795 }
 0x78d   :  { %v1645_v58 = vmul.f32 %v14796_v52, %v14792_v41  ;;  %v14798_v5 = vpop.eup %14797 }
 0x78e   :  { %v1644_v7 = vmul.f32 %v14798_v5, %v1642_v53 }
 0x78f   :  { %v14800_v17 = vpop.eup %14799 }
 0x790   :  { %v16048_v13 = vadd.f32 %v1645_v58, %v1644_v7 }
 0x792   :  { %14801 = vtanh.f32 %v16048_v13  ;;  %v1831_v53 = vrot.slane %v16048_v13, 7  ;;  %v1882_v13 = vld [vmem:[#allocation6 + $0x4a8] sm:$0xff] }
 0x793   :  { %v11784_v38 = vpack.c.bf16 %v1886_v26, %v1882_v13  ;;  %v1919_v26 = vld [vmem:[#allocation6 + $0x5d0] sm:$0xff] }
 0x79c   :  { %v14802_v18 = vpop.eup %14801 }
 0x79d   :  { %v1648_v43 = vmul.f32 %v14802_v18, %v14800_v17 }
 0x79f   :  { %1649 = vst [vmem:[#allocation2] sm:$0x40] %v1648_v43  ;;  %v1651_v20 = vrot.slane %v1648_v43, 6 }
 0x7a1   :  { %1718 = vmatmul.mubr.f32.vlgmr.msra.gmra.mrb[16].mxu0 %v1651_v20  ;;  %1789 = vmatmul.mubr.f32.vlgmr.msra.gmra.mrb[16].mxu1 %v1651_v20 }
 0x7a2   :  { %2080 = vmatprep.mubr.f32.mxu0 %v15570_v0  ;;  %2151 = vmatprep.mubr.f32.mxu1 %v15570_v0 }
 0x7a3   :  { %11779 = vmatpush1.bf16.msra.mxu0 %v11778_v30  ;;  %11811 = vmatpush1.bf16.msra.mxu1 %v11810_v54  ;;  %v1883_v30 = vld [vmem:[#allocation6 + $0x4b0] sm:$0xff]  ;;  %v1894_v54 = vld [vmem:[#allocation6 + $0x508] sm:$0xff] }
 0x7a4   :  { %11781 = vmatprep.subr.bf16.mxu0 %v11780_v59  ;;  %11813 = vmatprep.subr.bf16.mxu1 %v11812_v60  ;;  %v11818_v46 = vpack.c.bf16 %v1887_v45, %v1883_v30  ;;  %v11788_v14 = vpack.c.bf16 %v1894_v54, %v1890_v47  ;;  %v1889_v59 = vld [vmem:[#allocation6 + $0x4e0] sm:$0xff]  ;;  %v1927_v47 = vld [vmem:[#allocation6 + $0x610] sm:$0xff]  ;;  %v1930_v54 = vld [vmem:[#allocation6 + $0x628] sm:$0xff] }
 0x7a5   :  { %v1893_v60 = vld [vmem:[#allocation6 + $0x500] sm:$0xff] }
 0x7a6   :  { %v11790_v3 = vpack.c.bf16 %v1893_v60, %v1889_v59  ;;  %v1925_v45 = vld [vmem:[#allocation6 + $0x600] sm:$0xff]  ;;  %v1936_v59 = vld [vmem:[#allocation6 + $0x658] sm:$0xff] }
 0x7a7   :  { %11783 = vmatpush1.bf16.msra.mxu0 %v11782_v19  ;;  %11815 = vmatpush1.bf16.msra.mxu1 %v11814_v50  ;;  %v1895_v19 = vld [vmem:[#allocation6 + $0x510] sm:$0xff]  ;;  %v1898_v50 = vld [vmem:[#allocation6 + $0x528] sm:$0xff] }
 0x7a8   :  { %11785 = vmatprep.subr.bf16.mxu0 %v11784_v38  ;;  %11817 = vmatprep.subr.bf16.mxu1 %v11816_v32  ;;  %v11822_v49 = vpack.c.bf16 %v1895_v19, %v1891_v15  ;;  %v1926_v38 = vld [vmem:[#allocation6 + $0x608] sm:$0xff]  ;;  %v1928_v32 = vld [vmem:[#allocation6 + $0x618] sm:$0xff] }
 0x7a9   :  { %v11804_v25 = vpack.c.bf16 %v1926_v38, %v1922_v44  ;;  %v11836_v30 = vpack.c.bf16 %v1928_v32, %v1924_v21  ;;  %v1947_v38 = vld [vmem:[#allocation6 + $0x6b0] sm:$0xff]  ;;  %v1958_v21 = vld [vmem:[#allocation6 + $0x708] sm:$0xff]  ;;  %v1956_v32 = vld [vmem:[#allocation6 + $0x6f8] sm:$0xff] }
 0x7ab   :  { %11787 = vmatpush1.bf16.msra.mxu0 %v11786_v33  ;;  %11819 = vmatpush1.bf16.msra.mxu1 %v11818_v46  ;;  %v1921_v33 = vld [vmem:[#allocation6 + $0x5e0] sm:$0xff]  ;;  %v1923_v46 = vld [vmem:[#allocation6 + $0x5f0] sm:$0xff] }
 0x7ac   :  { %11789 = vmatprep.subr.bf16.mxu0 %v11788_v14  ;;  %11821 = vmatprep.subr.bf16.mxu1 %v11820_v2  ;;  %v1932_v14 = vld [vmem:[#allocation6 + $0x638] sm:$0xff]  ;;  %v11806_v56 = vpack.c.bf16 %v1925_v45, %v1921_v33  ;;  %v11838_v60 = vpack.c.bf16 %v1927_v47, %v1923_v46  ;;  %v16063_v2 = vpack.c.bf16 %v1934_v9, %v1930_v54  ;;  %v1953_v46 = vld [vmem:[#allocation6 + $0x6e0] sm:$0xff] }
 0x7ad   :  { %v1960_v33 = vld [vmem:[#allocation6 + $0x718] sm:$0xff]  ;;  %v1957_v47 = vld [vmem:[#allocation6 + $0x700] sm:$0xff] }
 0x7ae   :  { %v16102_v9 = vpack.c.bf16 %v1960_v33, %v1956_v32  ;;  %v1988_v32 = vld [vmem:[#allocation6 + $0x7f8] sm:$0xff] }
 0x7af   :  { %11791 = vmatpush1.bf16.msra.mxu0 %v11790_v3  ;;  %11823 = vmatpush1.bf16.msra.mxu1 %v11822_v49  ;;  %v16065_v3 = vpack.c.bf16 %v1936_v59, %v1932_v14  ;;  %v1955_v14 = vld [vmem:[#allocation6 + $0x6f0] sm:$0xff]  ;;  %v1962_v59 = vld [vmem:[#allocation6 + $0x728] sm:$0xff]  ;;  %v1992_v33 = vld [vmem:[#allocation6 + $0x818] sm:$0xff] }
 0x874   :  { %v1719_v51 = vpop.f32.mrb[16].mxu0  ;;  %v1790_v55 = vpop.f32.mrb[16].mxu1 }
 0x875   :  { %v1799_v61 = vrot.slane %v1719_v51, 1  ;;  %v1721_v62 = vpop.f32.mrb[17].mxu0  ;;  %v1792_v63 = vpop.f32.mrb[17].mxu1  ;;  %v1801_v22 = vrot.slane %v1790_v55, 1  ;;  %v1902_v51 = vld [vmem:[#allocation6 + $0x548] sm:$0xff]  ;;  %v1900_v55 = vld [vmem:[#allocation6 + $0x538] sm:$0xff] }
 0x876   :  { %v1800_v4 = vrot.slane %v1721_v62, 1  ;;  %v1802_v23 = vrot.slane %v1792_v63, 1  ;;  %v1904_v62 = vld [vmem:[#allocation6 + $0x558] sm:$0xff]  ;;  %v1897_v63 = vld [vmem:[#allocation6 + $0x520] sm:$0xff] }
 0x877   :  { %v1807_v10 = vadd.f32 %v1799_v61, %v15781_v39  ;;  %v1809_v24 = vadd.f32 %v1801_v22, %v15791_v1  ;;  %v11792_v61 = vpack.c.bf16 %v1902_v51, %v1898_v50 }
 0x878   :  { %v1808_v11 = vadd.f32 %v1800_v4, %v15783_v40  ;;  %v1810_v28 = vadd.f32 %v1802_v23, %v15795_v8  ;;  %v1901_v4 = vld [vmem:[#allocation6 + $0x540] sm:$0xff]  ;;  %v1906_v23 = vld [vmem:[#allocation6 + $0x568] sm:$0xff] }
 0x879   :  { %v11014_v12 = vmul.f32 -1.442695, %v1807_v10  ;;  %v11016_v34 = vmul.f32 -1.442695, %v1809_v24  ;;  %v11824_v10 = vpack.c.bf16 %v1904_v62, %v1900_v55  ;;  %11793 = vmatprep.subr.bf16.mxu0 %v11792_v61  ;;  %v1910_v24 = vld [vmem:[#allocation6 + $0x588] sm:$0xff] }
 0x87a   :  { %v11015_v16 = vmul.f32 -1.442695, %v1808_v11  ;;  %v11794_v11 = vpack.c.bf16 %v1901_v4, %v1897_v63  ;;  %v11017_v63 = vld [vmem:[#allocation8 + $0x80] ss:$0 sm:$0xff] }
 0x87b   :  { %14803 = vpow2.f32 %v11014_v12  ;;  %v1899_v12 = vld [vmem:[#allocation6 + $0x530] sm:$0xff]  ;;  %11825 = vmatprep.subr.bf16.mxu1 %v11824_v10  ;;  %v11018_v10 = vld [vmem:[#allocation8 + $0x88] ss:$0 sm:$0xff] }
 0x87c   :  { %14805 = vpow2.f32 %v11015_v16  ;;  %v1903_v16 = vld [vmem:[#allocation6 + $0x550] sm:$0xff]  ;;  %11795 = vmatpush1.bf16.msra.mxu0 %v11794_v11  ;;  %v1929_v11 = vld [vmem:[#allocation6 + $0x620] sm:$0xff] }
 0x87d   :  { %14807 = vtanh.f32 %v1810_v28  ;;  %v11826_v22 = vpack.c.bf16 %v1903_v16, %v1899_v12  ;;  %v1908_v28 = vld [vmem:[#allocation6 + $0x578] sm:$0xff]  ;;  %v1933_v12 = vld [vmem:[#allocation6 + $0x640] sm:$0xff] }
 0x87e   :  { %14809 = vpow2.f32 %v11016_v34  ;;  %v11796_v34 = vpack.c.bf16 %v1910_v24, %v1906_v23  ;;  %v1935_v23 = vld [vmem:[#allocation6 + $0x650] sm:$0xff]  ;;  %v1938_v24 = vld [vmem:[#allocation6 + $0x668] sm:$0xff] }
 0x87f   :  { %11827 = vmatpush1.bf16.msra.mxu1 %v11826_v22  ;;  %v1931_v22 = vld [vmem:[#allocation6 + $0x630] sm:$0xff] }
 0x880   :  { %11797 = vmatprep.subr.bf16.mxu0 %v11796_v34  ;;  %v1940_v34 = vld [vmem:[#allocation6 + $0x678] sm:$0xff] }
 0x885   :  { %v14804_v35 = vpop.eup %14803 }
 0x886   :  { %v1820_v36 = vadd.f32 1.0, %v14804_v35  ;;  %v14806_v41 = vpop.eup %14805  ;;  %v1912_v35 = vld [vmem:[#allocation6 + $0x598] sm:$0xff] }
 0x887   :  { %v1821_v39 = vadd.f32 1.0, %v14806_v41  ;;  %v14808_v40 = vpop.eup %14807  ;;  %v1909_v41 = vld [vmem:[#allocation6 + $0x580] sm:$0xff] }
 0x888   :  { %14811 = vrcp.f32 %v1820_v36  ;;  %v14810_v48 = vpop.eup %14809  ;;  %v1905_v36 = vld [vmem:[#allocation6 + $0x560] sm:$0xff] }
 0x889   :  { %14813 = vrcp.f32 %v1821_v39  ;;  %v1822_v6 = vadd.f32 1.0, %v14810_v48  ;;  %v11828_v39 = vpack.c.bf16 %v1912_v35, %v1908_v28  ;;  %v1907_v48 = vld [vmem:[#allocation6 + $0x570] sm:$0xff]  ;;  %v1942_v28 = vld [vmem:[#allocation6 + $0x688] sm:$0xff]  ;;  %v1944_v35 = vld [vmem:[#allocation6 + $0x698] sm:$0xff] }
 0x88b   :  { %14815 = vrcp.f32 %v1822_v6  ;;  %v1916_v6 = vld [vmem:[#allocation6 + $0x5b8] sm:$0xff]  ;;  %11829 = vmatprep.subr.bf16.mxu1 %v11828_v39  ;;  %v16072_v39 = vpack.c.bf16 %v1935_v23, %v1931_v22 }
 0x892   :  { %v14812_v52 = vpop.eup %14811 }
 0x893   :  { %v1834_v58 = vmul.f32 %v14812_v52, %v14808_v40  ;;  %v14814_v5 = vpop.eup %14813  ;;  %v11798_v40 = vpack.c.bf16 %v1909_v41, %v1905_v36  ;;  %v1911_v52 = vld [vmem:[#allocation6 + $0x590] sm:$0xff]  ;;  %v16070_v41 = vpack.c.bf16 %v1933_v12, %v1929_v11  ;;  %v1974_v11 = vld [vmem:[#allocation6 + $0x788] sm:$0xff]  ;;  %v1972_v12 = vld [vmem:[#allocation6 + $0x778] sm:$0xff] }
 0x894   :  { %v1833_v1 = vmul.f32 %v14814_v5, %v1831_v53  ;;  %v1914_v53 = vld [vmem:[#allocation6 + $0x5a8] sm:$0xff] }
 0x895   :  { %v14816_v8 = vpop.eup %14815  ;;  %v1918_v5 = vld [vmem:[#allocation6 + $0x5c8] sm:$0xff]  ;;  %11799 = vmatpush1.bf16.msra.mxu0 %v11798_v40  ;;  %v1937_v40 = vld [vmem:[#allocation6 + $0x660] sm:$0xff] }
 0x896   :  { %v1835_v7 = vadd.f32 %v1834_v58, %v1833_v1  ;;  %v11830_v58 = vpack.c.bf16 %v1911_v52, %v1907_v48  ;;  %v1920_v1 = vld [vmem:[#allocation6 + $0x5d8] sm:$0xff]  ;;  %v1941_v48 = vld [vmem:[#allocation6 + $0x680] sm:$0xff]  ;;  %v16074_v52 = vpack.c.bf16 %v1942_v28, %v1938_v24 }
 0x897   :  { %v1969_v24 = vld [vmem:[#allocation6 + $0x760] sm:$0xff] }
 0x898   :  { %14817 = vtanh.f32 %v1835_v7  ;;  %v11800_v7 = vpack.c.bf16 %v1918_v5, %v1914_v53  ;;  %11831 = vmatpush1.bf16.msra.mxu1 %v11830_v58  ;;  %v16076_v53 = vpack.c.bf16 %v1944_v35, %v1940_v34  ;;  %v1939_v58 = vld [vmem:[#allocation6 + $0x670] sm:$0xff]  ;;  %v1973_v28 = vld [vmem:[#allocation6 + $0x780] sm:$0xff] }
 0x899   :  { %v1943_v5 = vld [vmem:[#allocation6 + $0x690] sm:$0xff] }
 0x89a   :  { %11801 = vmatprep.subr.bf16.mxu0 %v11800_v7  ;;  %v1948_v7 = vld [vmem:[#allocation6 + $0x6b8] sm:$0xff] }
 0x8a2   :  { %v14818_v17 = vpop.eup %14817 }
 0x8a3   :  { %v1837_v18 = vmul.f32 %v14818_v17, %v14816_v8  ;;  %v11832_v8 = vpack.c.bf16 %v1920_v1, %v1916_v6  ;;  %v1913_v17 = vld [vmem:[#allocation6 + $0x5a0] sm:$0xff]  ;;  %v1946_v6 = vld [vmem:[#allocation6 + $0x6a8] sm:$0xff] }
 0x8a4   :  { %v1950_v1 = vld [vmem:[#allocation6 + $0x6c8] sm:$0xff] }
 0x8a5   :  { %1838 = vst [vmem:[#allocation2] sm:$0x80] %v1837_v18  ;;  %v1917_v18 = vld [vmem:[#allocation6 + $0x5c0] sm:$0xff]  ;;  %11833 = vmatprep.subr.bf16.mxu1 %v11832_v8  ;;  %v1952_v8 = vld [vmem:[#allocation6 + $0x6d8] sm:$0xff] }
 0x8a6   :  { %v11802_v13 = vpack.c.bf16 %v1917_v18, %v1913_v17  ;;  %v16080_v17 = vpack.c.bf16 %v1941_v48, %v1937_v40  ;;  %v16082_v18 = vpack.c.bf16 %v1943_v5, %v1939_v58  ;;  %v16088_v44 = vpack.c.bf16 %v1952_v8, %v1948_v7  ;;  %v1975_v40 = vld [vmem:[#allocation6 + $0x790] sm:$0xff]  ;;  %v1978_v48 = vld [vmem:[#allocation6 + $0x7a8] sm:$0xff]  ;;  %v1980_v58 = vld [vmem:[#allocation6 + $0x7b8] sm:$0xff] }
 0x8a7   :  { %v1984_v5 = vld [vmem:[#allocation6 + $0x7d8] sm:$0xff]  ;;  %v1977_v7 = vld [vmem:[#allocation6 + $0x7a0] sm:$0xff] }
 0x8a8   :  { %11803 = vmatpush1.bf16.msra.mxu0 %v11802_v13  ;;  %v1949_v13 = vld [vmem:[#allocation6 + $0x6c0] sm:$0xff] }
 0x8a9   :  { %11805 = vmatprep.subr.bf16.mxu0 %v11804_v25  ;;  %v1954_v25 = vld [vmem:[#allocation6 + $0x6e8] sm:$0xff]  ;;  %v1981_v8 = vld [vmem:[#allocation6 + $0x7c0] sm:$0xff] }
 0x8aa   :  { %v16100_v54 = vpack.c.bf16 %v1958_v21, %v1954_v25  ;;  %v1986_v25 = vld [vmem:[#allocation6 + $0x7e8] sm:$0xff] }
 0x8ab   :  { %v1990_v21 = vld [vmem:[#allocation6 + $0x808] sm:$0xff] }
 0x8ac   :  { %v16058_v43 = vld [vmem:[#allocation2] sm:$0xff]  ;;  %11807 = vmatpush1.bf16.msra.mxu0 %v11806_v56 }
 0x8ad   :  { %1842 = vadd.xlane.f32.xlu0 %v16058_v43  ;;  %v1845_v20 = vmul.f32 %v16058_v43, %v16058_v43  ;;  %11841 = vmatprep.subr.bf16.mxu0 %v16063_v2  ;;  %v1959_v56 = vld [vmem:[#allocation6 + $0x710] sm:$0xff] }
 0x8b1   :  { %1846 = vadd.xlane.f32.xlu0 %v1845_v20  ;;  %v1915_v20 = vld [vmem:[#allocation6 + $0x5b0] sm:$0xff] }
 0x8b2   :  { %v11834_v42 = vpack.c.bf16 %v1919_v26, %v1915_v20  ;;  %v1945_v20 = vld [vmem:[#allocation6 + $0x6a0] sm:$0xff]  ;;  %v16086_v26 = vpack.c.bf16 %v1950_v1, %v1946_v6  ;;  %v16130_v6 = vpack.c.bf16 %v1973_v28, %v1969_v24 }
 0x8b4   :  { %11835 = vmatpush1.bf16.msra.mxu1 %v11834_v42  ;;  %v1951_v42 = vld [vmem:[#allocation6 + $0x6d0] sm:$0xff] }
 0x8b5   :  { %11837 = vmatprep.subr.bf16.mxu1 %v11836_v30  ;;  %v16094_v30 = vpack.c.bf16 %v1949_v13, %v1945_v20  ;;  %v16096_v45 = vpack.c.bf16 %v1951_v42, %v1947_v38  ;;  %v16138_v13 = vpack.c.bf16 %v1984_v5, %v1980_v58  ;;  %v1979_v38 = vld [vmem:[#allocation6 + $0x7b0] sm:$0xff] }
 0x8b6   :  { %v1983_v42 = vld [vmem:[#allocation6 + $0x7d0] sm:$0xff] }
 0x8b8   :  { %11839 = vmatpush1.bf16.msra.mxu1 %v11838_v60  ;;  %v1966_v60 = vld [vmem:[#allocation6 + $0x748] sm:$0xff] }
 0x8b9   :  { %11873 = vmatprep.subr.bf16.mxu1 %v16065_v3 }
 0x93a   :  { %v1843_v15 = vpop.xlane.xlu0 %1842 }
 0x93b   :  { %v1844_v19 = vmul.f32 0.0078125, %v1843_v15  ;;  %v1964_v15 = vld [vmem:[#allocation6 + $0x738] sm:$0xff] }
 0x93d   :  { %v1849_v50 = vmul.f32 %v1844_v19, %v1844_v19  ;;  %v1853_v62 = vsub.f32 %v16058_v43, %v1844_v19  ;;  %v1968_v19 = vld [vmem:[#allocation6 + $0x758] sm:$0xff] }
 0x93e   :  { %v1847_v49 = vpop.xlane.xlu0 %1846 }
 0x93f   :  { %v1848_v51 = vmul.f32 0.0078125, %v1847_v49  ;;  %v16106_v49 = vpack.c.bf16 %v1957_v47, %v1953_v46  ;;  %v16142_v46 = vpack.c.bf16 %v1981_v8, %v1977_v7  ;;  %v16144_v47 = vpack.c.bf16 %v1983_v42, %v1979_v38 }
 0x941   :  { %v1850_v55 = vsub.f32 %v1848_v51, %v1849_v50  ;;  %v16108_v50 = vpack.c.bf16 %v1959_v56, %v1955_v14  ;;  %v1961_v51 = vld [vmem:[#allocation6 + $0x720] sm:$0xff]  ;;  %v16148_v56 = vpack.c.bf16 %v1990_v21, %v1986_v25 }
 0x942   :  { %v1985_v14 = vld [vmem:[#allocation6 + $0x7e0] sm:$0xff] }
 0x943   :  { %v1851_v61 = vadd.f32 1e-05, %v1850_v55  ;;  %v1965_v55 = vld [vmem:[#allocation6 + $0x740] sm:$0xff] }
 0x944   :  { %v16118_v22 = vpack.c.bf16 %v1965_v55, %v1961_v51 }
 0x945   :  { %14819 = vrsqrt.f32 %v1851_v61  ;;  %v16112_v61 = vpack.c.bf16 %v1966_v60, %v1962_v59  ;;  %v16150_v59 = vpack.c.bf16 %v1992_v33, %v1988_v32  ;;  %v1989_v60 = vld [vmem:[#allocation6 + $0x800] sm:$0xff] }
 0x946   :  { %v16154_v51 = vpack.c.bf16 %v1989_v60, %v1985_v14 }
 0x94f   :  { %v14820_v4 = vpop.eup %14819 }
 0x950   :  { %v1854_v16 = vmul.f32 %v14820_v4, %v1853_v62  ;;  %v16114_v62 = vpack.c.bf16 %v1968_v19, %v1964_v15  ;;  %v1967_v4 = vld [vmem:[#allocation6 + $0x750] sm:$0xff] }
 0x951   :  { %v1987_v15 = vld [vmem:[#allocation6 + $0x7f0] sm:$0xff] }
 0x952   :  { %v1859_v36 = vmul.f32 %v11017_v63, %v1854_v16  ;;  %v1963_v63 = vld [vmem:[#allocation6 + $0x730] sm:$0xff]  ;;  %v1976_v16 = vld [vmem:[#allocation6 + $0x798] sm:$0xff] }
 0x953   :  { %v16120_v23 = vpack.c.bf16 %v1967_v4, %v1963_v63  ;;  %v16126_v35 = vpack.c.bf16 %v1976_v16, %v1972_v12  ;;  %v1991_v19 = vld [vmem:[#allocation6 + $0x810] sm:$0xff] }
 0x954   :  { %v1864_v43 = vadd.f32 %v11018_v10, %v1859_v36  ;;  %v1970_v10 = vld [vmem:[#allocation6 + $0x768] sm:$0xff]  ;;  %v1971_v36 = vld [vmem:[#allocation6 + $0x770] sm:$0xff]  ;;  %v16156_v55 = vpack.c.bf16 %v1991_v19, %v1987_v15 }
 0x955   :  { %v16124_v34 = vpack.c.bf16 %v1974_v11, %v1970_v10  ;;  %v16132_v1 = vpack.c.bf16 %v1975_v40, %v1971_v36  ;;  %v1994_v12 = vld [vmem:[#allocation6 + $0x820] ss:$8 sm:$0xf] }
 0x956   :  { %2081 = vmatmul.mubr.f32.vlgmr.msra.gmra.mrb[18].mxu0 %v1864_v43  ;;  %2152 = vmatmul.mubr.f32.vlgmr.msra.gmra.mrb[18].mxu1 %v1864_v43  ;;  %v1982_v43 = vld [vmem:[#allocation6 + $0x7c8] sm:$0xff]  ;;  %v1999_v16 = vrot.slane %v1994_v12, %v15771_v29  ;;  %v2003_v24 = vrot.slane %v1994_v12, %v15774_v31  ;;  %v2007_v8 = vrot.slane %v1994_v12, %v15779_v37 }
 0x957   :  { %11843 = vmatpush1.bf16.msra.mxu0 %v16070_v41  ;;  %11875 = vmatpush1.bf16.msra.mxu1 %v16072_v39  ;;  %v16136_v20 = vpack.c.bf16 %v1982_v43, %v1978_v48  ;;  %v2011_v25 = vrot.slane %v1994_v12, %v15789_v57 }
 0x958   :  { %11845 = vmatprep.subr.bf16.mxu0 %v16074_v52  ;;  %11877 = vmatprep.subr.bf16.mxu1 %v16076_v53 }
 0x959   :  { %2222 = vmatprep.mubr.f32.mxu0 %v15570_v0  ;;  %2293 = vmatprep.mubr.f32.mxu1 %v15570_v0 }
 0x95b   :  { %11847 = vmatpush1.bf16.msra.mxu0 %v16080_v17  ;;  %11879 = vmatpush1.bf16.msra.mxu1 %v16082_v18 }
 0x95c   :  { %11849 = vmatprep.subr.bf16.mxu0 %v16086_v26  ;;  %11881 = vmatprep.subr.bf16.mxu1 %v16088_v44 }
 0x95f   :  { %11851 = vmatpush1.bf16.msra.mxu0 %v16094_v30  ;;  %11883 = vmatpush1.bf16.msra.mxu1 %v16096_v45 }
 0x960   :  { %11853 = vmatprep.subr.bf16.mxu0 %v16100_v54  ;;  %11885 = vmatprep.subr.bf16.mxu1 %v16102_v9 }
 0x963   :  { %11855 = vmatpush1.bf16.msra.mxu0 %v16106_v49  ;;  %11887 = vmatpush1.bf16.msra.mxu1 %v16108_v50 }
 0x964   :  { %11857 = vmatprep.subr.bf16.mxu0 %v16112_v61  ;;  %11889 = vmatprep.subr.bf16.mxu1 %v16114_v62 }
 0x967   :  { %11859 = vmatpush1.bf16.msra.mxu0 %v16118_v22  ;;  %11891 = vmatpush1.bf16.msra.mxu1 %v16120_v23 }
 0x968   :  { %11861 = vmatprep.subr.bf16.mxu0 %v16124_v34  ;;  %11893 = vmatprep.subr.bf16.mxu1 %v16126_v35 }
 0x96b   :  { %11863 = vmatpush1.bf16.msra.mxu0 %v16130_v6  ;;  %11895 = vmatpush1.bf16.msra.mxu1 %v16132_v1 }
 0x96c   :  { %11865 = vmatprep.subr.bf16.mxu0 %v16136_v20  ;;  %11897 = vmatprep.subr.bf16.mxu1 %v16138_v13 }
 0x96f   :  { %11867 = vmatpush1.bf16.msra.mxu0 %v16142_v46  ;;  %11899 = vmatpush1.bf16.msra.mxu1 %v16144_v47 }
 0x970   :  { %11869 = vmatprep.subr.bf16.mxu0 %v16148_v56  ;;  %11901 = vmatprep.subr.bf16.mxu1 %v16150_v59 }
 0x973   :  { %11871 = vmatpush1.bf16.msra.mxu0 %v16154_v51  ;;  %11903 = vmatpush1.bf16.msra.mxu1 %v16156_v55 }
 0x974   :  { %11905 = vmatprep.subr.bf16.mxu0 %v16063_v2  ;;  %11937 = vmatprep.subr.bf16.mxu1 %v16065_v3 }
 0x976   :  { %2223 = vmatmul.mubr.f32.vlgmr.msra.gmra.mrb[20].mxu0 %v15570_v0  ;;  %2294 = vmatmul.mubr.f32.vlgmr.msra.gmra.mrb[20].mxu1 %v15570_v0 }
 0x977   :  { %11907 = vmatpush1.bf16.msra.mxu0 %v16070_v41  ;;  %11939 = vmatpush1.bf16.msra.mxu1 %v16072_v39 }
 0x978   :  { %11909 = vmatprep.subr.bf16.mxu0 %v16074_v52  ;;  %11941 = vmatprep.subr.bf16.mxu1 %v16076_v53 }
 0x979   :  { %2393 = vmatprep.mubr.f32.mxu0 %v15570_v0  ;;  %2464 = vmatprep.mubr.f32.mxu1 %v15570_v0 }
 0x97b   :  { %11911 = vmatpush1.bf16.msra.mxu0 %v16080_v17  ;;  %11943 = vmatpush1.bf16.msra.mxu1 %v16082_v18 }
 0x97c   :  { %11913 = vmatprep.subr.bf16.mxu0 %v16086_v26  ;;  %11945 = vmatprep.subr.bf16.mxu1 %v16088_v44 }
 0x97f   :  { %11915 = vmatpush1.bf16.msra.mxu0 %v16094_v30  ;;  %11947 = vmatpush1.bf16.msra.mxu1 %v16096_v45 }
 0x980   :  { %11917 = vmatprep.subr.bf16.mxu0 %v16100_v54  ;;  %11949 = vmatprep.subr.bf16.mxu1 %v16102_v9 }
 0x983   :  { %11919 = vmatpush1.bf16.msra.mxu0 %v16106_v49  ;;  %11951 = vmatpush1.bf16.msra.mxu1 %v16108_v50 }
 0x984   :  { %11921 = vmatprep.subr.bf16.mxu0 %v16112_v61  ;;  %11953 = vmatprep.subr.bf16.mxu1 %v16114_v62 }
 0x987   :  { %11923 = vmatpush1.bf16.msra.mxu0 %v16118_v22  ;;  %11955 = vmatpush1.bf16.msra.mxu1 %v16120_v23 }
 0x988   :  { %11925 = vmatprep.subr.bf16.mxu0 %v16124_v34  ;;  %11957 = vmatprep.subr.bf16.mxu1 %v16126_v35 }
 0x98b   :  { %11927 = vmatpush1.bf16.msra.mxu0 %v16130_v6  ;;  %11959 = vmatpush1.bf16.msra.mxu1 %v16132_v1 }
 0x98c   :  { %11929 = vmatprep.subr.bf16.mxu0 %v16136_v20  ;;  %11961 = vmatprep.subr.bf16.mxu1 %v16138_v13 }
 0x98f   :  { %11931 = vmatpush1.bf16.msra.mxu0 %v16142_v46  ;;  %11963 = vmatpush1.bf16.msra.mxu1 %v16144_v47 }
 0x990   :  { %11933 = vmatprep.subr.bf16.mxu0 %v16148_v56  ;;  %11965 = vmatprep.subr.bf16.mxu1 %v16150_v59 }
 0x993   :  { %11935 = vmatpush1.bf16.msra.mxu0 %v16154_v51  ;;  %11967 = vmatpush1.bf16.msra.mxu1 %v16156_v55 }
 0x994   :  { %11969 = vmatprep.subr.bf16.mxu0 %v16063_v2  ;;  %12001 = vmatprep.subr.bf16.mxu1 %v16065_v3 }
 0xa29   :  { %v2082_v63 = vpop.f32.mrb[18].mxu0  ;;  %v2153_v4 = vpop.f32.mrb[18].mxu1 }
 0xa2a   :  { %v2084_v10 = vpop.f32.mrb[19].mxu0  ;;  %v2155_v11 = vpop.f32.mrb[19].mxu1  ;;  %v16202_v28 = vadd.f32 %v2082_v63, %v1999_v16  ;;  %v16210_v21 = vadd.f32 %v2153_v4, %v2007_v8 }
 0xa2b   :  { %v16204_v36 = vadd.f32 %v2084_v10, %v2003_v24  ;;  %v16213_v33 = vadd.f32 %v2155_v11, %v2011_v25 }
 0xa49   :  { %v2224_v40 = vpop.f32.mrb[20].mxu0  ;;  %v2295_v48 = vpop.f32.mrb[20].mxu1 }
 0xa4a   :  { %v2300_v43 = vadd.f32 %v2224_v40, %v16202_v28  ;;  %v2226_v58 = vpop.f32.mrb[21].mxu0  ;;  %v2297_v5 = vpop.f32.mrb[21].mxu1  ;;  %v2302_v32 = vadd.f32 %v2295_v48, %v16210_v21 }
 0xa4b   :  { %v2301_v7 = vadd.f32 %v2226_v58, %v16204_v36  ;;  %v2303_v14 = vadd.f32 %v2297_v5, %v16213_v33 }
 0xa4c   :  { %v11019_v38 = vmul.f32 -1.442695, %v2300_v43  ;;  %v11021_v60 = vmul.f32 -1.442695, %v2302_v32 }
 0xa4d   :  { %v11020_v42 = vmul.f32 -1.442695, %v2301_v7 }
 0xa4e   :  { %14821 = vpow2.f32 %v11019_v38 }
 0xa4f   :  { %14823 = vpow2.f32 %v11020_v42 }
 0xa50   :  { %14825 = vtanh.f32 %v2303_v14 }
 0xa51   :  { %14827 = vpow2.f32 %v11021_v60 }
 0xa58   :  { %v14822_v15 = vpop.eup %14821 }
 0xa59   :  { %v2313_v19 = vadd.f32 1.0, %v14822_v15  ;;  %v14824_v63 = vpop.eup %14823 }
 0xa5a   :  { %v2314_v10 = vadd.f32 1.0, %v14824_v63  ;;  %v14826_v16 = vpop.eup %14825 }
 0xa5b   :  { %14829 = vrcp.f32 %v2313_v19  ;;  %v14828_v12 = vpop.eup %14827 }
 0xa5c   :  { %14831 = vrcp.f32 %v2314_v10  ;;  %v2315_v43 = vadd.f32 1.0, %v14828_v12 }
 0xa5e   :  { %14833 = vrcp.f32 %v2315_v43 }
 0xa65   :  { %v14830_v4 = vpop.eup %14829 }
 0xa66   :  { %v2324_v24 = vmul.f32 %v14830_v4, %v14826_v16  ;;  %v14832_v40 = vpop.eup %14831 }
 0xa67   :  { %v2323_v48 = vmul.f32 0.0, %v14832_v40 }
 0xa68   :  { %v14834_v58 = vpop.eup %14833 }
 0xa69   :  { %v16216_v11 = vadd.f32 %v2324_v24, %v2323_v48 }
 0xa6b   :  { %14835 = vtanh.f32 %v16216_v11 }
 0xa75   :  { %v14836_v5 = vpop.eup %14835 }
 0xa76   :  { %v2327_v7 = vmul.f32 %v14836_v5, %v14834_v58 }
 0xa78   :  { %2328 = vst [vmem:[#allocation2] sm:$0x1] %v2327_v7  ;;  %2394 = vmatmul.mubr.f32.vlgmr.msra.gmra.mrb[22].mxu0 %v2327_v7  ;;  %2465 = vmatmul.mubr.f32.vlgmr.msra.gmra.mrb[22].mxu1 %v2327_v7 }
 0xa79   :  { %11971 = vmatpush1.bf16.msra.mxu0 %v16070_v41  ;;  %12003 = vmatpush1.bf16.msra.mxu1 %v16072_v39 }
 0xa7a   :  { %11973 = vmatprep.subr.bf16.mxu0 %v16074_v52  ;;  %12005 = vmatprep.subr.bf16.mxu1 %v16076_v53 }
 0xa7b   :  { %2582 = vmatprep.mubr.f32.mxu0 %v15570_v0  ;;  %2653 = vmatprep.mubr.f32.mxu1 %v15570_v0 }
 0xa7d   :  { %11975 = vmatpush1.bf16.msra.mxu0 %v16080_v17  ;;  %12007 = vmatpush1.bf16.msra.mxu1 %v16082_v18 }
 0xa7e   :  { %11977 = vmatprep.subr.bf16.mxu0 %v16086_v26  ;;  %12009 = vmatprep.subr.bf16.mxu1 %v16088_v44 }
 0xa81   :  { %11979 = vmatpush1.bf16.msra.mxu0 %v16094_v30  ;;  %12011 = vmatpush1.bf16.msra.mxu1 %v16096_v45 }
 0xa82   :  { %11981 = vmatprep.subr.bf16.mxu0 %v16100_v54  ;;  %12013 = vmatprep.subr.bf16.mxu1 %v16102_v9 }
 0xa85   :  { %11983 = vmatpush1.bf16.msra.mxu0 %v16106_v49  ;;  %12015 = vmatpush1.bf16.msra.mxu1 %v16108_v50 }
 0xa86   :  { %11985 = vmatprep.subr.bf16.mxu0 %v16112_v61  ;;  %12017 = vmatprep.subr.bf16.mxu1 %v16114_v62 }
 0xa89   :  { %11987 = vmatpush1.bf16.msra.mxu0 %v16118_v22  ;;  %12019 = vmatpush1.bf16.msra.mxu1 %v16120_v23 }
 0xa8a   :  { %11989 = vmatprep.subr.bf16.mxu0 %v16124_v34  ;;  %12021 = vmatprep.subr.bf16.mxu1 %v16126_v35 }
 0xa8d   :  { %11991 = vmatpush1.bf16.msra.mxu0 %v16130_v6  ;;  %12023 = vmatpush1.bf16.msra.mxu1 %v16132_v1 }
 0xa8e   :  { %11993 = vmatprep.subr.bf16.mxu0 %v16136_v20  ;;  %12025 = vmatprep.subr.bf16.mxu1 %v16138_v13 }
 0xa91   :  { %11995 = vmatpush1.bf16.msra.mxu0 %v16142_v46  ;;  %12027 = vmatpush1.bf16.msra.mxu1 %v16144_v47 }
 0xa92   :  { %11997 = vmatprep.subr.bf16.mxu0 %v16148_v56  ;;  %12029 = vmatprep.subr.bf16.mxu1 %v16150_v59 }
 0xa95   :  { %11999 = vmatpush1.bf16.msra.mxu0 %v16154_v51  ;;  %12031 = vmatpush1.bf16.msra.mxu1 %v16156_v55 }
 0xa96   :  { %12033 = vmatprep.subr.bf16.mxu0 %v16063_v2  ;;  %12065 = vmatprep.subr.bf16.mxu1 %v16065_v3 }
 0xb4b   :  { %v2395_v8 = vpop.f32.mrb[22].mxu0  ;;  %v2466_v38 = vpop.f32.mrb[22].mxu1 }
 0xb4c   :  { %v2475_v42 = vrot.slane %v2395_v8, 7  ;;  %v2397_v25 = vpop.f32.mrb[23].mxu0  ;;  %v2468_v32 = vpop.f32.mrb[23].mxu1  ;;  %v2477_v10 = vrot.slane %v2466_v38, 7  ;;  %v2507_v38 = vrot.slane %v16216_v11, 7 }
 0xb4d   :  { %v2476_v14 = vrot.slane %v2397_v25, 7  ;;  %v2478_v16 = vrot.slane %v2468_v32, 7 }
 0xb4e   :  { %v2483_v60 = vadd.f32 %v2475_v42, %v16202_v28  ;;  %v2485_v12 = vadd.f32 %v2477_v10, %v16210_v21 }
 0xb4f   :  { %v2484_v15 = vadd.f32 %v2476_v14, %v16204_v36  ;;  %v2486_v4 = vadd.f32 %v2478_v16, %v16213_v33 }
 0xb50   :  { %v11022_v19 = vmul.f32 -1.442695, %v2483_v60  ;;  %v11024_v24 = vmul.f32 -1.442695, %v2485_v12 }
 0xb51   :  { %v11023_v63 = vmul.f32 -1.442695, %v2484_v15 }
 0xb52   :  { %14837 = vpow2.f32 %v11022_v19 }
 0xb53   :  { %14839 = vpow2.f32 %v11023_v63 }
 0xb54   :  { %14841 = vtanh.f32 %v2486_v4 }
 0xb55   :  { %14843 = vpow2.f32 %v11024_v24 }
 0xb5c   :  { %v14838_v40 = vpop.eup %14837 }
 0xb5d   :  { %v2496_v43 = vadd.f32 1.0, %v14838_v40  ;;  %v14840_v48 = vpop.eup %14839 }
 0xb5e   :  { %v2497_v58 = vadd.f32 1.0, %v14840_v48  ;;  %v14842_v5 = vpop.eup %14841 }
 0xb5f   :  { %14845 = vrcp.f32 %v2496_v43  ;;  %v14844_v7 = vpop.eup %14843 }
 0xb60   :  { %14847 = vrcp.f32 %v2497_v58  ;;  %v2498_v32 = vadd.f32 1.0, %v14844_v7 }
 0xb62   :  { %14849 = vrcp.f32 %v2498_v32 }
 0xb69   :  { %v14846_v8 = vpop.eup %14845 }
 0xb6a   :  { %v2510_v42 = vmul.f32 %v14846_v8, %v14842_v5  ;;  %v14848_v25 = vpop.eup %14847 }
 0xb6b   :  { %v2509_v14 = vmul.f32 %v14848_v25, %v2507_v38 }
 0xb6c   :  { %v14850_v15 = vpop.eup %14849 }
 0xb6d   :  { %v16258_v60 = vadd.f32 %v2510_v42, %v2509_v14 }
 0xb6f   :  { %14851 = vtanh.f32 %v16258_v60 }
 0xb79   :  { %v14852_v19 = vpop.eup %14851 }
 0xb7a   :  { %v2513_v63 = vmul.f32 %v14852_v19, %v14850_v15 }
 0xb7c   :  { %2514 = vst [vmem:[#allocation2] sm:$0x2] %v2513_v63  ;;  %v2516_v10 = vrot.slane %v2513_v63, 1 }
 0xb7e   :  { %2583 = vmatmul.mubr.f32.vlgmr.msra.gmra.mrb[24].mxu0 %v2516_v10  ;;  %2654 = vmatmul.mubr.f32.vlgmr.msra.gmra.mrb[24].mxu1 %v2516_v10 }
 0xb7f   :  { %12035 = vmatpush1.bf16.msra.mxu0 %v16070_v41  ;;  %12067 = vmatpush1.bf16.msra.mxu1 %v16072_v39 }
 0xb80   :  { %12037 = vmatprep.subr.bf16.mxu0 %v16074_v52  ;;  %12069 = vmatprep.subr.bf16.mxu1 %v16076_v53 }
 0xb81   :  { %2771 = vmatprep.mubr.f32.mxu0 %v15570_v0  ;;  %2842 = vmatprep.mubr.f32.mxu1 %v15570_v0 }
 0xb83   :  { %12039 = vmatpush1.bf16.msra.mxu0 %v16080_v17  ;;  %12071 = vmatpush1.bf16.msra.mxu1 %v16082_v18 }
 0xb84   :  { %12041 = vmatprep.subr.bf16.mxu0 %v16086_v26  ;;  %12073 = vmatprep.subr.bf16.mxu1 %v16088_v44 }
 0xb87   :  { %12043 = vmatpush1.bf16.msra.mxu0 %v16094_v30  ;;  %12075 = vmatpush1.bf16.msra.mxu1 %v16096_v45 }
 0xb88   :  { %12045 = vmatprep.subr.bf16.mxu0 %v16100_v54  ;;  %12077 = vmatprep.subr.bf16.mxu1 %v16102_v9 }
 0xb8b   :  { %12047 = vmatpush1.bf16.msra.mxu0 %v16106_v49  ;;  %12079 = vmatpush1.bf16.msra.mxu1 %v16108_v50 }
 0xb8c   :  { %12049 = vmatprep.subr.bf16.mxu0 %v16112_v61  ;;  %12081 = vmatprep.subr.bf16.mxu1 %v16114_v62 }
 0xb8f   :  { %12051 = vmatpush1.bf16.msra.mxu0 %v16118_v22  ;;  %12083 = vmatpush1.bf16.msra.mxu1 %v16120_v23 }
 0xb90   :  { %12053 = vmatprep.subr.bf16.mxu0 %v16124_v34  ;;  %12085 = vmatprep.subr.bf16.mxu1 %v16126_v35 }
 0xb93   :  { %12055 = vmatpush1.bf16.msra.mxu0 %v16130_v6  ;;  %12087 = vmatpush1.bf16.msra.mxu1 %v16132_v1 }
 0xb94   :  { %12057 = vmatprep.subr.bf16.mxu0 %v16136_v20  ;;  %12089 = vmatprep.subr.bf16.mxu1 %v16138_v13 }
 0xb97   :  { %12059 = vmatpush1.bf16.msra.mxu0 %v16142_v46  ;;  %12091 = vmatpush1.bf16.msra.mxu1 %v16144_v47 }
 0xb98   :  { %12061 = vmatprep.subr.bf16.mxu0 %v16148_v56  ;;  %12093 = vmatprep.subr.bf16.mxu1 %v16150_v59 }
 0xb9b   :  { %12063 = vmatpush1.bf16.msra.mxu0 %v16154_v51  ;;  %12095 = vmatpush1.bf16.msra.mxu1 %v16156_v55 }
 0xb9c   :  { %12097 = vmatprep.subr.bf16.mxu0 %v16063_v2  ;;  %12129 = vmatprep.subr.bf16.mxu1 %v16065_v3 }
 0xc51   :  { %v2584_v11 = vpop.f32.mrb[24].mxu0  ;;  %v2655_v16 = vpop.f32.mrb[24].mxu1 }
 0xc52   :  { %v2664_v12 = vrot.slane %v2584_v11, 6  ;;  %v2586_v4 = vpop.f32.mrb[25].mxu0  ;;  %v2657_v24 = vpop.f32.mrb[25].mxu1  ;;  %v2666_v7 = vrot.slane %v2655_v16, 6  ;;  %v2696_v16 = vrot.slane %v16258_v60, 7 }
 0xc53   :  { %v2665_v40 = vrot.slane %v2586_v4, 6  ;;  %v2667_v8 = vrot.slane %v2657_v24, 6 }
 0xc54   :  { %v2672_v43 = vadd.f32 %v2664_v12, %v16202_v28  ;;  %v2674_v38 = vadd.f32 %v2666_v7, %v16210_v21 }
 0xc55   :  { %v2673_v48 = vadd.f32 %v2665_v40, %v16204_v36  ;;  %v2675_v42 = vadd.f32 %v2667_v8, %v16213_v33 }
 0xc56   :  { %v11025_v58 = vmul.f32 -1.442695, %v2672_v43  ;;  %v11027_v25 = vmul.f32 -1.442695, %v2674_v38 }
 0xc57   :  { %v11026_v5 = vmul.f32 -1.442695, %v2673_v48 }
 0xc58   :  { %14853 = vpow2.f32 %v11025_v58 }
 0xc59   :  { %14855 = vpow2.f32 %v11026_v5 }
 0xc5a   :  { %14857 = vtanh.f32 %v2675_v42 }
 0xc5b   :  { %14859 = vpow2.f32 %v11027_v25 }
 0xc62   :  { %v14854_v32 = vpop.eup %14853 }
 0xc63   :  { %v2685_v14 = vadd.f32 1.0, %v14854_v32  ;;  %v14856_v15 = vpop.eup %14855 }
 0xc64   :  { %v2686_v19 = vadd.f32 1.0, %v14856_v15  ;;  %v14858_v63 = vpop.eup %14857 }
 0xc65   :  { %14861 = vrcp.f32 %v2685_v14  ;;  %v14860_v10 = vpop.eup %14859 }
 0xc66   :  { %14863 = vrcp.f32 %v2686_v19  ;;  %v2687_v24 = vadd.f32 1.0, %v14860_v10 }
 0xc68   :  { %14865 = vrcp.f32 %v2687_v24 }
 0xc6f   :  { %v14862_v11 = vpop.eup %14861 }
 0xc70   :  { %v2699_v12 = vmul.f32 %v14862_v11, %v14858_v63  ;;  %v14864_v4 = vpop.eup %14863 }
 0xc71   :  { %v2698_v40 = vmul.f32 %v14864_v4, %v2696_v16 }
 0xc72   :  { %v14866_v48 = vpop.eup %14865 }
 0xc73   :  { %v16300_v43 = vadd.f32 %v2699_v12, %v2698_v40 }
 0xc75   :  { %14867 = vtanh.f32 %v16300_v43 }
 0xc7f   :  { %v14868_v58 = vpop.eup %14867 }
 0xc80   :  { %v2702_v5 = vmul.f32 %v14868_v58, %v14866_v48 }
 0xc82   :  { %2703 = vst [vmem:[#allocation2] sm:$0x4] %v2702_v5  ;;  %v2705_v7 = vrot.slane %v2702_v5, 2 }
 0xc84   :  { %2772 = vmatmul.mubr.f32.vlgmr.msra.gmra.mrb[26].mxu0 %v2705_v7  ;;  %2843 = vmatmul.mubr.f32.vlgmr.msra.gmra.mrb[26].mxu1 %v2705_v7 }
 0xc85   :  { %12099 = vmatpush1.bf16.msra.mxu0 %v16070_v41  ;;  %12131 = vmatpush1.bf16.msra.mxu1 %v16072_v39 }
 0xc86   :  { %12101 = vmatprep.subr.bf16.mxu0 %v16074_v52  ;;  %12133 = vmatprep.subr.bf16.mxu1 %v16076_v53 }
 0xc87   :  { %2960 = vmatprep.mubr.f32.mxu0 %v15570_v0  ;;  %3031 = vmatprep.mubr.f32.mxu1 %v15570_v0 }
 0xc89   :  { %12103 = vmatpush1.bf16.msra.mxu0 %v16080_v17  ;;  %12135 = vmatpush1.bf16.msra.mxu1 %v16082_v18 }
 0xc8a   :  { %12105 = vmatprep.subr.bf16.mxu0 %v16086_v26  ;;  %12137 = vmatprep.subr.bf16.mxu1 %v16088_v44 }
 0xc8d   :  { %12107 = vmatpush1.bf16.msra.mxu0 %v16094_v30  ;;  %12139 = vmatpush1.bf16.msra.mxu1 %v16096_v45 }
 0xc8e   :  { %12109 = vmatprep.subr.bf16.mxu0 %v16100_v54  ;;  %12141 = vmatprep.subr.bf16.mxu1 %v16102_v9 }
 0xc91   :  { %12111 = vmatpush1.bf16.msra.mxu0 %v16106_v49  ;;  %12143 = vmatpush1.bf16.msra.mxu1 %v16108_v50 }
 0xc92   :  { %12113 = vmatprep.subr.bf16.mxu0 %v16112_v61  ;;  %12145 = vmatprep.subr.bf16.mxu1 %v16114_v62 }
 0xc95   :  { %12115 = vmatpush1.bf16.msra.mxu0 %v16118_v22  ;;  %12147 = vmatpush1.bf16.msra.mxu1 %v16120_v23 }
 0xc96   :  { %12117 = vmatprep.subr.bf16.mxu0 %v16124_v34  ;;  %12149 = vmatprep.subr.bf16.mxu1 %v16126_v35 }
 0xc99   :  { %12119 = vmatpush1.bf16.msra.mxu0 %v16130_v6  ;;  %12151 = vmatpush1.bf16.msra.mxu1 %v16132_v1 }
 0xc9a   :  { %12121 = vmatprep.subr.bf16.mxu0 %v16136_v20  ;;  %12153 = vmatprep.subr.bf16.mxu1 %v16138_v13 }
 0xc9d   :  { %12123 = vmatpush1.bf16.msra.mxu0 %v16142_v46  ;;  %12155 = vmatpush1.bf16.msra.mxu1 %v16144_v47 }
 0xc9e   :  { %12125 = vmatprep.subr.bf16.mxu0 %v16148_v56  ;;  %12157 = vmatprep.subr.bf16.mxu1 %v16150_v59 }
 0xca1   :  { %12127 = vmatpush1.bf16.msra.mxu0 %v16154_v51  ;;  %12159 = vmatpush1.bf16.msra.mxu1 %v16156_v55 }
 0xca2   :  { %12161 = vmatprep.subr.bf16.mxu0 %v16063_v2  ;;  %12193 = vmatprep.subr.bf16.mxu1 %v16065_v3 }
 0xd57   :  { %v2773_v60 = vpop.f32.mrb[26].mxu0  ;;  %v2844_v8 = vpop.f32.mrb[26].mxu1 }
 0xd58   :  { %v2853_v38 = vrot.slane %v2773_v60, 5  ;;  %v2775_v42 = vpop.f32.mrb[27].mxu0  ;;  %v2846_v25 = vpop.f32.mrb[27].mxu1  ;;  %v2855_v10 = vrot.slane %v2844_v8, 5  ;;  %v2885_v8 = vrot.slane %v16300_v43, 7 }
 0xd59   :  { %v2854_v32 = vrot.slane %v2775_v42, 5  ;;  %v2856_v11 = vrot.slane %v2846_v25, 5 }
 0xd5a   :  { %v2861_v14 = vadd.f32 %v2853_v38, %v16202_v28  ;;  %v2863_v16 = vadd.f32 %v2855_v10, %v16210_v21 }
 0xd5b   :  { %v2862_v15 = vadd.f32 %v2854_v32, %v16204_v36  ;;  %v2864_v12 = vadd.f32 %v2856_v11, %v16213_v33 }
 0xd5c   :  { %v11028_v19 = vmul.f32 -1.442695, %v2861_v14  ;;  %v11030_v4 = vmul.f32 -1.442695, %v2863_v16 }
 0xd5d   :  { %v11029_v63 = vmul.f32 -1.442695, %v2862_v15 }
 0xd5e   :  { %14869 = vpow2.f32 %v11028_v19 }
 0xd5f   :  { %14871 = vpow2.f32 %v11029_v63 }
 0xd60   :  { %14873 = vtanh.f32 %v2864_v12 }
 0xd61   :  { %14875 = vpow2.f32 %v11030_v4 }
 0xd68   :  { %v14870_v24 = vpop.eup %14869 }
 0xd69   :  { %v2874_v40 = vadd.f32 1.0, %v14870_v24  ;;  %v14872_v48 = vpop.eup %14871 }
 0xd6a   :  { %v2875_v58 = vadd.f32 1.0, %v14872_v48  ;;  %v14874_v5 = vpop.eup %14873 }
 0xd6b   :  { %14877 = vrcp.f32 %v2874_v40  ;;  %v14876_v7 = vpop.eup %14875 }
 0xd6c   :  { %14879 = vrcp.f32 %v2875_v58  ;;  %v2876_v25 = vadd.f32 1.0, %v14876_v7 }
 0xd6e   :  { %14881 = vrcp.f32 %v2876_v25 }
 0xd75   :  { %v14878_v60 = vpop.eup %14877 }
 0xd76   :  { %v2888_v38 = vmul.f32 %v14878_v60, %v14874_v5  ;;  %v14880_v42 = vpop.eup %14879 }
 0xd77   :  { %v2887_v32 = vmul.f32 %v14880_v42, %v2885_v8 }
 0xd78   :  { %v14882_v15 = vpop.eup %14881 }
 0xd79   :  { %v16342_v14 = vadd.f32 %v2888_v38, %v2887_v32 }
 0xd7b   :  { %14883 = vtanh.f32 %v16342_v14 }
 0xd85   :  { %v14884_v19 = vpop.eup %14883 }
 0xd86   :  { %v2891_v63 = vmul.f32 %v14884_v19, %v14882_v15 }
 0xd88   :  { %2892 = vst [vmem:[#allocation2] sm:$0x8] %v2891_v63  ;;  %v2894_v10 = vrot.slane %v2891_v63, 3 }
 0xd8a   :  { %2961 = vmatmul.mubr.f32.vlgmr.msra.gmra.mrb[28].mxu0 %v2894_v10  ;;  %3032 = vmatmul.mubr.f32.vlgmr.msra.gmra.mrb[28].mxu1 %v2894_v10 }
 0xd8b   :  { %12163 = vmatpush1.bf16.msra.mxu0 %v16070_v41  ;;  %12195 = vmatpush1.bf16.msra.mxu1 %v16072_v39 }
 0xd8c   :  { %12165 = vmatprep.subr.bf16.mxu0 %v16074_v52  ;;  %12197 = vmatprep.subr.bf16.mxu1 %v16076_v53 }
 0xd8d   :  { %3149 = vmatprep.mubr.f32.mxu0 %v15570_v0  ;;  %3220 = vmatprep.mubr.f32.mxu1 %v15570_v0 }
 0xd8f   :  { %12167 = vmatpush1.bf16.msra.mxu0 %v16080_v17  ;;  %12199 = vmatpush1.bf16.msra.mxu1 %v16082_v18 }
 0xd90   :  { %12169 = vmatprep.subr.bf16.mxu0 %v16086_v26  ;;  %12201 = vmatprep.subr.bf16.mxu1 %v16088_v44 }
 0xd93   :  { %12171 = vmatpush1.bf16.msra.mxu0 %v16094_v30  ;;  %12203 = vmatpush1.bf16.msra.mxu1 %v16096_v45 }
 0xd94   :  { %12173 = vmatprep.subr.bf16.mxu0 %v16100_v54  ;;  %12205 = vmatprep.subr.bf16.mxu1 %v16102_v9 }
 0xd97   :  { %12175 = vmatpush1.bf16.msra.mxu0 %v16106_v49  ;;  %12207 = vmatpush1.bf16.msra.mxu1 %v16108_v50 }
 0xd98   :  { %12177 = vmatprep.subr.bf16.mxu0 %v16112_v61  ;;  %12209 = vmatprep.subr.bf16.mxu1 %v16114_v62 }
 0xd9b   :  { %12179 = vmatpush1.bf16.msra.mxu0 %v16118_v22  ;;  %12211 = vmatpush1.bf16.msra.mxu1 %v16120_v23 }
 0xd9c   :  { %12181 = vmatprep.subr.bf16.mxu0 %v16124_v34  ;;  %12213 = vmatprep.subr.bf16.mxu1 %v16126_v35 }
 0xd9f   :  { %12183 = vmatpush1.bf16.msra.mxu0 %v16130_v6  ;;  %12215 = vmatpush1.bf16.msra.mxu1 %v16132_v1 }
 0xda0   :  { %12185 = vmatprep.subr.bf16.mxu0 %v16136_v20  ;;  %12217 = vmatprep.subr.bf16.mxu1 %v16138_v13 }
 0xda3   :  { %12187 = vmatpush1.bf16.msra.mxu0 %v16142_v46  ;;  %12219 = vmatpush1.bf16.msra.mxu1 %v16144_v47 }
 0xda4   :  { %12189 = vmatprep.subr.bf16.mxu0 %v16148_v56  ;;  %12221 = vmatprep.subr.bf16.mxu1 %v16150_v59 }
 0xda7   :  { %12191 = vmatpush1.bf16.msra.mxu0 %v16154_v51  ;;  %12223 = vmatpush1.bf16.msra.mxu1 %v16156_v55 }
 0xda8   :  { %12225 = vmatprep.subr.bf16.mxu0 %v16063_v2  ;;  %12257 = vmatprep.subr.bf16.mxu1 %v16065_v3 }
 0xe5d   :  { %v2962_v43 = vpop.f32.mrb[28].mxu0  ;;  %v3033_v11 = vpop.f32.mrb[28].mxu1 }
 0xe5e   :  { %v3042_v16 = vrot.slane %v2962_v43, 4  ;;  %v2964_v12 = vpop.f32.mrb[29].mxu0  ;;  %v3035_v4 = vpop.f32.mrb[29].mxu1  ;;  %v3044_v7 = vrot.slane %v3033_v11, 4  ;;  %v3074_v11 = vrot.slane %v16342_v14, 7 }
 0xe5f   :  { %v3043_v24 = vrot.slane %v2964_v12, 4  ;;  %v3045_v60 = vrot.slane %v3035_v4, 4 }
 0xe60   :  { %v3050_v40 = vadd.f32 %v3042_v16, %v16202_v28  ;;  %v3052_v8 = vadd.f32 %v3044_v7, %v16210_v21 }
 0xe61   :  { %v3051_v48 = vadd.f32 %v3043_v24, %v16204_v36  ;;  %v3053_v38 = vadd.f32 %v3045_v60, %v16213_v33 }
 0xe62   :  { %v11031_v58 = vmul.f32 -1.442695, %v3050_v40  ;;  %v11033_v42 = vmul.f32 -1.442695, %v3052_v8 }
 0xe63   :  { %v11032_v5 = vmul.f32 -1.442695, %v3051_v48 }
 0xe64   :  { %14885 = vpow2.f32 %v11031_v58 }
 0xe65   :  { %14887 = vpow2.f32 %v11032_v5 }
 0xe66   :  { %14889 = vtanh.f32 %v3053_v38 }
 0xe67   :  { %14891 = vpow2.f32 %v11033_v42 }
 0xe6e   :  { %v14886_v25 = vpop.eup %14885 }
 0xe6f   :  { %v3063_v32 = vadd.f32 1.0, %v14886_v25  ;;  %v14888_v15 = vpop.eup %14887 }
 0xe70   :  { %v3064_v19 = vadd.f32 1.0, %v14888_v15  ;;  %v14890_v63 = vpop.eup %14889 }
 0xe71   :  { %14893 = vrcp.f32 %v3063_v32  ;;  %v14892_v10 = vpop.eup %14891 }
 0xe72   :  { %14895 = vrcp.f32 %v3064_v19  ;;  %v3065_v4 = vadd.f32 1.0, %v14892_v10 }
 0xe74   :  { %14897 = vrcp.f32 %v3065_v4 }
 0xe7b   :  { %v14894_v43 = vpop.eup %14893 }
 0xe7c   :  { %v3077_v16 = vmul.f32 %v14894_v43, %v14890_v63  ;;  %v14896_v12 = vpop.eup %14895 }
 0xe7d   :  { %v3076_v24 = vmul.f32 %v14896_v12, %v3074_v11 }
 0xe7e   :  { %v14898_v48 = vpop.eup %14897 }
 0xe7f   :  { %v16384_v40 = vadd.f32 %v3077_v16, %v3076_v24 }
 0xe81   :  { %14899 = vtanh.f32 %v16384_v40 }
 0xe8b   :  { %v14900_v58 = vpop.eup %14899 }
 0xe8c   :  { %v3080_v5 = vmul.f32 %v14900_v58, %v14898_v48 }
 0xe8e   :  { %3081 = vst [vmem:[#allocation2] sm:$0x10] %v3080_v5  ;;  %v3083_v7 = vrot.slane %v3080_v5, 4 }
 0xe90   :  { %3150 = vmatmul.mubr.f32.vlgmr.msra.gmra.mrb[30].mxu0 %v3083_v7  ;;  %3221 = vmatmul.mubr.f32.vlgmr.msra.gmra.mrb[30].mxu1 %v3083_v7  ;;  %v3263_v7 = vrot.slane %v16384_v40, 7 }
 0xe91   :  { %12227 = vmatpush1.bf16.msra.mxu0 %v16070_v41  ;;  %12259 = vmatpush1.bf16.msra.mxu1 %v16072_v39 }
 0xe92   :  { %12229 = vmatprep.subr.bf16.mxu0 %v16074_v52  ;;  %12261 = vmatprep.subr.bf16.mxu1 %v16076_v53 }
 0xe93   :  { %3338 = vmatprep.mubr.f32.mxu0 %v15570_v0  ;;  %3409 = vmatprep.mubr.f32.mxu1 %v15570_v0 }
 0xe95   :  { %12231 = vmatpush1.bf16.msra.mxu0 %v16080_v17  ;;  %12263 = vmatpush1.bf16.msra.mxu1 %v16082_v18 }
 0xe96   :  { %12233 = vmatprep.subr.bf16.mxu0 %v16086_v26  ;;  %12265 = vmatprep.subr.bf16.mxu1 %v16088_v44 }
 0xe99   :  { %12235 = vmatpush1.bf16.msra.mxu0 %v16094_v30  ;;  %12267 = vmatpush1.bf16.msra.mxu1 %v16096_v45 }
 0xe9a   :  { %12237 = vmatprep.subr.bf16.mxu0 %v16100_v54  ;;  %12269 = vmatprep.subr.bf16.mxu1 %v16102_v9 }
 0xe9d   :  { %12239 = vmatpush1.bf16.msra.mxu0 %v16106_v49  ;;  %12271 = vmatpush1.bf16.msra.mxu1 %v16108_v50 }
 0xe9e   :  { %12241 = vmatprep.subr.bf16.mxu0 %v16112_v61  ;;  %12273 = vmatprep.subr.bf16.mxu1 %v16114_v62 }
 0xea1   :  { %12243 = vmatpush1.bf16.msra.mxu0 %v16118_v22  ;;  %12275 = vmatpush1.bf16.msra.mxu1 %v16120_v23 }
 0xea2   :  { %12245 = vmatprep.subr.bf16.mxu0 %v16124_v34  ;;  %12277 = vmatprep.subr.bf16.mxu1 %v16126_v35 }
 0xea5   :  { %12247 = vmatpush1.bf16.msra.mxu0 %v16130_v6  ;;  %12279 = vmatpush1.bf16.msra.mxu1 %v16132_v1 }
 0xea6   :  { %12249 = vmatprep.subr.bf16.mxu0 %v16136_v20  ;;  %12281 = vmatprep.subr.bf16.mxu1 %v16138_v13 }
 0xea9   :  { %12251 = vmatpush1.bf16.msra.mxu0 %v16142_v46  ;;  %12283 = vmatpush1.bf16.msra.mxu1 %v16144_v47 }
 0xeaa   :  { %12253 = vmatprep.subr.bf16.mxu0 %v16148_v56  ;;  %12285 = vmatprep.subr.bf16.mxu1 %v16150_v59 }
 0xead   :  { %12255 = vmatpush1.bf16.msra.mxu0 %v16154_v51  ;;  %12287 = vmatpush1.bf16.msra.mxu1 %v16156_v55 }
 0xeae   :  { %12289 = vmatprep.subr.bf16.mxu0 %v16063_v2  ;;  %12321 = vmatprep.subr.bf16.mxu1 %v16065_v3 }
 0xf63   :  { %v3151_v14 = vpop.f32.mrb[30].mxu0  ;;  %v3222_v60 = vpop.f32.mrb[30].mxu1 }
 0xf64   :  { %v3231_v8 = vrot.slane %v3151_v14, 3  ;;  %v3153_v38 = vpop.f32.mrb[31].mxu0  ;;  %v3224_v42 = vpop.f32.mrb[31].mxu1  ;;  %v3233_v10 = vrot.slane %v3222_v60, 3 }
 0xf65   :  { %v3232_v25 = vrot.slane %v3153_v38, 3  ;;  %v3234_v43 = vrot.slane %v3224_v42, 3 }
 0xf66   :  { %v3239_v32 = vadd.f32 %v3231_v8, %v16202_v28  ;;  %v3241_v2 = vadd.f32 %v3233_v10, %v16210_v21  ;;  %v3676_v10 = vld [vmem:[#allocation6 + $0x848] sm:$0xff] }
 0xf67   :  { %v3240_v15 = vadd.f32 %v3232_v25, %v16204_v36  ;;  %v3242_v3 = vadd.f32 %v3234_v43, %v16213_v33  ;;  %v3680_v43 = vld [vmem:[#allocation6 + $0x868] sm:$0xff] }
 0xf68   :  { %v11034_v19 = vmul.f32 -1.442695, %v3239_v32  ;;  %v11036_v11 = vmul.f32 -1.442695, %v3241_v2  ;;  %v3678_v2 = vld [vmem:[#allocation6 + $0x858] sm:$0xff] }
 0xf69   :  { %v11035_v63 = vmul.f32 -1.442695, %v3240_v15 }
 0xf6a   :  { %14901 = vpow2.f32 %v11034_v19 }
 0xf6b   :  { %14903 = vpow2.f32 %v11035_v63 }
 0xf6c   :  { %14905 = vtanh.f32 %v3242_v3  ;;  %v12352_v3 = vpack.c.bf16 %v3680_v43, %v3676_v10  ;;  %v3696_v10 = vld [vmem:[#allocation6 + $0x8e8] sm:$0xff]  ;;  %v3694_v43 = vld [vmem:[#allocation6 + $0x8d8] sm:$0xff] }
 0xf6d   :  { %14907 = vpow2.f32 %v11036_v11  ;;  %v3682_v11 = vld [vmem:[#allocation6 + $0x878] sm:$0xff] }
 0xf74   :  { %v14902_v16 = vpop.eup %14901 }
 0xf75   :  { %v3252_v12 = vadd.f32 1.0, %v14902_v16  ;;  %v14904_v4 = vpop.eup %14903  ;;  %v3675_v16 = vld [vmem:[#allocation6 + $0x840] sm:$0xff] }
 0xf76   :  { %v3253_v24 = vadd.f32 1.0, %v14904_v4  ;;  %v14906_v48 = vpop.eup %14905  ;;  %v12384_v4 = vpack.c.bf16 %v3682_v11, %v3678_v2  ;;  %v3691_v11 = vld [vmem:[#allocation6 + $0x8c0] sm:$0xff] }
 0xf77   :  { %14909 = vrcp.f32 %v3252_v12  ;;  %v14908_v58 = vpop.eup %14907  ;;  %v3679_v12 = vld [vmem:[#allocation6 + $0x860] sm:$0xff] }
 0xf78   :  { %14911 = vrcp.f32 %v3253_v24  ;;  %v3254_v8 = vadd.f32 1.0, %v14908_v58  ;;  %v12354_v24 = vpack.c.bf16 %v3679_v12, %v3675_v16  ;;  %v3681_v58 = vld [vmem:[#allocation6 + $0x870] sm:$0xff]  ;;  %v3695_v16 = vld [vmem:[#allocation6 + $0x8e0] sm:$0xff] }
 0xf7a   :  { %14913 = vrcp.f32 %v3254_v8  ;;  %v3690_v8 = vld [vmem:[#allocation6 + $0x8b8] sm:$0xff] }
 0xf81   :  { %v14910_v5 = vpop.eup %14909 }
 0xf82   :  { %v3266_v14 = vmul.f32 %v14910_v5, %v14906_v48  ;;  %v14912_v60 = vpop.eup %14911  ;;  %v3677_v48 = vld [vmem:[#allocation6 + $0x850] sm:$0xff]  ;;  %v3684_v5 = vld [vmem:[#allocation6 + $0x888] sm:$0xff] }
 0xf83   :  { %v3265_v38 = vmul.f32 %v14912_v60, %v3263_v7  ;;  %v12386_v7 = vpack.c.bf16 %v3681_v58, %v3677_v48  ;;  %v3686_v60 = vld [vmem:[#allocation6 + $0x898] sm:$0xff]  ;;  %v3697_v48 = vld [vmem:[#allocation6 + $0x8f0] sm:$0xff] }
 0xf84   :  { %v14914_v25 = vpop.eup %14913 }
 0xf85   :  { %v16426_v42 = vadd.f32 %v3266_v14, %v3265_v38  ;;  %v3688_v14 = vld [vmem:[#allocation6 + $0x8a8] sm:$0xff] }
 0xf86   :  { %v12356_v38 = vpack.c.bf16 %v3688_v14, %v3684_v5  ;;  %v3700_v5 = vld [vmem:[#allocation6 + $0x908] sm:$0xff]  ;;  %v3702_v14 = vld [vmem:[#allocation6 + $0x918] sm:$0xff] }
 0xf87   :  { %14915 = vtanh.f32 %v16426_v42 }
 0xf91   :  { %v14916_v32 = vpop.eup %14915 }
 0xf92   :  { %v3269_v15 = vmul.f32 %v14916_v32, %v14914_v25  ;;  %v3683_v25 = vld [vmem:[#allocation6 + $0x880] sm:$0xff] }
 0xf93   :  { %v3687_v32 = vld [vmem:[#allocation6 + $0x8a0] sm:$0xff] }
 0xf94   :  { %3270 = vst [vmem:[#allocation2] sm:$0x20] %v3269_v15  ;;  %v3272_v19 = vrot.slane %v3269_v15, 5  ;;  %v3685_v15 = vld [vmem:[#allocation6 + $0x890] sm:$0xff] }
 0xf96   :  { %3339 = vmatmul.mubr.f32.vlgmr.msra.gmra.mrb[32].mxu0 %v3272_v19  ;;  %3410 = vmatmul.mubr.f32.vlgmr.msra.gmra.mrb[32].mxu1 %v3272_v19  ;;  %v12358_v19 = vpack.c.bf16 %v3687_v32, %v3683_v25 }
 0xf97   :  { %12291 = vmatpush1.bf16.msra.mxu0 %v16070_v41  ;;  %12323 = vmatpush1.bf16.msra.mxu1 %v16072_v39 }
 0xf98   :  { %12293 = vmatprep.subr.bf16.mxu0 %v16074_v52  ;;  %12325 = vmatprep.subr.bf16.mxu1 %v16076_v53 }
 0xf99   :  { %3527 = vmatprep.mubr.f32.mxu0 %v15570_v0  ;;  %3598 = vmatprep.mubr.f32.mxu1 %v15570_v0 }
 0xf9b   :  { %12295 = vmatpush1.bf16.msra.mxu0 %v16080_v17  ;;  %12327 = vmatpush1.bf16.msra.mxu1 %v16082_v18 }
 0xf9c   :  { %12297 = vmatprep.subr.bf16.mxu0 %v16086_v26  ;;  %12329 = vmatprep.subr.bf16.mxu1 %v16088_v44 }
 0xf9f   :  { %12299 = vmatpush1.bf16.msra.mxu0 %v16094_v30  ;;  %12331 = vmatpush1.bf16.msra.mxu1 %v16096_v45 }
 0xfa0   :  { %12301 = vmatprep.subr.bf16.mxu0 %v16100_v54  ;;  %12333 = vmatprep.subr.bf16.mxu1 %v16102_v9 }
 0xfa3   :  { %12303 = vmatpush1.bf16.msra.mxu0 %v16106_v49  ;;  %12335 = vmatpush1.bf16.msra.mxu1 %v16108_v50 }
 0xfa4   :  { %12305 = vmatprep.subr.bf16.mxu0 %v16112_v61  ;;  %12337 = vmatprep.subr.bf16.mxu1 %v16114_v62 }
 0xfa7   :  { %12307 = vmatpush1.bf16.msra.mxu0 %v16118_v22  ;;  %12339 = vmatpush1.bf16.msra.mxu1 %v16120_v23 }
 0xfa8   :  { %12309 = vmatprep.subr.bf16.mxu0 %v16124_v34  ;;  %12341 = vmatprep.subr.bf16.mxu1 %v16126_v35 }
 0xfab   :  { %12311 = vmatpush1.bf16.msra.mxu0 %v16130_v6  ;;  %12343 = vmatpush1.bf16.msra.mxu1 %v16132_v1 }
 0xfac   :  { %12313 = vmatprep.subr.bf16.mxu0 %v16136_v20  ;;  %12345 = vmatprep.subr.bf16.mxu1 %v16138_v13  ;;  %v3452_v20 = vrot.slane %v16426_v42, 7  ;;  %v12388_v42 = vpack.c.bf16 %v3690_v8, %v3686_v60  ;;  %v3706_v8 = vld [vmem:[#allocation6 + $0x938] sm:$0xff] }
 0xfad   :  { %v12396_v25 = vpack.c.bf16 %v3706_v8, %v3702_v14  ;;  %v3744_v14 = vld [vmem:[#allocation6 + $0xa68] sm:$0xff] }
 0xfaf   :  { %12315 = vmatpush1.bf16.msra.mxu0 %v16142_v46  ;;  %12347 = vmatpush1.bf16.msra.mxu1 %v16144_v47 }
 0xfb0   :  { %12317 = vmatprep.subr.bf16.mxu0 %v16148_v56  ;;  %12349 = vmatprep.subr.bf16.mxu1 %v16150_v59 }
 0xfb3   :  { %12319 = vmatpush1.bf16.msra.mxu0 %v16154_v51  ;;  %12351 = vmatpush1.bf16.msra.mxu1 %v16156_v55 }
 0xfb4   :  { %12353 = vmatprep.subr.bf16.mxu0 %v12352_v3  ;;  %12385 = vmatprep.subr.bf16.mxu1 %v12384_v4  ;;  %v3698_v3 = vld [vmem:[#allocation6 + $0x8f8] sm:$0xff]  ;;  %v12362_v4 = vpack.c.bf16 %v3695_v16, %v3691_v11 }
 0xfb5   :  { %v12392_v12 = vpack.c.bf16 %v3698_v3, %v3694_v43  ;;  %v3732_v43 = vld [vmem:[#allocation6 + $0xa08] sm:$0xff]  ;;  %v3734_v16 = vld [vmem:[#allocation6 + $0xa18] sm:$0xff] }
0x1069   :  { %v3340_v41 = vpop.f32.mrb[32].mxu0  ;;  %v3411_v39 = vpop.f32.mrb[32].mxu1 }
0x106a   :  { %v3420_v52 = vrot.slane %v3340_v41, 2  ;;  %v3342_v53 = vpop.f32.mrb[33].mxu0  ;;  %v3413_v17 = vpop.f32.mrb[33].mxu1  ;;  %v3422_v54 = vrot.slane %v3411_v39, 2  ;;  %v3689_v41 = vld [vmem:[#allocation6 + $0x8b0] sm:$0xff] }
0x106b   :  { %v3421_v18 = vrot.slane %v3342_v53, 2  ;;  %v3423_v9 = vrot.slane %v3413_v17, 2  ;;  %v12390_v39 = vpack.c.bf16 %v3689_v41, %v3685_v15  ;;  %v3701_v15 = vld [vmem:[#allocation6 + $0x910] sm:$0xff] }
0x106c   :  { %v3428_v26 = vadd.f32 %v3420_v52, %v16202_v28  ;;  %v3430_v49 = vadd.f32 %v3422_v54, %v16210_v21 }
0x106d   :  { %v3429_v44 = vadd.f32 %v3421_v18, %v16204_v36  ;;  %v3431_v50 = vadd.f32 %v3423_v9, %v16213_v33 }
0x106e   :  { %v11037_v30 = vmul.f32 -1.442695, %v3428_v26  ;;  %v11039_v61 = vmul.f32 -1.442695, %v3430_v49 }
0x106f   :  { %v11038_v45 = vmul.f32 -1.442695, %v3429_v44 }
0x1070   :  { %14917 = vpow2.f32 %v11037_v30 }
0x1071   :  { %14919 = vpow2.f32 %v11038_v45 }
0x1072   :  { %14921 = vtanh.f32 %v3431_v50 }
0x1073   :  { %14923 = vpow2.f32 %v11039_v61 }
0x107a   :  { %v14918_v62 = vpop.eup %14917 }
0x107b   :  { %v3441_v22 = vadd.f32 1.0, %v14918_v62  ;;  %v14920_v23 = vpop.eup %14919 }
0x107c   :  { %v3442_v34 = vadd.f32 1.0, %v14920_v23  ;;  %v14922_v35 = vpop.eup %14921 }
0x107d   :  { %14925 = vrcp.f32 %v3441_v22  ;;  %v14924_v6 = vpop.eup %14923 }
0x107e   :  { %14927 = vrcp.f32 %v3442_v34  ;;  %v3443_v47 = vadd.f32 1.0, %v14924_v6 }
0x1080   :  { %14929 = vrcp.f32 %v3443_v47 }
0x1087   :  { %v14926_v1 = vpop.eup %14925 }
0x1088   :  { %v3455_v13 = vmul.f32 %v14926_v1, %v14922_v35  ;;  %v14928_v46 = vpop.eup %14927 }
0x1089   :  { %v3454_v56 = vmul.f32 %v14928_v46, %v3452_v20 }
0x108a   :  { %v14930_v51 = vpop.eup %14929 }
0x108b   :  { %v16466_v59 = vadd.f32 %v3455_v13, %v3454_v56 }
0x108d   :  { %14931 = vtanh.f32 %v16466_v59  ;;  %v3641_v20 = vrot.slane %v16466_v59, 7  ;;  %v3692_v59 = vld [vmem:[#allocation6 + $0x8c8] sm:$0xff] }
0x108e   :  { %v12360_v2 = vpack.c.bf16 %v3696_v10, %v3692_v59  ;;  %v3729_v10 = vld [vmem:[#allocation6 + $0x9f0] sm:$0xff] }
0x1097   :  { %v14932_v55 = vpop.eup %14931 }
0x1098   :  { %v3458_v40 = vmul.f32 %v14932_v55, %v14930_v51 }
0x109a   :  { %3459 = vst [vmem:[#allocation2] sm:$0x40] %v3458_v40  ;;  %v3461_v63 = vrot.slane %v3458_v40, 6 }
0x109c   :  { %3528 = vmatmul.mubr.f32.vlgmr.msra.gmra.mrb[34].mxu0 %v3461_v63  ;;  %3599 = vmatmul.mubr.f32.vlgmr.msra.gmra.mrb[34].mxu1 %v3461_v63 }
0x109d   :  { %3890 = vmatprep.mubr.f32.mxu0 %v15570_v0  ;;  %3961 = vmatprep.mubr.f32.mxu1 %v15570_v0 }
0x109e   :  { %12355 = vmatpush1.bf16.msra.mxu0 %v12354_v24  ;;  %12387 = vmatpush1.bf16.msra.mxu1 %v12386_v7  ;;  %v3693_v24 = vld [vmem:[#allocation6 + $0x8d0] sm:$0xff]  ;;  %v3704_v7 = vld [vmem:[#allocation6 + $0x928] sm:$0xff] }
0x109f   :  { %12357 = vmatprep.subr.bf16.mxu0 %v12356_v38  ;;  %12389 = vmatprep.subr.bf16.mxu1 %v12388_v42  ;;  %v12394_v58 = vpack.c.bf16 %v3697_v48, %v3693_v24  ;;  %v12364_v60 = vpack.c.bf16 %v3704_v7, %v3700_v5  ;;  %v3699_v38 = vld [vmem:[#allocation6 + $0x900] sm:$0xff]  ;;  %v3737_v5 = vld [vmem:[#allocation6 + $0xa30] sm:$0xff]  ;;  %v3740_v7 = vld [vmem:[#allocation6 + $0xa48] sm:$0xff] }
0x10a0   :  { %v3703_v42 = vld [vmem:[#allocation6 + $0x920] sm:$0xff] }
0x10a1   :  { %v12366_v32 = vpack.c.bf16 %v3703_v42, %v3699_v38  ;;  %v3735_v48 = vld [vmem:[#allocation6 + $0xa20] sm:$0xff]  ;;  %v3746_v38 = vld [vmem:[#allocation6 + $0xa78] sm:$0xff] }
0x10a2   :  { %12359 = vmatpush1.bf16.msra.mxu0 %v12358_v19  ;;  %12391 = vmatpush1.bf16.msra.mxu1 %v12390_v39  ;;  %v3705_v19 = vld [vmem:[#allocation6 + $0x930] sm:$0xff]  ;;  %v3708_v39 = vld [vmem:[#allocation6 + $0x948] sm:$0xff] }
0x10a3   :  { %12361 = vmatprep.subr.bf16.mxu0 %v12360_v2  ;;  %12393 = vmatprep.subr.bf16.mxu1 %v12392_v12  ;;  %v12398_v41 = vpack.c.bf16 %v3705_v19, %v3701_v15  ;;  %v3736_v2 = vld [vmem:[#allocation6 + $0xa28] sm:$0xff]  ;;  %v3738_v12 = vld [vmem:[#allocation6 + $0xa38] sm:$0xff] }
0x10a4   :  { %v12380_v11 = vpack.c.bf16 %v3736_v2, %v3732_v43  ;;  %v12412_v24 = vpack.c.bf16 %v3738_v12, %v3734_v16  ;;  %v3757_v2 = vld [vmem:[#allocation6 + $0xad0] sm:$0xff]  ;;  %v3768_v16 = vld [vmem:[#allocation6 + $0xb28] sm:$0xff]  ;;  %v3766_v12 = vld [vmem:[#allocation6 + $0xb18] sm:$0xff] }
0x10a6   :  { %12363 = vmatpush1.bf16.msra.mxu0 %v12362_v4  ;;  %12395 = vmatpush1.bf16.msra.mxu1 %v12394_v58  ;;  %v3731_v4 = vld [vmem:[#allocation6 + $0xa00] sm:$0xff]  ;;  %v3733_v58 = vld [vmem:[#allocation6 + $0xa10] sm:$0xff] }
0x10a7   :  { %12365 = vmatprep.subr.bf16.mxu0 %v12364_v60  ;;  %12397 = vmatprep.subr.bf16.mxu1 %v12396_v25  ;;  %v3742_v60 = vld [vmem:[#allocation6 + $0xa58] sm:$0xff]  ;;  %v12382_v8 = vpack.c.bf16 %v3735_v48, %v3731_v4  ;;  %v12414_v42 = vpack.c.bf16 %v3737_v5, %v3733_v58  ;;  %v16481_v25 = vpack.c.bf16 %v3744_v14, %v3740_v7  ;;  %v3763_v58 = vld [vmem:[#allocation6 + $0xb00] sm:$0xff] }
0x10a8   :  { %v3770_v4 = vld [vmem:[#allocation6 + $0xb38] sm:$0xff]  ;;  %v3767_v5 = vld [vmem:[#allocation6 + $0xb20] sm:$0xff] }
0x10a9   :  { %v16520_v14 = vpack.c.bf16 %v3770_v4, %v3766_v12  ;;  %v3798_v12 = vld [vmem:[#allocation6 + $0xc18] sm:$0xff] }
0x10aa   :  { %12367 = vmatpush1.bf16.msra.mxu0 %v12366_v32  ;;  %12399 = vmatpush1.bf16.msra.mxu1 %v12398_v41  ;;  %v16483_v32 = vpack.c.bf16 %v3746_v38, %v3742_v60  ;;  %v3765_v60 = vld [vmem:[#allocation6 + $0xb10] sm:$0xff]  ;;  %v3772_v38 = vld [vmem:[#allocation6 + $0xb48] sm:$0xff]  ;;  %v3802_v4 = vld [vmem:[#allocation6 + $0xc38] sm:$0xff] }
0x116f   :  { %v3529_v52 = vpop.f32.mrb[34].mxu0  ;;  %v3600_v53 = vpop.f32.mrb[34].mxu1 }
0x1170   :  { %v3609_v17 = vrot.slane %v3529_v52, 1  ;;  %v3531_v18 = vpop.f32.mrb[35].mxu0  ;;  %v3602_v26 = vpop.f32.mrb[35].mxu1  ;;  %v3611_v49 = vrot.slane %v3600_v53, 1  ;;  %v3712_v52 = vld [vmem:[#allocation6 + $0x968] sm:$0xff]  ;;  %v3710_v53 = vld [vmem:[#allocation6 + $0x958] sm:$0xff] }
0x1171   :  { %v3610_v44 = vrot.slane %v3531_v18, 1  ;;  %v3612_v50 = vrot.slane %v3602_v26, 1  ;;  %v3714_v18 = vld [vmem:[#allocation6 + $0x978] sm:$0xff]  ;;  %v3707_v26 = vld [vmem:[#allocation6 + $0x940] sm:$0xff] }
0x1172   :  { %v3617_v30 = vadd.f32 %v3609_v17, %v16202_v28  ;;  %v3619_v61 = vadd.f32 %v3611_v49, %v16210_v21  ;;  %v12368_v17 = vpack.c.bf16 %v3712_v52, %v3708_v39 }
0x1173   :  { %v3618_v45 = vadd.f32 %v3610_v44, %v16204_v36  ;;  %v3620_v62 = vadd.f32 %v3612_v50, %v16213_v33  ;;  %v3711_v44 = vld [vmem:[#allocation6 + $0x960] sm:$0xff]  ;;  %v3716_v50 = vld [vmem:[#allocation6 + $0x988] sm:$0xff] }
0x1174   :  { %v11040_v54 = vmul.f32 -1.442695, %v3617_v30  ;;  %v11042_v22 = vmul.f32 -1.442695, %v3619_v61  ;;  %v12400_v30 = vpack.c.bf16 %v3714_v18, %v3710_v53  ;;  %12369 = vmatprep.subr.bf16.mxu0 %v12368_v17  ;;  %v3720_v61 = vld [vmem:[#allocation6 + $0x9a8] sm:$0xff] }
0x1175   :  { %v11041_v9 = vmul.f32 -1.442695, %v3618_v45  ;;  %v12370_v45 = vpack.c.bf16 %v3711_v44, %v3707_v26  ;;  %v11043_v26 = vld [vmem:[#allocation8 + $0x90] ss:$0 sm:$0xff] }
0x1176   :  { %14933 = vpow2.f32 %v11040_v54  ;;  %v3709_v54 = vld [vmem:[#allocation6 + $0x950] sm:$0xff]  ;;  %12401 = vmatprep.subr.bf16.mxu1 %v12400_v30  ;;  %v11044_v30 = vld [vmem:[#allocation8 + $0x98] ss:$0 sm:$0xff] }
0x1177   :  { %14935 = vpow2.f32 %v11041_v9  ;;  %v3713_v9 = vld [vmem:[#allocation6 + $0x970] sm:$0xff]  ;;  %12371 = vmatpush1.bf16.msra.mxu0 %v12370_v45  ;;  %v3739_v45 = vld [vmem:[#allocation6 + $0xa40] sm:$0xff] }
0x1178   :  { %14937 = vtanh.f32 %v3620_v62  ;;  %v12402_v49 = vpack.c.bf16 %v3713_v9, %v3709_v54  ;;  %v3718_v62 = vld [vmem:[#allocation6 + $0x998] sm:$0xff]  ;;  %v3743_v54 = vld [vmem:[#allocation6 + $0xa60] sm:$0xff] }
0x1179   :  { %14939 = vpow2.f32 %v11042_v22  ;;  %v12372_v22 = vpack.c.bf16 %v3720_v61, %v3716_v50  ;;  %v3745_v50 = vld [vmem:[#allocation6 + $0xa70] sm:$0xff]  ;;  %v3748_v61 = vld [vmem:[#allocation6 + $0xa88] sm:$0xff] }
0x117a   :  { %12403 = vmatpush1.bf16.msra.mxu1 %v12402_v49  ;;  %v3741_v49 = vld [vmem:[#allocation6 + $0xa50] sm:$0xff] }
0x117b   :  { %12373 = vmatprep.subr.bf16.mxu0 %v12372_v22  ;;  %v3750_v22 = vld [vmem:[#allocation6 + $0xa98] sm:$0xff] }
0x1180   :  { %v14934_v23 = vpop.eup %14933 }
0x1181   :  { %v3630_v34 = vadd.f32 1.0, %v14934_v23  ;;  %v14936_v35 = vpop.eup %14935  ;;  %v3722_v23 = vld [vmem:[#allocation6 + $0x9b8] sm:$0xff] }
0x1182   :  { %v3631_v28 = vadd.f32 1.0, %v14936_v35  ;;  %v14938_v36 = vpop.eup %14937  ;;  %v3719_v35 = vld [vmem:[#allocation6 + $0x9a0] sm:$0xff] }
0x1183   :  { %14941 = vrcp.f32 %v3630_v34  ;;  %v14940_v6 = vpop.eup %14939  ;;  %v3715_v34 = vld [vmem:[#allocation6 + $0x980] sm:$0xff] }
0x1184   :  { %14943 = vrcp.f32 %v3631_v28  ;;  %v3632_v47 = vadd.f32 1.0, %v14940_v6  ;;  %v12404_v28 = vpack.c.bf16 %v3722_v23, %v3718_v62  ;;  %v3717_v6 = vld [vmem:[#allocation6 + $0x990] sm:$0xff]  ;;  %v3752_v62 = vld [vmem:[#allocation6 + $0xaa8] sm:$0xff]  ;;  %v3754_v23 = vld [vmem:[#allocation6 + $0xab8] sm:$0xff] }
0x1186   :  { %14945 = vrcp.f32 %v3632_v47  ;;  %v3726_v47 = vld [vmem:[#allocation6 + $0x9d8] sm:$0xff]  ;;  %12405 = vmatprep.subr.bf16.mxu1 %v12404_v28  ;;  %v16490_v28 = vpack.c.bf16 %v3745_v50, %v3741_v49 }
0x118d   :  { %v14942_v1 = vpop.eup %14941 }
0x118e   :  { %v3644_v13 = vmul.f32 %v14942_v1, %v14938_v36  ;;  %v14944_v46 = vpop.eup %14943  ;;  %v12374_v36 = vpack.c.bf16 %v3719_v35, %v3715_v34  ;;  %v3721_v1 = vld [vmem:[#allocation6 + $0x9b0] sm:$0xff]  ;;  %v16488_v35 = vpack.c.bf16 %v3743_v54, %v3739_v45  ;;  %v3784_v45 = vld [vmem:[#allocation6 + $0xba8] sm:$0xff]  ;;  %v3782_v54 = vld [vmem:[#allocation6 + $0xb98] sm:$0xff] }
0x118f   :  { %v3643_v21 = vmul.f32 %v14944_v46, %v3641_v20  ;;  %v3724_v20 = vld [vmem:[#allocation6 + $0x9c8] sm:$0xff] }
0x1190   :  { %v14946_v33 = vpop.eup %14945  ;;  %v3728_v46 = vld [vmem:[#allocation6 + $0x9e8] sm:$0xff]  ;;  %12375 = vmatpush1.bf16.msra.mxu0 %v12374_v36  ;;  %v3747_v36 = vld [vmem:[#allocation6 + $0xa80] sm:$0xff] }
0x1191   :  { %v3645_v56 = vadd.f32 %v3644_v13, %v3643_v21  ;;  %v12406_v13 = vpack.c.bf16 %v3721_v1, %v3717_v6  ;;  %v3730_v21 = vld [vmem:[#allocation6 + $0x9f8] sm:$0xff]  ;;  %v3751_v6 = vld [vmem:[#allocation6 + $0xaa0] sm:$0xff]  ;;  %v16492_v1 = vpack.c.bf16 %v3752_v62, %v3748_v61 }
0x1192   :  { %v3779_v61 = vld [vmem:[#allocation6 + $0xb80] sm:$0xff] }
0x1193   :  { %14947 = vtanh.f32 %v3645_v56  ;;  %v12376_v56 = vpack.c.bf16 %v3728_v46, %v3724_v20  ;;  %12407 = vmatpush1.bf16.msra.mxu1 %v12406_v13  ;;  %v16494_v20 = vpack.c.bf16 %v3754_v23, %v3750_v22  ;;  %v3749_v13 = vld [vmem:[#allocation6 + $0xa90] sm:$0xff]  ;;  %v3783_v62 = vld [vmem:[#allocation6 + $0xba0] sm:$0xff] }
0x1194   :  { %v3753_v46 = vld [vmem:[#allocation6 + $0xab0] sm:$0xff] }
0x1195   :  { %12377 = vmatprep.subr.bf16.mxu0 %v12376_v56  ;;  %v3758_v56 = vld [vmem:[#allocation6 + $0xad8] sm:$0xff] }
0x119d   :  { %v14948_v51 = vpop.eup %14947 }
0x119e   :  { %v3647_v55 = vmul.f32 %v14948_v51, %v14946_v33  ;;  %v12408_v33 = vpack.c.bf16 %v3730_v21, %v3726_v47  ;;  %v3723_v51 = vld [vmem:[#allocation6 + $0x9c0] sm:$0xff]  ;;  %v3756_v47 = vld [vmem:[#allocation6 + $0xac8] sm:$0xff] }
0x119f   :  { %v3760_v21 = vld [vmem:[#allocation6 + $0xae8] sm:$0xff] }
0x11a0   :  { %3648 = vst [vmem:[#allocation2] sm:$0x80] %v3647_v55  ;;  %v3727_v55 = vld [vmem:[#allocation6 + $0x9e0] sm:$0xff]  ;;  %12409 = vmatprep.subr.bf16.mxu1 %v12408_v33  ;;  %v3762_v33 = vld [vmem:[#allocation6 + $0xaf8] sm:$0xff] }
0x11a1   :  { %v12378_v59 = vpack.c.bf16 %v3727_v55, %v3723_v51  ;;  %v16498_v51 = vpack.c.bf16 %v3751_v6, %v3747_v36  ;;  %v16500_v55 = vpack.c.bf16 %v3753_v46, %v3749_v13  ;;  %v16506_v43 = vpack.c.bf16 %v3762_v33, %v3758_v56  ;;  %v3785_v36 = vld [vmem:[#allocation6 + $0xbb0] sm:$0xff]  ;;  %v3788_v6 = vld [vmem:[#allocation6 + $0xbc8] sm:$0xff]  ;;  %v3790_v13 = vld [vmem:[#allocation6 + $0xbd8] sm:$0xff] }
0x11a2   :  { %v3794_v46 = vld [vmem:[#allocation6 + $0xbf8] sm:$0xff]  ;;  %v3787_v56 = vld [vmem:[#allocation6 + $0xbc0] sm:$0xff] }
0x11a3   :  { %12379 = vmatpush1.bf16.msra.mxu0 %v12378_v59  ;;  %v3759_v59 = vld [vmem:[#allocation6 + $0xae0] sm:$0xff] }
0x11a4   :  { %12381 = vmatprep.subr.bf16.mxu0 %v12380_v11  ;;  %v3764_v11 = vld [vmem:[#allocation6 + $0xb08] sm:$0xff]  ;;  %v3791_v33 = vld [vmem:[#allocation6 + $0xbe0] sm:$0xff] }
0x11a5   :  { %v16518_v7 = vpack.c.bf16 %v3768_v16, %v3764_v11  ;;  %v3796_v11 = vld [vmem:[#allocation6 + $0xc08] sm:$0xff] }
0x11a6   :  { %v3800_v16 = vld [vmem:[#allocation6 + $0xc28] sm:$0xff] }
0x11a7   :  { %v16476_v40 = vld [vmem:[#allocation2] sm:$0xff]  ;;  %12383 = vmatpush1.bf16.msra.mxu0 %v12382_v8 }
0x11a8   :  { %3652 = vadd.xlane.f32.xlu1 %v16476_v40  ;;  %v3655_v63 = vmul.f32 %v16476_v40, %v16476_v40  ;;  %12417 = vmatprep.subr.bf16.mxu0 %v16481_v25  ;;  %v3769_v8 = vld [vmem:[#allocation6 + $0xb30] sm:$0xff] }
0x11ac   :  { %3656 = vadd.xlane.f32.xlu1 %v3655_v63  ;;  %v3725_v63 = vld [vmem:[#allocation6 + $0x9d0] sm:$0xff] }
0x11ad   :  { %v12410_v3 = vpack.c.bf16 %v3729_v10, %v3725_v63  ;;  %v3755_v63 = vld [vmem:[#allocation6 + $0xac0] sm:$0xff]  ;;  %v16504_v10 = vpack.c.bf16 %v3760_v21, %v3756_v47  ;;  %v16548_v47 = vpack.c.bf16 %v3783_v62, %v3779_v61 }
0x11af   :  { %12411 = vmatpush1.bf16.msra.mxu1 %v12410_v3  ;;  %v3761_v3 = vld [vmem:[#allocation6 + $0xaf0] sm:$0xff] }
0x11b0   :  { %12413 = vmatprep.subr.bf16.mxu1 %v12412_v24  ;;  %v16512_v24 = vpack.c.bf16 %v3759_v59, %v3755_v63  ;;  %v16514_v48 = vpack.c.bf16 %v3761_v3, %v3757_v2  ;;  %v16556_v59 = vpack.c.bf16 %v3794_v46, %v3790_v13  ;;  %v3789_v2 = vld [vmem:[#allocation6 + $0xbd0] sm:$0xff] }
0x11b1   :  { %v3793_v3 = vld [vmem:[#allocation6 + $0xbf0] sm:$0xff] }
0x11b3   :  { %12415 = vmatpush1.bf16.msra.mxu1 %v12414_v42  ;;  %v3776_v42 = vld [vmem:[#allocation6 + $0xb68] sm:$0xff] }
0x11b4   :  { %12449 = vmatprep.subr.bf16.mxu1 %v16483_v32 }
0x1235   :  { %v3653_v15 = vpop.xlane.xlu1 %3652 }
0x1236   :  { %v3654_v19 = vmul.f32 0.03125, %v3653_v15  ;;  %v3774_v15 = vld [vmem:[#allocation6 + $0xb58] sm:$0xff] }
0x1238   :  { %v3659_v39 = vmul.f32 %v3654_v19, %v3654_v19  ;;  %v3663_v18 = vsub.f32 %v16476_v40, %v3654_v19  ;;  %v3778_v19 = vld [vmem:[#allocation6 + $0xb78] sm:$0xff] }
0x1239   :  { %v3657_v41 = vpop.xlane.xlu1 %3656 }
0x123a   :  { %v3658_v52 = vmul.f32 0.03125, %v3657_v41  ;;  %v16524_v41 = vpack.c.bf16 %v3767_v5, %v3763_v58  ;;  %v16560_v58 = vpack.c.bf16 %v3791_v33, %v3787_v56  ;;  %v16562_v5 = vpack.c.bf16 %v3793_v3, %v3789_v2 }
0x123c   :  { %v3660_v53 = vsub.f32 %v3658_v52, %v3659_v39  ;;  %v16526_v39 = vpack.c.bf16 %v3769_v8, %v3765_v60  ;;  %v3771_v52 = vld [vmem:[#allocation6 + $0xb40] sm:$0xff]  ;;  %v16566_v8 = vpack.c.bf16 %v3800_v16, %v3796_v11 }
0x123d   :  { %v3795_v60 = vld [vmem:[#allocation6 + $0xc00] sm:$0xff] }
0x123e   :  { %v3661_v17 = vadd.f32 1e-05, %v3660_v53  ;;  %v3775_v53 = vld [vmem:[#allocation6 + $0xb60] sm:$0xff] }
0x123f   :  { %v16536_v49 = vpack.c.bf16 %v3775_v53, %v3771_v52 }
0x1240   :  { %14949 = vrsqrt.f32 %v3661_v17  ;;  %v16530_v17 = vpack.c.bf16 %v3776_v42, %v3772_v38  ;;  %v16568_v38 = vpack.c.bf16 %v3802_v4, %v3798_v12  ;;  %v3799_v42 = vld [vmem:[#allocation6 + $0xc20] sm:$0xff] }
0x1241   :  { %v16572_v52 = vpack.c.bf16 %v3799_v42, %v3795_v60 }
0x124a   :  { %v14950_v44 = vpop.eup %14949 }
0x124b   :  { %v3664_v9 = vmul.f32 %v14950_v44, %v3663_v18  ;;  %v16532_v18 = vpack.c.bf16 %v3778_v19, %v3774_v15  ;;  %v3777_v44 = vld [vmem:[#allocation6 + $0xb70] sm:$0xff] }
0x124c   :  { %v3797_v15 = vld [vmem:[#allocation6 + $0xc10] sm:$0xff] }
0x124d   :  { %v3669_v34 = vmul.f32 %v11043_v26, %v3664_v9  ;;  %v3773_v26 = vld [vmem:[#allocation6 + $0xb50] sm:$0xff]  ;;  %v3786_v9 = vld [vmem:[#allocation6 + $0xbb8] sm:$0xff] }
0x124e   :  { %v16538_v50 = vpack.c.bf16 %v3777_v44, %v3773_v26  ;;  %v16544_v23 = vpack.c.bf16 %v3786_v9, %v3782_v54  ;;  %v3801_v19 = vld [vmem:[#allocation6 + $0xc30] sm:$0xff] }
0x124f   :  { %v3674_v40 = vadd.f32 %v11044_v30, %v3669_v34  ;;  %v3780_v30 = vld [vmem:[#allocation6 + $0xb88] sm:$0xff]  ;;  %v3781_v34 = vld [vmem:[#allocation6 + $0xb90] sm:$0xff]  ;;  %v16574_v53 = vpack.c.bf16 %v3801_v19, %v3797_v15 }
0x1250   :  { %v16542_v22 = vpack.c.bf16 %v3784_v45, %v3780_v30  ;;  %v16550_v21 = vpack.c.bf16 %v3785_v36, %v3781_v34  ;;  %v3804_v54 = vld [vmem:[#allocation6 + $0xc40] ss:$8 sm:$0xf] }
0x1251   :  { %3891 = vmatmul.mubr.f32.vlgmr.msra.gmra.mrb[36].mxu0 %v3674_v40  ;;  %3962 = vmatmul.mubr.f32.vlgmr.msra.gmra.mrb[36].mxu1 %v3674_v40  ;;  %v3792_v40 = vld [vmem:[#allocation6 + $0xbe8] sm:$0xff]  ;;  %v3809_v9 = vrot.slane %v3804_v54, %v15771_v29  ;;  %v3813_v61 = vrot.slane %v3804_v54, %v15774_v31  ;;  %v3817_v33 = vrot.slane %v3804_v54, %v15779_v37 }
0x1252   :  { %12419 = vmatpush1.bf16.msra.mxu0 %v16488_v35  ;;  %12451 = vmatpush1.bf16.msra.mxu1 %v16490_v28  ;;  %v16554_v63 = vpack.c.bf16 %v3792_v40, %v3788_v6  ;;  %v3821_v11 = vrot.slane %v3804_v54, %v15789_v57 }
0x1253   :  { %12421 = vmatprep.subr.bf16.mxu0 %v16492_v1  ;;  %12453 = vmatprep.subr.bf16.mxu1 %v16494_v20 }
0x1254   :  { %4032 = vmatprep.mubr.f32.mxu0 %v15570_v0  ;;  %4103 = vmatprep.mubr.f32.mxu1 %v15570_v0 }
0x1256   :  { %12423 = vmatpush1.bf16.msra.mxu0 %v16498_v51  ;;  %12455 = vmatpush1.bf16.msra.mxu1 %v16500_v55 }
0x1257   :  { %12425 = vmatprep.subr.bf16.mxu0 %v16504_v10  ;;  %12457 = vmatprep.subr.bf16.mxu1 %v16506_v43 }
0x125a   :  { %12427 = vmatpush1.bf16.msra.mxu0 %v16512_v24  ;;  %12459 = vmatpush1.bf16.msra.mxu1 %v16514_v48 }
0x125b   :  { %12429 = vmatprep.subr.bf16.mxu0 %v16518_v7  ;;  %12461 = vmatprep.subr.bf16.mxu1 %v16520_v14 }
0x125e   :  { %12431 = vmatpush1.bf16.msra.mxu0 %v16524_v41  ;;  %12463 = vmatpush1.bf16.msra.mxu1 %v16526_v39 }
0x125f   :  { %12433 = vmatprep.subr.bf16.mxu0 %v16530_v17  ;;  %12465 = vmatprep.subr.bf16.mxu1 %v16532_v18 }
0x1262   :  { %12435 = vmatpush1.bf16.msra.mxu0 %v16536_v49  ;;  %12467 = vmatpush1.bf16.msra.mxu1 %v16538_v50 }
0x1263   :  { %12437 = vmatprep.subr.bf16.mxu0 %v16542_v22  ;;  %12469 = vmatprep.subr.bf16.mxu1 %v16544_v23 }
0x1266   :  { %12439 = vmatpush1.bf16.msra.mxu0 %v16548_v47  ;;  %12471 = vmatpush1.bf16.msra.mxu1 %v16550_v21 }
0x1267   :  { %12441 = vmatprep.subr.bf16.mxu0 %v16554_v63  ;;  %12473 = vmatprep.subr.bf16.mxu1 %v16556_v59 }
0x126a   :  { %12443 = vmatpush1.bf16.msra.mxu0 %v16560_v58  ;;  %12475 = vmatpush1.bf16.msra.mxu1 %v16562_v5 }
0x126b   :  { %12445 = vmatprep.subr.bf16.mxu0 %v16566_v8  ;;  %12477 = vmatprep.subr.bf16.mxu1 %v16568_v38 }
0x126e   :  { %12447 = vmatpush1.bf16.msra.mxu0 %v16572_v52  ;;  %12479 = vmatpush1.bf16.msra.mxu1 %v16574_v53 }
0x126f   :  { %12481 = vmatprep.subr.bf16.mxu0 %v16481_v25  ;;  %12513 = vmatprep.subr.bf16.mxu1 %v16483_v32 }
0x1271   :  { %4033 = vmatmul.mubr.f32.vlgmr.msra.gmra.mrb[38].mxu0 %v15570_v0  ;;  %4104 = vmatmul.mubr.f32.vlgmr.msra.gmra.mrb[38].mxu1 %v15570_v0 }
0x1272   :  { %12483 = vmatpush1.bf16.msra.mxu0 %v16488_v35  ;;  %12515 = vmatpush1.bf16.msra.mxu1 %v16490_v28 }
0x1273   :  { %12485 = vmatprep.subr.bf16.mxu0 %v16492_v1  ;;  %12517 = vmatprep.subr.bf16.mxu1 %v16494_v20 }
0x1274   :  { %4202 = vmatprep.mubr.f32.mxu0 %v15570_v0  ;;  %4273 = vmatprep.mubr.f32.mxu1 %v15570_v0 }
0x1276   :  { %12487 = vmatpush1.bf16.msra.mxu0 %v16498_v51  ;;  %12519 = vmatpush1.bf16.msra.mxu1 %v16500_v55 }
0x1277   :  { %12489 = vmatprep.subr.bf16.mxu0 %v16504_v10  ;;  %12521 = vmatprep.subr.bf16.mxu1 %v16506_v43 }
0x127a   :  { %12491 = vmatpush1.bf16.msra.mxu0 %v16512_v24  ;;  %12523 = vmatpush1.bf16.msra.mxu1 %v16514_v48 }
0x127b   :  { %12493 = vmatprep.subr.bf16.mxu0 %v16518_v7  ;;  %12525 = vmatprep.subr.bf16.mxu1 %v16520_v14 }
0x127e   :  { %12495 = vmatpush1.bf16.msra.mxu0 %v16524_v41  ;;  %12527 = vmatpush1.bf16.msra.mxu1 %v16526_v39 }
0x127f   :  { %12497 = vmatprep.subr.bf16.mxu0 %v16530_v17  ;;  %12529 = vmatprep.subr.bf16.mxu1 %v16532_v18 }
0x1282   :  { %12499 = vmatpush1.bf16.msra.mxu0 %v16536_v49  ;;  %12531 = vmatpush1.bf16.msra.mxu1 %v16538_v50 }
0x1283   :  { %12501 = vmatprep.subr.bf16.mxu0 %v16542_v22  ;;  %12533 = vmatprep.subr.bf16.mxu1 %v16544_v23 }
0x1286   :  { %12503 = vmatpush1.bf16.msra.mxu0 %v16548_v47  ;;  %12535 = vmatpush1.bf16.msra.mxu1 %v16550_v21 }
0x1287   :  { %12505 = vmatprep.subr.bf16.mxu0 %v16554_v63  ;;  %12537 = vmatprep.subr.bf16.mxu1 %v16556_v59 }
0x128a   :  { %12507 = vmatpush1.bf16.msra.mxu0 %v16560_v58  ;;  %12539 = vmatpush1.bf16.msra.mxu1 %v16562_v5 }
0x128b   :  { %12509 = vmatprep.subr.bf16.mxu0 %v16566_v8  ;;  %12541 = vmatprep.subr.bf16.mxu1 %v16568_v38 }
0x128e   :  { %12511 = vmatpush1.bf16.msra.mxu0 %v16572_v52  ;;  %12543 = vmatpush1.bf16.msra.mxu1 %v16574_v53 }
0x128f   :  { %12545 = vmatprep.subr.bf16.mxu0 %v16481_v25  ;;  %12577 = vmatprep.subr.bf16.mxu1 %v16483_v32 }
0x1324   :  { %v3892_v26 = vpop.f32.mrb[36].mxu0  ;;  %v3963_v44 = vpop.f32.mrb[36].mxu1 }
0x1325   :  { %v3894_v30 = vpop.f32.mrb[37].mxu0  ;;  %v3965_v45 = vpop.f32.mrb[37].mxu1  ;;  %v16620_v62 = vadd.f32 %v3892_v26, %v3809_v9  ;;  %v16628_v16 = vadd.f32 %v3963_v44, %v3817_v33 }
0x1326   :  { %v16622_v34 = vadd.f32 %v3894_v30, %v3813_v61  ;;  %v16631_v4 = vadd.f32 %v3965_v45, %v3821_v11 }
0x1344   :  { %v4034_v36 = vpop.f32.mrb[38].mxu0  ;;  %v4105_v6 = vpop.f32.mrb[38].mxu1 }
0x1345   :  { %v4110_v40 = vadd.f32 %v4034_v36, %v16620_v62  ;;  %v4036_v13 = vpop.f32.mrb[39].mxu0  ;;  %v4107_v46 = vpop.f32.mrb[39].mxu1  ;;  %v4112_v12 = vadd.f32 %v4105_v6, %v16628_v16 }
0x1346   :  { %v4111_v56 = vadd.f32 %v4036_v13, %v16622_v34  ;;  %v4113_v60 = vadd.f32 %v4107_v46, %v16631_v4 }
0x1347   :  { %v11045_v2 = vmul.f32 -1.442695, %v4110_v40  ;;  %v11047_v42 = vmul.f32 -1.442695, %v4112_v12 }
0x1348   :  { %v11046_v3 = vmul.f32 -1.442695, %v4111_v56 }
0x1349   :  { %14951 = vpow2.f32 %v11045_v2 }
0x134a   :  { %14953 = vpow2.f32 %v11046_v3 }
0x134b   :  { %14955 = vtanh.f32 %v4113_v60 }
0x134c   :  { %14957 = vpow2.f32 %v11047_v42 }
0x1353   :  { %v14952_v15 = vpop.eup %14951 }
0x1354   :  { %v4123_v19 = vadd.f32 1.0, %v14952_v15  ;;  %v14954_v26 = vpop.eup %14953 }
0x1355   :  { %v4124_v30 = vadd.f32 1.0, %v14954_v26  ;;  %v14956_v9 = vpop.eup %14955 }
0x1356   :  { %14959 = vrcp.f32 %v4123_v19  ;;  %v14958_v54 = vpop.eup %14957 }
0x1357   :  { %14961 = vrcp.f32 %v4124_v30  ;;  %v4125_v40 = vadd.f32 1.0, %v14958_v54 }
0x1359   :  { %14963 = vrcp.f32 %v4125_v40 }
0x1360   :  { %v14960_v44 = vpop.eup %14959 }
0x1361   :  { %v4134_v61 = vmul.f32 %v14960_v44, %v14956_v9  ;;  %v14962_v36 = vpop.eup %14961 }
0x1362   :  { %v4133_v6 = vmul.f32 0.0, %v14962_v36 }
0x1363   :  { %v14964_v13 = vpop.eup %14963 }
0x1364   :  { %v16634_v45 = vadd.f32 %v4134_v61, %v4133_v6 }
0x1366   :  { %14965 = vtanh.f32 %v16634_v45 }
0x1370   :  { %v14966_v46 = vpop.eup %14965 }
0x1371   :  { %v4137_v56 = vmul.f32 %v14966_v46, %v14964_v13 }
0x1373   :  { %4203 = vmatmul.mubr.f32.vlgmr.msra.gmra.mrb[40].mxu0 %v4137_v56  ;;  %4274 = vmatmul.mubr.f32.vlgmr.msra.gmra.mrb[40].mxu1 %v4137_v56 }
0x1374   :  { %12547 = vmatpush1.bf16.msra.mxu0 %v16488_v35  ;;  %12579 = vmatpush1.bf16.msra.mxu1 %v16490_v28 }
0x1375   :  { %12549 = vmatprep.subr.bf16.mxu0 %v16492_v1  ;;  %12581 = vmatprep.subr.bf16.mxu1 %v16494_v20 }
0x1376   :  { %4390 = vmatprep.mubr.f32.mxu0 %v15570_v0  ;;  %4461 = vmatprep.mubr.f32.mxu1 %v15570_v0 }
0x1378   :  { %12551 = vmatpush1.bf16.msra.mxu0 %v16498_v51  ;;  %12583 = vmatpush1.bf16.msra.mxu1 %v16500_v55 }
0x1379   :  { %12553 = vmatprep.subr.bf16.mxu0 %v16504_v10  ;;  %12585 = vmatprep.subr.bf16.mxu1 %v16506_v43 }
0x137c   :  { %12555 = vmatpush1.bf16.msra.mxu0 %v16512_v24  ;;  %12587 = vmatpush1.bf16.msra.mxu1 %v16514_v48 }
0x137d   :  { %12557 = vmatprep.subr.bf16.mxu0 %v16518_v7  ;;  %12589 = vmatprep.subr.bf16.mxu1 %v16520_v14 }
0x1380   :  { %12559 = vmatpush1.bf16.msra.mxu0 %v16524_v41  ;;  %12591 = vmatpush1.bf16.msra.mxu1 %v16526_v39 }
0x1381   :  { %12561 = vmatprep.subr.bf16.mxu0 %v16530_v17  ;;  %12593 = vmatprep.subr.bf16.mxu1 %v16532_v18 }
0x1384   :  { %12563 = vmatpush1.bf16.msra.mxu0 %v16536_v49  ;;  %12595 = vmatpush1.bf16.msra.mxu1 %v16538_v50 }
0x1385   :  { %12565 = vmatprep.subr.bf16.mxu0 %v16542_v22  ;;  %12597 = vmatprep.subr.bf16.mxu1 %v16544_v23 }
0x1388   :  { %12567 = vmatpush1.bf16.msra.mxu0 %v16548_v47  ;;  %12599 = vmatpush1.bf16.msra.mxu1 %v16550_v21 }
0x1389   :  { %12569 = vmatprep.subr.bf16.mxu0 %v16554_v63  ;;  %12601 = vmatprep.subr.bf16.mxu1 %v16556_v59 }
0x138c   :  { %12571 = vmatpush1.bf16.msra.mxu0 %v16560_v58  ;;  %12603 = vmatpush1.bf16.msra.mxu1 %v16562_v5 }
0x138d   :  { %12573 = vmatprep.subr.bf16.mxu0 %v16566_v8  ;;  %12605 = vmatprep.subr.bf16.mxu1 %v16568_v38 }
0x1390   :  { %12575 = vmatpush1.bf16.msra.mxu0 %v16572_v52  ;;  %12607 = vmatpush1.bf16.msra.mxu1 %v16574_v53 }
0x1391   :  { %12609 = vmatprep.subr.bf16.mxu0 %v16481_v25  ;;  %12641 = vmatprep.subr.bf16.mxu1 %v16483_v32 }
0x1446   :  { %v4204_v33 = vpop.f32.mrb[40].mxu0  ;;  %v4275_v2 = vpop.f32.mrb[40].mxu1 }
0x1447   :  { %v4284_v3 = vrot.slane %v4204_v33, 7  ;;  %v4206_v11 = vpop.f32.mrb[41].mxu0  ;;  %v4277_v12 = vpop.f32.mrb[41].mxu1  ;;  %v4286_v30 = vrot.slane %v4275_v2, 7  ;;  %v4316_v2 = vrot.slane %v16634_v45, 7 }
0x1448   :  { %v4285_v60 = vrot.slane %v4206_v11, 7  ;;  %v4287_v9 = vrot.slane %v4277_v12, 7 }
0x1449   :  { %v4292_v42 = vadd.f32 %v4284_v3, %v16620_v62  ;;  %v4294_v54 = vadd.f32 %v4286_v30, %v16628_v16 }
0x144a   :  { %v4293_v15 = vadd.f32 %v4285_v60, %v16622_v34  ;;  %v4295_v44 = vadd.f32 %v4287_v9, %v16631_v4 }
0x144b   :  { %v11048_v19 = vmul.f32 -1.442695, %v4292_v42  ;;  %v11050_v61 = vmul.f32 -1.442695, %v4294_v54 }
0x144c   :  { %v11049_v26 = vmul.f32 -1.442695, %v4293_v15 }
0x144d   :  { %14967 = vpow2.f32 %v11048_v19 }
0x144e   :  { %14969 = vpow2.f32 %v11049_v26 }
0x144f   :  { %14971 = vtanh.f32 %v4295_v44 }
0x1450   :  { %14973 = vpow2.f32 %v11050_v61 }
0x1457   :  { %v14968_v36 = vpop.eup %14967 }
0x1458   :  { %v4305_v40 = vadd.f32 1.0, %v14968_v36  ;;  %v14970_v6 = vpop.eup %14969 }
0x1459   :  { %v4306_v13 = vadd.f32 1.0, %v14970_v6  ;;  %v14972_v46 = vpop.eup %14971 }
0x145a   :  { %14975 = vrcp.f32 %v4305_v40  ;;  %v14974_v56 = vpop.eup %14973 }
0x145b   :  { %14977 = vrcp.f32 %v4306_v13  ;;  %v4307_v12 = vadd.f32 1.0, %v14974_v56 }
0x145d   :  { %14979 = vrcp.f32 %v4307_v12 }
0x1464   :  { %v14976_v33 = vpop.eup %14975 }
0x1465   :  { %v4319_v3 = vmul.f32 %v14976_v33, %v14972_v46  ;;  %v14978_v11 = vpop.eup %14977 }
0x1466   :  { %v4318_v60 = vmul.f32 %v14978_v11, %v4316_v2 }
0x1467   :  { %v14980_v15 = vpop.eup %14979 }
0x1468   :  { %v16676_v42 = vadd.f32 %v4319_v3, %v4318_v60 }
0x146a   :  { %14981 = vtanh.f32 %v16676_v42 }
0x1474   :  { %v14982_v19 = vpop.eup %14981 }
0x1475   :  { %v4322_v26 = vmul.f32 %v14982_v19, %v14980_v15 }
0x1477   :  { %v4324_v30 = vrot.slane %v4322_v26, 1 }
0x1479   :  { %4391 = vmatmul.mubr.f32.vlgmr.msra.gmra.mrb[42].mxu0 %v4324_v30  ;;  %4462 = vmatmul.mubr.f32.vlgmr.msra.gmra.mrb[42].mxu1 %v4324_v30 }
0x147a   :  { %12611 = vmatpush1.bf16.msra.mxu0 %v16488_v35  ;;  %12643 = vmatpush1.bf16.msra.mxu1 %v16490_v28 }
0x147b   :  { %12613 = vmatprep.subr.bf16.mxu0 %v16492_v1  ;;  %12645 = vmatprep.subr.bf16.mxu1 %v16494_v20 }
0x147c   :  { %4578 = vmatprep.mubr.f32.mxu0 %v15570_v0  ;;  %4649 = vmatprep.mubr.f32.mxu1 %v15570_v0 }
0x147e   :  { %12615 = vmatpush1.bf16.msra.mxu0 %v16498_v51  ;;  %12647 = vmatpush1.bf16.msra.mxu1 %v16500_v55 }
0x147f   :  { %12617 = vmatprep.subr.bf16.mxu0 %v16504_v10  ;;  %12649 = vmatprep.subr.bf16.mxu1 %v16506_v43 }
0x1482   :  { %12619 = vmatpush1.bf16.msra.mxu0 %v16512_v24  ;;  %12651 = vmatpush1.bf16.msra.mxu1 %v16514_v48 }
0x1483   :  { %12621 = vmatprep.subr.bf16.mxu0 %v16518_v7  ;;  %12653 = vmatprep.subr.bf16.mxu1 %v16520_v14 }
0x1486   :  { %12623 = vmatpush1.bf16.msra.mxu0 %v16524_v41  ;;  %12655 = vmatpush1.bf16.msra.mxu1 %v16526_v39 }
0x1487   :  { %12625 = vmatprep.subr.bf16.mxu0 %v16530_v17  ;;  %12657 = vmatprep.subr.bf16.mxu1 %v16532_v18 }
0x148a   :  { %12627 = vmatpush1.bf16.msra.mxu0 %v16536_v49  ;;  %12659 = vmatpush1.bf16.msra.mxu1 %v16538_v50 }
0x148b   :  { %12629 = vmatprep.subr.bf16.mxu0 %v16542_v22  ;;  %12661 = vmatprep.subr.bf16.mxu1 %v16544_v23 }
0x148e   :  { %12631 = vmatpush1.bf16.msra.mxu0 %v16548_v47  ;;  %12663 = vmatpush1.bf16.msra.mxu1 %v16550_v21 }
0x148f   :  { %12633 = vmatprep.subr.bf16.mxu0 %v16554_v63  ;;  %12665 = vmatprep.subr.bf16.mxu1 %v16556_v59 }
0x1492   :  { %12635 = vmatpush1.bf16.msra.mxu0 %v16560_v58  ;;  %12667 = vmatpush1.bf16.msra.mxu1 %v16562_v5 }
0x1493   :  { %12637 = vmatprep.subr.bf16.mxu0 %v16566_v8  ;;  %12669 = vmatprep.subr.bf16.mxu1 %v16568_v38 }
0x1496   :  { %12639 = vmatpush1.bf16.msra.mxu0 %v16572_v52  ;;  %12671 = vmatpush1.bf16.msra.mxu1 %v16574_v53 }
0x1497   :  { %12673 = vmatprep.subr.bf16.mxu0 %v16481_v25  ;;  %12705 = vmatprep.subr.bf16.mxu1 %v16483_v32 }
0x154c   :  { %v4392_v45 = vpop.f32.mrb[42].mxu0  ;;  %v4463_v9 = vpop.f32.mrb[42].mxu1 }
0x154d   :  { %v4472_v54 = vrot.slane %v4392_v45, 6  ;;  %v4394_v44 = vpop.f32.mrb[43].mxu0  ;;  %v4465_v61 = vpop.f32.mrb[43].mxu1  ;;  %v4474_v56 = vrot.slane %v4463_v9, 6  ;;  %v4504_v9 = vrot.slane %v16676_v42, 7 }
0x154e   :  { %v4473_v36 = vrot.slane %v4394_v44, 6  ;;  %v4475_v33 = vrot.slane %v4465_v61, 6 }
0x154f   :  { %v4480_v40 = vadd.f32 %v4472_v54, %v16620_v62  ;;  %v4482_v2 = vadd.f32 %v4474_v56, %v16628_v16 }
0x1550   :  { %v4481_v6 = vadd.f32 %v4473_v36, %v16622_v34  ;;  %v4483_v3 = vadd.f32 %v4475_v33, %v16631_v4 }
0x1551   :  { %v11051_v13 = vmul.f32 -1.442695, %v4480_v40  ;;  %v11053_v11 = vmul.f32 -1.442695, %v4482_v2 }
0x1552   :  { %v11052_v46 = vmul.f32 -1.442695, %v4481_v6 }
0x1553   :  { %14983 = vpow2.f32 %v11051_v13 }
0x1554   :  { %14985 = vpow2.f32 %v11052_v46 }
0x1555   :  { %14987 = vtanh.f32 %v4483_v3 }
0x1556   :  { %14989 = vpow2.f32 %v11053_v11 }
0x155d   :  { %v14984_v12 = vpop.eup %14983 }
0x155e   :  { %v4493_v60 = vadd.f32 1.0, %v14984_v12  ;;  %v14986_v15 = vpop.eup %14985 }
0x155f   :  { %v4494_v19 = vadd.f32 1.0, %v14986_v15  ;;  %v14988_v26 = vpop.eup %14987 }
0x1560   :  { %14991 = vrcp.f32 %v4493_v60  ;;  %v14990_v30 = vpop.eup %14989 }
0x1561   :  { %14993 = vrcp.f32 %v4494_v19  ;;  %v4495_v61 = vadd.f32 1.0, %v14990_v30 }
0x1563   :  { %14995 = vrcp.f32 %v4495_v61 }
0x156a   :  { %v14992_v45 = vpop.eup %14991 }
0x156b   :  { %v4507_v54 = vmul.f32 %v14992_v45, %v14988_v26  ;;  %v14994_v44 = vpop.eup %14993 }
0x156c   :  { %v4506_v36 = vmul.f32 %v14994_v44, %v4504_v9 }
0x156d   :  { %v14996_v6 = vpop.eup %14995 }
0x156e   :  { %v16718_v40 = vadd.f32 %v4507_v54, %v4506_v36 }
0x1570   :  { %14997 = vtanh.f32 %v16718_v40 }
0x157a   :  { %v14998_v13 = vpop.eup %14997 }
0x157b   :  { %v4510_v46 = vmul.f32 %v14998_v13, %v14996_v6 }
0x157d   :  { %v4512_v56 = vrot.slane %v4510_v46, 2 }
0x157f   :  { %4579 = vmatmul.mubr.f32.vlgmr.msra.gmra.mrb[44].mxu0 %v4512_v56  ;;  %4650 = vmatmul.mubr.f32.vlgmr.msra.gmra.mrb[44].mxu1 %v4512_v56 }
0x1580   :  { %12675 = vmatpush1.bf16.msra.mxu0 %v16488_v35  ;;  %12707 = vmatpush1.bf16.msra.mxu1 %v16490_v28 }
0x1581   :  { %12677 = vmatprep.subr.bf16.mxu0 %v16492_v1  ;;  %12709 = vmatprep.subr.bf16.mxu1 %v16494_v20 }
0x1582   :  { %4766 = vmatprep.mubr.f32.mxu0 %v15570_v0  ;;  %4837 = vmatprep.mubr.f32.mxu1 %v15570_v0 }
0x1584   :  { %12679 = vmatpush1.bf16.msra.mxu0 %v16498_v51  ;;  %12711 = vmatpush1.bf16.msra.mxu1 %v16500_v55 }
0x1585   :  { %12681 = vmatprep.subr.bf16.mxu0 %v16504_v10  ;;  %12713 = vmatprep.subr.bf16.mxu1 %v16506_v43 }
0x1588   :  { %12683 = vmatpush1.bf16.msra.mxu0 %v16512_v24  ;;  %12715 = vmatpush1.bf16.msra.mxu1 %v16514_v48 }
0x1589   :  { %12685 = vmatprep.subr.bf16.mxu0 %v16518_v7  ;;  %12717 = vmatprep.subr.bf16.mxu1 %v16520_v14 }
0x158c   :  { %12687 = vmatpush1.bf16.msra.mxu0 %v16524_v41  ;;  %12719 = vmatpush1.bf16.msra.mxu1 %v16526_v39 }
0x158d   :  { %12689 = vmatprep.subr.bf16.mxu0 %v16530_v17  ;;  %12721 = vmatprep.subr.bf16.mxu1 %v16532_v18 }
0x1590   :  { %12691 = vmatpush1.bf16.msra.mxu0 %v16536_v49  ;;  %12723 = vmatpush1.bf16.msra.mxu1 %v16538_v50 }
0x1591   :  { %12693 = vmatprep.subr.bf16.mxu0 %v16542_v22  ;;  %12725 = vmatprep.subr.bf16.mxu1 %v16544_v23 }
0x1594   :  { %12695 = vmatpush1.bf16.msra.mxu0 %v16548_v47  ;;  %12727 = vmatpush1.bf16.msra.mxu1 %v16550_v21 }
0x1595   :  { %12697 = vmatprep.subr.bf16.mxu0 %v16554_v63  ;;  %12729 = vmatprep.subr.bf16.mxu1 %v16556_v59 }
0x1598   :  { %12699 = vmatpush1.bf16.msra.mxu0 %v16560_v58  ;;  %12731 = vmatpush1.bf16.msra.mxu1 %v16562_v5 }
0x1599   :  { %12701 = vmatprep.subr.bf16.mxu0 %v16566_v8  ;;  %12733 = vmatprep.subr.bf16.mxu1 %v16568_v38 }
0x159c   :  { %12703 = vmatpush1.bf16.msra.mxu0 %v16572_v52  ;;  %12735 = vmatpush1.bf16.msra.mxu1 %v16574_v53 }
0x159d   :  { %12737 = vmatprep.subr.bf16.mxu0 %v16481_v25  ;;  %12769 = vmatprep.subr.bf16.mxu1 %v16483_v32 }
0x1652   :  { %v4580_v42 = vpop.f32.mrb[44].mxu0  ;;  %v4651_v33 = vpop.f32.mrb[44].mxu1 }
0x1653   :  { %v4660_v2 = vrot.slane %v4580_v42, 5  ;;  %v4582_v3 = vpop.f32.mrb[45].mxu0  ;;  %v4653_v11 = vpop.f32.mrb[45].mxu1  ;;  %v4662_v30 = vrot.slane %v4651_v33, 5  ;;  %v4692_v33 = vrot.slane %v16718_v40, 7 }
0x1654   :  { %v4661_v12 = vrot.slane %v4582_v3, 5  ;;  %v4663_v45 = vrot.slane %v4653_v11, 5 }
0x1655   :  { %v4668_v60 = vadd.f32 %v4660_v2, %v16620_v62  ;;  %v4670_v9 = vadd.f32 %v4662_v30, %v16628_v16 }
0x1656   :  { %v4669_v15 = vadd.f32 %v4661_v12, %v16622_v34  ;;  %v4671_v54 = vadd.f32 %v4663_v45, %v16631_v4 }
0x1657   :  { %v11054_v19 = vmul.f32 -1.442695, %v4668_v60  ;;  %v11056_v44 = vmul.f32 -1.442695, %v4670_v9 }
0x1658   :  { %v11055_v26 = vmul.f32 -1.442695, %v4669_v15 }
0x1659   :  { %14999 = vpow2.f32 %v11054_v19 }
0x165a   :  { %15001 = vpow2.f32 %v11055_v26 }
0x165b   :  { %15003 = vtanh.f32 %v4671_v54 }
0x165c   :  { %15005 = vpow2.f32 %v11056_v44 }
0x1663   :  { %v15000_v61 = vpop.eup %14999 }
0x1664   :  { %v4681_v36 = vadd.f32 1.0, %v15000_v61  ;;  %v15002_v6 = vpop.eup %15001 }
0x1665   :  { %v4682_v13 = vadd.f32 1.0, %v15002_v6  ;;  %v15004_v46 = vpop.eup %15003 }
0x1666   :  { %15007 = vrcp.f32 %v4681_v36  ;;  %v15006_v56 = vpop.eup %15005 }
0x1667   :  { %15009 = vrcp.f32 %v4682_v13  ;;  %v4683_v11 = vadd.f32 1.0, %v15006_v56 }
0x1669   :  { %15011 = vrcp.f32 %v4683_v11 }
0x1670   :  { %v15008_v42 = vpop.eup %15007 }
0x1671   :  { %v4695_v2 = vmul.f32 %v15008_v42, %v15004_v46  ;;  %v15010_v3 = vpop.eup %15009 }
0x1672   :  { %v4694_v12 = vmul.f32 %v15010_v3, %v4692_v33 }
0x1673   :  { %v15012_v15 = vpop.eup %15011 }
0x1674   :  { %v16760_v60 = vadd.f32 %v4695_v2, %v4694_v12 }
0x1676   :  { %15013 = vtanh.f32 %v16760_v60 }
0x1680   :  { %v15014_v19 = vpop.eup %15013 }
0x1681   :  { %v4698_v26 = vmul.f32 %v15014_v19, %v15012_v15 }
0x1683   :  { %v4700_v30 = vrot.slane %v4698_v26, 3 }
0x1685   :  { %4767 = vmatmul.mubr.f32.vlgmr.msra.gmra.mrb[46].mxu0 %v4700_v30  ;;  %4838 = vmatmul.mubr.f32.vlgmr.msra.gmra.mrb[46].mxu1 %v4700_v30 }
0x1686   :  { %12739 = vmatpush1.bf16.msra.mxu0 %v16488_v35  ;;  %12771 = vmatpush1.bf16.msra.mxu1 %v16490_v28 }
0x1687   :  { %12741 = vmatprep.subr.bf16.mxu0 %v16492_v1  ;;  %12773 = vmatprep.subr.bf16.mxu1 %v16494_v20 }
0x1688   :  { %4954 = vmatprep.mubr.f32.mxu0 %v15570_v0  ;;  %5025 = vmatprep.mubr.f32.mxu1 %v15570_v0 }
0x168a   :  { %12743 = vmatpush1.bf16.msra.mxu0 %v16498_v51  ;;  %12775 = vmatpush1.bf16.msra.mxu1 %v16500_v55 }
0x168b   :  { %12745 = vmatprep.subr.bf16.mxu0 %v16504_v10  ;;  %12777 = vmatprep.subr.bf16.mxu1 %v16506_v43 }
0x168e   :  { %12747 = vmatpush1.bf16.msra.mxu0 %v16512_v24  ;;  %12779 = vmatpush1.bf16.msra.mxu1 %v16514_v48 }
0x168f   :  { %12749 = vmatprep.subr.bf16.mxu0 %v16518_v7  ;;  %12781 = vmatprep.subr.bf16.mxu1 %v16520_v14 }
0x1692   :  { %12751 = vmatpush1.bf16.msra.mxu0 %v16524_v41  ;;  %12783 = vmatpush1.bf16.msra.mxu1 %v16526_v39 }
0x1693   :  { %12753 = vmatprep.subr.bf16.mxu0 %v16530_v17  ;;  %12785 = vmatprep.subr.bf16.mxu1 %v16532_v18 }
0x1696   :  { %12755 = vmatpush1.bf16.msra.mxu0 %v16536_v49  ;;  %12787 = vmatpush1.bf16.msra.mxu1 %v16538_v50 }
0x1697   :  { %12757 = vmatprep.subr.bf16.mxu0 %v16542_v22  ;;  %12789 = vmatprep.subr.bf16.mxu1 %v16544_v23 }
0x169a   :  { %12759 = vmatpush1.bf16.msra.mxu0 %v16548_v47  ;;  %12791 = vmatpush1.bf16.msra.mxu1 %v16550_v21 }
0x169b   :  { %12761 = vmatprep.subr.bf16.mxu0 %v16554_v63  ;;  %12793 = vmatprep.subr.bf16.mxu1 %v16556_v59 }
0x169e   :  { %12763 = vmatpush1.bf16.msra.mxu0 %v16560_v58  ;;  %12795 = vmatpush1.bf16.msra.mxu1 %v16562_v5 }
0x169f   :  { %12765 = vmatprep.subr.bf16.mxu0 %v16566_v8  ;;  %12797 = vmatprep.subr.bf16.mxu1 %v16568_v38 }
0x16a2   :  { %12767 = vmatpush1.bf16.msra.mxu0 %v16572_v52  ;;  %12799 = vmatpush1.bf16.msra.mxu1 %v16574_v53 }
0x16a3   :  { %12801 = vmatprep.subr.bf16.mxu0 %v16481_v25  ;;  %12833 = vmatprep.subr.bf16.mxu1 %v16483_v32 }
0x1758   :  { %v4768_v40 = vpop.f32.mrb[46].mxu0  ;;  %v4839_v45 = vpop.f32.mrb[46].mxu1 }
0x1759   :  { %v4848_v9 = vrot.slane %v4768_v40, 4  ;;  %v4770_v54 = vpop.f32.mrb[47].mxu0  ;;  %v4841_v44 = vpop.f32.mrb[47].mxu1  ;;  %v4850_v56 = vrot.slane %v4839_v45, 4  ;;  %v4880_v45 = vrot.slane %v16760_v60, 7 }
0x175a   :  { %v4849_v61 = vrot.slane %v4770_v54, 4  ;;  %v4851_v42 = vrot.slane %v4841_v44, 4 }
0x175b   :  { %v4856_v36 = vadd.f32 %v4848_v9, %v16620_v62  ;;  %v4858_v33 = vadd.f32 %v4850_v56, %v16628_v16 }
0x175c   :  { %v4857_v6 = vadd.f32 %v4849_v61, %v16622_v34  ;;  %v4859_v2 = vadd.f32 %v4851_v42, %v16631_v4 }
0x175d   :  { %v11057_v13 = vmul.f32 -1.442695, %v4856_v36  ;;  %v11059_v3 = vmul.f32 -1.442695, %v4858_v33 }
0x175e   :  { %v11058_v46 = vmul.f32 -1.442695, %v4857_v6 }
0x175f   :  { %15015 = vpow2.f32 %v11057_v13 }
0x1760   :  { %15017 = vpow2.f32 %v11058_v46 }
0x1761   :  { %15019 = vtanh.f32 %v4859_v2 }
0x1762   :  { %15021 = vpow2.f32 %v11059_v3 }
0x1769   :  { %v15016_v11 = vpop.eup %15015 }
0x176a   :  { %v4869_v12 = vadd.f32 1.0, %v15016_v11  ;;  %v15018_v15 = vpop.eup %15017 }
0x176b   :  { %v4870_v19 = vadd.f32 1.0, %v15018_v15  ;;  %v15020_v26 = vpop.eup %15019 }
0x176c   :  { %15023 = vrcp.f32 %v4869_v12  ;;  %v15022_v30 = vpop.eup %15021 }
0x176d   :  { %15025 = vrcp.f32 %v4870_v19  ;;  %v4871_v44 = vadd.f32 1.0, %v15022_v30 }
0x176f   :  { %15027 = vrcp.f32 %v4871_v44 }
0x1776   :  { %v15024_v40 = vpop.eup %15023 }
0x1777   :  { %v4883_v9 = vmul.f32 %v15024_v40, %v15020_v26  ;;  %v15026_v54 = vpop.eup %15025 }
0x1778   :  { %v4882_v61 = vmul.f32 %v15026_v54, %v4880_v45 }
0x1779   :  { %v15028_v6 = vpop.eup %15027 }
0x177a   :  { %v16802_v36 = vadd.f32 %v4883_v9, %v4882_v61 }
0x177c   :  { %15029 = vtanh.f32 %v16802_v36 }
0x1786   :  { %v15030_v13 = vpop.eup %15029 }
0x1787   :  { %v4886_v46 = vmul.f32 %v15030_v13, %v15028_v6 }
0x1789   :  { %v4888_v56 = vrot.slane %v4886_v46, 4 }
0x178b   :  { %4955 = vmatmul.mubr.f32.vlgmr.msra.gmra.mrb[48].mxu0 %v4888_v56  ;;  %5026 = vmatmul.mubr.f32.vlgmr.msra.gmra.mrb[48].mxu1 %v4888_v56  ;;  %v5068_v56 = vrot.slane %v16802_v36, 7 }
0x178c   :  { %12803 = vmatpush1.bf16.msra.mxu0 %v16488_v35  ;;  %12835 = vmatpush1.bf16.msra.mxu1 %v16490_v28 }
0x178d   :  { %12805 = vmatprep.subr.bf16.mxu0 %v16492_v1  ;;  %12837 = vmatprep.subr.bf16.mxu1 %v16494_v20 }
0x178e   :  { %5142 = vmatprep.mubr.f32.mxu0 %v15570_v0  ;;  %5213 = vmatprep.mubr.f32.mxu1 %v15570_v0 }
0x1790   :  { %12807 = vmatpush1.bf16.msra.mxu0 %v16498_v51  ;;  %12839 = vmatpush1.bf16.msra.mxu1 %v16500_v55 }
0x1791   :  { %12809 = vmatprep.subr.bf16.mxu0 %v16504_v10  ;;  %12841 = vmatprep.subr.bf16.mxu1 %v16506_v43 }
0x1794   :  { %12811 = vmatpush1.bf16.msra.mxu0 %v16512_v24  ;;  %12843 = vmatpush1.bf16.msra.mxu1 %v16514_v48 }
0x1795   :  { %12813 = vmatprep.subr.bf16.mxu0 %v16518_v7  ;;  %12845 = vmatprep.subr.bf16.mxu1 %v16520_v14 }
0x1798   :  { %12815 = vmatpush1.bf16.msra.mxu0 %v16524_v41  ;;  %12847 = vmatpush1.bf16.msra.mxu1 %v16526_v39 }
0x1799   :  { %12817 = vmatprep.subr.bf16.mxu0 %v16530_v17  ;;  %12849 = vmatprep.subr.bf16.mxu1 %v16532_v18 }
0x179c   :  { %12819 = vmatpush1.bf16.msra.mxu0 %v16536_v49  ;;  %12851 = vmatpush1.bf16.msra.mxu1 %v16538_v50 }
0x179d   :  { %12821 = vmatprep.subr.bf16.mxu0 %v16542_v22  ;;  %12853 = vmatprep.subr.bf16.mxu1 %v16544_v23 }
0x17a0   :  { %12823 = vmatpush1.bf16.msra.mxu0 %v16548_v47  ;;  %12855 = vmatpush1.bf16.msra.mxu1 %v16550_v21 }
0x17a1   :  { %12825 = vmatprep.subr.bf16.mxu0 %v16554_v63  ;;  %12857 = vmatprep.subr.bf16.mxu1 %v16556_v59 }
0x17a4   :  { %12827 = vmatpush1.bf16.msra.mxu0 %v16560_v58  ;;  %12859 = vmatpush1.bf16.msra.mxu1 %v16562_v5 }
0x17a5   :  { %12829 = vmatprep.subr.bf16.mxu0 %v16566_v8  ;;  %12861 = vmatprep.subr.bf16.mxu1 %v16568_v38 }
0x17a8   :  { %12831 = vmatpush1.bf16.msra.mxu0 %v16572_v52  ;;  %12863 = vmatpush1.bf16.msra.mxu1 %v16574_v53 }
0x17a9   :  { %12865 = vmatprep.subr.bf16.mxu0 %v16481_v25  ;;  %12897 = vmatprep.subr.bf16.mxu1 %v16483_v32 }
0x185e   :  { %v4956_v60 = vpop.f32.mrb[48].mxu0  ;;  %v5027_v42 = vpop.f32.mrb[48].mxu1 }
0x185f   :  { %v5036_v33 = vrot.slane %v4956_v60, 3  ;;  %v4958_v2 = vpop.f32.mrb[49].mxu0  ;;  %v5029_v3 = vpop.f32.mrb[49].mxu1  ;;  %v5038_v30 = vrot.slane %v5027_v42, 3 }
0x1860   :  { %v5037_v11 = vrot.slane %v4958_v2, 3  ;;  %v5039_v40 = vrot.slane %v5029_v3, 3 }
0x1861   :  { %v5044_v12 = vadd.f32 %v5036_v33, %v16620_v62  ;;  %v5046_v25 = vadd.f32 %v5038_v30, %v16628_v16  ;;  %v5456_v30 = vld [vmem:[#allocation6 + $0xc68] sm:$0xff] }
0x1862   :  { %v5045_v15 = vadd.f32 %v5037_v11, %v16622_v34  ;;  %v5047_v32 = vadd.f32 %v5039_v40, %v16631_v4  ;;  %v5460_v40 = vld [vmem:[#allocation6 + $0xc88] sm:$0xff] }
0x1863   :  { %v11060_v19 = vmul.f32 -1.442695, %v5044_v12  ;;  %v11062_v45 = vmul.f32 -1.442695, %v5046_v25  ;;  %v5458_v25 = vld [vmem:[#allocation6 + $0xc78] sm:$0xff] }
0x1864   :  { %v11061_v26 = vmul.f32 -1.442695, %v5045_v15 }
0x1865   :  { %15031 = vpow2.f32 %v11060_v19 }
0x1866   :  { %15033 = vpow2.f32 %v11061_v26 }
0x1867   :  { %15035 = vtanh.f32 %v5047_v32  ;;  %v12928_v32 = vpack.c.bf16 %v5460_v40, %v5456_v30  ;;  %v5487_v30 = vld [vmem:[#allocation6 + $0xd60] sm:$0xff] }
0x1868   :  { %15037 = vpow2.f32 %v11062_v45  ;;  %v5462_v45 = vld [vmem:[#allocation6 + $0xc98] sm:$0xff]  ;;  %v5491_v40 = vld [vmem:[#allocation6 + $0xd80] sm:$0xff] }
0x186f   :  { %v15032_v9 = vpop.eup %15031 }
0x1870   :  { %v5057_v54 = vadd.f32 1.0, %v15032_v9  ;;  %v15034_v44 = vpop.eup %15033  ;;  %v5455_v9 = vld [vmem:[#allocation6 + $0xc60] sm:$0xff] }
0x1871   :  { %v5058_v61 = vadd.f32 1.0, %v15034_v44  ;;  %v15036_v6 = vpop.eup %15035  ;;  %v12960_v44 = vpack.c.bf16 %v5462_v45, %v5458_v25  ;;  %v5489_v45 = vld [vmem:[#allocation6 + $0xd70] sm:$0xff] }
0x1872   :  { %15039 = vrcp.f32 %v5057_v54  ;;  %v15038_v13 = vpop.eup %15037  ;;  %v5459_v54 = vld [vmem:[#allocation6 + $0xc80] sm:$0xff] }
0x1873   :  { %15041 = vrcp.f32 %v5058_v61  ;;  %v5059_v33 = vadd.f32 1.0, %v15038_v13  ;;  %v12930_v61 = vpack.c.bf16 %v5459_v54, %v5455_v9  ;;  %v5461_v13 = vld [vmem:[#allocation6 + $0xc90] sm:$0xff] }
0x1874   :  { %v5493_v9 = vld [vmem:[#allocation6 + $0xd90] sm:$0xff] }
0x1875   :  { %15043 = vrcp.f32 %v5059_v33  ;;  %v12978_v54 = vpack.c.bf16 %v5493_v9, %v5489_v45 }
0x187c   :  { %v15040_v46 = vpop.eup %15039 }
0x187d   :  { %v5071_v60 = vmul.f32 %v15040_v46, %v15036_v6  ;;  %v15042_v42 = vpop.eup %15041  ;;  %v5457_v6 = vld [vmem:[#allocation6 + $0xc70] sm:$0xff] }
0x187e   :  { %v5070_v2 = vmul.f32 %v15042_v42, %v5068_v56  ;;  %v12962_v46 = vpack.c.bf16 %v5461_v13, %v5457_v6  ;;  %v5464_v56 = vld [vmem:[#allocation6 + $0xca8] sm:$0xff]  ;;  %v5466_v42 = vld [vmem:[#allocation6 + $0xcb8] sm:$0xff] }
0x187f   :  { %v15044_v11 = vpop.eup %15043  ;;  %v5498_v6 = vld [vmem:[#allocation6 + $0xdb8] sm:$0xff] }
0x1880   :  { %v16844_v3 = vadd.f32 %v5071_v60, %v5070_v2  ;;  %v5468_v60 = vld [vmem:[#allocation6 + $0xcc8] sm:$0xff]  ;;  %v5470_v2 = vld [vmem:[#allocation6 + $0xcd8] sm:$0xff] }
0x1881   :  { %v12932_v33 = vpack.c.bf16 %v5468_v60, %v5464_v56  ;;  %v5495_v56 = vld [vmem:[#allocation6 + $0xda0] sm:$0xff] }
0x1882   :  { %15045 = vtanh.f32 %v16844_v3  ;;  %v5499_v60 = vld [vmem:[#allocation6 + $0xdc0] sm:$0xff] }
0x188c   :  { %v15046_v12 = vpop.eup %15045 }
0x188d   :  { %v5074_v15 = vmul.f32 %v15046_v12, %v15044_v11  ;;  %v5467_v11 = vld [vmem:[#allocation6 + $0xcc0] sm:$0xff]  ;;  %v12964_v12 = vpack.c.bf16 %v5470_v2, %v5466_v42  ;;  %v5497_v2 = vld [vmem:[#allocation6 + $0xdb0] sm:$0xff] }
0x188f   :  { %v5076_v19 = vrot.slane %v5074_v15, 5 }
0x1891   :  { %5143 = vmatmul.mubr.f32.vlgmr.msra.gmra.mrb[50].mxu0 %v5076_v19  ;;  %5214 = vmatmul.mubr.f32.vlgmr.msra.gmra.mrb[50].mxu1 %v5076_v19  ;;  %v5465_v19 = vld [vmem:[#allocation6 + $0xcb0] sm:$0xff] }
0x1892   :  { %12867 = vmatpush1.bf16.msra.mxu0 %v16488_v35  ;;  %12899 = vmatpush1.bf16.msra.mxu1 %v16490_v28 }
0x1893   :  { %12869 = vmatprep.subr.bf16.mxu0 %v16492_v1  ;;  %12901 = vmatprep.subr.bf16.mxu1 %v16494_v20 }
0x1894   :  { %5330 = vmatprep.mubr.f32.mxu0 %v15570_v0  ;;  %5401 = vmatprep.mubr.f32.mxu1 %v15570_v0 }
0x1896   :  { %12871 = vmatpush1.bf16.msra.mxu0 %v16498_v51  ;;  %12903 = vmatpush1.bf16.msra.mxu1 %v16500_v55 }
0x1897   :  { %12873 = vmatprep.subr.bf16.mxu0 %v16504_v10  ;;  %12905 = vmatprep.subr.bf16.mxu1 %v16506_v43 }
0x189a   :  { %12875 = vmatpush1.bf16.msra.mxu0 %v16512_v24  ;;  %12907 = vmatpush1.bf16.msra.mxu1 %v16514_v48 }
0x189b   :  { %12877 = vmatprep.subr.bf16.mxu0 %v16518_v7  ;;  %12909 = vmatprep.subr.bf16.mxu1 %v16520_v14 }
0x189e   :  { %12879 = vmatpush1.bf16.msra.mxu0 %v16524_v41  ;;  %12911 = vmatpush1.bf16.msra.mxu1 %v16526_v39 }
0x189f   :  { %12881 = vmatprep.subr.bf16.mxu0 %v16530_v17  ;;  %12913 = vmatprep.subr.bf16.mxu1 %v16532_v18 }
0x18a2   :  { %12883 = vmatpush1.bf16.msra.mxu0 %v16536_v49  ;;  %12915 = vmatpush1.bf16.msra.mxu1 %v16538_v50 }
0x18a3   :  { %12885 = vmatprep.subr.bf16.mxu0 %v16542_v22  ;;  %12917 = vmatprep.subr.bf16.mxu1 %v16544_v23 }
0x18a6   :  { %12887 = vmatpush1.bf16.msra.mxu0 %v16548_v47  ;;  %12919 = vmatpush1.bf16.msra.mxu1 %v16550_v21 }
0x18a7   :  { %12889 = vmatprep.subr.bf16.mxu0 %v16554_v63  ;;  %12921 = vmatprep.subr.bf16.mxu1 %v16556_v59  ;;  %v5256_v63 = vrot.slane %v16844_v3, 7  ;;  %v5463_v3 = vld [vmem:[#allocation6 + $0xca0] sm:$0xff] }
0x18a8   :  { %v12934_v15 = vpack.c.bf16 %v5467_v11, %v5463_v3  ;;  %v5501_v3 = vld [vmem:[#allocation6 + $0xdd0] sm:$0xff]  ;;  %v5504_v11 = vld [vmem:[#allocation6 + $0xde8] sm:$0xff] }
0x18aa   :  { %12891 = vmatpush1.bf16.msra.mxu0 %v16560_v58  ;;  %12923 = vmatpush1.bf16.msra.mxu1 %v16562_v5 }
0x18ab   :  { %12893 = vmatprep.subr.bf16.mxu0 %v16566_v8  ;;  %12925 = vmatprep.subr.bf16.mxu1 %v16568_v38 }
0x18ae   :  { %12895 = vmatpush1.bf16.msra.mxu0 %v16572_v52  ;;  %12927 = vmatpush1.bf16.msra.mxu1 %v16574_v53 }
0x18af   :  { %12929 = vmatprep.subr.bf16.mxu0 %v12928_v32  ;;  %12961 = vmatprep.subr.bf16.mxu1 %v12960_v44  ;;  %v12946_v32 = vpack.c.bf16 %v5491_v40, %v5487_v30  ;;  %v5496_v44 = vld [vmem:[#allocation6 + $0xda8] sm:$0xff] }
0x1964   :  { %v5144_v35 = vpop.f32.mrb[50].mxu0  ;;  %v5215_v28 = vpop.f32.mrb[50].mxu1 }
0x1965   :  { %v5224_v1 = vrot.slane %v5144_v35, 2  ;;  %v5146_v20 = vpop.f32.mrb[51].mxu0  ;;  %v5217_v51 = vpop.f32.mrb[51].mxu1  ;;  %v5226_v7 = vrot.slane %v5215_v28, 2  ;;  %v5469_v35 = vld [vmem:[#allocation6 + $0xcd0] sm:$0xff] }
0x1966   :  { %v5225_v55 = vrot.slane %v5146_v20, 2  ;;  %v5227_v14 = vrot.slane %v5217_v51, 2  ;;  %v12966_v28 = vpack.c.bf16 %v5469_v35, %v5465_v19  ;;  %v5476_v20 = vld [vmem:[#allocation6 + $0xd08] sm:$0xff]  ;;  %v5474_v51 = vld [vmem:[#allocation6 + $0xcf8] sm:$0xff] }
0x1967   :  { %v5232_v10 = vadd.f32 %v5224_v1, %v16620_v62  ;;  %v5234_v41 = vadd.f32 %v5226_v7, %v16628_v16  ;;  %v5472_v1 = vld [vmem:[#allocation6 + $0xce8] sm:$0xff]  ;;  %v5506_v19 = vld [vmem:[#allocation6 + $0xdf8] sm:$0xff] }
0x1968   :  { %v5233_v43 = vadd.f32 %v5225_v55, %v16622_v34  ;;  %v5235_v39 = vadd.f32 %v5227_v14, %v16631_v4  ;;  %v12936_v55 = vpack.c.bf16 %v5476_v20, %v5472_v1  ;;  %v5473_v14 = vld [vmem:[#allocation6 + $0xcf0] sm:$0xff]  ;;  %v5510_v35 = vld [vmem:[#allocation6 + $0xe18] sm:$0xff]  ;;  %v5503_v20 = vld [vmem:[#allocation6 + $0xde0] sm:$0xff] }
0x1969   :  { %v11063_v24 = vmul.f32 -1.442695, %v5232_v10  ;;  %v11065_v17 = vmul.f32 -1.442695, %v5234_v41  ;;  %v5478_v10 = vld [vmem:[#allocation6 + $0xd18] sm:$0xff]  ;;  %v5477_v41 = vld [vmem:[#allocation6 + $0xd10] sm:$0xff]  ;;  %v12984_v1 = vpack.c.bf16 %v5510_v35, %v5506_v19 }
0x196a   :  { %v11064_v48 = vmul.f32 -1.442695, %v5233_v43  ;;  %v5471_v43 = vld [vmem:[#allocation6 + $0xce0] sm:$0xff] }
0x196b   :  { %15047 = vpow2.f32 %v11063_v24  ;;  %v5475_v24 = vld [vmem:[#allocation6 + $0xd00] sm:$0xff] }
0x196c   :  { %15049 = vpow2.f32 %v11064_v48  ;;  %v12968_v48 = vpack.c.bf16 %v5478_v10, %v5474_v51  ;;  %v12938_v7 = vpack.c.bf16 %v5475_v24, %v5471_v43  ;;  %v5507_v51 = vld [vmem:[#allocation6 + $0xe00] sm:$0xff]  ;;  %v5509_v43 = vld [vmem:[#allocation6 + $0xe10] sm:$0xff]  ;;  %v5512_v24 = vld [vmem:[#allocation6 + $0xe28] sm:$0xff] }
0x196d   :  { %15051 = vtanh.f32 %v5235_v39  ;;  %v12970_v39 = vpack.c.bf16 %v5477_v41, %v5473_v14  ;;  %v12954_v10 = vpack.c.bf16 %v5507_v51, %v5503_v20  ;;  %v5514_v41 = vld [vmem:[#allocation6 + $0xe38] sm:$0xff]  ;;  %v5523_v19 = vld [vmem:[#allocation6 + $0xe80] sm:$0xff]  ;;  %v5525_v20 = vld [vmem:[#allocation6 + $0xe90] sm:$0xff] }
0x196e   :  { %15053 = vpow2.f32 %v11065_v17  ;;  %v5480_v17 = vld [vmem:[#allocation6 + $0xd28] sm:$0xff] }
0x196f   :  { %v5528_v51 = vld [vmem:[#allocation6 + $0xea8] sm:$0xff] }
0x1975   :  { %v15048_v18 = vpop.eup %15047 }
0x1976   :  { %v5245_v49 = vadd.f32 1.0, %v15048_v18  ;;  %v15050_v50 = vpop.eup %15049  ;;  %v5484_v18 = vld [vmem:[#allocation6 + $0xd48] sm:$0xff] }
0x1977   :  { %v5246_v22 = vadd.f32 1.0, %v15050_v50  ;;  %v15052_v23 = vpop.eup %15051  ;;  %v12940_v50 = vpack.c.bf16 %v5484_v18, %v5480_v17  ;;  %v5511_v17 = vld [vmem:[#allocation6 + $0xe20] sm:$0xff] }
0x1978   :  { %15055 = vrcp.f32 %v5245_v49  ;;  %v15054_v47 = vpop.eup %15053  ;;  %v5482_v49 = vld [vmem:[#allocation6 + $0xd38] sm:$0xff] }
0x1979   :  { %15057 = vrcp.f32 %v5246_v22  ;;  %v5247_v5 = vadd.f32 1.0, %v15054_v47  ;;  %v5486_v22 = vld [vmem:[#allocation6 + $0xd58] sm:$0xff]  ;;  %v5483_v47 = vld [vmem:[#allocation6 + $0xd40] sm:$0xff] }
0x197b   :  { %15059 = vrcp.f32 %v5247_v5 }
0x1982   :  { %v15056_v21 = vpop.eup %15055 }
0x1983   :  { %v5259_v59 = vmul.f32 %v15056_v21, %v15052_v23  ;;  %v15058_v58 = vpop.eup %15057  ;;  %v5479_v23 = vld [vmem:[#allocation6 + $0xd20] sm:$0xff]  ;;  %v12972_v21 = vpack.c.bf16 %v5486_v22, %v5482_v49  ;;  %v5517_v22 = vld [vmem:[#allocation6 + $0xe50] sm:$0xff] }
0x1984   :  { %v5258_v8 = vmul.f32 %v15058_v58, %v5256_v63  ;;  %v12942_v63 = vpack.c.bf16 %v5483_v47, %v5479_v23  ;;  %v5485_v58 = vld [vmem:[#allocation6 + $0xd50] sm:$0xff]  ;;  %v5515_v49 = vld [vmem:[#allocation6 + $0xe40] sm:$0xff]  ;;  %v5520_v47 = vld [vmem:[#allocation6 + $0xe68] sm:$0xff] }
0x1985   :  { %v15060_v52 = vpop.eup %15059  ;;  %v12958_v23 = vpack.c.bf16 %v5515_v49, %v5511_v17  ;;  %v5533_v49 = vld [vmem:[#allocation6 + $0xed0] sm:$0xff] }
0x1986   :  { %v16884_v38 = vadd.f32 %v5259_v59, %v5258_v8  ;;  %v5481_v59 = vld [vmem:[#allocation6 + $0xd30] sm:$0xff]  ;;  %v5488_v8 = vld [vmem:[#allocation6 + $0xd68] sm:$0xff] }
0x1987   :  { %v12974_v5 = vpack.c.bf16 %v5485_v58, %v5481_v59 }
0x1988   :  { %15061 = vtanh.f32 %v16884_v38 }
0x1992   :  { %v15062_v53 = vpop.eup %15061 }
0x1993   :  { %v5262_v36 = vmul.f32 %v15062_v53, %v15060_v52  ;;  %v5492_v52 = vld [vmem:[#allocation6 + $0xd88] sm:$0xff]  ;;  %v5490_v53 = vld [vmem:[#allocation6 + $0xd78] sm:$0xff] }
0x1995   :  { %v5264_v26 = vrot.slane %v5262_v36, 6  ;;  %v12944_v36 = vpack.c.bf16 %v5492_v52, %v5488_v8 }
0x1997   :  { %5331 = vmatmul.mubr.f32.vlgmr.msra.gmra.mrb[52].mxu0 %v5264_v26  ;;  %5402 = vmatmul.mubr.f32.vlgmr.msra.gmra.mrb[52].mxu1 %v5264_v26  ;;  %v5494_v26 = vld [vmem:[#allocation6 + $0xd98] sm:$0xff] }
0x1998   :  { %5670 = vmatprep.mubr.f32.mxu0 %v15570_v0  ;;  %5741 = vmatprep.mubr.f32.mxu1 %v15570_v0  ;;  %v12976_v25 = vpack.c.bf16 %v5494_v26, %v5490_v53 }
0x1999   :  { %12931 = vmatpush1.bf16.msra.mxu0 %v12930_v61  ;;  %12963 = vmatpush1.bf16.msra.mxu1 %v12962_v46  ;;  %v5500_v61 = vld [vmem:[#allocation6 + $0xdc8] sm:$0xff]  ;;  %v5502_v46 = vld [vmem:[#allocation6 + $0xdd8] sm:$0xff] }
0x199a   :  { %12933 = vmatprep.subr.bf16.mxu0 %v12932_v33  ;;  %12965 = vmatprep.subr.bf16.mxu1 %v12964_v12  ;;  %v12948_v13 = vpack.c.bf16 %v5500_v61, %v5496_v44  ;;  %v12980_v42 = vpack.c.bf16 %v5502_v46, %v5498_v6  ;;  %v12950_v33 = vpack.c.bf16 %v5499_v60, %v5495_v56 }
0x199b   :  { %v12982_v12 = vpack.c.bf16 %v5501_v3, %v5497_v2  ;;  %v5444_v2 = vrot.slane %v16884_v38, 7 }
0x199d   :  { %12935 = vmatpush1.bf16.msra.mxu0 %v12934_v15  ;;  %12967 = vmatpush1.bf16.msra.mxu1 %v12966_v28  ;;  %v5508_v15 = vld [vmem:[#allocation6 + $0xe08] sm:$0xff] }
0x199e   :  { %12937 = vmatprep.subr.bf16.mxu0 %v12936_v55  ;;  %12969 = vmatprep.subr.bf16.mxu1 %v12968_v48  ;;  %v12952_v28 = vpack.c.bf16 %v5508_v15, %v5504_v11  ;;  %v5505_v55 = vld [vmem:[#allocation6 + $0xdf0] sm:$0xff]  ;;  %v5516_v48 = vld [vmem:[#allocation6 + $0xe48] sm:$0xff] }
0x199f   :  { %v12956_v14 = vpack.c.bf16 %v5516_v48, %v5512_v24  ;;  %v5534_v24 = vld [vmem:[#allocation6 + $0xed8] sm:$0xff] }
0x19a1   :  { %12939 = vmatpush1.bf16.msra.mxu0 %v12938_v7  ;;  %12971 = vmatpush1.bf16.msra.mxu1 %v12970_v39  ;;  %v12986_v7 = vpack.c.bf16 %v5509_v43, %v5505_v55  ;;  %v5518_v39 = vld [vmem:[#allocation6 + $0xe58] sm:$0xff] }
0x19a2   :  { %12941 = vmatprep.subr.bf16.mxu0 %v12940_v50  ;;  %12973 = vmatprep.subr.bf16.mxu1 %v12972_v21  ;;  %v12988_v18 = vpack.c.bf16 %v5518_v39, %v5514_v41  ;;  %v5513_v50 = vld [vmem:[#allocation6 + $0xe30] sm:$0xff]  ;;  %v5524_v21 = vld [vmem:[#allocation6 + $0xe88] sm:$0xff]  ;;  %v5530_v43 = vld [vmem:[#allocation6 + $0xeb8] sm:$0xff] }
0x19a3   :  { %v12990_v59 = vpack.c.bf16 %v5517_v22, %v5513_v50  ;;  %v16889_v58 = vpack.c.bf16 %v5524_v21, %v5520_v47  ;;  %v5531_v41 = vld [vmem:[#allocation6 + $0xec0] sm:$0xff]  ;;  %v5536_v50 = vld [vmem:[#allocation6 + $0xee8] sm:$0xff]  ;;  %v5542_v47 = vld [vmem:[#allocation6 + $0xf18] sm:$0xff] }
0x19a4   :  { %v5540_v22 = vld [vmem:[#allocation6 + $0xf08] sm:$0xff] }
0x19a5   :  { %12943 = vmatpush1.bf16.msra.mxu0 %v12942_v63  ;;  %12975 = vmatpush1.bf16.msra.mxu1 %v12974_v5  ;;  %v5522_v63 = vld [vmem:[#allocation6 + $0xe78] sm:$0xff] }
0x19a6   :  { %12945 = vmatprep.subr.bf16.mxu0 %v12944_v36  ;;  %12977 = vmatprep.subr.bf16.mxu1 %v12976_v25  ;;  %v5526_v5 = vld [vmem:[#allocation6 + $0xe98] sm:$0xff] }
0x19a7   :  { %v16891_v8 = vpack.c.bf16 %v5526_v5, %v5522_v63  ;;  %v5539_v5 = vld [vmem:[#allocation6 + $0xf00] sm:$0xff] }
0x19a9   :  { %12947 = vmatpush1.bf16.msra.mxu0 %v12946_v32  ;;  %12979 = vmatpush1.bf16.msra.mxu1 %v12978_v54 }
0x19aa   :  { %12949 = vmatprep.subr.bf16.mxu0 %v12948_v13  ;;  %12981 = vmatprep.subr.bf16.mxu1 %v12980_v42 }
0x19ad   :  { %12951 = vmatpush1.bf16.msra.mxu0 %v12950_v33  ;;  %12983 = vmatpush1.bf16.msra.mxu1 %v12982_v12 }
0x19ae   :  { %12953 = vmatprep.subr.bf16.mxu0 %v12952_v28  ;;  %12985 = vmatprep.subr.bf16.mxu1 %v12984_v1  ;;  %v5453_v28 = vsub.s32 7, %v15768_v27  ;;  %v5521_v1 = vld [vmem:[#allocation6 + $0xe70] sm:$0xff] }
0x19af   :  { %v5529_v27 = vld [vmem:[#allocation6 + $0xeb0] sm:$0xff] }
0x19b0   :  { %v16913_v63 = vpack.c.bf16 %v5533_v49, %v5529_v27  ;;  %v5574_v27 = vld [vmem:[#allocation6 + $0x1018] sm:$0xff] }
0x19b1   :  { %12955 = vmatpush1.bf16.msra.mxu0 %v12954_v10  ;;  %12987 = vmatpush1.bf16.msra.mxu1 %v12986_v7  ;;  %v5532_v10 = vld [vmem:[#allocation6 + $0xec8] sm:$0xff]  ;;  %v16903_v7 = vpack.c.bf16 %v5525_v20, %v5521_v1 }
0x19b2   :  { %12957 = vmatprep.subr.bf16.mxu0 %v12956_v14  ;;  %12989 = vmatprep.subr.bf16.mxu1 %v12988_v18  ;;  %v5527_v14 = vld [vmem:[#allocation6 + $0xea0] sm:$0xff]  ;;  %v16905_v17 = vpack.c.bf16 %v5532_v10, %v5528_v51  ;;  %v16907_v18 = vpack.c.bf16 %v5534_v24, %v5530_v43  ;;  %v5561_v24 = vld [vmem:[#allocation6 + $0xfb0] sm:$0xff] }
0x19b3   :  { %v16911_v21 = vpack.c.bf16 %v5531_v41, %v5527_v14  ;;  %v5559_v51 = vld [vmem:[#allocation6 + $0xfa0] sm:$0xff]  ;;  %v5568_v14 = vld [vmem:[#allocation6 + $0xfe8] sm:$0xff] }
0x19b4   :  { %v5572_v41 = vld [vmem:[#allocation6 + $0x1008] sm:$0xff] }
0x19b5   :  { %12959 = vmatpush1.bf16.msra.mxu0 %v12958_v23  ;;  %12991 = vmatpush1.bf16.msra.mxu1 %v12990_v59  ;;  %v5538_v23 = vld [vmem:[#allocation6 + $0xef8] sm:$0xff]  ;;  %v5535_v59 = vld [vmem:[#allocation6 + $0xee0] sm:$0xff] }
0x19b6   :  { %12993 = vmatprep.subr.bf16.mxu0 %v16889_v58  ;;  %13025 = vmatprep.subr.bf16.mxu1 %v16891_v8 }
0x1a6a   :  { %v5332_v52 = vpop.f32.mrb[52].mxu0  ;;  %v5403_v53 = vpop.f32.mrb[52].mxu1 }
0x1a6b   :  { %v5412_v36 = vrot.slane %v5332_v52, 1  ;;  %v5334_v26 = vpop.f32.mrb[53].mxu0  ;;  %v5405_v30 = vpop.f32.mrb[53].mxu1  ;;  %v5414_v54 = vrot.slane %v5403_v53, 1  ;;  %v16917_v52 = vpack.c.bf16 %v5540_v22, %v5536_v50  ;;  %v16919_v53 = vpack.c.bf16 %v5542_v47, %v5538_v23  ;;  %v5567_v22 = vld [vmem:[#allocation6 + $0xfe0] sm:$0xff] }
0x1a6c   :  { %v5413_v40 = vrot.slane %v5334_v26, 1  ;;  %v5415_v44 = vrot.slane %v5405_v30, 1  ;;  %v5541_v26 = vld [vmem:[#allocation6 + $0xf10] sm:$0xff]  ;;  %v5544_v30 = vld [vmem:[#allocation6 + $0xf28] sm:$0xff]  ;;  %v5571_v23 = vld [vmem:[#allocation6 + $0x1000] sm:$0xff]  ;;  %v16967_v47 = vpack.c.bf16 %v5572_v41, %v5568_v14 }
0x1a6d   :  { %v5420_v25 = vadd.f32 %v5412_v36, %v16620_v62  ;;  %v5422_v61 = vadd.f32 %v5414_v54, %v16628_v16  ;;  %v5537_v36 = vld [vmem:[#allocation6 + $0xef0] sm:$0xff]  ;;  %v5543_v54 = vld [vmem:[#allocation6 + $0xf20] sm:$0xff] }
0x1a6e   :  { %v5421_v32 = vadd.f32 %v5413_v40, %v16622_v34  ;;  %v5423_v6 = vadd.f32 %v5415_v44, %v16631_v4  ;;  %v5519_v4 = vld [vmem:[#allocation6 + $0xe60] sm:$0xff]  ;;  %v5548_v40 = vld [vmem:[#allocation6 + $0xf48] sm:$0xff] }
0x1a6f   :  { %v11066_v45 = vmul.f32 -1.442695, %v5420_v25  ;;  %v11068_v13 = vmul.f32 -1.442695, %v5422_v61  ;;  %v16901_v48 = vpack.c.bf16 %v5523_v19, %v5519_v4  ;;  %v5546_v25 = vld [vmem:[#allocation6 + $0xf38] sm:$0xff]  ;;  %v5547_v44 = vld [vmem:[#allocation6 + $0xf40] sm:$0xff]  ;;  %v16931_v61 = vpack.c.bf16 %v5548_v40, %v5544_v30 }
0x1a70   :  { %v11067_v9 = vmul.f32 -1.442695, %v5421_v32  ;;  %v5550_v32 = vld [vmem:[#allocation6 + $0xf58] sm:$0xff]  ;;  %v5560_v4 = vld [vmem:[#allocation6 + $0xfa8] sm:$0xff] }
0x1a71   :  { %15063 = vpow2.f32 %v11066_v45  ;;  %v16925_v45 = vpack.c.bf16 %v5539_v5, %v5535_v59  ;;  %v5564_v19 = vld [vmem:[#allocation6 + $0xfc8] sm:$0xff]  ;;  %v5569_v5 = vld [vmem:[#allocation6 + $0xff0] sm:$0xff]  ;;  %v5578_v40 = vld [vmem:[#allocation6 + $0x1038] sm:$0xff] }
0x1a72   :  { %15065 = vpow2.f32 %v11067_v9  ;;  %v16927_v9 = vpack.c.bf16 %v5541_v26, %v5537_v36  ;;  %v16955_v10 = vpack.c.bf16 %v5564_v19, %v5560_v4  ;;  %v5573_v36 = vld [vmem:[#allocation6 + $0x1010] sm:$0xff]  ;;  %v5576_v26 = vld [vmem:[#allocation6 + $0x1028] sm:$0xff] }
0x1a73   :  { %15067 = vtanh.f32 %v5423_v6  ;;  %v16933_v6 = vpack.c.bf16 %v5550_v32, %v5546_v25  ;;  %v5580_v30 = vld [vmem:[#allocation6 + $0x1048] sm:$0xff]  ;;  %v5582_v25 = vld [vmem:[#allocation6 + $0x1058] sm:$0xff]  ;;  %v16973_v32 = vpack.c.bf16 %v5571_v23, %v5567_v22 }
0x1a74   :  { %15069 = vpow2.f32 %v11068_v13  ;;  %v5545_v13 = vld [vmem:[#allocation6 + $0xf30] sm:$0xff] }
0x1a75   :  { %v5584_v19 = vld [vmem:[#allocation6 + $0x1060] ss:$8 sm:$0xf] }
0x1a76   :  { %v5597_v22 = vrot.slane %v5584_v19, %v15779_v37 }
0x1a7b   :  { %v15064_v46 = vpop.eup %15063 }
0x1a7c   :  { %v5433_v56 = vadd.f32 1.0, %v15064_v46  ;;  %v15066_v60 = vpop.eup %15065  ;;  %v5549_v46 = vld [vmem:[#allocation6 + $0xf50] sm:$0xff] }
0x1a7d   :  { %v5434_v62 = vadd.f32 1.0, %v15066_v60  ;;  %v15068_v34 = vpop.eup %15067  ;;  %v5556_v60 = vld [vmem:[#allocation6 + $0xf88] sm:$0xff] }
0x1a7e   :  { %15071 = vrcp.f32 %v5433_v56  ;;  %v15070_v42 = vpop.eup %15069  ;;  %v5552_v56 = vld [vmem:[#allocation6 + $0xf68] sm:$0xff] }
0x1a7f   :  { %15073 = vrcp.f32 %v5434_v62  ;;  %v5435_v12 = vadd.f32 1.0, %v15070_v42  ;;  %v5554_v62 = vld [vmem:[#allocation6 + $0xf78] sm:$0xff]  ;;  %v16937_v42 = vpack.c.bf16 %v5547_v44, %v5543_v54  ;;  %v16975_v54 = vpack.c.bf16 %v5573_v36, %v5569_v5  ;;  %v5575_v44 = vld [vmem:[#allocation6 + $0x1020] sm:$0xff] }
0x1a80   :  { %v5601_v36 = vrot.slane %v5584_v19, %v15789_v57 }
0x1a81   :  { %15075 = vrcp.f32 %v5435_v12 }
0x1a88   :  { %v15072_v33 = vpop.eup %15071 }
0x1a89   :  { %v5447_v3 = vmul.f32 %v15072_v33, %v15068_v34  ;;  %v15074_v11 = vpop.eup %15073  ;;  %v5558_v34 = vld [vmem:[#allocation6 + $0xf98] sm:$0xff]  ;;  %v16939_v33 = vpack.c.bf16 %v5549_v46, %v5545_v13  ;;  %v16979_v13 = vpack.c.bf16 %v5580_v30, %v5576_v26  ;;  %v16981_v46 = vpack.c.bf16 %v5582_v25, %v5578_v40 }
0x1a8a   :  { %v5446_v16 = vmul.f32 %v15074_v11, %v5444_v2  ;;  %v5551_v2 = vld [vmem:[#allocation6 + $0xf60] sm:$0xff]  ;;  %v16943_v11 = vpack.c.bf16 %v5556_v60, %v5552_v56  ;;  %v16945_v12 = vpack.c.bf16 %v5558_v34, %v5554_v62  ;;  %v5577_v60 = vld [vmem:[#allocation6 + $0x1030] sm:$0xff] }
0x1a8b   :  { %v15076_v35 = vpop.eup %15075  ;;  %v5579_v56 = vld [vmem:[#allocation6 + $0x1040] sm:$0xff]  ;;  %v5581_v62 = vld [vmem:[#allocation6 + $0x1050] sm:$0xff] }
0x1a8c   :  { %v5448_v15 = vadd.f32 %v5447_v3, %v5446_v16  ;;  %v5555_v3 = vld [vmem:[#allocation6 + $0xf80] sm:$0xff]  ;;  %v5553_v16 = vld [vmem:[#allocation6 + $0xf70] sm:$0xff]  ;;  %v16985_v34 = vpack.c.bf16 %v5579_v56, %v5575_v44 }
0x1a8d   :  { %v16949_v1 = vpack.c.bf16 %v5555_v3, %v5551_v2  ;;  %v16987_v2 = vpack.c.bf16 %v5581_v62, %v5577_v60 }
0x1a8e   :  { %15077 = vtanh.f32 %v5448_v15  ;;  %v5557_v15 = vld [vmem:[#allocation6 + $0xf90] sm:$0xff] }
0x1a8f   :  { %v16951_v20 = vpack.c.bf16 %v5557_v15, %v5553_v16 }
0x1a98   :  { %v15078_v55 = vpop.eup %15077 }
0x1a99   :  { %v5450_v38 = vmul.f32 %v15078_v55, %v15076_v35  ;;  %v5562_v35 = vld [vmem:[#allocation6 + $0xfb8] sm:$0xff]  ;;  %v5563_v55 = vld [vmem:[#allocation6 + $0xfc0] sm:$0xff] }
0x1a9a   :  { %v16961_v49 = vpack.c.bf16 %v5563_v55, %v5559_v51 }
0x1a9b   :  { %v5454_v39 = vrot.slane %v5450_v38, %v5453_v28  ;;  %v5566_v28 = vld [vmem:[#allocation6 + $0xfd8] sm:$0xff]  ;;  %v5565_v38 = vld [vmem:[#allocation6 + $0xfd0] sm:$0xff] }
0x1a9c   :  { %v16957_v43 = vpack.c.bf16 %v5566_v28, %v5562_v35  ;;  %v16963_v50 = vpack.c.bf16 %v5565_v38, %v5561_v24  ;;  %v5589_v35 = vrot.slane %v5584_v19, %v15771_v29  ;;  %v5593_v28 = vrot.slane %v5584_v19, %v15774_v31 }
0x1a9d   :  { %5671 = vmatmul.mubr.f32.vlgmr.msra.gmra.mrb[54].mxu0 %v5454_v39  ;;  %5742 = vmatmul.mubr.f32.vlgmr.msra.gmra.mrb[54].mxu1 %v5454_v39  ;;  %v5570_v39 = vld [vmem:[#allocation6 + $0xff8] sm:$0xff] }
0x1a9e   :  { %12995 = vmatpush1.bf16.msra.mxu0 %v16901_v48  ;;  %13027 = vmatpush1.bf16.msra.mxu1 %v16903_v7  ;;  %v16969_v59 = vpack.c.bf16 %v5574_v27, %v5570_v39 }
0x1a9f   :  { %12997 = vmatprep.subr.bf16.mxu0 %v16905_v17  ;;  %13029 = vmatprep.subr.bf16.mxu1 %v16907_v18 }
0x1aa0   :  { %5812 = vmatprep.mubr.f32.mxu0 %v15570_v0  ;;  %5883 = vmatprep.mubr.f32.mxu1 %v15570_v0 }
0x1aa2   :  { %12999 = vmatpush1.bf16.msra.mxu0 %v16911_v21  ;;  %13031 = vmatpush1.bf16.msra.mxu1 %v16913_v63 }
0x1aa3   :  { %13001 = vmatprep.subr.bf16.mxu0 %v16917_v52  ;;  %13033 = vmatprep.subr.bf16.mxu1 %v16919_v53 }
0x1aa6   :  { %13003 = vmatpush1.bf16.msra.mxu0 %v16925_v45  ;;  %13035 = vmatpush1.bf16.msra.mxu1 %v16927_v9 }
0x1aa7   :  { %13005 = vmatprep.subr.bf16.mxu0 %v16931_v61  ;;  %13037 = vmatprep.subr.bf16.mxu1 %v16933_v6 }
0x1aaa   :  { %13007 = vmatpush1.bf16.msra.mxu0 %v16937_v42  ;;  %13039 = vmatpush1.bf16.msra.mxu1 %v16939_v33 }
0x1aab   :  { %13009 = vmatprep.subr.bf16.mxu0 %v16943_v11  ;;  %13041 = vmatprep.subr.bf16.mxu1 %v16945_v12 }
0x1aae   :  { %13011 = vmatpush1.bf16.msra.mxu0 %v16949_v1  ;;  %13043 = vmatpush1.bf16.msra.mxu1 %v16951_v20 }
0x1aaf   :  { %13013 = vmatprep.subr.bf16.mxu0 %v16955_v10  ;;  %13045 = vmatprep.subr.bf16.mxu1 %v16957_v43 }
0x1ab2   :  { %13015 = vmatpush1.bf16.msra.mxu0 %v16961_v49  ;;  %13047 = vmatpush1.bf16.msra.mxu1 %v16963_v50 }
0x1ab3   :  { %13017 = vmatprep.subr.bf16.mxu0 %v16967_v47  ;;  %13049 = vmatprep.subr.bf16.mxu1 %v16969_v59 }
0x1ab6   :  { %13019 = vmatpush1.bf16.msra.mxu0 %v16973_v32  ;;  %13051 = vmatpush1.bf16.msra.mxu1 %v16975_v54 }
0x1ab7   :  { %13021 = vmatprep.subr.bf16.mxu0 %v16979_v13  ;;  %13053 = vmatprep.subr.bf16.mxu1 %v16981_v46 }
0x1aba   :  { %13023 = vmatpush1.bf16.msra.mxu0 %v16985_v34  ;;  %13055 = vmatpush1.bf16.msra.mxu1 %v16987_v2 }
0x1abb   :  { %13057 = vmatprep.subr.bf16.mxu0 %v16889_v58  ;;  %13089 = vmatprep.subr.bf16.mxu1 %v16891_v8 }
0x1abd   :  { %5813 = vmatmul.mubr.f32.vlgmr.msra.gmra.mrb[56].mxu0 %v15570_v0  ;;  %5884 = vmatmul.mubr.f32.vlgmr.msra.gmra.mrb[56].mxu1 %v15570_v0 }
0x1abe   :  { %13059 = vmatpush1.bf16.msra.mxu0 %v16901_v48  ;;  %13091 = vmatpush1.bf16.msra.mxu1 %v16903_v7 }
0x1abf   :  { %13061 = vmatprep.subr.bf16.mxu0 %v16905_v17  ;;  %13093 = vmatprep.subr.bf16.mxu1 %v16907_v18 }
0x1ac0   :  { %5983 = vmatprep.mubr.f32.mxu0 %v15570_v0  ;;  %6054 = vmatprep.mubr.f32.mxu1 %v15570_v0 }
0x1ac2   :  { %13063 = vmatpush1.bf16.msra.mxu0 %v16911_v21  ;;  %13095 = vmatpush1.bf16.msra.mxu1 %v16913_v63 }
0x1ac3   :  { %13065 = vmatprep.subr.bf16.mxu0 %v16917_v52  ;;  %13097 = vmatprep.subr.bf16.mxu1 %v16919_v53 }
0x1ac6   :  { %13067 = vmatpush1.bf16.msra.mxu0 %v16925_v45  ;;  %13099 = vmatpush1.bf16.msra.mxu1 %v16927_v9 }
0x1ac7   :  { %13069 = vmatprep.subr.bf16.mxu0 %v16931_v61  ;;  %13101 = vmatprep.subr.bf16.mxu1 %v16933_v6 }
0x1aca   :  { %13071 = vmatpush1.bf16.msra.mxu0 %v16937_v42  ;;  %13103 = vmatpush1.bf16.msra.mxu1 %v16939_v33 }
0x1acb   :  { %13073 = vmatprep.subr.bf16.mxu0 %v16943_v11  ;;  %13105 = vmatprep.subr.bf16.mxu1 %v16945_v12 }
0x1ace   :  { %13075 = vmatpush1.bf16.msra.mxu0 %v16949_v1  ;;  %13107 = vmatpush1.bf16.msra.mxu1 %v16951_v20 }
0x1acf   :  { %13077 = vmatprep.subr.bf16.mxu0 %v16955_v10  ;;  %13109 = vmatprep.subr.bf16.mxu1 %v16957_v43 }
0x1ad2   :  { %13079 = vmatpush1.bf16.msra.mxu0 %v16961_v49  ;;  %13111 = vmatpush1.bf16.msra.mxu1 %v16963_v50 }
0x1ad3   :  { %13081 = vmatprep.subr.bf16.mxu0 %v16967_v47  ;;  %13113 = vmatprep.subr.bf16.mxu1 %v16969_v59 }
0x1ad6   :  { %13083 = vmatpush1.bf16.msra.mxu0 %v16973_v32  ;;  %13115 = vmatpush1.bf16.msra.mxu1 %v16975_v54 }
0x1ad7   :  { %13085 = vmatprep.subr.bf16.mxu0 %v16979_v13  ;;  %13117 = vmatprep.subr.bf16.mxu1 %v16981_v46 }
0x1ada   :  { %13087 = vmatpush1.bf16.msra.mxu0 %v16985_v34  ;;  %13119 = vmatpush1.bf16.msra.mxu1 %v16987_v2 }
0x1adb   :  { %13121 = vmatprep.subr.bf16.mxu0 %v16889_v58  ;;  %13153 = vmatprep.subr.bf16.mxu1 %v16891_v8 }
0x1b70   :  { %v5672_v3 = vpop.f32.mrb[54].mxu0  ;;  %v5743_v16 = vpop.f32.mrb[54].mxu1 }
0x1b71   :  { %v5674_v15 = vpop.f32.mrb[55].mxu0  ;;  %v5745_v4 = vpop.f32.mrb[55].mxu1  ;;  %v17033_v51 = vadd.f32 %v5672_v3, %v5589_v35  ;;  %v17041_v26 = vadd.f32 %v5743_v16, %v5597_v22 }
0x1b72   :  { %v17035_v55 = vadd.f32 %v5674_v15, %v5593_v28  ;;  %v17044_v40 = vadd.f32 %v5745_v4, %v5601_v36 }
0x1b90   :  { %v5814_v24 = vpop.f32.mrb[56].mxu0  ;;  %v5885_v38 = vpop.f32.mrb[56].mxu1 }
0x1b91   :  { %v5890_v14 = vadd.f32 %v5814_v24, %v17033_v51  ;;  %v5816_v41 = vpop.f32.mrb[57].mxu0  ;;  %v5887_v39 = vpop.f32.mrb[57].mxu1  ;;  %v5892_v30 = vadd.f32 %v5885_v38, %v17041_v26 }
0x1b92   :  { %v5891_v27 = vadd.f32 %v5816_v41, %v17035_v55  ;;  %v5893_v25 = vadd.f32 %v5887_v39, %v17044_v40 }
0x1b93   :  { %v11069_v23 = vmul.f32 -1.442695, %v5890_v14  ;;  %v11071_v44 = vmul.f32 -1.442695, %v5892_v30 }
0x1b94   :  { %v11070_v5 = vmul.f32 -1.442695, %v5891_v27 }
0x1b95   :  { %15079 = vpow2.f32 %v11069_v23 }
0x1b96   :  { %15081 = vpow2.f32 %v11070_v5 }
0x1b97   :  { %15083 = vtanh.f32 %v5893_v25 }
0x1b98   :  { %15085 = vpow2.f32 %v11071_v44 }
0x1b9f   :  { %v15080_v56 = vpop.eup %15079 }
0x1ba0   :  { %v5903_v60 = vadd.f32 1.0, %v15080_v56  ;;  %v15082_v62 = vpop.eup %15081 }
0x1ba1   :  { %v5904_v3 = vadd.f32 1.0, %v15082_v62  ;;  %v15084_v15 = vpop.eup %15083 }
0x1ba2   :  { %15087 = vrcp.f32 %v5903_v60  ;;  %v15086_v19 = vpop.eup %15085 }
0x1ba3   :  { %15089 = vrcp.f32 %v5904_v3  ;;  %v5905_v24 = vadd.f32 1.0, %v15086_v19 }
0x1ba5   :  { %15091 = vrcp.f32 %v5905_v24 }
0x1bac   :  { %v15088_v16 = vpop.eup %15087 }
0x1bad   :  { %v5914_v35 = vmul.f32 %v15088_v16, %v15084_v15  ;;  %v15090_v28 = vpop.eup %15089 }
0x1bae   :  { %v5913_v38 = vmul.f32 0.0, %v15090_v28 }
0x1baf   :  { %v15092_v14 = vpop.eup %15091 }
0x1bb0   :  { %v17047_v4 = vadd.f32 %v5914_v35, %v5913_v38 }
0x1bb2   :  { %15093 = vtanh.f32 %v17047_v4 }
0x1bbc   :  { %v15094_v41 = vpop.eup %15093 }
0x1bbd   :  { %v5917_v39 = vmul.f32 %v15094_v41, %v15092_v14 }
0x1bbf   :  { %5918 = vst [vmem:[#allocation2] sm:$0x1] %v5917_v39  ;;  %5984 = vmatmul.mubr.f32.vlgmr.msra.gmra.mrb[58].mxu0 %v5917_v39  ;;  %6055 = vmatmul.mubr.f32.vlgmr.msra.gmra.mrb[58].mxu1 %v5917_v39 }
0x1bc0   :  { %13123 = vmatpush1.bf16.msra.mxu0 %v16901_v48  ;;  %13155 = vmatpush1.bf16.msra.mxu1 %v16903_v7 }
0x1bc1   :  { %13125 = vmatprep.subr.bf16.mxu0 %v16905_v17  ;;  %13157 = vmatprep.subr.bf16.mxu1 %v16907_v18 }
0x1bc2   :  { %6172 = vmatprep.mubr.f32.mxu0 %v15570_v0  ;;  %6243 = vmatprep.mubr.f32.mxu1 %v15570_v0 }
0x1bc4   :  { %13127 = vmatpush1.bf16.msra.mxu0 %v16911_v21  ;;  %13159 = vmatpush1.bf16.msra.mxu1 %v16913_v63 }
0x1bc5   :  { %13129 = vmatprep.subr.bf16.mxu0 %v16917_v52  ;;  %13161 = vmatprep.subr.bf16.mxu1 %v16919_v53 }
0x1bc8   :  { %13131 = vmatpush1.bf16.msra.mxu0 %v16925_v45  ;;  %13163 = vmatpush1.bf16.msra.mxu1 %v16927_v9 }
0x1bc9   :  { %13133 = vmatprep.subr.bf16.mxu0 %v16931_v61  ;;  %13165 = vmatprep.subr.bf16.mxu1 %v16933_v6 }
0x1bcc   :  { %13135 = vmatpush1.bf16.msra.mxu0 %v16937_v42  ;;  %13167 = vmatpush1.bf16.msra.mxu1 %v16939_v33 }
0x1bcd   :  { %13137 = vmatprep.subr.bf16.mxu0 %v16943_v11  ;;  %13169 = vmatprep.subr.bf16.mxu1 %v16945_v12 }
0x1bd0   :  { %13139 = vmatpush1.bf16.msra.mxu0 %v16949_v1  ;;  %13171 = vmatpush1.bf16.msra.mxu1 %v16951_v20 }
0x1bd1   :  { %13141 = vmatprep.subr.bf16.mxu0 %v16955_v10  ;;  %13173 = vmatprep.subr.bf16.mxu1 %v16957_v43 }
0x1bd4   :  { %13143 = vmatpush1.bf16.msra.mxu0 %v16961_v49  ;;  %13175 = vmatpush1.bf16.msra.mxu1 %v16963_v50 }
0x1bd5   :  { %13145 = vmatprep.subr.bf16.mxu0 %v16967_v47  ;;  %13177 = vmatprep.subr.bf16.mxu1 %v16969_v59 }
0x1bd8   :  { %13147 = vmatpush1.bf16.msra.mxu0 %v16973_v32  ;;  %13179 = vmatpush1.bf16.msra.mxu1 %v16975_v54 }
0x1bd9   :  { %13149 = vmatprep.subr.bf16.mxu0 %v16979_v13  ;;  %13181 = vmatprep.subr.bf16.mxu1 %v16981_v46 }
0x1bdc   :  { %13151 = vmatpush1.bf16.msra.mxu0 %v16985_v34  ;;  %13183 = vmatpush1.bf16.msra.mxu1 %v16987_v2 }
0x1bdd   :  { %13185 = vmatprep.subr.bf16.mxu0 %v16889_v58  ;;  %13217 = vmatprep.subr.bf16.mxu1 %v16891_v8 }
0x1c92   :  { %v5985_v27 = vpop.f32.mrb[58].mxu0  ;;  %v6056_v22 = vpop.f32.mrb[58].mxu1 }
0x1c93   :  { %v6065_v23 = vrot.slane %v5985_v27, 7  ;;  %v5987_v5 = vpop.f32.mrb[59].mxu0  ;;  %v6058_v36 = vpop.f32.mrb[59].mxu1  ;;  %v6067_v62 = vrot.slane %v6056_v22, 7  ;;  %v6097_v27 = vrot.slane %v17047_v4, 7 }
0x1c94   :  { %v6066_v30 = vrot.slane %v5987_v5, 7  ;;  %v6068_v3 = vrot.slane %v6058_v36, 7 }
0x1c95   :  { %v6073_v25 = vadd.f32 %v6065_v23, %v17033_v51  ;;  %v6075_v15 = vadd.f32 %v6067_v62, %v17041_v26 }
0x1c96   :  { %v6074_v44 = vadd.f32 %v6066_v30, %v17035_v55  ;;  %v6076_v19 = vadd.f32 %v6068_v3, %v17044_v40 }
0x1c97   :  { %v11072_v56 = vmul.f32 -1.442695, %v6073_v25  ;;  %v11074_v16 = vmul.f32 -1.442695, %v6075_v15 }
0x1c98   :  { %v11073_v60 = vmul.f32 -1.442695, %v6074_v44 }
0x1c99   :  { %15095 = vpow2.f32 %v11072_v56 }
0x1c9a   :  { %15097 = vpow2.f32 %v11073_v60 }
0x1c9b   :  { %15099 = vtanh.f32 %v6076_v19 }
0x1c9c   :  { %15101 = vpow2.f32 %v11074_v16 }
0x1ca3   :  { %v15096_v35 = vpop.eup %15095 }
0x1ca4   :  { %v6086_v28 = vadd.f32 1.0, %v15096_v35  ;;  %v15098_v24 = vpop.eup %15097 }
0x1ca5   :  { %v6087_v38 = vadd.f32 1.0, %v15098_v24  ;;  %v15100_v14 = vpop.eup %15099 }
0x1ca6   :  { %15103 = vrcp.f32 %v6086_v28  ;;  %v15102_v41 = vpop.eup %15101 }
0x1ca7   :  { %15105 = vrcp.f32 %v6087_v38  ;;  %v6088_v5 = vadd.f32 1.0, %v15102_v41 }
0x1ca9   :  { %15107 = vrcp.f32 %v6088_v5 }
0x1cb0   :  { %v15104_v39 = vpop.eup %15103 }
0x1cb1   :  { %v6100_v22 = vmul.f32 %v15104_v39, %v15100_v14  ;;  %v15106_v23 = vpop.eup %15105 }
0x1cb2   :  { %v6099_v36 = vmul.f32 %v15106_v23, %v6097_v27 }
0x1cb3   :  { %v15108_v25 = vpop.eup %15107 }
0x1cb4   :  { %v17089_v30 = vadd.f32 %v6100_v22, %v6099_v36 }
0x1cb6   :  { %15109 = vtanh.f32 %v17089_v30 }
0x1cc0   :  { %v15110_v44 = vpop.eup %15109 }
0x1cc1   :  { %v6103_v56 = vmul.f32 %v15110_v44, %v15108_v25 }
0x1cc3   :  { %6104 = vst [vmem:[#allocation2] sm:$0x2] %v6103_v56  ;;  %v6106_v60 = vrot.slane %v6103_v56, 1 }
0x1cc5   :  { %6173 = vmatmul.mubr.f32.vlgmr.msra.gmra.mrb[60].mxu0 %v6106_v60  ;;  %6244 = vmatmul.mubr.f32.vlgmr.msra.gmra.mrb[60].mxu1 %v6106_v60 }
0x1cc6   :  { %13187 = vmatpush1.bf16.msra.mxu0 %v16901_v48  ;;  %13219 = vmatpush1.bf16.msra.mxu1 %v16903_v7 }
0x1cc7   :  { %13189 = vmatprep.subr.bf16.mxu0 %v16905_v17  ;;  %13221 = vmatprep.subr.bf16.mxu1 %v16907_v18 }
0x1cc8   :  { %6361 = vmatprep.mubr.f32.mxu0 %v15570_v0  ;;  %6432 = vmatprep.mubr.f32.mxu1 %v15570_v0 }
0x1cca   :  { %13191 = vmatpush1.bf16.msra.mxu0 %v16911_v21  ;;  %13223 = vmatpush1.bf16.msra.mxu1 %v16913_v63 }
0x1ccb   :  { %13193 = vmatprep.subr.bf16.mxu0 %v16917_v52  ;;  %13225 = vmatprep.subr.bf16.mxu1 %v16919_v53 }
0x1cce   :  { %13195 = vmatpush1.bf16.msra.mxu0 %v16925_v45  ;;  %13227 = vmatpush1.bf16.msra.mxu1 %v16927_v9 }
0x1ccf   :  { %13197 = vmatprep.subr.bf16.mxu0 %v16931_v61  ;;  %13229 = vmatprep.subr.bf16.mxu1 %v16933_v6 }
0x1cd2   :  { %13199 = vmatpush1.bf16.msra.mxu0 %v16937_v42  ;;  %13231 = vmatpush1.bf16.msra.mxu1 %v16939_v33 }
0x1cd3   :  { %13201 = vmatprep.subr.bf16.mxu0 %v16943_v11  ;;  %13233 = vmatprep.subr.bf16.mxu1 %v16945_v12 }
0x1cd6   :  { %13203 = vmatpush1.bf16.msra.mxu0 %v16949_v1  ;;  %13235 = vmatpush1.bf16.msra.mxu1 %v16951_v20 }
0x1cd7   :  { %13205 = vmatprep.subr.bf16.mxu0 %v16955_v10  ;;  %13237 = vmatprep.subr.bf16.mxu1 %v16957_v43 }
0x1cda   :  { %13207 = vmatpush1.bf16.msra.mxu0 %v16961_v49  ;;  %13239 = vmatpush1.bf16.msra.mxu1 %v16963_v50 }
0x1cdb   :  { %13209 = vmatprep.subr.bf16.mxu0 %v16967_v47  ;;  %13241 = vmatprep.subr.bf16.mxu1 %v16969_v59 }
0x1cde   :  { %13211 = vmatpush1.bf16.msra.mxu0 %v16973_v32  ;;  %13243 = vmatpush1.bf16.msra.mxu1 %v16975_v54 }
0x1cdf   :  { %13213 = vmatprep.subr.bf16.mxu0 %v16979_v13  ;;  %13245 = vmatprep.subr.bf16.mxu1 %v16981_v46 }
0x1ce2   :  { %13215 = vmatpush1.bf16.msra.mxu0 %v16985_v34  ;;  %13247 = vmatpush1.bf16.msra.mxu1 %v16987_v2 }
0x1ce3   :  { %13249 = vmatprep.subr.bf16.mxu0 %v16889_v58  ;;  %13281 = vmatprep.subr.bf16.mxu1 %v16891_v8 }
0x1d98   :  { %v6174_v4 = vpop.f32.mrb[60].mxu0  ;;  %v6245_v62 = vpop.f32.mrb[60].mxu1 }
0x1d99   :  { %v6254_v3 = vrot.slane %v6174_v4, 6  ;;  %v6176_v15 = vpop.f32.mrb[61].mxu0  ;;  %v6247_v19 = vpop.f32.mrb[61].mxu1  ;;  %v6256_v14 = vrot.slane %v6245_v62, 6  ;;  %v6286_v4 = vrot.slane %v17089_v30, 7 }
0x1d9a   :  { %v6255_v16 = vrot.slane %v6176_v15, 6  ;;  %v6257_v41 = vrot.slane %v6247_v19, 6 }
0x1d9b   :  { %v6262_v35 = vadd.f32 %v6254_v3, %v17033_v51  ;;  %v6264_v39 = vadd.f32 %v6256_v14, %v17041_v26 }
0x1d9c   :  { %v6263_v28 = vadd.f32 %v6255_v16, %v17035_v55  ;;  %v6265_v27 = vadd.f32 %v6257_v41, %v17044_v40 }
0x1d9d   :  { %v11075_v24 = vmul.f32 -1.442695, %v6262_v35  ;;  %v11077_v22 = vmul.f32 -1.442695, %v6264_v39 }
0x1d9e   :  { %v11076_v38 = vmul.f32 -1.442695, %v6263_v28 }
0x1d9f   :  { %15111 = vpow2.f32 %v11075_v24 }
0x1da0   :  { %15113 = vpow2.f32 %v11076_v38 }
0x1da1   :  { %15115 = vtanh.f32 %v6265_v27 }
0x1da2   :  { %15117 = vpow2.f32 %v11077_v22 }
0x1da9   :  { %v15112_v23 = vpop.eup %15111 }
0x1daa   :  { %v6275_v5 = vadd.f32 1.0, %v15112_v23  ;;  %v15114_v36 = vpop.eup %15113 }
0x1dab   :  { %v6276_v25 = vadd.f32 1.0, %v15114_v36  ;;  %v15116_v44 = vpop.eup %15115 }
0x1dac   :  { %15119 = vrcp.f32 %v6275_v5  ;;  %v15118_v56 = vpop.eup %15117 }
0x1dad   :  { %15121 = vrcp.f32 %v6276_v25  ;;  %v6277_v15 = vadd.f32 1.0, %v15118_v56 }
0x1daf   :  { %15123 = vrcp.f32 %v6277_v15 }
0x1db6   :  { %v15120_v60 = vpop.eup %15119 }
0x1db7   :  { %v6289_v62 = vmul.f32 %v15120_v60, %v15116_v44  ;;  %v15122_v3 = vpop.eup %15121 }
0x1db8   :  { %v6288_v19 = vmul.f32 %v15122_v3, %v6286_v4 }
0x1db9   :  { %v15124_v35 = vpop.eup %15123 }
0x1dba   :  { %v17131_v16 = vadd.f32 %v6289_v62, %v6288_v19 }
0x1dbc   :  { %15125 = vtanh.f32 %v17131_v16 }
0x1dc6   :  { %v15126_v28 = vpop.eup %15125 }
0x1dc7   :  { %v6292_v24 = vmul.f32 %v15126_v28, %v15124_v35 }
0x1dc9   :  { %6293 = vst [vmem:[#allocation2] sm:$0x4] %v6292_v24  ;;  %v6295_v38 = vrot.slane %v6292_v24, 2 }
0x1dcb   :  { %6362 = vmatmul.mubr.f32.vlgmr.msra.gmra.mrb[62].mxu0 %v6295_v38  ;;  %6433 = vmatmul.mubr.f32.vlgmr.msra.gmra.mrb[62].mxu1 %v6295_v38 }
0x1dcc   :  { %13251 = vmatpush1.bf16.msra.mxu0 %v16901_v48  ;;  %13283 = vmatpush1.bf16.msra.mxu1 %v16903_v7 }
0x1dcd   :  { %13253 = vmatprep.subr.bf16.mxu0 %v16905_v17  ;;  %13285 = vmatprep.subr.bf16.mxu1 %v16907_v18 }
0x1dce   :  { %6550 = vmatprep.mubr.f32.mxu0 %v15570_v0  ;;  %6621 = vmatprep.mubr.f32.mxu1 %v15570_v0 }
0x1dd0   :  { %13255 = vmatpush1.bf16.msra.mxu0 %v16911_v21  ;;  %13287 = vmatpush1.bf16.msra.mxu1 %v16913_v63 }
0x1dd1   :  { %13257 = vmatprep.subr.bf16.mxu0 %v16917_v52  ;;  %13289 = vmatprep.subr.bf16.mxu1 %v16919_v53 }
0x1dd4   :  { %13259 = vmatpush1.bf16.msra.mxu0 %v16925_v45  ;;  %13291 = vmatpush1.bf16.msra.mxu1 %v16927_v9 }
0x1dd5   :  { %13261 = vmatprep.subr.bf16.mxu0 %v16931_v61  ;;  %13293 = vmatprep.subr.bf16.mxu1 %v16933_v6 }
0x1dd8   :  { %13263 = vmatpush1.bf16.msra.mxu0 %v16937_v42  ;;  %13295 = vmatpush1.bf16.msra.mxu1 %v16939_v33 }
0x1dd9   :  { %13265 = vmatprep.subr.bf16.mxu0 %v16943_v11  ;;  %13297 = vmatprep.subr.bf16.mxu1 %v16945_v12 }
0x1ddc   :  { %13267 = vmatpush1.bf16.msra.mxu0 %v16949_v1  ;;  %13299 = vmatpush1.bf16.msra.mxu1 %v16951_v20 }
0x1ddd   :  { %13269 = vmatprep.subr.bf16.mxu0 %v16955_v10  ;;  %13301 = vmatprep.subr.bf16.mxu1 %v16957_v43 }
0x1de0   :  { %13271 = vmatpush1.bf16.msra.mxu0 %v16961_v49  ;;  %13303 = vmatpush1.bf16.msra.mxu1 %v16963_v50 }
0x1de1   :  { %13273 = vmatprep.subr.bf16.mxu0 %v16967_v47  ;;  %13305 = vmatprep.subr.bf16.mxu1 %v16969_v59 }
0x1de4   :  { %13275 = vmatpush1.bf16.msra.mxu0 %v16973_v32  ;;  %13307 = vmatpush1.bf16.msra.mxu1 %v16975_v54 }
0x1de5   :  { %13277 = vmatprep.subr.bf16.mxu0 %v16979_v13  ;;  %13309 = vmatprep.subr.bf16.mxu1 %v16981_v46 }
0x1de8   :  { %13279 = vmatpush1.bf16.msra.mxu0 %v16985_v34  ;;  %13311 = vmatpush1.bf16.msra.mxu1 %v16987_v2 }
0x1de9   :  { %13313 = vmatprep.subr.bf16.mxu0 %v16889_v58  ;;  %13345 = vmatprep.subr.bf16.mxu1 %v16891_v8 }
0x1e9e   :  { %v6363_v30 = vpop.f32.mrb[62].mxu0  ;;  %v6434_v14 = vpop.f32.mrb[62].mxu1 }
0x1e9f   :  { %v6443_v41 = vrot.slane %v6363_v30, 5  ;;  %v6365_v39 = vpop.f32.mrb[63].mxu0  ;;  %v6436_v27 = vpop.f32.mrb[63].mxu1  ;;  %v6445_v44 = vrot.slane %v6434_v14, 5  ;;  %v6475_v30 = vrot.slane %v17131_v16, 7 }
0x1ea0   :  { %v6444_v22 = vrot.slane %v6365_v39, 5  ;;  %v6446_v56 = vrot.slane %v6436_v27, 5 }
0x1ea1   :  { %v6451_v23 = vadd.f32 %v6443_v41, %v17033_v51  ;;  %v6453_v60 = vadd.f32 %v6445_v44, %v17041_v26 }
0x1ea2   :  { %v6452_v5 = vadd.f32 %v6444_v22, %v17035_v55  ;;  %v6454_v4 = vadd.f32 %v6446_v56, %v17044_v40 }
0x1ea3   :  { %v11078_v36 = vmul.f32 -1.442695, %v6451_v23  ;;  %v11080_v62 = vmul.f32 -1.442695, %v6453_v60 }
0x1ea4   :  { %v11079_v25 = vmul.f32 -1.442695, %v6452_v5 }
0x1ea5   :  { %15127 = vpow2.f32 %v11078_v36 }
0x1ea6   :  { %15129 = vpow2.f32 %v11079_v25 }
0x1ea7   :  { %15131 = vtanh.f32 %v6454_v4 }
0x1ea8   :  { %15133 = vpow2.f32 %v11080_v62 }
0x1eaf   :  { %v15128_v3 = vpop.eup %15127 }
0x1eb0   :  { %v6464_v15 = vadd.f32 1.0, %v15128_v3  ;;  %v15130_v19 = vpop.eup %15129 }
0x1eb1   :  { %v6465_v35 = vadd.f32 1.0, %v15130_v19  ;;  %v15132_v28 = vpop.eup %15131 }
0x1eb2   :  { %15135 = vrcp.f32 %v6464_v15  ;;  %v15134_v24 = vpop.eup %15133 }
0x1eb3   :  { %15137 = vrcp.f32 %v6465_v35  ;;  %v6466_v39 = vadd.f32 1.0, %v15134_v24 }
0x1eb5   :  { %15139 = vrcp.f32 %v6466_v39 }
0x1ebc   :  { %v15136_v38 = vpop.eup %15135 }
0x1ebd   :  { %v6478_v14 = vmul.f32 %v15136_v38, %v15132_v28  ;;  %v15138_v41 = vpop.eup %15137 }
0x1ebe   :  { %v6477_v27 = vmul.f32 %v15138_v41, %v6475_v30 }
0x1ebf   :  { %v15140_v23 = vpop.eup %15139 }
0x1ec0   :  { %v17173_v22 = vadd.f32 %v6478_v14, %v6477_v27 }
0x1ec2   :  { %15141 = vtanh.f32 %v17173_v22 }
0x1ecc   :  { %v15142_v5 = vpop.eup %15141 }
0x1ecd   :  { %v6481_v36 = vmul.f32 %v15142_v5, %v15140_v23 }
0x1ecf   :  { %6482 = vst [vmem:[#allocation2] sm:$0x8] %v6481_v36  ;;  %v6484_v25 = vrot.slane %v6481_v36, 3 }
0x1ed1   :  { %6551 = vmatmul.mubr.f32.vlgmr.msra.gmra.mrb[64].mxu0 %v6484_v25  ;;  %6622 = vmatmul.mubr.f32.vlgmr.msra.gmra.mrb[64].mxu1 %v6484_v25 }
0x1ed2   :  { %13315 = vmatpush1.bf16.msra.mxu0 %v16901_v48  ;;  %13347 = vmatpush1.bf16.msra.mxu1 %v16903_v7 }
0x1ed3   :  { %13317 = vmatprep.subr.bf16.mxu0 %v16905_v17  ;;  %13349 = vmatprep.subr.bf16.mxu1 %v16907_v18 }
0x1ed4   :  { %6739 = vmatprep.mubr.f32.mxu0 %v15570_v0  ;;  %6810 = vmatprep.mubr.f32.mxu1 %v15570_v0 }
0x1ed6   :  { %13319 = vmatpush1.bf16.msra.mxu0 %v16911_v21  ;;  %13351 = vmatpush1.bf16.msra.mxu1 %v16913_v63 }
0x1ed7   :  { %13321 = vmatprep.subr.bf16.mxu0 %v16917_v52  ;;  %13353 = vmatprep.subr.bf16.mxu1 %v16919_v53 }
0x1eda   :  { %13323 = vmatpush1.bf16.msra.mxu0 %v16925_v45  ;;  %13355 = vmatpush1.bf16.msra.mxu1 %v16927_v9 }
0x1edb   :  { %13325 = vmatprep.subr.bf16.mxu0 %v16931_v61  ;;  %13357 = vmatprep.subr.bf16.mxu1 %v16933_v6 }
0x1ede   :  { %13327 = vmatpush1.bf16.msra.mxu0 %v16937_v42  ;;  %13359 = vmatpush1.bf16.msra.mxu1 %v16939_v33 }
0x1edf   :  { %13329 = vmatprep.subr.bf16.mxu0 %v16943_v11  ;;  %13361 = vmatprep.subr.bf16.mxu1 %v16945_v12 }
0x1ee2   :  { %13331 = vmatpush1.bf16.msra.mxu0 %v16949_v1  ;;  %13363 = vmatpush1.bf16.msra.mxu1 %v16951_v20 }
0x1ee3   :  { %13333 = vmatprep.subr.bf16.mxu0 %v16955_v10  ;;  %13365 = vmatprep.subr.bf16.mxu1 %v16957_v43 }
0x1ee6   :  { %13335 = vmatpush1.bf16.msra.mxu0 %v16961_v49  ;;  %13367 = vmatpush1.bf16.msra.mxu1 %v16963_v50 }
0x1ee7   :  { %13337 = vmatprep.subr.bf16.mxu0 %v16967_v47  ;;  %13369 = vmatprep.subr.bf16.mxu1 %v16969_v59 }
0x1eea   :  { %13339 = vmatpush1.bf16.msra.mxu0 %v16973_v32  ;;  %13371 = vmatpush1.bf16.msra.mxu1 %v16975_v54 }
0x1eeb   :  { %13341 = vmatprep.subr.bf16.mxu0 %v16979_v13  ;;  %13373 = vmatprep.subr.bf16.mxu1 %v16981_v46 }
0x1eee   :  { %13343 = vmatpush1.bf16.msra.mxu0 %v16985_v34  ;;  %13375 = vmatpush1.bf16.msra.mxu1 %v16987_v2 }
0x1eef   :  { %13377 = vmatprep.subr.bf16.mxu0 %v16889_v58  ;;  %13409 = vmatprep.subr.bf16.mxu1 %v16891_v8 }
0x1fa4   :  { %v6552_v16 = vpop.f32.mrb[64].mxu0  ;;  %v6623_v44 = vpop.f32.mrb[64].mxu1 }
0x1fa5   :  { %v6632_v56 = vrot.slane %v6552_v16, 4  ;;  %v6554_v60 = vpop.f32.mrb[65].mxu0  ;;  %v6625_v4 = vpop.f32.mrb[65].mxu1  ;;  %v6634_v28 = vrot.slane %v6623_v44, 4  ;;  %v6664_v16 = vrot.slane %v17173_v22, 7 }
0x1fa6   :  { %v6633_v62 = vrot.slane %v6554_v60, 4  ;;  %v6635_v24 = vrot.slane %v6625_v4, 4 }
0x1fa7   :  { %v6640_v3 = vadd.f32 %v6632_v56, %v17033_v51  ;;  %v6642_v38 = vadd.f32 %v6634_v28, %v17041_v26 }
0x1fa8   :  { %v6641_v15 = vadd.f32 %v6633_v62, %v17035_v55  ;;  %v6643_v30 = vadd.f32 %v6635_v24, %v17044_v40 }
0x1fa9   :  { %v11081_v19 = vmul.f32 -1.442695, %v6640_v3  ;;  %v11083_v14 = vmul.f32 -1.442695, %v6642_v38 }
0x1faa   :  { %v11082_v35 = vmul.f32 -1.442695, %v6641_v15 }
0x1fab   :  { %15143 = vpow2.f32 %v11081_v19 }
0x1fac   :  { %15145 = vpow2.f32 %v11082_v35 }
0x1fad   :  { %15147 = vtanh.f32 %v6643_v30 }
0x1fae   :  { %15149 = vpow2.f32 %v11083_v14 }
0x1fb5   :  { %v15144_v41 = vpop.eup %15143 }
0x1fb6   :  { %v6653_v39 = vadd.f32 1.0, %v15144_v41  ;;  %v15146_v27 = vpop.eup %15145 }
0x1fb7   :  { %v6654_v23 = vadd.f32 1.0, %v15146_v27  ;;  %v15148_v5 = vpop.eup %15147 }
0x1fb8   :  { %15151 = vrcp.f32 %v6653_v39  ;;  %v15150_v36 = vpop.eup %15149 }
0x1fb9   :  { %15153 = vrcp.f32 %v6654_v23  ;;  %v6655_v60 = vadd.f32 1.0, %v15150_v36 }
0x1fbb   :  { %15155 = vrcp.f32 %v6655_v60 }
0x1fc2   :  { %v15152_v25 = vpop.eup %15151 }
0x1fc3   :  { %v6667_v44 = vmul.f32 %v15152_v25, %v15148_v5  ;;  %v15154_v56 = vpop.eup %15153 }
0x1fc4   :  { %v6666_v4 = vmul.f32 %v15154_v56, %v6664_v16 }
0x1fc5   :  { %v15156_v3 = vpop.eup %15155 }
0x1fc6   :  { %v17215_v62 = vadd.f32 %v6667_v44, %v6666_v4 }
0x1fc8   :  { %15157 = vtanh.f32 %v17215_v62 }
0x1fd2   :  { %v15158_v15 = vpop.eup %15157 }
0x1fd3   :  { %v6670_v19 = vmul.f32 %v15158_v15, %v15156_v3 }
0x1fd5   :  { %6671 = vst [vmem:[#allocation2] sm:$0x10] %v6670_v19  ;;  %v6673_v35 = vrot.slane %v6670_v19, 4  ;;  %v6853_v19 = vrot.slane %v17215_v62, 7 }
0x1fd7   :  { %6740 = vmatmul.mubr.f32.vlgmr.msra.gmra.mrb[66].mxu0 %v6673_v35  ;;  %6811 = vmatmul.mubr.f32.vlgmr.msra.gmra.mrb[66].mxu1 %v6673_v35 }
0x1fd8   :  { %13379 = vmatpush1.bf16.msra.mxu0 %v16901_v48  ;;  %13411 = vmatpush1.bf16.msra.mxu1 %v16903_v7 }
0x1fd9   :  { %13381 = vmatprep.subr.bf16.mxu0 %v16905_v17  ;;  %13413 = vmatprep.subr.bf16.mxu1 %v16907_v18 }
0x1fda   :  { %6928 = vmatprep.mubr.f32.mxu0 %v15570_v0  ;;  %6999 = vmatprep.mubr.f32.mxu1 %v15570_v0 }
0x1fdc   :  { %13383 = vmatpush1.bf16.msra.mxu0 %v16911_v21  ;;  %13415 = vmatpush1.bf16.msra.mxu1 %v16913_v63 }
0x1fdd   :  { %13385 = vmatprep.subr.bf16.mxu0 %v16917_v52  ;;  %13417 = vmatprep.subr.bf16.mxu1 %v16919_v53 }
0x1fe0   :  { %13387 = vmatpush1.bf16.msra.mxu0 %v16925_v45  ;;  %13419 = vmatpush1.bf16.msra.mxu1 %v16927_v9 }
0x1fe1   :  { %13389 = vmatprep.subr.bf16.mxu0 %v16931_v61  ;;  %13421 = vmatprep.subr.bf16.mxu1 %v16933_v6 }
0x1fe4   :  { %13391 = vmatpush1.bf16.msra.mxu0 %v16937_v42  ;;  %13423 = vmatpush1.bf16.msra.mxu1 %v16939_v33 }
0x1fe5   :  { %13393 = vmatprep.subr.bf16.mxu0 %v16943_v11  ;;  %13425 = vmatprep.subr.bf16.mxu1 %v16945_v12 }
0x1fe8   :  { %13395 = vmatpush1.bf16.msra.mxu0 %v16949_v1  ;;  %13427 = vmatpush1.bf16.msra.mxu1 %v16951_v20 }
0x1fe9   :  { %13397 = vmatprep.subr.bf16.mxu0 %v16955_v10  ;;  %13429 = vmatprep.subr.bf16.mxu1 %v16957_v43 }
0x1fec   :  { %13399 = vmatpush1.bf16.msra.mxu0 %v16961_v49  ;;  %13431 = vmatpush1.bf16.msra.mxu1 %v16963_v50 }
0x1fed   :  { %13401 = vmatprep.subr.bf16.mxu0 %v16967_v47  ;;  %13433 = vmatprep.subr.bf16.mxu1 %v16969_v59 }
0x1ff0   :  { %13403 = vmatpush1.bf16.msra.mxu0 %v16973_v32  ;;  %13435 = vmatpush1.bf16.msra.mxu1 %v16975_v54 }
0x1ff1   :  { %13405 = vmatprep.subr.bf16.mxu0 %v16979_v13  ;;  %13437 = vmatprep.subr.bf16.mxu1 %v16981_v46 }
0x1ff4   :  { %13407 = vmatpush1.bf16.msra.mxu0 %v16985_v34  ;;  %13439 = vmatpush1.bf16.msra.mxu1 %v16987_v2 }
0x1ff5   :  { %13441 = vmatprep.subr.bf16.mxu0 %v16889_v58  ;;  %13473 = vmatprep.subr.bf16.mxu1 %v16891_v8 }
0x20aa   :  { %v6741_v22 = vpop.f32.mrb[66].mxu0  ;;  %v6812_v28 = vpop.f32.mrb[66].mxu1 }
0x20ab   :  { %v6821_v24 = vrot.slane %v6741_v22, 3  ;;  %v6743_v38 = vpop.f32.mrb[67].mxu0  ;;  %v6814_v30 = vpop.f32.mrb[67].mxu1  ;;  %v6823_v5 = vrot.slane %v6812_v28, 3 }
0x20ac   :  { %v6822_v14 = vrot.slane %v6743_v38, 3  ;;  %v6824_v36 = vrot.slane %v6814_v30, 3 }
0x20ad   :  { %v6829_v41 = vadd.f32 %v6821_v24, %v17033_v51  ;;  %v6831_v58 = vadd.f32 %v6823_v5, %v17041_v26  ;;  %v7270_v5 = vld [vmem:[#allocation6 + $0x10a8] sm:$0xff] }
0x20ae   :  { %v6830_v39 = vadd.f32 %v6822_v14, %v17035_v55  ;;  %v6832_v8 = vadd.f32 %v6824_v36, %v17044_v40  ;;  %v7268_v36 = vld [vmem:[#allocation6 + $0x1098] sm:$0xff] }
0x20af   :  { %v11084_v27 = vmul.f32 -1.442695, %v6829_v41  ;;  %v11086_v25 = vmul.f32 -1.442695, %v6831_v58 }
0x20b0   :  { %v11085_v23 = vmul.f32 -1.442695, %v6830_v39 }
0x20b1   :  { %15159 = vpow2.f32 %v11084_v27 }
0x20b2   :  { %15161 = vpow2.f32 %v11085_v23  ;;  %v7266_v23 = vld [vmem:[#allocation6 + $0x1088] sm:$0xff] }
0x20b3   :  { %15163 = vtanh.f32 %v6832_v8  ;;  %v13504_v58 = vpack.c.bf16 %v7270_v5, %v7266_v23  ;;  %v7272_v8 = vld [vmem:[#allocation6 + $0x10b8] sm:$0xff] }
0x20b4   :  { %15165 = vpow2.f32 %v11086_v25  ;;  %v7265_v25 = vld [vmem:[#allocation6 + $0x1080] sm:$0xff]  ;;  %v7284_v23 = vld [vmem:[#allocation6 + $0x1118] sm:$0xff] }
0x20bb   :  { %v15160_v16 = vpop.eup %15159 }
0x20bc   :  { %v6842_v44 = vadd.f32 1.0, %v15160_v16  ;;  %v15162_v56 = vpop.eup %15161  ;;  %v7269_v16 = vld [vmem:[#allocation6 + $0x10a0] sm:$0xff] }
0x20bd   :  { %v6843_v60 = vadd.f32 1.0, %v15162_v56  ;;  %v15164_v4 = vpop.eup %15163  ;;  %v13506_v56 = vpack.c.bf16 %v7269_v16, %v7265_v25 }
0x20be   :  { %15167 = vrcp.f32 %v6842_v44  ;;  %v15166_v3 = vpop.eup %15165  ;;  %v13536_v44 = vpack.c.bf16 %v7272_v8, %v7268_v36  ;;  %v7288_v36 = vld [vmem:[#allocation6 + $0x1138] sm:$0xff]  ;;  %v7285_v8 = vld [vmem:[#allocation6 + $0x1120] sm:$0xff] }
0x20bf   :  { %15169 = vrcp.f32 %v6843_v60  ;;  %v6844_v28 = vadd.f32 1.0, %v15166_v3  ;;  %v7267_v60 = vld [vmem:[#allocation6 + $0x1090] sm:$0xff]  ;;  %v7274_v3 = vld [vmem:[#allocation6 + $0x10c8] sm:$0xff]  ;;  %v13544_v25 = vpack.c.bf16 %v7288_v36, %v7284_v23 }
0x20c0   :  { %v7326_v23 = vld [vmem:[#allocation6 + $0x1268] sm:$0xff] }
0x20c1   :  { %15171 = vrcp.f32 %v6844_v28 }
0x20c8   :  { %v15168_v15 = vpop.eup %15167 }
0x20c9   :  { %v6856_v35 = vmul.f32 %v15168_v15, %v15164_v4  ;;  %v15170_v22 = vpop.eup %15169  ;;  %v7271_v4 = vld [vmem:[#allocation6 + $0x10b0] sm:$0xff] }
0x20ca   :  { %v6855_v24 = vmul.f32 %v15170_v22, %v6853_v19  ;;  %v13538_v15 = vpack.c.bf16 %v7271_v4, %v7267_v60  ;;  %v7278_v19 = vld [vmem:[#allocation6 + $0x10e8] sm:$0xff]  ;;  %v7280_v22 = vld [vmem:[#allocation6 + $0x10f8] sm:$0xff] }
0x20cb   :  { %v15172_v30 = vpop.eup %15171  ;;  %v13508_v28 = vpack.c.bf16 %v7278_v19, %v7274_v3  ;;  %v7290_v4 = vld [vmem:[#allocation6 + $0x1148] sm:$0xff] }
0x20cc   :  { %v17257_v38 = vadd.f32 %v6856_v35, %v6855_v24  ;;  %v7276_v35 = vld [vmem:[#allocation6 + $0x10d8] sm:$0xff]  ;;  %v7294_v3 = vld [vmem:[#allocation6 + $0x1168] sm:$0xff] }
0x20cd   :  { %v13540_v24 = vpack.c.bf16 %v7280_v22, %v7276_v35  ;;  %v13516_v19 = vpack.c.bf16 %v7294_v3, %v7290_v4  ;;  %v7296_v35 = vld [vmem:[#allocation6 + $0x1178] sm:$0xff]  ;;  %v7289_v22 = vld [vmem:[#allocation6 + $0x1140] sm:$0xff]  ;;  %v7330_v4 = vld [vmem:[#allocation6 + $0x1288] sm:$0xff] }
0x20ce   :  { %15173 = vtanh.f32 %v17257_v38  ;;  %v7334_v3 = vld [vmem:[#allocation6 + $0x12a8] sm:$0xff] }
0x20d8   :  { %v15174_v14 = vpop.eup %15173 }
0x20d9   :  { %v6859_v41 = vmul.f32 %v15174_v14, %v15172_v30  ;;  %v7277_v30 = vld [vmem:[#allocation6 + $0x10e0] sm:$0xff]  ;;  %v7275_v14 = vld [vmem:[#allocation6 + $0x10d0] sm:$0xff] }
0x20db   :  { %6860 = vst [vmem:[#allocation2] sm:$0x20] %v6859_v41  ;;  %v6862_v39 = vrot.slane %v6859_v41, 5 }
0x20dd   :  { %6929 = vmatmul.mubr.f32.vlgmr.msra.gmra.mrb[68].mxu0 %v6862_v39  ;;  %7000 = vmatmul.mubr.f32.vlgmr.msra.gmra.mrb[68].mxu1 %v6862_v39  ;;  %v7279_v39 = vld [vmem:[#allocation6 + $0x10f0] sm:$0xff] }
0x20de   :  { %13443 = vmatpush1.bf16.msra.mxu0 %v16901_v48  ;;  %13475 = vmatpush1.bf16.msra.mxu1 %v16903_v7 }
0x20df   :  { %13445 = vmatprep.subr.bf16.mxu0 %v16905_v17  ;;  %13477 = vmatprep.subr.bf16.mxu1 %v16907_v18 }
0x20e0   :  { %7117 = vmatprep.mubr.f32.mxu0 %v15570_v0  ;;  %7188 = vmatprep.mubr.f32.mxu1 %v15570_v0 }
0x20e2   :  { %13447 = vmatpush1.bf16.msra.mxu0 %v16911_v21  ;;  %13479 = vmatpush1.bf16.msra.mxu1 %v16913_v63 }
0x20e3   :  { %13449 = vmatprep.subr.bf16.mxu0 %v16917_v52  ;;  %13481 = vmatprep.subr.bf16.mxu1 %v16919_v53 }
0x20e6   :  { %13451 = vmatpush1.bf16.msra.mxu0 %v16925_v45  ;;  %13483 = vmatpush1.bf16.msra.mxu1 %v16927_v9 }
0x20e7   :  { %13453 = vmatprep.subr.bf16.mxu0 %v16931_v61  ;;  %13485 = vmatprep.subr.bf16.mxu1 %v16933_v6 }
0x20ea   :  { %13455 = vmatpush1.bf16.msra.mxu0 %v16937_v42  ;;  %13487 = vmatpush1.bf16.msra.mxu1 %v16939_v33 }
0x20eb   :  { %13457 = vmatprep.subr.bf16.mxu0 %v16943_v11  ;;  %13489 = vmatprep.subr.bf16.mxu1 %v16945_v12 }
0x20ee   :  { %13459 = vmatpush1.bf16.msra.mxu0 %v16949_v1  ;;  %13491 = vmatpush1.bf16.msra.mxu1 %v16951_v20 }
0x20ef   :  { %13461 = vmatprep.subr.bf16.mxu0 %v16955_v10  ;;  %13493 = vmatprep.subr.bf16.mxu1 %v16957_v43 }
0x20f2   :  { %13463 = vmatpush1.bf16.msra.mxu0 %v16961_v49  ;;  %13495 = vmatpush1.bf16.msra.mxu1 %v16963_v50 }
0x20f3   :  { %13465 = vmatprep.subr.bf16.mxu0 %v16967_v47  ;;  %13497 = vmatprep.subr.bf16.mxu1 %v16969_v59  ;;  %v7042_v47 = vrot.slane %v17257_v38, 7  ;;  %v7273_v38 = vld [vmem:[#allocation6 + $0x10c0] sm:$0xff] }
0x20f4   :  { %v13510_v41 = vpack.c.bf16 %v7277_v30, %v7273_v38  ;;  %v7291_v30 = vld [vmem:[#allocation6 + $0x1150] sm:$0xff] }
0x20f6   :  { %13467 = vmatpush1.bf16.msra.mxu0 %v16973_v32  ;;  %13499 = vmatpush1.bf16.msra.mxu1 %v16975_v54 }
0x20f7   :  { %13469 = vmatprep.subr.bf16.mxu0 %v16979_v13  ;;  %13501 = vmatprep.subr.bf16.mxu1 %v16981_v46 }
0x20fa   :  { %13471 = vmatpush1.bf16.msra.mxu0 %v16985_v34  ;;  %13503 = vmatpush1.bf16.msra.mxu1 %v16987_v2 }
0x20fb   :  { %13505 = vmatprep.subr.bf16.mxu0 %v13504_v58  ;;  %13537 = vmatprep.subr.bf16.mxu1 %v13536_v44  ;;  %v7281_v58 = vld [vmem:[#allocation6 + $0x1100] sm:$0xff]  ;;  %v7283_v44 = vld [vmem:[#allocation6 + $0x1110] sm:$0xff] }
0x20fc   :  { %v13514_v16 = vpack.c.bf16 %v7285_v8, %v7281_v58  ;;  %v7324_v58 = vld [vmem:[#allocation6 + $0x1258] sm:$0xff] }
0x20fd   :  { %v7328_v8 = vld [vmem:[#allocation6 + $0x1278] sm:$0xff] }
0x21b0   :  { %v6930_v48 = vpop.f32.mrb[68].mxu0  ;;  %v7001_v7 = vpop.f32.mrb[68].mxu1 }
0x21b1   :  { %v7010_v17 = vrot.slane %v6930_v48, 2  ;;  %v6932_v18 = vpop.f32.mrb[69].mxu0  ;;  %v7003_v21 = vpop.f32.mrb[69].mxu1  ;;  %v7012_v61 = vrot.slane %v7001_v7, 2  ;;  %v13542_v48 = vpack.c.bf16 %v7279_v39, %v7275_v14  ;;  %v7295_v14 = vld [vmem:[#allocation6 + $0x1170] sm:$0xff]  ;;  %v7298_v39 = vld [vmem:[#allocation6 + $0x1188] sm:$0xff] }
0x21b2   :  { %v7011_v63 = vrot.slane %v6932_v18, 2  ;;  %v7013_v6 = vrot.slane %v7003_v21, 2 }
0x21b3   :  { %v7018_v52 = vadd.f32 %v7010_v17, %v17033_v51  ;;  %v7020_v42 = vadd.f32 %v7012_v61, %v17041_v26 }
0x21b4   :  { %v7019_v53 = vadd.f32 %v7011_v63, %v17035_v55  ;;  %v7021_v33 = vadd.f32 %v7013_v6, %v17044_v40 }
0x21b5   :  { %v11087_v45 = vmul.f32 -1.442695, %v7018_v52  ;;  %v11089_v11 = vmul.f32 -1.442695, %v7020_v42 }
0x21b6   :  { %v11088_v9 = vmul.f32 -1.442695, %v7019_v53 }
0x21b7   :  { %15175 = vpow2.f32 %v11087_v45 }
0x21b8   :  { %15177 = vpow2.f32 %v11088_v9 }
0x21b9   :  { %15179 = vtanh.f32 %v7021_v33 }
0x21ba   :  { %15181 = vpow2.f32 %v11089_v11 }
0x21c1   :  { %v15176_v12 = vpop.eup %15175 }
0x21c2   :  { %v7031_v1 = vadd.f32 1.0, %v15176_v12  ;;  %v15178_v20 = vpop.eup %15177 }
0x21c3   :  { %v7032_v10 = vadd.f32 1.0, %v15178_v20  ;;  %v15180_v43 = vpop.eup %15179 }
0x21c4   :  { %15183 = vrcp.f32 %v7031_v1  ;;  %v15182_v49 = vpop.eup %15181 }
0x21c5   :  { %15185 = vrcp.f32 %v7032_v10  ;;  %v7033_v54 = vadd.f32 1.0, %v15182_v49 }
0x21c7   :  { %15187 = vrcp.f32 %v7033_v54 }
0x21ce   :  { %v15184_v50 = vpop.eup %15183 }
0x21cf   :  { %v7045_v59 = vmul.f32 %v15184_v50, %v15180_v43  ;;  %v15186_v32 = vpop.eup %15185 }
0x21d0   :  { %v7044_v13 = vmul.f32 %v15186_v32, %v7042_v47 }
0x21d1   :  { %v15188_v34 = vpop.eup %15187 }
0x21d2   :  { %v17297_v46 = vadd.f32 %v7045_v59, %v7044_v13 }
0x21d4   :  { %15189 = vtanh.f32 %v17297_v46  ;;  %v7231_v50 = vrot.slane %v17297_v46, 7  ;;  %v7282_v46 = vld [vmem:[#allocation6 + $0x1108] sm:$0xff] }
0x21de   :  { %v15190_v2 = vpop.eup %15189 }
0x21df   :  { %v7048_v62 = vmul.f32 %v15190_v2, %v15188_v34 }
0x21e1   :  { %7049 = vst [vmem:[#allocation2] sm:$0x40] %v7048_v62  ;;  %v7051_v27 = vrot.slane %v7048_v62, 6 }
0x21e3   :  { %7118 = vmatmul.mubr.f32.vlgmr.msra.gmra.mrb[70].mxu0 %v7051_v27  ;;  %7189 = vmatmul.mubr.f32.vlgmr.msra.gmra.mrb[70].mxu1 %v7051_v27  ;;  %v7286_v27 = vld [vmem:[#allocation6 + $0x1128] sm:$0xff] }
0x21e4   :  { %7480 = vmatprep.mubr.f32.mxu0 %v15570_v0  ;;  %7551 = vmatprep.mubr.f32.mxu1 %v15570_v0  ;;  %v13512_v5 = vpack.c.bf16 %v7286_v27, %v7282_v46  ;;  %v7319_v46 = vld [vmem:[#allocation6 + $0x1230] sm:$0xff]  ;;  %v7322_v27 = vld [vmem:[#allocation6 + $0x1248] sm:$0xff] }
0x21e5   :  { %13507 = vmatpush1.bf16.msra.mxu0 %v13506_v56  ;;  %13539 = vmatpush1.bf16.msra.mxu1 %v13538_v15  ;;  %v7287_v56 = vld [vmem:[#allocation6 + $0x1130] sm:$0xff]  ;;  %v7292_v15 = vld [vmem:[#allocation6 + $0x1158] sm:$0xff]  ;;  %v13532_v36 = vpack.c.bf16 %v7326_v23, %v7322_v27 }
0x21e6   :  { %13509 = vmatprep.subr.bf16.mxu0 %v13508_v28  ;;  %13541 = vmatprep.subr.bf16.mxu1 %v13540_v24  ;;  %v13546_v60 = vpack.c.bf16 %v7287_v56, %v7283_v44  ;;  %v7293_v28 = vld [vmem:[#allocation6 + $0x1160] sm:$0xff]  ;;  %v13548_v24 = vpack.c.bf16 %v7296_v35, %v7292_v15  ;;  %v7323_v56 = vld [vmem:[#allocation6 + $0x1250] sm:$0xff]  ;;  %v7332_v15 = vld [vmem:[#allocation6 + $0x1298] sm:$0xff] }
0x21e7   :  { %v13518_v38 = vpack.c.bf16 %v7293_v28, %v7289_v22  ;;  %v7325_v44 = vld [vmem:[#allocation6 + $0x1260] sm:$0xff]  ;;  %v7336_v35 = vld [vmem:[#allocation6 + $0x12b8] sm:$0xff]  ;;  %v17312_v28 = vpack.c.bf16 %v7334_v3, %v7330_v4  ;;  %v7347_v27 = vld [vmem:[#allocation6 + $0x1310] sm:$0xff] }
0x21e8   :  { %v7351_v23 = vld [vmem:[#allocation6 + $0x1330] sm:$0xff] }
0x21e9   :  { %13511 = vmatpush1.bf16.msra.mxu0 %v13510_v41  ;;  %13543 = vmatpush1.bf16.msra.mxu1 %v13542_v48  ;;  %v13550_v41 = vpack.c.bf16 %v7295_v14, %v7291_v30  ;;  %v7302_v48 = vld [vmem:[#allocation6 + $0x11a8] sm:$0xff]  ;;  %v7355_v3 = vld [vmem:[#allocation6 + $0x1350] sm:$0xff] }
0x21ea   :  { %13513 = vmatprep.subr.bf16.mxu0 %v13512_v5  ;;  %13545 = vmatprep.subr.bf16.mxu1 %v13544_v25  ;;  %v7321_v25 = vld [vmem:[#allocation6 + $0x1240] sm:$0xff] }
0x21ed   :  { %13515 = vmatpush1.bf16.msra.mxu0 %v13514_v16  ;;  %13547 = vmatpush1.bf16.msra.mxu1 %v13546_v60  ;;  %v13564_v16 = vpack.c.bf16 %v7328_v8, %v7324_v58  ;;  %v7327_v60 = vld [vmem:[#allocation6 + $0x1270] sm:$0xff]  ;;  %v7356_v58 = vld [vmem:[#allocation6 + $0x1358] sm:$0xff] }
0x21ee   :  { %13517 = vmatprep.subr.bf16.mxu0 %v13516_v19  ;;  %13549 = vmatprep.subr.bf16.mxu1 %v13548_v24  ;;  %v13534_v19 = vpack.c.bf16 %v7325_v44, %v7321_v25  ;;  %v13566_v22 = vpack.c.bf16 %v7327_v60, %v7323_v56  ;;  %v17314_v24 = vpack.c.bf16 %v7336_v35, %v7332_v15  ;;  %v7360_v8 = vld [vmem:[#allocation6 + $0x1378] sm:$0xff]  ;;  %v7353_v44 = vld [vmem:[#allocation6 + $0x1340] sm:$0xff]  ;;  %v7359_v15 = vld [vmem:[#allocation6 + $0x1370] sm:$0xff] }
0x21ef   :  { %v7357_v56 = vld [vmem:[#allocation6 + $0x1360] sm:$0xff]  ;;  %v17351_v4 = vpack.c.bf16 %v7360_v8, %v7356_v58  ;;  %v7366_v35 = vld [vmem:[#allocation6 + $0x13a8] sm:$0xff]  ;;  %v7392_v58 = vld [vmem:[#allocation6 + $0x1478] sm:$0xff] }
0x21f1   :  { %13519 = vmatpush1.bf16.msra.mxu0 %v13518_v38  ;;  %13551 = vmatpush1.bf16.msra.mxu1 %v13550_v41 }
0x22b6   :  { %v7119_v7 = vpop.f32.mrb[70].mxu0  ;;  %v7190_v17 = vpop.f32.mrb[70].mxu1 }
0x22b7   :  { %v7199_v18 = vrot.slane %v7119_v7, 1  ;;  %v7121_v21 = vpop.f32.mrb[71].mxu0  ;;  %v7192_v63 = vpop.f32.mrb[71].mxu1  ;;  %v7201_v6 = vrot.slane %v7190_v17, 1  ;;  %v7300_v7 = vld [vmem:[#allocation6 + $0x1198] sm:$0xff]  ;;  %v13520_v17 = vpack.c.bf16 %v7302_v48, %v7298_v39 }
0x22b8   :  { %v7200_v52 = vrot.slane %v7121_v21, 1  ;;  %v7202_v42 = vrot.slane %v7192_v63, 1  ;;  %v7297_v21 = vld [vmem:[#allocation6 + $0x1180] sm:$0xff] }
0x22b9   :  { %v7207_v53 = vadd.f32 %v7199_v18, %v17033_v51  ;;  %v7209_v33 = vadd.f32 %v7201_v6, %v17041_v26  ;;  %v7304_v18 = vld [vmem:[#allocation6 + $0x11b8] sm:$0xff]  ;;  %v7301_v63 = vld [vmem:[#allocation6 + $0x11a0] sm:$0xff]  ;;  %13521 = vmatprep.subr.bf16.mxu0 %v13520_v17  ;;  %v7306_v6 = vld [vmem:[#allocation6 + $0x11c8] sm:$0xff] }
0x22ba   :  { %v7208_v45 = vadd.f32 %v7200_v52, %v17035_v55  ;;  %v7210_v11 = vadd.f32 %v7202_v42, %v17044_v40  ;;  %v13552_v52 = vpack.c.bf16 %v7304_v18, %v7300_v7  ;;  %v7310_v42 = vld [vmem:[#allocation6 + $0x11e8] sm:$0xff]  ;;  %v11093_v18 = vld [vmem:[#allocation8 + $0xa0] ss:$0 sm:$0xff] }
0x22bb   :  { %v11090_v9 = vmul.f32 -1.442695, %v7207_v53  ;;  %v11092_v12 = vmul.f32 -1.442695, %v7209_v33  ;;  %v13522_v53 = vpack.c.bf16 %v7301_v63, %v7297_v21  ;;  %v7308_v33 = vld [vmem:[#allocation6 + $0x11d8] sm:$0xff] }
0x22bc   :  { %v11091_v61 = vmul.f32 -1.442695, %v7208_v45  ;;  %v7299_v45 = vld [vmem:[#allocation6 + $0x1190] sm:$0xff]  ;;  %13553 = vmatprep.subr.bf16.mxu1 %v13552_v52  ;;  %v11094_v63 = vld [vmem:[#allocation8 + $0xa8] ss:$0 sm:$0xff]  ;;  %v7329_v52 = vld [vmem:[#allocation6 + $0x1280] sm:$0xff] }
0x22bd   :  { %15191 = vpow2.f32 %v11090_v9  ;;  %v7303_v9 = vld [vmem:[#allocation6 + $0x11b0] sm:$0xff]  ;;  %13523 = vmatpush1.bf16.msra.mxu0 %v13522_v53  ;;  %v7333_v53 = vld [vmem:[#allocation6 + $0x12a0] sm:$0xff] }
0x22be   :  { %15193 = vpow2.f32 %v11091_v61  ;;  %v13554_v61 = vpack.c.bf16 %v7303_v9, %v7299_v45  ;;  %v7331_v9 = vld [vmem:[#allocation6 + $0x1290] sm:$0xff] }
0x22bf   :  { %15195 = vtanh.f32 %v7210_v11  ;;  %v13524_v11 = vpack.c.bf16 %v7310_v42, %v7306_v6  ;;  %v7338_v6 = vld [vmem:[#allocation6 + $0x12c8] sm:$0xff] }
0x22c0   :  { %15197 = vpow2.f32 %v11092_v12  ;;  %v7312_v12 = vld [vmem:[#allocation6 + $0x11f8] sm:$0xff]  ;;  %13555 = vmatpush1.bf16.msra.mxu1 %v13554_v61  ;;  %v7335_v61 = vld [vmem:[#allocation6 + $0x12b0] sm:$0xff]  ;;  %v7342_v42 = vld [vmem:[#allocation6 + $0x12e8] sm:$0xff] }
0x22c1   :  { %13525 = vmatprep.subr.bf16.mxu0 %v13524_v11  ;;  %v7344_v11 = vld [vmem:[#allocation6 + $0x12f8] sm:$0xff] }
0x22c7   :  { %v15192_v1 = vpop.eup %15191 }
0x22c8   :  { %v7220_v20 = vadd.f32 1.0, %v15192_v1  ;;  %v15194_v10 = vpop.eup %15193  ;;  %v7305_v1 = vld [vmem:[#allocation6 + $0x11c0] sm:$0xff] }
0x22c9   :  { %v7221_v51 = vadd.f32 1.0, %v15194_v10  ;;  %v15196_v55 = vpop.eup %15195  ;;  %v13556_v10 = vpack.c.bf16 %v7312_v12, %v7308_v33  ;;  %v7340_v33 = vld [vmem:[#allocation6 + $0x12d8] sm:$0xff] }
0x22ca   :  { %15199 = vrcp.f32 %v7220_v20  ;;  %v15198_v43 = vpop.eup %15197  ;;  %v7309_v20 = vld [vmem:[#allocation6 + $0x11e0] sm:$0xff] }
0x22cb   :  { %15201 = vrcp.f32 %v7221_v51  ;;  %v7222_v32 = vadd.f32 1.0, %v15198_v43  ;;  %v13526_v51 = vpack.c.bf16 %v7309_v20, %v7305_v1  ;;  %v7311_v43 = vld [vmem:[#allocation6 + $0x11f0] sm:$0xff]  ;;  %13557 = vmatprep.subr.bf16.mxu1 %v13556_v10  ;;  %v17319_v1 = vpack.c.bf16 %v7333_v53, %v7329_v52  ;;  %v7337_v10 = vld [vmem:[#allocation6 + $0x12c0] sm:$0xff]  ;;  %v7372_v52 = vld [vmem:[#allocation6 + $0x13d8] sm:$0xff] }
0x22cc   :  { %v17321_v20 = vpack.c.bf16 %v7335_v61, %v7331_v9  ;;  %v7376_v53 = vld [vmem:[#allocation6 + $0x13f8] sm:$0xff]  ;;  %v7369_v61 = vld [vmem:[#allocation6 + $0x13c0] sm:$0xff] }
0x22cd   :  { %15203 = vrcp.f32 %v7222_v32  ;;  %v7320_v32 = vld [vmem:[#allocation6 + $0x1238] sm:$0xff]  ;;  %13527 = vmatpush1.bf16.msra.mxu0 %v13526_v51  ;;  %v7341_v51 = vld [vmem:[#allocation6 + $0x12e0] sm:$0xff] }
0x22d4   :  { %v15200_v49 = vpop.eup %15199 }
0x22d5   :  { %v7234_v47 = vmul.f32 %v15200_v49, %v15196_v55  ;;  %v15202_v59 = vpop.eup %15201  ;;  %v7307_v55 = vld [vmem:[#allocation6 + $0x11d0] sm:$0xff]  ;;  %v7314_v49 = vld [vmem:[#allocation6 + $0x1208] sm:$0xff] }
0x22d6   :  { %v7233_v26 = vmul.f32 %v15202_v59, %v7231_v50  ;;  %v13558_v50 = vpack.c.bf16 %v7311_v43, %v7307_v55  ;;  %v7316_v59 = vld [vmem:[#allocation6 + $0x1218] sm:$0xff]  ;;  %v17323_v55 = vpack.c.bf16 %v7342_v42, %v7338_v6  ;;  %v17325_v43 = vpack.c.bf16 %v7344_v11, %v7340_v33  ;;  %v7373_v6 = vld [vmem:[#allocation6 + $0x13e0] sm:$0xff]  ;;  %v7371_v11 = vld [vmem:[#allocation6 + $0x13d0] sm:$0xff] }
0x22d7   :  { %v15204_v40 = vpop.eup %15203  ;;  %v17375_v33 = vpack.c.bf16 %v7376_v53, %v7372_v52 }
0x22d8   :  { %v7235_v54 = vadd.f32 %v7234_v47, %v7233_v26  ;;  %v7318_v47 = vld [vmem:[#allocation6 + $0x1228] sm:$0xff]  ;;  %13559 = vmatpush1.bf16.msra.mxu1 %v13558_v50  ;;  %v7343_v50 = vld [vmem:[#allocation6 + $0x12f0] sm:$0xff] }
0x22d9   :  { %v13528_v26 = vpack.c.bf16 %v7318_v47, %v7314_v49  ;;  %v7339_v49 = vld [vmem:[#allocation6 + $0x12d0] sm:$0xff]  ;;  %v7346_v47 = vld [vmem:[#allocation6 + $0x1308] sm:$0xff] }
0x22da   :  { %15205 = vtanh.f32 %v7235_v54  ;;  %v13560_v54 = vpack.c.bf16 %v7320_v32, %v7316_v59  ;;  %v7350_v59 = vld [vmem:[#allocation6 + $0x1328] sm:$0xff]  ;;  %v7348_v32 = vld [vmem:[#allocation6 + $0x1318] sm:$0xff] }
0x22db   :  { %13529 = vmatprep.subr.bf16.mxu0 %v13528_v26  ;;  %v7352_v26 = vld [vmem:[#allocation6 + $0x1338] sm:$0xff] }
0x22dc   :  { %13561 = vmatprep.subr.bf16.mxu1 %v13560_v54  ;;  %v17329_v54 = vpack.c.bf16 %v7341_v51, %v7337_v10  ;;  %v7378_v10 = vld [vmem:[#allocation6 + $0x1408] sm:$0xff] }
0x22dd   :  { %v7382_v51 = vld [vmem:[#allocation6 + $0x1428] sm:$0xff] }
0x22e4   :  { %v15206_v13 = vpop.eup %15205 }
0x22e5   :  { %v7237_v34 = vmul.f32 %v15206_v13, %v15204_v40  ;;  %v7313_v40 = vld [vmem:[#allocation6 + $0x1200] sm:$0xff] }
0x22e6   :  { %v7317_v13 = vld [vmem:[#allocation6 + $0x1220] sm:$0xff] }
0x22e7   :  { %7238 = vst [vmem:[#allocation2] sm:$0x80] %v7237_v34  ;;  %v7315_v34 = vld [vmem:[#allocation6 + $0x1210] sm:$0xff] }
0x22e8   :  { %v13562_v5 = vpack.c.bf16 %v7319_v46, %v7315_v34  ;;  %v7349_v34 = vld [vmem:[#allocation6 + $0x1320] sm:$0xff]  ;;  %v17337_v46 = vpack.c.bf16 %v7352_v26, %v7348_v32  ;;  %v17385_v26 = vpack.c.bf16 %v7382_v51, %v7378_v10 }
0x22e9   :  { %v7381_v32 = vld [vmem:[#allocation6 + $0x1420] sm:$0xff] }
0x22ea   :  { %13563 = vmatpush1.bf16.msra.mxu1 %v13562_v5  ;;  %v7354_v5 = vld [vmem:[#allocation6 + $0x1348] sm:$0xff] }
0x22eb   :  { %13565 = vmatprep.subr.bf16.mxu1 %v13564_v16  ;;  %v17345_v16 = vpack.c.bf16 %v7351_v23, %v7347_v27  ;;  %v7383_v27 = vld [vmem:[#allocation6 + $0x1430] sm:$0xff]  ;;  %v7386_v23 = vld [vmem:[#allocation6 + $0x1448] sm:$0xff] }
0x22ee   :  { %v17307_v2 = vld [vmem:[#allocation2] sm:$0xff]  ;;  %13567 = vmatpush1.bf16.msra.mxu1 %v13566_v22  ;;  %v7364_v22 = vld [vmem:[#allocation6 + $0x1398] sm:$0xff] }
0x22ef   :  { %7242 = vadd.xlane.f32.xlu0 %v17307_v2  ;;  %v7245_v62 = vmul.f32 %v17307_v2, %v17307_v2  ;;  %13601 = vmatprep.subr.bf16.mxu1 %v17314_v24 }
0x22f1   :  { %7246 = vadd.xlane.f32.xlu1 %v7245_v62  ;;  %v13530_v62 = vpack.c.bf16 %v7317_v13, %v7313_v40  ;;  %v17331_v40 = vpack.c.bf16 %v7343_v50, %v7339_v49  ;;  %v7345_v13 = vld [vmem:[#allocation6 + $0x1300] sm:$0xff]  ;;  %v7384_v49 = vld [vmem:[#allocation6 + $0x1438] sm:$0xff]  ;;  %v17379_v50 = vpack.c.bf16 %v7373_v6, %v7369_v61 }
0x22f2   :  { %v17343_v25 = vpack.c.bf16 %v7349_v34, %v7345_v13  ;;  %v7379_v34 = vld [vmem:[#allocation6 + $0x1410] sm:$0xff] }
0x22f3   :  { %13531 = vmatpush1.bf16.msra.mxu0 %v13530_v62  ;;  %v17335_v62 = vpack.c.bf16 %v7350_v59, %v7346_v47  ;;  %v7377_v59 = vld [vmem:[#allocation6 + $0x1400] sm:$0xff] }
0x22f4   :  { %13533 = vmatprep.subr.bf16.mxu0 %v13532_v36  ;;  %v7358_v36 = vld [vmem:[#allocation6 + $0x1368] sm:$0xff]  ;;  %v17391_v8 = vpack.c.bf16 %v7381_v32, %v7377_v59 }
0x22f5   :  { %v17349_v60 = vpack.c.bf16 %v7358_v36, %v7354_v5  ;;  %v7390_v5 = vld [vmem:[#allocation6 + $0x1468] sm:$0xff]  ;;  %v7388_v36 = vld [vmem:[#allocation6 + $0x1458] sm:$0xff] }
0x22f7   :  { %13535 = vmatpush1.bf16.msra.mxu0 %v13534_v19  ;;  %v7362_v19 = vld [vmem:[#allocation6 + $0x1388] sm:$0xff] }
0x22f8   :  { %13569 = vmatprep.subr.bf16.mxu0 %v17312_v28 }
0x237c   :  { %v7243_v38 = vpop.xlane.xlu0 %7242 }
0x237d   :  { %v7244_v30 = vmul.f32 0.25, %v7243_v38  ;;  %v7368_v38 = vld [vmem:[#allocation6 + $0x13b8] sm:$0xff] }
0x237e   :  { %v7247_v14 = vpop.xlane.xlu1 %7246 }
0x237f   :  { %v7249_v41 = vmul.f32 %v7244_v30, %v7244_v30  ;;  %v7248_v39 = vmul.f32 0.25, %v7247_v14  ;;  %v7253_v17 = vsub.f32 %v17307_v2, %v7244_v30  ;;  %v17355_v30 = vpack.c.bf16 %v7357_v56, %v7353_v44  ;;  %v7385_v56 = vld [vmem:[#allocation6 + $0x1440] sm:$0xff] }
0x2380   :  { %v17357_v14 = vpack.c.bf16 %v7359_v15, %v7355_v3  ;;  %v17393_v44 = vpack.c.bf16 %v7383_v27, %v7379_v34  ;;  %v17397_v3 = vpack.c.bf16 %v7390_v5, %v7386_v23  ;;  %v17399_v15 = vpack.c.bf16 %v7392_v58, %v7388_v36 }
0x2381   :  { %v7250_v48 = vsub.f32 %v7248_v39, %v7249_v41  ;;  %v7361_v41 = vld [vmem:[#allocation6 + $0x1380] sm:$0xff] }
0x2382   :  { %v7365_v39 = vld [vmem:[#allocation6 + $0x13a0] sm:$0xff] }
0x2383   :  { %v7251_v7 = vadd.f32 1e-05, %v7250_v48  ;;  %v17361_v48 = vpack.c.bf16 %v7366_v35, %v7362_v19  ;;  %v7389_v19 = vld [vmem:[#allocation6 + $0x1460] sm:$0xff]  ;;  %v7387_v35 = vld [vmem:[#allocation6 + $0x1450] sm:$0xff] }
0x2385   :  { %15207 = vrsqrt.f32 %v7251_v7  ;;  %v17363_v7 = vpack.c.bf16 %v7368_v38, %v7364_v22  ;;  %v7391_v22 = vld [vmem:[#allocation6 + $0x1470] sm:$0xff]  ;;  %v17403_v38 = vpack.c.bf16 %v7389_v19, %v7385_v56 }
0x238f   :  { %v15208_v21 = vpop.eup %15207 }
0x2390   :  { %v7254_v45 = vmul.f32 %v15208_v21, %v7253_v17  ;;  %v7363_v17 = vld [vmem:[#allocation6 + $0x1390] sm:$0xff]  ;;  %v7370_v21 = vld [vmem:[#allocation6 + $0x13c8] sm:$0xff] }
0x2392   :  { %v7259_v12 = vmul.f32 %v11093_v18, %v7254_v45  ;;  %v7367_v18 = vld [vmem:[#allocation6 + $0x13b0] sm:$0xff]  ;;  %v17367_v45 = vpack.c.bf16 %v7365_v39, %v7361_v41  ;;  %v17405_v41 = vpack.c.bf16 %v7391_v22, %v7387_v35 }
0x2393   :  { %v17369_v9 = vpack.c.bf16 %v7367_v18, %v7363_v17 }
0x2394   :  { %v7264_v2 = vadd.f32 %v11094_v63, %v7259_v12  ;;  %v7374_v63 = vld [vmem:[#allocation6 + $0x13e8] sm:$0xff]  ;;  %v7375_v12 = vld [vmem:[#allocation6 + $0x13f0] sm:$0xff] }
0x2395   :  { %v17373_v42 = vpack.c.bf16 %v7374_v63, %v7370_v21  ;;  %v17381_v47 = vpack.c.bf16 %v7375_v12, %v7371_v11  ;;  %v7394_v63 = vld [vmem:[#allocation6 + $0x1480] ss:$8 sm:$0xf] }
0x2396   :  { %7481 = vmatmul.mubr.f32.vlgmr.msra.gmra.mrb[72].mxu0 %v7264_v2  ;;  %7552 = vmatmul.mubr.f32.vlgmr.msra.gmra.mrb[72].mxu1 %v7264_v2  ;;  %v7380_v2 = vld [vmem:[#allocation6 + $0x1418] sm:$0xff]  ;;  %v7399_v52 = vrot.slane %v7394_v63, %v15771_v29  ;;  %v7403_v53 = vrot.slane %v7394_v63, %v15774_v31  ;;  %v7407_v59 = vrot.slane %v7394_v63, %v15779_v37 }
0x2397   :  { %13571 = vmatpush1.bf16.msra.mxu0 %v17319_v1  ;;  %13603 = vmatpush1.bf16.msra.mxu1 %v17321_v20  ;;  %v17387_v13 = vpack.c.bf16 %v7384_v49, %v7380_v2  ;;  %v7411_v27 = vrot.slane %v7394_v63, %v15789_v57 }
0x2398   :  { %13573 = vmatprep.subr.bf16.mxu0 %v17323_v55  ;;  %13605 = vmatprep.subr.bf16.mxu1 %v17325_v43 }
0x2399   :  { %7622 = vmatprep.mubr.f32.mxu0 %v15570_v0  ;;  %7693 = vmatprep.mubr.f32.mxu1 %v15570_v0 }
0x239b   :  { %13575 = vmatpush1.bf16.msra.mxu0 %v17329_v54  ;;  %13607 = vmatpush1.bf16.msra.mxu1 %v17331_v40 }
0x239c   :  { %13577 = vmatprep.subr.bf16.mxu0 %v17335_v62  ;;  %13609 = vmatprep.subr.bf16.mxu1 %v17337_v46 }
0x239f   :  { %13579 = vmatpush1.bf16.msra.mxu0 %v17343_v25  ;;  %13611 = vmatpush1.bf16.msra.mxu1 %v17345_v16 }
0x23a0   :  { %13581 = vmatprep.subr.bf16.mxu0 %v17349_v60  ;;  %13613 = vmatprep.subr.bf16.mxu1 %v17351_v4 }
0x23a3   :  { %13583 = vmatpush1.bf16.msra.mxu0 %v17355_v30  ;;  %13615 = vmatpush1.bf16.msra.mxu1 %v17357_v14 }
0x23a4   :  { %13585 = vmatprep.subr.bf16.mxu0 %v17361_v48  ;;  %13617 = vmatprep.subr.bf16.mxu1 %v17363_v7 }
0x23a7   :  { %13587 = vmatpush1.bf16.msra.mxu0 %v17367_v45  ;;  %13619 = vmatpush1.bf16.msra.mxu1 %v17369_v9 }
0x23a8   :  { %13589 = vmatprep.subr.bf16.mxu0 %v17373_v42  ;;  %13621 = vmatprep.subr.bf16.mxu1 %v17375_v33 }
0x23ab   :  { %13591 = vmatpush1.bf16.msra.mxu0 %v17379_v50  ;;  %13623 = vmatpush1.bf16.msra.mxu1 %v17381_v47 }
0x23ac   :  { %13593 = vmatprep.subr.bf16.mxu0 %v17385_v26  ;;  %13625 = vmatprep.subr.bf16.mxu1 %v17387_v13 }
0x23af   :  { %13595 = vmatpush1.bf16.msra.mxu0 %v17391_v8  ;;  %13627 = vmatpush1.bf16.msra.mxu1 %v17393_v44 }
0x23b0   :  { %13597 = vmatprep.subr.bf16.mxu0 %v17397_v3  ;;  %13629 = vmatprep.subr.bf16.mxu1 %v17399_v15 }
0x23b3   :  { %13599 = vmatpush1.bf16.msra.mxu0 %v17403_v38  ;;  %13631 = vmatpush1.bf16.msra.mxu1 %v17405_v41 }
0x23b4   :  { %13633 = vmatprep.subr.bf16.mxu0 %v17312_v28  ;;  %13665 = vmatprep.subr.bf16.mxu1 %v17314_v24 }
0x23b6   :  { %7623 = vmatmul.mubr.f32.vlgmr.msra.gmra.mrb[74].mxu0 %v15570_v0  ;;  %7694 = vmatmul.mubr.f32.vlgmr.msra.gmra.mrb[74].mxu1 %v15570_v0 }
0x23b7   :  { %13635 = vmatpush1.bf16.msra.mxu0 %v17319_v1  ;;  %13667 = vmatpush1.bf16.msra.mxu1 %v17321_v20 }
0x23b8   :  { %13637 = vmatprep.subr.bf16.mxu0 %v17323_v55  ;;  %13669 = vmatprep.subr.bf16.mxu1 %v17325_v43 }
0x23b9   :  { %7793 = vmatprep.mubr.f32.mxu0 %v15570_v0  ;;  %7864 = vmatprep.mubr.f32.mxu1 %v15570_v0 }
0x23bb   :  { %13639 = vmatpush1.bf16.msra.mxu0 %v17329_v54  ;;  %13671 = vmatpush1.bf16.msra.mxu1 %v17331_v40 }
0x23bc   :  { %13641 = vmatprep.subr.bf16.mxu0 %v17335_v62  ;;  %13673 = vmatprep.subr.bf16.mxu1 %v17337_v46 }
0x23bf   :  { %13643 = vmatpush1.bf16.msra.mxu0 %v17343_v25  ;;  %13675 = vmatpush1.bf16.msra.mxu1 %v17345_v16 }
0x23c0   :  { %13645 = vmatprep.subr.bf16.mxu0 %v17349_v60  ;;  %13677 = vmatprep.subr.bf16.mxu1 %v17351_v4 }
0x23c3   :  { %13647 = vmatpush1.bf16.msra.mxu0 %v17355_v30  ;;  %13679 = vmatpush1.bf16.msra.mxu1 %v17357_v14 }
0x23c4   :  { %13649 = vmatprep.subr.bf16.mxu0 %v17361_v48  ;;  %13681 = vmatprep.subr.bf16.mxu1 %v17363_v7 }
0x23c7   :  { %13651 = vmatpush1.bf16.msra.mxu0 %v17367_v45  ;;  %13683 = vmatpush1.bf16.msra.mxu1 %v17369_v9 }
0x23c8   :  { %13653 = vmatprep.subr.bf16.mxu0 %v17373_v42  ;;  %13685 = vmatprep.subr.bf16.mxu1 %v17375_v33 }
0x23cb   :  { %13655 = vmatpush1.bf16.msra.mxu0 %v17379_v50  ;;  %13687 = vmatpush1.bf16.msra.mxu1 %v17381_v47 }
0x23cc   :  { %13657 = vmatprep.subr.bf16.mxu0 %v17385_v26  ;;  %13689 = vmatprep.subr.bf16.mxu1 %v17387_v13 }
0x23cf   :  { %13659 = vmatpush1.bf16.msra.mxu0 %v17391_v8  ;;  %13691 = vmatpush1.bf16.msra.mxu1 %v17393_v44 }
0x23d0   :  { %13661 = vmatprep.subr.bf16.mxu0 %v17397_v3  ;;  %13693 = vmatprep.subr.bf16.mxu1 %v17399_v15 }
0x23d3   :  { %13663 = vmatpush1.bf16.msra.mxu0 %v17403_v38  ;;  %13695 = vmatpush1.bf16.msra.mxu1 %v17405_v41 }
0x23d4   :  { %13697 = vmatprep.subr.bf16.mxu0 %v17312_v28  ;;  %13729 = vmatprep.subr.bf16.mxu1 %v17314_v24 }
0x2469   :  { %v7482_v39 = vpop.f32.mrb[72].mxu0  ;;  %v7553_v17 = vpop.f32.mrb[72].mxu1 }
0x246a   :  { %v7484_v18 = vpop.f32.mrb[73].mxu0  ;;  %v7555_v21 = vpop.f32.mrb[73].mxu1  ;;  %v17451_v61 = vadd.f32 %v7482_v39, %v7399_v52  ;;  %v17459_v23 = vadd.f32 %v7553_v17, %v7407_v59 }
0x246b   :  { %v17453_v6 = vadd.f32 %v7484_v18, %v7403_v53  ;;  %v17462_v36 = vadd.f32 %v7555_v21, %v7411_v27 }
0x2489   :  { %v7624_v11 = vpop.f32.mrb[74].mxu0  ;;  %v7695_v12 = vpop.f32.mrb[74].mxu1 }
0x248a   :  { %v7700_v10 = vadd.f32 %v7624_v11, %v17451_v61  ;;  %v7626_v51 = vpop.f32.mrb[75].mxu0  ;;  %v7697_v2 = vpop.f32.mrb[75].mxu1  ;;  %v7702_v5 = vadd.f32 %v7695_v12, %v17459_v23 }
0x248b   :  { %v7701_v49 = vadd.f32 %v7626_v51, %v17453_v6  ;;  %v7703_v58 = vadd.f32 %v7697_v2, %v17462_v36 }
0x248c   :  { %v11095_v32 = vmul.f32 -1.442695, %v7700_v10  ;;  %v11097_v56 = vmul.f32 -1.442695, %v7702_v5 }
0x248d   :  { %v11096_v34 = vmul.f32 -1.442695, %v7701_v49 }
0x248e   :  { %15209 = vpow2.f32 %v11095_v32 }
0x248f   :  { %15211 = vpow2.f32 %v11096_v34 }
0x2490   :  { %15213 = vtanh.f32 %v7703_v58 }
0x2491   :  { %15215 = vpow2.f32 %v11097_v56 }
0x2498   :  { %v15210_v19 = vpop.eup %15209 }
0x2499   :  { %v7713_v35 = vadd.f32 1.0, %v15210_v19  ;;  %v15212_v22 = vpop.eup %15211 }
0x249a   :  { %v7714_v39 = vadd.f32 1.0, %v15212_v22  ;;  %v15214_v18 = vpop.eup %15213 }
0x249b   :  { %15217 = vrcp.f32 %v7713_v35  ;;  %v15216_v63 = vpop.eup %15215 }
0x249c   :  { %15219 = vrcp.f32 %v7714_v39  ;;  %v7715_v11 = vadd.f32 1.0, %v15216_v63 }
0x249e   :  { %15221 = vrcp.f32 %v7715_v11 }
0x24a5   :  { %v15218_v17 = vpop.eup %15217 }
0x24a6   :  { %v7724_v52 = vmul.f32 %v15218_v17, %v15214_v18  ;;  %v15220_v53 = vpop.eup %15219 }
0x24a7   :  { %v7723_v12 = vmul.f32 0.0, %v15220_v53 }
0x24a8   :  { %v15222_v10 = vpop.eup %15221 }
0x24a9   :  { %v17465_v21 = vadd.f32 %v7724_v52, %v7723_v12 }
0x24ab   :  { %15223 = vtanh.f32 %v17465_v21 }
0x24b5   :  { %v15224_v51 = vpop.eup %15223 }
0x24b6   :  { %v7727_v2 = vmul.f32 %v15224_v51, %v15222_v10 }
0x24b8   :  { %7728 = vst [vmem:[#allocation2] sm:$0x1] %v7727_v2  ;;  %7794 = vmatmul.mubr.f32.vlgmr.msra.gmra.mrb[76].mxu0 %v7727_v2  ;;  %7865 = vmatmul.mubr.f32.vlgmr.msra.gmra.mrb[76].mxu1 %v7727_v2 }
0x24b9   :  { %13699 = vmatpush1.bf16.msra.mxu0 %v17319_v1  ;;  %13731 = vmatpush1.bf16.msra.mxu1 %v17321_v20 }
0x24ba   :  { %13701 = vmatprep.subr.bf16.mxu0 %v17323_v55  ;;  %13733 = vmatprep.subr.bf16.mxu1 %v17325_v43 }
0x24bb   :  { %7982 = vmatprep.mubr.f32.mxu0 %v15570_v0  ;;  %8053 = vmatprep.mubr.f32.mxu1 %v15570_v0 }
0x24bd   :  { %13703 = vmatpush1.bf16.msra.mxu0 %v17329_v54  ;;  %13735 = vmatpush1.bf16.msra.mxu1 %v17331_v40 }
0x24be   :  { %13705 = vmatprep.subr.bf16.mxu0 %v17335_v62  ;;  %13737 = vmatprep.subr.bf16.mxu1 %v17337_v46 }
0x24c1   :  { %13707 = vmatpush1.bf16.msra.mxu0 %v17343_v25  ;;  %13739 = vmatpush1.bf16.msra.mxu1 %v17345_v16 }
0x24c2   :  { %13709 = vmatprep.subr.bf16.mxu0 %v17349_v60  ;;  %13741 = vmatprep.subr.bf16.mxu1 %v17351_v4 }
0x24c5   :  { %13711 = vmatpush1.bf16.msra.mxu0 %v17355_v30  ;;  %13743 = vmatpush1.bf16.msra.mxu1 %v17357_v14 }
0x24c6   :  { %13713 = vmatprep.subr.bf16.mxu0 %v17361_v48  ;;  %13745 = vmatprep.subr.bf16.mxu1 %v17363_v7 }
0x24c9   :  { %13715 = vmatpush1.bf16.msra.mxu0 %v17367_v45  ;;  %13747 = vmatpush1.bf16.msra.mxu1 %v17369_v9 }
0x24ca   :  { %13717 = vmatprep.subr.bf16.mxu0 %v17373_v42  ;;  %13749 = vmatprep.subr.bf16.mxu1 %v17375_v33 }
0x24cd   :  { %13719 = vmatpush1.bf16.msra.mxu0 %v17379_v50  ;;  %13751 = vmatpush1.bf16.msra.mxu1 %v17381_v47 }
0x24ce   :  { %13721 = vmatprep.subr.bf16.mxu0 %v17385_v26  ;;  %13753 = vmatprep.subr.bf16.mxu1 %v17387_v13 }
0x24d1   :  { %13723 = vmatpush1.bf16.msra.mxu0 %v17391_v8  ;;  %13755 = vmatpush1.bf16.msra.mxu1 %v17393_v44 }
0x24d2   :  { %13725 = vmatprep.subr.bf16.mxu0 %v17397_v3  ;;  %13757 = vmatprep.subr.bf16.mxu1 %v17399_v15 }
0x24d5   :  { %13727 = vmatpush1.bf16.msra.mxu0 %v17403_v38  ;;  %13759 = vmatpush1.bf16.msra.mxu1 %v17405_v41 }
0x24d6   :  { %13761 = vmatprep.subr.bf16.mxu0 %v17312_v28  ;;  %13793 = vmatprep.subr.bf16.mxu1 %v17314_v24 }
0x258b   :  { %v7795_v49 = vpop.f32.mrb[76].mxu0  ;;  %v7866_v59 = vpop.f32.mrb[76].mxu1 }
0x258c   :  { %v7875_v32 = vrot.slane %v7795_v49, 7  ;;  %v7797_v34 = vpop.f32.mrb[77].mxu0  ;;  %v7868_v27 = vpop.f32.mrb[77].mxu1  ;;  %v7877_v22 = vrot.slane %v7866_v59, 7  ;;  %v7907_v49 = vrot.slane %v17465_v21, 7 }
0x258d   :  { %v7876_v5 = vrot.slane %v7797_v34, 7  ;;  %v7878_v39 = vrot.slane %v7868_v27, 7 }
0x258e   :  { %v7883_v58 = vadd.f32 %v7875_v32, %v17451_v61  ;;  %v7885_v18 = vadd.f32 %v7877_v22, %v17459_v23 }
0x258f   :  { %v7884_v56 = vadd.f32 %v7876_v5, %v17453_v6  ;;  %v7886_v63 = vadd.f32 %v7878_v39, %v17462_v36 }
0x2590   :  { %v11098_v19 = vmul.f32 -1.442695, %v7883_v58  ;;  %v11100_v17 = vmul.f32 -1.442695, %v7885_v18 }
0x2591   :  { %v11099_v35 = vmul.f32 -1.442695, %v7884_v56 }
0x2592   :  { %15225 = vpow2.f32 %v11098_v19 }
0x2593   :  { %15227 = vpow2.f32 %v11099_v35 }
0x2594   :  { %15229 = vtanh.f32 %v7886_v63 }
0x2595   :  { %15231 = vpow2.f32 %v11100_v17 }
0x259c   :  { %v15226_v52 = vpop.eup %15225 }
0x259d   :  { %v7896_v53 = vadd.f32 1.0, %v15226_v52  ;;  %v15228_v11 = vpop.eup %15227 }
0x259e   :  { %v7897_v12 = vadd.f32 1.0, %v15228_v11  ;;  %v15230_v10 = vpop.eup %15229 }
0x259f   :  { %15233 = vrcp.f32 %v7896_v53  ;;  %v15232_v51 = vpop.eup %15231 }
0x25a0   :  { %15235 = vrcp.f32 %v7897_v12  ;;  %v7898_v34 = vadd.f32 1.0, %v15232_v51 }
0x25a2   :  { %15237 = vrcp.f32 %v7898_v34 }
0x25a9   :  { %v15234_v2 = vpop.eup %15233 }
0x25aa   :  { %v7910_v59 = vmul.f32 %v15234_v2, %v15230_v10  ;;  %v15236_v32 = vpop.eup %15235 }
0x25ab   :  { %v7909_v27 = vmul.f32 %v15236_v32, %v7907_v49 }
0x25ac   :  { %v15238_v58 = vpop.eup %15237 }
0x25ad   :  { %v17507_v5 = vadd.f32 %v7910_v59, %v7909_v27 }
0x25af   :  { %15239 = vtanh.f32 %v17507_v5 }
0x25b9   :  { %v15240_v56 = vpop.eup %15239 }
0x25ba   :  { %v7913_v19 = vmul.f32 %v15240_v56, %v15238_v58 }
0x25bc   :  { %7914 = vst [vmem:[#allocation2] sm:$0x2] %v7913_v19  ;;  %v7916_v35 = vrot.slane %v7913_v19, 1 }
0x25be   :  { %7983 = vmatmul.mubr.f32.vlgmr.msra.gmra.mrb[78].mxu0 %v7916_v35  ;;  %8054 = vmatmul.mubr.f32.vlgmr.msra.gmra.mrb[78].mxu1 %v7916_v35 }
0x25bf   :  { %13763 = vmatpush1.bf16.msra.mxu0 %v17319_v1  ;;  %13795 = vmatpush1.bf16.msra.mxu1 %v17321_v20 }
0x25c0   :  { %13765 = vmatprep.subr.bf16.mxu0 %v17323_v55  ;;  %13797 = vmatprep.subr.bf16.mxu1 %v17325_v43 }
0x25c1   :  { %8171 = vmatprep.mubr.f32.mxu0 %v15570_v0  ;;  %8242 = vmatprep.mubr.f32.mxu1 %v15570_v0 }
0x25c3   :  { %13767 = vmatpush1.bf16.msra.mxu0 %v17329_v54  ;;  %13799 = vmatpush1.bf16.msra.mxu1 %v17331_v40 }
0x25c4   :  { %13769 = vmatprep.subr.bf16.mxu0 %v17335_v62  ;;  %13801 = vmatprep.subr.bf16.mxu1 %v17337_v46 }
0x25c7   :  { %13771 = vmatpush1.bf16.msra.mxu0 %v17343_v25  ;;  %13803 = vmatpush1.bf16.msra.mxu1 %v17345_v16 }
0x25c8   :  { %13773 = vmatprep.subr.bf16.mxu0 %v17349_v60  ;;  %13805 = vmatprep.subr.bf16.mxu1 %v17351_v4 }
0x25cb   :  { %13775 = vmatpush1.bf16.msra.mxu0 %v17355_v30  ;;  %13807 = vmatpush1.bf16.msra.mxu1 %v17357_v14 }
0x25cc   :  { %13777 = vmatprep.subr.bf16.mxu0 %v17361_v48  ;;  %13809 = vmatprep.subr.bf16.mxu1 %v17363_v7 }
0x25cf   :  { %13779 = vmatpush1.bf16.msra.mxu0 %v17367_v45  ;;  %13811 = vmatpush1.bf16.msra.mxu1 %v17369_v9 }
0x25d0   :  { %13781 = vmatprep.subr.bf16.mxu0 %v17373_v42  ;;  %13813 = vmatprep.subr.bf16.mxu1 %v17375_v33 }
0x25d3   :  { %13783 = vmatpush1.bf16.msra.mxu0 %v17379_v50  ;;  %13815 = vmatpush1.bf16.msra.mxu1 %v17381_v47 }
0x25d4   :  { %13785 = vmatprep.subr.bf16.mxu0 %v17385_v26  ;;  %13817 = vmatprep.subr.bf16.mxu1 %v17387_v13 }
0x25d7   :  { %13787 = vmatpush1.bf16.msra.mxu0 %v17391_v8  ;;  %13819 = vmatpush1.bf16.msra.mxu1 %v17393_v44 }
0x25d8   :  { %13789 = vmatprep.subr.bf16.mxu0 %v17397_v3  ;;  %13821 = vmatprep.subr.bf16.mxu1 %v17399_v15 }
0x25db   :  { %13791 = vmatpush1.bf16.msra.mxu0 %v17403_v38  ;;  %13823 = vmatpush1.bf16.msra.mxu1 %v17405_v41 }
0x25dc   :  { %13825 = vmatprep.subr.bf16.mxu0 %v17312_v28  ;;  %13857 = vmatprep.subr.bf16.mxu1 %v17314_v24 }
0x2691   :  { %v7984_v21 = vpop.f32.mrb[78].mxu0  ;;  %v8055_v22 = vpop.f32.mrb[78].mxu1 }
0x2692   :  { %v8064_v39 = vrot.slane %v7984_v21, 6  ;;  %v7986_v18 = vpop.f32.mrb[79].mxu0  ;;  %v8057_v63 = vpop.f32.mrb[79].mxu1  ;;  %v8066_v10 = vrot.slane %v8055_v22, 6  ;;  %v8096_v21 = vrot.slane %v17507_v5, 7 }
0x2693   :  { %v8065_v17 = vrot.slane %v7986_v18, 6  ;;  %v8067_v51 = vrot.slane %v8057_v63, 6 }
0x2694   :  { %v8072_v52 = vadd.f32 %v8064_v39, %v17451_v61  ;;  %v8074_v2 = vadd.f32 %v8066_v10, %v17459_v23 }
0x2695   :  { %v8073_v53 = vadd.f32 %v8065_v17, %v17453_v6  ;;  %v8075_v49 = vadd.f32 %v8067_v51, %v17462_v36 }
0x2696   :  { %v11101_v11 = vmul.f32 -1.442695, %v8072_v52  ;;  %v11103_v59 = vmul.f32 -1.442695, %v8074_v2 }
0x2697   :  { %v11102_v12 = vmul.f32 -1.442695, %v8073_v53 }
0x2698   :  { %15241 = vpow2.f32 %v11101_v11 }
0x2699   :  { %15243 = vpow2.f32 %v11102_v12 }
0x269a   :  { %15245 = vtanh.f32 %v8075_v49 }
0x269b   :  { %15247 = vpow2.f32 %v11103_v59 }
0x26a2   :  { %v15242_v32 = vpop.eup %15241 }
0x26a3   :  { %v8085_v34 = vadd.f32 1.0, %v15242_v32  ;;  %v15244_v27 = vpop.eup %15243 }
0x26a4   :  { %v8086_v58 = vadd.f32 1.0, %v15244_v27  ;;  %v15246_v56 = vpop.eup %15245 }
0x26a5   :  { %15249 = vrcp.f32 %v8085_v34  ;;  %v15248_v19 = vpop.eup %15247 }
0x26a6   :  { %15251 = vrcp.f32 %v8086_v58  ;;  %v8087_v18 = vadd.f32 1.0, %v15248_v19 }
0x26a8   :  { %15253 = vrcp.f32 %v8087_v18 }
0x26af   :  { %v15250_v35 = vpop.eup %15249 }
0x26b0   :  { %v8099_v22 = vmul.f32 %v15250_v35, %v15246_v56  ;;  %v15252_v39 = vpop.eup %15251 }
0x26b1   :  { %v8098_v63 = vmul.f32 %v15252_v39, %v8096_v21 }
0x26b2   :  { %v15254_v52 = vpop.eup %15253 }
0x26b3   :  { %v17549_v17 = vadd.f32 %v8099_v22, %v8098_v63 }
0x26b5   :  { %15255 = vtanh.f32 %v17549_v17 }
0x26bf   :  { %v15256_v53 = vpop.eup %15255 }
0x26c0   :  { %v8102_v11 = vmul.f32 %v15256_v53, %v15254_v52 }
0x26c2   :  { %8103 = vst [vmem:[#allocation2] sm:$0x4] %v8102_v11  ;;  %v8105_v12 = vrot.slane %v8102_v11, 2 }
0x26c4   :  { %8172 = vmatmul.mubr.f32.vlgmr.msra.gmra.mrb[80].mxu0 %v8105_v12  ;;  %8243 = vmatmul.mubr.f32.vlgmr.msra.gmra.mrb[80].mxu1 %v8105_v12 }
0x26c5   :  { %13827 = vmatpush1.bf16.msra.mxu0 %v17319_v1  ;;  %13859 = vmatpush1.bf16.msra.mxu1 %v17321_v20 }
0x26c6   :  { %13829 = vmatprep.subr.bf16.mxu0 %v17323_v55  ;;  %13861 = vmatprep.subr.bf16.mxu1 %v17325_v43 }
0x26c7   :  { %8360 = vmatprep.mubr.f32.mxu0 %v15570_v0  ;;  %8431 = vmatprep.mubr.f32.mxu1 %v15570_v0 }
0x26c9   :  { %13831 = vmatpush1.bf16.msra.mxu0 %v17329_v54  ;;  %13863 = vmatpush1.bf16.msra.mxu1 %v17331_v40 }
0x26ca   :  { %13833 = vmatprep.subr.bf16.mxu0 %v17335_v62  ;;  %13865 = vmatprep.subr.bf16.mxu1 %v17337_v46 }
0x26cd   :  { %13835 = vmatpush1.bf16.msra.mxu0 %v17343_v25  ;;  %13867 = vmatpush1.bf16.msra.mxu1 %v17345_v16 }
0x26ce   :  { %13837 = vmatprep.subr.bf16.mxu0 %v17349_v60  ;;  %13869 = vmatprep.subr.bf16.mxu1 %v17351_v4 }
0x26d1   :  { %13839 = vmatpush1.bf16.msra.mxu0 %v17355_v30  ;;  %13871 = vmatpush1.bf16.msra.mxu1 %v17357_v14 }
0x26d2   :  { %13841 = vmatprep.subr.bf16.mxu0 %v17361_v48  ;;  %13873 = vmatprep.subr.bf16.mxu1 %v17363_v7 }
0x26d5   :  { %13843 = vmatpush1.bf16.msra.mxu0 %v17367_v45  ;;  %13875 = vmatpush1.bf16.msra.mxu1 %v17369_v9 }
0x26d6   :  { %13845 = vmatprep.subr.bf16.mxu0 %v17373_v42  ;;  %13877 = vmatprep.subr.bf16.mxu1 %v17375_v33 }
0x26d9   :  { %13847 = vmatpush1.bf16.msra.mxu0 %v17379_v50  ;;  %13879 = vmatpush1.bf16.msra.mxu1 %v17381_v47 }
0x26da   :  { %13849 = vmatprep.subr.bf16.mxu0 %v17385_v26  ;;  %13881 = vmatprep.subr.bf16.mxu1 %v17387_v13 }
0x26dd   :  { %13851 = vmatpush1.bf16.msra.mxu0 %v17391_v8  ;;  %13883 = vmatpush1.bf16.msra.mxu1 %v17393_v44 }
0x26de   :  { %13853 = vmatprep.subr.bf16.mxu0 %v17397_v3  ;;  %13885 = vmatprep.subr.bf16.mxu1 %v17399_v15 }
0x26e1   :  { %13855 = vmatpush1.bf16.msra.mxu0 %v17403_v38  ;;  %13887 = vmatpush1.bf16.msra.mxu1 %v17405_v41 }
0x26e2   :  { %13889 = vmatprep.subr.bf16.mxu0 %v17312_v28  ;;  %13921 = vmatprep.subr.bf16.mxu1 %v17314_v24 }
0x2797   :  { %v8173_v5 = vpop.f32.mrb[80].mxu0  ;;  %v8244_v10 = vpop.f32.mrb[80].mxu1 }
0x2798   :  { %v8253_v51 = vrot.slane %v8173_v5, 5  ;;  %v8175_v2 = vpop.f32.mrb[81].mxu0  ;;  %v8246_v49 = vpop.f32.mrb[81].mxu1  ;;  %v8255_v56 = vrot.slane %v8244_v10, 5  ;;  %v8285_v5 = vrot.slane %v17549_v17, 7 }
0x2799   :  { %v8254_v59 = vrot.slane %v8175_v2, 5  ;;  %v8256_v19 = vrot.slane %v8246_v49, 5 }
0x279a   :  { %v8261_v32 = vadd.f32 %v8253_v51, %v17451_v61  ;;  %v8263_v35 = vadd.f32 %v8255_v56, %v17459_v23 }
0x279b   :  { %v8262_v34 = vadd.f32 %v8254_v59, %v17453_v6  ;;  %v8264_v21 = vadd.f32 %v8256_v19, %v17462_v36 }
0x279c   :  { %v11104_v27 = vmul.f32 -1.442695, %v8261_v32  ;;  %v11106_v22 = vmul.f32 -1.442695, %v8263_v35 }
0x279d   :  { %v11105_v58 = vmul.f32 -1.442695, %v8262_v34 }
0x279e   :  { %15257 = vpow2.f32 %v11104_v27 }
0x279f   :  { %15259 = vpow2.f32 %v11105_v58 }
0x27a0   :  { %15261 = vtanh.f32 %v8264_v21 }
0x27a1   :  { %15263 = vpow2.f32 %v11106_v22 }
0x27a8   :  { %v15258_v39 = vpop.eup %15257 }
0x27a9   :  { %v8274_v18 = vadd.f32 1.0, %v15258_v39  ;;  %v15260_v63 = vpop.eup %15259 }
0x27aa   :  { %v8275_v52 = vadd.f32 1.0, %v15260_v63  ;;  %v15262_v53 = vpop.eup %15261 }
0x27ab   :  { %15265 = vrcp.f32 %v8274_v18  ;;  %v15264_v11 = vpop.eup %15263 }
0x27ac   :  { %15267 = vrcp.f32 %v8275_v52  ;;  %v8276_v2 = vadd.f32 1.0, %v15264_v11 }
0x27ae   :  { %15269 = vrcp.f32 %v8276_v2 }
0x27b5   :  { %v15266_v12 = vpop.eup %15265 }
0x27b6   :  { %v8288_v10 = vmul.f32 %v15266_v12, %v15262_v53  ;;  %v15268_v51 = vpop.eup %15267 }
0x27b7   :  { %v8287_v49 = vmul.f32 %v15268_v51, %v8285_v5 }
0x27b8   :  { %v15270_v32 = vpop.eup %15269 }
0x27b9   :  { %v17591_v59 = vadd.f32 %v8288_v10, %v8287_v49 }
0x27bb   :  { %15271 = vtanh.f32 %v17591_v59 }
0x27c5   :  { %v15272_v34 = vpop.eup %15271 }
0x27c6   :  { %v8291_v27 = vmul.f32 %v15272_v34, %v15270_v32 }
0x27c8   :  { %8292 = vst [vmem:[#allocation2] sm:$0x8] %v8291_v27  ;;  %v8294_v58 = vrot.slane %v8291_v27, 3 }
0x27ca   :  { %8361 = vmatmul.mubr.f32.vlgmr.msra.gmra.mrb[82].mxu0 %v8294_v58  ;;  %8432 = vmatmul.mubr.f32.vlgmr.msra.gmra.mrb[82].mxu1 %v8294_v58 }
0x27cb   :  { %13891 = vmatpush1.bf16.msra.mxu0 %v17319_v1  ;;  %13923 = vmatpush1.bf16.msra.mxu1 %v17321_v20 }
0x27cc   :  { %13893 = vmatprep.subr.bf16.mxu0 %v17323_v55  ;;  %13925 = vmatprep.subr.bf16.mxu1 %v17325_v43 }
0x27cd   :  { %8549 = vmatprep.mubr.f32.mxu0 %v15570_v0  ;;  %8620 = vmatprep.mubr.f32.mxu1 %v15570_v0 }
0x27cf   :  { %13895 = vmatpush1.bf16.msra.mxu0 %v17329_v54  ;;  %13927 = vmatpush1.bf16.msra.mxu1 %v17331_v40 }
0x27d0   :  { %13897 = vmatprep.subr.bf16.mxu0 %v17335_v62  ;;  %13929 = vmatprep.subr.bf16.mxu1 %v17337_v46 }
0x27d3   :  { %13899 = vmatpush1.bf16.msra.mxu0 %v17343_v25  ;;  %13931 = vmatpush1.bf16.msra.mxu1 %v17345_v16 }
0x27d4   :  { %13901 = vmatprep.subr.bf16.mxu0 %v17349_v60  ;;  %13933 = vmatprep.subr.bf16.mxu1 %v17351_v4 }
0x27d7   :  { %13903 = vmatpush1.bf16.msra.mxu0 %v17355_v30  ;;  %13935 = vmatpush1.bf16.msra.mxu1 %v17357_v14 }
0x27d8   :  { %13905 = vmatprep.subr.bf16.mxu0 %v17361_v48  ;;  %13937 = vmatprep.subr.bf16.mxu1 %v17363_v7 }
0x27db   :  { %13907 = vmatpush1.bf16.msra.mxu0 %v17367_v45  ;;  %13939 = vmatpush1.bf16.msra.mxu1 %v17369_v9 }
0x27dc   :  { %13909 = vmatprep.subr.bf16.mxu0 %v17373_v42  ;;  %13941 = vmatprep.subr.bf16.mxu1 %v17375_v33 }
0x27df   :  { %13911 = vmatpush1.bf16.msra.mxu0 %v17379_v50  ;;  %13943 = vmatpush1.bf16.msra.mxu1 %v17381_v47 }
0x27e0   :  { %13913 = vmatprep.subr.bf16.mxu0 %v17385_v26  ;;  %13945 = vmatprep.subr.bf16.mxu1 %v17387_v13 }
0x27e3   :  { %13915 = vmatpush1.bf16.msra.mxu0 %v17391_v8  ;;  %13947 = vmatpush1.bf16.msra.mxu1 %v17393_v44 }
0x27e4   :  { %13917 = vmatprep.subr.bf16.mxu0 %v17397_v3  ;;  %13949 = vmatprep.subr.bf16.mxu1 %v17399_v15 }
0x27e7   :  { %13919 = vmatpush1.bf16.msra.mxu0 %v17403_v38  ;;  %13951 = vmatpush1.bf16.msra.mxu1 %v17405_v41 }
0x27e8   :  { %13953 = vmatprep.subr.bf16.mxu0 %v17312_v28  ;;  %13985 = vmatprep.subr.bf16.mxu1 %v17314_v24 }
0x289d   :  { %v8362_v17 = vpop.f32.mrb[82].mxu0  ;;  %v8433_v56 = vpop.f32.mrb[82].mxu1 }
0x289e   :  { %v8442_v19 = vrot.slane %v8362_v17, 4  ;;  %v8364_v35 = vpop.f32.mrb[83].mxu0  ;;  %v8435_v21 = vpop.f32.mrb[83].mxu1  ;;  %v8444_v53 = vrot.slane %v8433_v56, 4  ;;  %v8474_v17 = vrot.slane %v17591_v59, 7 }
0x289f   :  { %v8443_v22 = vrot.slane %v8364_v35, 4  ;;  %v8445_v11 = vrot.slane %v8435_v21, 4 }
0x28a0   :  { %v8450_v39 = vadd.f32 %v8442_v19, %v17451_v61  ;;  %v8452_v12 = vadd.f32 %v8444_v53, %v17459_v23 }
0x28a1   :  { %v8451_v18 = vadd.f32 %v8443_v22, %v17453_v6  ;;  %v8453_v5 = vadd.f32 %v8445_v11, %v17462_v36 }
0x28a2   :  { %v11107_v63 = vmul.f32 -1.442695, %v8450_v39  ;;  %v11109_v10 = vmul.f32 -1.442695, %v8452_v12 }
0x28a3   :  { %v11108_v52 = vmul.f32 -1.442695, %v8451_v18 }
0x28a4   :  { %15273 = vpow2.f32 %v11107_v63 }
0x28a5   :  { %15275 = vpow2.f32 %v11108_v52 }
0x28a6   :  { %15277 = vtanh.f32 %v8453_v5 }
0x28a7   :  { %15279 = vpow2.f32 %v11109_v10 }
0x28ae   :  { %v15274_v51 = vpop.eup %15273 }
0x28af   :  { %v8463_v2 = vadd.f32 1.0, %v15274_v51  ;;  %v15276_v49 = vpop.eup %15275 }
0x28b0   :  { %v8464_v32 = vadd.f32 1.0, %v15276_v49  ;;  %v15278_v34 = vpop.eup %15277 }
0x28b1   :  { %15281 = vrcp.f32 %v8463_v2  ;;  %v15280_v27 = vpop.eup %15279 }
0x28b2   :  { %15283 = vrcp.f32 %v8464_v32  ;;  %v8465_v35 = vadd.f32 1.0, %v15280_v27 }
0x28b4   :  { %15285 = vrcp.f32 %v8465_v35 }
0x28bb   :  { %v15282_v58 = vpop.eup %15281 }
0x28bc   :  { %v8477_v56 = vmul.f32 %v15282_v58, %v15278_v34  ;;  %v15284_v19 = vpop.eup %15283 }
0x28bd   :  { %v8476_v21 = vmul.f32 %v15284_v19, %v8474_v17 }
0x28be   :  { %v15286_v39 = vpop.eup %15285 }
0x28bf   :  { %v17633_v22 = vadd.f32 %v8477_v56, %v8476_v21 }
0x28c1   :  { %15287 = vtanh.f32 %v17633_v22 }
0x28cb   :  { %v15288_v18 = vpop.eup %15287 }
0x28cc   :  { %v8480_v63 = vmul.f32 %v15288_v18, %v15286_v39 }
0x28ce   :  { %8481 = vst [vmem:[#allocation2] sm:$0x10] %v8480_v63  ;;  %v8483_v52 = vrot.slane %v8480_v63, 4  ;;  %v8663_v63 = vrot.slane %v17633_v22, 7 }
0x28d0   :  { %8550 = vmatmul.mubr.f32.vlgmr.msra.gmra.mrb[84].mxu0 %v8483_v52  ;;  %8621 = vmatmul.mubr.f32.vlgmr.msra.gmra.mrb[84].mxu1 %v8483_v52 }
0x28d1   :  { %13955 = vmatpush1.bf16.msra.mxu0 %v17319_v1  ;;  %13987 = vmatpush1.bf16.msra.mxu1 %v17321_v20 }
0x28d2   :  { %13957 = vmatprep.subr.bf16.mxu0 %v17323_v55  ;;  %13989 = vmatprep.subr.bf16.mxu1 %v17325_v43 }
0x28d3   :  { %8738 = vmatprep.mubr.f32.mxu0 %v15570_v0  ;;  %8809 = vmatprep.mubr.f32.mxu1 %v15570_v0 }
0x28d5   :  { %13959 = vmatpush1.bf16.msra.mxu0 %v17329_v54  ;;  %13991 = vmatpush1.bf16.msra.mxu1 %v17331_v40 }
0x28d6   :  { %13961 = vmatprep.subr.bf16.mxu0 %v17335_v62  ;;  %13993 = vmatprep.subr.bf16.mxu1 %v17337_v46 }
0x28d9   :  { %13963 = vmatpush1.bf16.msra.mxu0 %v17343_v25  ;;  %13995 = vmatpush1.bf16.msra.mxu1 %v17345_v16 }
0x28da   :  { %13965 = vmatprep.subr.bf16.mxu0 %v17349_v60  ;;  %13997 = vmatprep.subr.bf16.mxu1 %v17351_v4 }
0x28dd   :  { %13967 = vmatpush1.bf16.msra.mxu0 %v17355_v30  ;;  %13999 = vmatpush1.bf16.msra.mxu1 %v17357_v14 }
0x28de   :  { %13969 = vmatprep.subr.bf16.mxu0 %v17361_v48  ;;  %14001 = vmatprep.subr.bf16.mxu1 %v17363_v7 }
0x28e1   :  { %13971 = vmatpush1.bf16.msra.mxu0 %v17367_v45  ;;  %14003 = vmatpush1.bf16.msra.mxu1 %v17369_v9 }
0x28e2   :  { %13973 = vmatprep.subr.bf16.mxu0 %v17373_v42  ;;  %14005 = vmatprep.subr.bf16.mxu1 %v17375_v33 }
0x28e5   :  { %13975 = vmatpush1.bf16.msra.mxu0 %v17379_v50  ;;  %14007 = vmatpush1.bf16.msra.mxu1 %v17381_v47 }
0x28e6   :  { %13977 = vmatprep.subr.bf16.mxu0 %v17385_v26  ;;  %14009 = vmatprep.subr.bf16.mxu1 %v17387_v13 }
0x28e9   :  { %13979 = vmatpush1.bf16.msra.mxu0 %v17391_v8  ;;  %14011 = vmatpush1.bf16.msra.mxu1 %v17393_v44 }
0x28ea   :  { %13981 = vmatprep.subr.bf16.mxu0 %v17397_v3  ;;  %14013 = vmatprep.subr.bf16.mxu1 %v17399_v15 }
0x28ed   :  { %13983 = vmatpush1.bf16.msra.mxu0 %v17403_v38  ;;  %14015 = vmatpush1.bf16.msra.mxu1 %v17405_v41 }
0x28ee   :  { %14017 = vmatprep.subr.bf16.mxu0 %v17312_v28  ;;  %14049 = vmatprep.subr.bf16.mxu1 %v17314_v24 }
0x29a3   :  { %v8551_v59 = vpop.f32.mrb[84].mxu0  ;;  %v8622_v53 = vpop.f32.mrb[84].mxu1 }
0x29a4   :  { %v8631_v11 = vrot.slane %v8551_v59, 3  ;;  %v8553_v12 = vpop.f32.mrb[85].mxu0  ;;  %v8624_v5 = vpop.f32.mrb[85].mxu1  ;;  %v8633_v34 = vrot.slane %v8622_v53, 3 }
0x29a5   :  { %v8632_v10 = vrot.slane %v8553_v12, 3  ;;  %v8634_v27 = vrot.slane %v8624_v5, 3 }
0x29a6   :  { %v8639_v51 = vadd.f32 %v8631_v11, %v17451_v61  ;;  %v8641_v28 = vadd.f32 %v8633_v34, %v17459_v23  ;;  %v9080_v34 = vld [vmem:[#allocation6 + $0x14c8] sm:$0xff] }
0x29a7   :  { %v8640_v2 = vadd.f32 %v8632_v10, %v17453_v6  ;;  %v8642_v24 = vadd.f32 %v8634_v27, %v17462_v36  ;;  %v9078_v27 = vld [vmem:[#allocation6 + $0x14b8] sm:$0xff] }
0x29a8   :  { %v11110_v49 = vmul.f32 -1.442695, %v8639_v51  ;;  %v11112_v58 = vmul.f32 -1.442695, %v8641_v28 }
0x29a9   :  { %v11111_v32 = vmul.f32 -1.442695, %v8640_v2 }
0x29aa   :  { %15289 = vpow2.f32 %v11110_v49 }
0x29ab   :  { %15291 = vpow2.f32 %v11111_v32  ;;  %v9076_v32 = vld [vmem:[#allocation6 + $0x14a8] sm:$0xff] }
0x29ac   :  { %15293 = vtanh.f32 %v8642_v24  ;;  %v14080_v28 = vpack.c.bf16 %v9080_v34, %v9076_v32  ;;  %v9082_v24 = vld [vmem:[#allocation6 + $0x14d8] sm:$0xff] }
0x29ad   :  { %15295 = vpow2.f32 %v11112_v58  ;;  %v9075_v58 = vld [vmem:[#allocation6 + $0x14a0] sm:$0xff]  ;;  %v9094_v32 = vld [vmem:[#allocation6 + $0x1538] sm:$0xff] }
0x29b4   :  { %v15290_v17 = vpop.eup %15289 }
0x29b5   :  { %v8652_v56 = vadd.f32 1.0, %v15290_v17  ;;  %v15292_v19 = vpop.eup %15291  ;;  %v9079_v17 = vld [vmem:[#allocation6 + $0x14c0] sm:$0xff] }
0x29b6   :  { %v8653_v35 = vadd.f32 1.0, %v15292_v19  ;;  %v15294_v21 = vpop.eup %15293  ;;  %v14082_v19 = vpack.c.bf16 %v9079_v17, %v9075_v58 }
0x29b7   :  { %15297 = vrcp.f32 %v8652_v56  ;;  %v15296_v39 = vpop.eup %15295  ;;  %v14112_v56 = vpack.c.bf16 %v9082_v24, %v9078_v27  ;;  %v9098_v27 = vld [vmem:[#allocation6 + $0x1558] sm:$0xff]  ;;  %v9095_v24 = vld [vmem:[#allocation6 + $0x1540] sm:$0xff] }
0x29b8   :  { %15299 = vrcp.f32 %v8653_v35  ;;  %v8654_v53 = vadd.f32 1.0, %v15296_v39  ;;  %v9077_v35 = vld [vmem:[#allocation6 + $0x14b0] sm:$0xff]  ;;  %v9084_v39 = vld [vmem:[#allocation6 + $0x14e8] sm:$0xff]  ;;  %v14120_v58 = vpack.c.bf16 %v9098_v27, %v9094_v32 }
0x29b9   :  { %v9136_v32 = vld [vmem:[#allocation6 + $0x1688] sm:$0xff] }
0x29ba   :  { %15301 = vrcp.f32 %v8654_v53 }
0x29c1   :  { %v15298_v18 = vpop.eup %15297 }
0x29c2   :  { %v8666_v52 = vmul.f32 %v15298_v18, %v15294_v21  ;;  %v15300_v59 = vpop.eup %15299  ;;  %v9081_v21 = vld [vmem:[#allocation6 + $0x14d0] sm:$0xff] }
0x29c3   :  { %v8665_v11 = vmul.f32 %v15300_v59, %v8663_v63  ;;  %v14114_v18 = vpack.c.bf16 %v9081_v21, %v9077_v35  ;;  %v9088_v63 = vld [vmem:[#allocation6 + $0x1508] sm:$0xff]  ;;  %v9090_v59 = vld [vmem:[#allocation6 + $0x1518] sm:$0xff] }
0x29c4   :  { %v15302_v5 = vpop.eup %15301  ;;  %v14084_v53 = vpack.c.bf16 %v9088_v63, %v9084_v39  ;;  %v9100_v21 = vld [vmem:[#allocation6 + $0x1568] sm:$0xff] }
0x29c5   :  { %v17675_v12 = vadd.f32 %v8666_v52, %v8665_v11  ;;  %v9086_v52 = vld [vmem:[#allocation6 + $0x14f8] sm:$0xff]  ;;  %v9104_v39 = vld [vmem:[#allocation6 + $0x1588] sm:$0xff] }
0x29c6   :  { %v14116_v11 = vpack.c.bf16 %v9090_v59, %v9086_v52  ;;  %v14092_v63 = vpack.c.bf16 %v9104_v39, %v9100_v21  ;;  %v9106_v52 = vld [vmem:[#allocation6 + $0x1598] sm:$0xff]  ;;  %v9099_v59 = vld [vmem:[#allocation6 + $0x1560] sm:$0xff]  ;;  %v9140_v21 = vld [vmem:[#allocation6 + $0x16a8] sm:$0xff] }
0x29c7   :  { %15303 = vtanh.f32 %v17675_v12  ;;  %v9144_v39 = vld [vmem:[#allocation6 + $0x16c8] sm:$0xff] }
0x29d1   :  { %v15304_v10 = vpop.eup %15303 }
0x29d2   :  { %v8669_v51 = vmul.f32 %v15304_v10, %v15302_v5  ;;  %v9087_v5 = vld [vmem:[#allocation6 + $0x1500] sm:$0xff]  ;;  %v9085_v10 = vld [vmem:[#allocation6 + $0x14f0] sm:$0xff] }
0x29d4   :  { %8670 = vst [vmem:[#allocation2] sm:$0x20] %v8669_v51  ;;  %v8672_v2 = vrot.slane %v8669_v51, 5 }
0x29d6   :  { %8739 = vmatmul.mubr.f32.vlgmr.msra.gmra.mrb[86].mxu0 %v8672_v2  ;;  %8810 = vmatmul.mubr.f32.vlgmr.msra.gmra.mrb[86].mxu1 %v8672_v2  ;;  %v9089_v2 = vld [vmem:[#allocation6 + $0x1510] sm:$0xff] }
0x29d7   :  { %14019 = vmatpush1.bf16.msra.mxu0 %v17319_v1  ;;  %14051 = vmatpush1.bf16.msra.mxu1 %v17321_v20 }
0x29d8   :  { %14021 = vmatprep.subr.bf16.mxu0 %v17323_v55  ;;  %14053 = vmatprep.subr.bf16.mxu1 %v17325_v43 }
0x29d9   :  { %8927 = vmatprep.mubr.f32.mxu0 %v15570_v0  ;;  %8998 = vmatprep.mubr.f32.mxu1 %v15570_v0 }
0x29db   :  { %14023 = vmatpush1.bf16.msra.mxu0 %v17329_v54  ;;  %14055 = vmatpush1.bf16.msra.mxu1 %v17331_v40 }
0x29dc   :  { %14025 = vmatprep.subr.bf16.mxu0 %v17335_v62  ;;  %14057 = vmatprep.subr.bf16.mxu1 %v17337_v46 }
0x29df   :  { %14027 = vmatpush1.bf16.msra.mxu0 %v17343_v25  ;;  %14059 = vmatpush1.bf16.msra.mxu1 %v17345_v16 }
0x29e0   :  { %14029 = vmatprep.subr.bf16.mxu0 %v17349_v60  ;;  %14061 = vmatprep.subr.bf16.mxu1 %v17351_v4 }
0x29e3   :  { %14031 = vmatpush1.bf16.msra.mxu0 %v17355_v30  ;;  %14063 = vmatpush1.bf16.msra.mxu1 %v17357_v14 }
0x29e4   :  { %14033 = vmatprep.subr.bf16.mxu0 %v17361_v48  ;;  %14065 = vmatprep.subr.bf16.mxu1 %v17363_v7 }
0x29e7   :  { %14035 = vmatpush1.bf16.msra.mxu0 %v17367_v45  ;;  %14067 = vmatpush1.bf16.msra.mxu1 %v17369_v9 }
0x29e8   :  { %14037 = vmatprep.subr.bf16.mxu0 %v17373_v42  ;;  %14069 = vmatprep.subr.bf16.mxu1 %v17375_v33 }
0x29eb   :  { %14039 = vmatpush1.bf16.msra.mxu0 %v17379_v50  ;;  %14071 = vmatpush1.bf16.msra.mxu1 %v17381_v47 }
0x29ec   :  { %14041 = vmatprep.subr.bf16.mxu0 %v17385_v26  ;;  %14073 = vmatprep.subr.bf16.mxu1 %v17387_v13  ;;  %v8852_v26 = vrot.slane %v17675_v12, 7  ;;  %v9083_v12 = vld [vmem:[#allocation6 + $0x14e0] sm:$0xff] }
0x29ed   :  { %v14086_v51 = vpack.c.bf16 %v9087_v5, %v9083_v12  ;;  %v9101_v5 = vld [vmem:[#allocation6 + $0x1570] sm:$0xff] }
0x29ef   :  { %14043 = vmatpush1.bf16.msra.mxu0 %v17391_v8  ;;  %14075 = vmatpush1.bf16.msra.mxu1 %v17393_v44 }
0x29f0   :  { %14045 = vmatprep.subr.bf16.mxu0 %v17397_v3  ;;  %14077 = vmatprep.subr.bf16.mxu1 %v17399_v15 }
0x29f3   :  { %14047 = vmatpush1.bf16.msra.mxu0 %v17403_v38  ;;  %14079 = vmatpush1.bf16.msra.mxu1 %v17405_v41 }
0x29f4   :  { %14081 = vmatprep.subr.bf16.mxu0 %v14080_v28  ;;  %14113 = vmatprep.subr.bf16.mxu1 %v14112_v56  ;;  %v9091_v28 = vld [vmem:[#allocation6 + $0x1520] sm:$0xff]  ;;  %v9093_v56 = vld [vmem:[#allocation6 + $0x1530] sm:$0xff] }
0x29f5   :  { %v14090_v17 = vpack.c.bf16 %v9095_v24, %v9091_v28  ;;  %v9134_v28 = vld [vmem:[#allocation6 + $0x1678] sm:$0xff] }
0x29f6   :  { %v9138_v24 = vld [vmem:[#allocation6 + $0x1698] sm:$0xff] }
0x2aa9   :  { %v8740_v1 = vpop.f32.mrb[86].mxu0  ;;  %v8811_v20 = vpop.f32.mrb[86].mxu1 }
0x2aaa   :  { %v8820_v55 = vrot.slane %v8740_v1, 2  ;;  %v8742_v43 = vpop.f32.mrb[87].mxu0  ;;  %v8813_v54 = vpop.f32.mrb[87].mxu1  ;;  %v8822_v60 = vrot.slane %v8811_v20, 2  ;;  %v14118_v1 = vpack.c.bf16 %v9089_v2, %v9085_v10  ;;  %v9105_v10 = vld [vmem:[#allocation6 + $0x1590] sm:$0xff]  ;;  %v9108_v2 = vld [vmem:[#allocation6 + $0x15a8] sm:$0xff] }
0x2aab   :  { %v8821_v40 = vrot.slane %v8742_v43, 2  ;;  %v8823_v4 = vrot.slane %v8813_v54, 2 }
0x2aac   :  { %v8828_v62 = vadd.f32 %v8820_v55, %v17451_v61  ;;  %v8830_v30 = vadd.f32 %v8822_v60, %v17459_v23 }
0x2aad   :  { %v8829_v46 = vadd.f32 %v8821_v40, %v17453_v6  ;;  %v8831_v14 = vadd.f32 %v8823_v4, %v17462_v36 }
0x2aae   :  { %v11113_v25 = vmul.f32 -1.442695, %v8828_v62  ;;  %v11115_v48 = vmul.f32 -1.442695, %v8830_v30 }
0x2aaf   :  { %v11114_v16 = vmul.f32 -1.442695, %v8829_v46 }
0x2ab0   :  { %15305 = vpow2.f32 %v11113_v25 }
0x2ab1   :  { %15307 = vpow2.f32 %v11114_v16 }
0x2ab2   :  { %15309 = vtanh.f32 %v8831_v14 }
0x2ab3   :  { %15311 = vpow2.f32 %v11115_v48 }
0x2aba   :  { %v15306_v7 = vpop.eup %15305 }
0x2abb   :  { %v8841_v45 = vadd.f32 1.0, %v15306_v7  ;;  %v15308_v9 = vpop.eup %15307 }
0x2abc   :  { %v8842_v42 = vadd.f32 1.0, %v15308_v9  ;;  %v15310_v33 = vpop.eup %15309 }
0x2abd   :  { %15313 = vrcp.f32 %v8841_v45  ;;  %v15312_v50 = vpop.eup %15311 }
0x2abe   :  { %15315 = vrcp.f32 %v8842_v42  ;;  %v8843_v44 = vadd.f32 1.0, %v15312_v50 }
0x2ac0   :  { %15317 = vrcp.f32 %v8843_v44 }
0x2ac7   :  { %v15314_v47 = vpop.eup %15313 }
0x2ac8   :  { %v8855_v13 = vmul.f32 %v15314_v47, %v15310_v33  ;;  %v15316_v8 = vpop.eup %15315 }
0x2ac9   :  { %v8854_v3 = vmul.f32 %v15316_v8, %v8852_v26 }
0x2aca   :  { %v15318_v38 = vpop.eup %15317 }
0x2acb   :  { %v17715_v15 = vadd.f32 %v8855_v13, %v8854_v3 }
0x2acd   :  { %15319 = vtanh.f32 %v17715_v15  ;;  %v9041_v47 = vrot.slane %v17715_v15, 7  ;;  %v9092_v15 = vld [vmem:[#allocation6 + $0x1528] sm:$0xff] }
0x2ad7   :  { %v15320_v41 = vpop.eup %15319 }
0x2ad8   :  { %v8858_v22 = vmul.f32 %v15320_v41, %v15318_v38 }
0x2ada   :  { %8859 = vst [vmem:[#allocation2] sm:$0x40] %v8858_v22  ;;  %v8861_v49 = vrot.slane %v8858_v22, 6 }
0x2adc   :  { %8928 = vmatmul.mubr.f32.vlgmr.msra.gmra.mrb[88].mxu0 %v8861_v49  ;;  %8999 = vmatmul.mubr.f32.vlgmr.msra.gmra.mrb[88].mxu1 %v8861_v49  ;;  %v9096_v49 = vld [vmem:[#allocation6 + $0x1548] sm:$0xff] }
0x2add   :  { %9290 = vmatprep.mubr.f32.mxu0 %v15570_v0  ;;  %9361 = vmatprep.mubr.f32.mxu1 %v15570_v0  ;;  %v14088_v34 = vpack.c.bf16 %v9096_v49, %v9092_v15  ;;  %v9129_v15 = vld [vmem:[#allocation6 + $0x1650] sm:$0xff]  ;;  %v9132_v49 = vld [vmem:[#allocation6 + $0x1668] sm:$0xff] }
0x2ade   :  { %14083 = vmatpush1.bf16.msra.mxu0 %v14082_v19  ;;  %14115 = vmatpush1.bf16.msra.mxu1 %v14114_v18  ;;  %v9097_v19 = vld [vmem:[#allocation6 + $0x1550] sm:$0xff]  ;;  %v9102_v18 = vld [vmem:[#allocation6 + $0x1578] sm:$0xff]  ;;  %v14108_v27 = vpack.c.bf16 %v9136_v32, %v9132_v49 }
0x2adf   :  { %14085 = vmatprep.subr.bf16.mxu0 %v14084_v53  ;;  %14117 = vmatprep.subr.bf16.mxu1 %v14116_v11  ;;  %v14122_v35 = vpack.c.bf16 %v9097_v19, %v9093_v56  ;;  %v9103_v53 = vld [vmem:[#allocation6 + $0x1580] sm:$0xff]  ;;  %v14124_v11 = vpack.c.bf16 %v9106_v52, %v9102_v18  ;;  %v9133_v19 = vld [vmem:[#allocation6 + $0x1670] sm:$0xff]  ;;  %v9142_v18 = vld [vmem:[#allocation6 + $0x16b8] sm:$0xff] }
0x2ae0   :  { %v14094_v12 = vpack.c.bf16 %v9103_v53, %v9099_v59  ;;  %v9135_v56 = vld [vmem:[#allocation6 + $0x1680] sm:$0xff]  ;;  %v9146_v52 = vld [vmem:[#allocation6 + $0x16d8] sm:$0xff]  ;;  %v17730_v53 = vpack.c.bf16 %v9144_v39, %v9140_v21  ;;  %v9157_v49 = vld [vmem:[#allocation6 + $0x1730] sm:$0xff] }
0x2ae1   :  { %v9161_v32 = vld [vmem:[#allocation6 + $0x1750] sm:$0xff] }
0x2ae2   :  { %14087 = vmatpush1.bf16.msra.mxu0 %v14086_v51  ;;  %14119 = vmatpush1.bf16.msra.mxu1 %v14118_v1  ;;  %v14126_v51 = vpack.c.bf16 %v9105_v10, %v9101_v5  ;;  %v9112_v1 = vld [vmem:[#allocation6 + $0x15c8] sm:$0xff]  ;;  %v9165_v39 = vld [vmem:[#allocation6 + $0x1770] sm:$0xff] }
0x2ae3   :  { %14089 = vmatprep.subr.bf16.mxu0 %v14088_v34  ;;  %14121 = vmatprep.subr.bf16.mxu1 %v14120_v58  ;;  %v9131_v58 = vld [vmem:[#allocation6 + $0x1660] sm:$0xff] }
0x2ae6   :  { %14091 = vmatpush1.bf16.msra.mxu0 %v14090_v17  ;;  %14123 = vmatpush1.bf16.msra.mxu1 %v14122_v35  ;;  %v14140_v17 = vpack.c.bf16 %v9138_v24, %v9134_v28  ;;  %v9137_v35 = vld [vmem:[#allocation6 + $0x1690] sm:$0xff]  ;;  %v9166_v28 = vld [vmem:[#allocation6 + $0x1778] sm:$0xff] }
0x2ae7   :  { %14093 = vmatprep.subr.bf16.mxu0 %v14092_v63  ;;  %14125 = vmatprep.subr.bf16.mxu1 %v14124_v11  ;;  %v14110_v63 = vpack.c.bf16 %v9135_v56, %v9131_v58  ;;  %v14142_v59 = vpack.c.bf16 %v9137_v35, %v9133_v19  ;;  %v17732_v11 = vpack.c.bf16 %v9146_v52, %v9142_v18  ;;  %v9170_v24 = vld [vmem:[#allocation6 + $0x1798] sm:$0xff]  ;;  %v9163_v56 = vld [vmem:[#allocation6 + $0x1760] sm:$0xff]  ;;  %v9169_v18 = vld [vmem:[#allocation6 + $0x1790] sm:$0xff] }
0x2ae8   :  { %v9167_v19 = vld [vmem:[#allocation6 + $0x1780] sm:$0xff]  ;;  %v17769_v21 = vpack.c.bf16 %v9170_v24, %v9166_v28  ;;  %v9176_v52 = vld [vmem:[#allocation6 + $0x17c8] sm:$0xff]  ;;  %v9202_v28 = vld [vmem:[#allocation6 + $0x1898] sm:$0xff] }
0x2aea   :  { %14095 = vmatpush1.bf16.msra.mxu0 %v14094_v12  ;;  %14127 = vmatpush1.bf16.msra.mxu1 %v14126_v51 }
0x2baf   :  { %v8929_v20 = vpop.f32.mrb[88].mxu0  ;;  %v9000_v55 = vpop.f32.mrb[88].mxu1 }
0x2bb0   :  { %v9009_v43 = vrot.slane %v8929_v20, 1  ;;  %v8931_v54 = vpop.f32.mrb[89].mxu0  ;;  %v9002_v40 = vpop.f32.mrb[89].mxu1  ;;  %v9011_v4 = vrot.slane %v9000_v55, 1  ;;  %v9110_v20 = vld [vmem:[#allocation6 + $0x15b8] sm:$0xff]  ;;  %v14096_v55 = vpack.c.bf16 %v9112_v1, %v9108_v2 }
0x2bb1   :  { %v9010_v62 = vrot.slane %v8931_v54, 1  ;;  %v9012_v30 = vrot.slane %v9002_v40, 1  ;;  %v9107_v54 = vld [vmem:[#allocation6 + $0x15a0] sm:$0xff] }
0x2bb2   :  { %v9017_v46 = vadd.f32 %v9009_v43, %v17451_v61  ;;  %v9019_v14 = vadd.f32 %v9011_v4, %v17459_v23  ;;  %v9114_v43 = vld [vmem:[#allocation6 + $0x15d8] sm:$0xff]  ;;  %v9111_v40 = vld [vmem:[#allocation6 + $0x15c0] sm:$0xff]  ;;  %14097 = vmatprep.subr.bf16.mxu0 %v14096_v55  ;;  %v9116_v4 = vld [vmem:[#allocation6 + $0x15e8] sm:$0xff] }
0x2bb3   :  { %v9018_v25 = vadd.f32 %v9010_v62, %v17453_v6  ;;  %v9020_v48 = vadd.f32 %v9012_v30, %v17462_v36  ;;  %v14128_v62 = vpack.c.bf16 %v9114_v43, %v9110_v20  ;;  %v9120_v30 = vld [vmem:[#allocation6 + $0x1608] sm:$0xff]  ;;  %v11119_v43 = vld [vmem:[#allocation8 + $0xb0] ss:$0 sm:$0xff] }
0x2bb4   :  { %v11116_v16 = vmul.f32 -1.442695, %v9017_v46  ;;  %v11118_v7 = vmul.f32 -1.442695, %v9019_v14  ;;  %v14098_v46 = vpack.c.bf16 %v9111_v40, %v9107_v54  ;;  %v9118_v14 = vld [vmem:[#allocation6 + $0x15f8] sm:$0xff] }
0x2bb5   :  { %v11117_v60 = vmul.f32 -1.442695, %v9018_v25  ;;  %v9109_v25 = vld [vmem:[#allocation6 + $0x15b0] sm:$0xff]  ;;  %14129 = vmatprep.subr.bf16.mxu1 %v14128_v62  ;;  %v11120_v40 = vld [vmem:[#allocation8 + $0xb8] ss:$0 sm:$0xff]  ;;  %v9139_v62 = vld [vmem:[#allocation6 + $0x16a0] sm:$0xff] }
0x2bb6   :  { %15321 = vpow2.f32 %v11116_v16  ;;  %v9113_v16 = vld [vmem:[#allocation6 + $0x15d0] sm:$0xff]  ;;  %14099 = vmatpush1.bf16.msra.mxu0 %v14098_v46  ;;  %v9143_v46 = vld [vmem:[#allocation6 + $0x16c0] sm:$0xff] }
0x2bb7   :  { %15323 = vpow2.f32 %v11117_v60  ;;  %v14130_v60 = vpack.c.bf16 %v9113_v16, %v9109_v25  ;;  %v9141_v16 = vld [vmem:[#allocation6 + $0x16b0] sm:$0xff] }
0x2bb8   :  { %15325 = vtanh.f32 %v9020_v48  ;;  %v14100_v48 = vpack.c.bf16 %v9120_v30, %v9116_v4  ;;  %v9148_v4 = vld [vmem:[#allocation6 + $0x16e8] sm:$0xff] }
0x2bb9   :  { %15327 = vpow2.f32 %v11118_v7  ;;  %v9122_v7 = vld [vmem:[#allocation6 + $0x1618] sm:$0xff]  ;;  %14131 = vmatpush1.bf16.msra.mxu1 %v14130_v60  ;;  %v9145_v60 = vld [vmem:[#allocation6 + $0x16d0] sm:$0xff]  ;;  %v9152_v30 = vld [vmem:[#allocation6 + $0x1708] sm:$0xff] }
0x2bba   :  { %14101 = vmatprep.subr.bf16.mxu0 %v14100_v48  ;;  %v9154_v48 = vld [vmem:[#allocation6 + $0x1718] sm:$0xff] }
0x2bc0   :  { %v15322_v45 = vpop.eup %15321 }
0x2bc1   :  { %v9030_v9 = vadd.f32 1.0, %v15322_v45  ;;  %v15324_v42 = vpop.eup %15323  ;;  %v9115_v45 = vld [vmem:[#allocation6 + $0x15e0] sm:$0xff] }
0x2bc2   :  { %v9031_v61 = vadd.f32 1.0, %v15324_v42  ;;  %v15326_v6 = vpop.eup %15325  ;;  %v14132_v42 = vpack.c.bf16 %v9122_v7, %v9118_v14  ;;  %v9150_v14 = vld [vmem:[#allocation6 + $0x16f8] sm:$0xff] }
0x2bc3   :  { %15329 = vrcp.f32 %v9030_v9  ;;  %v15328_v33 = vpop.eup %15327  ;;  %v9119_v9 = vld [vmem:[#allocation6 + $0x1600] sm:$0xff] }
0x2bc4   :  { %15331 = vrcp.f32 %v9031_v61  ;;  %v9032_v8 = vadd.f32 1.0, %v15328_v33  ;;  %v14102_v61 = vpack.c.bf16 %v9119_v9, %v9115_v45  ;;  %v9121_v33 = vld [vmem:[#allocation6 + $0x1610] sm:$0xff]  ;;  %14133 = vmatprep.subr.bf16.mxu1 %v14132_v42  ;;  %v17737_v45 = vpack.c.bf16 %v9143_v46, %v9139_v62  ;;  %v9147_v42 = vld [vmem:[#allocation6 + $0x16e0] sm:$0xff]  ;;  %v9182_v62 = vld [vmem:[#allocation6 + $0x17f8] sm:$0xff] }
0x2bc5   :  { %v17739_v9 = vpack.c.bf16 %v9145_v60, %v9141_v16  ;;  %v9186_v46 = vld [vmem:[#allocation6 + $0x1818] sm:$0xff]  ;;  %v9179_v60 = vld [vmem:[#allocation6 + $0x17e0] sm:$0xff] }
0x2bc6   :  { %15333 = vrcp.f32 %v9032_v8  ;;  %v9130_v8 = vld [vmem:[#allocation6 + $0x1658] sm:$0xff]  ;;  %14103 = vmatpush1.bf16.msra.mxu0 %v14102_v61  ;;  %v9151_v61 = vld [vmem:[#allocation6 + $0x1700] sm:$0xff] }
0x2bcd   :  { %v15330_v50 = vpop.eup %15329 }
0x2bce   :  { %v9044_v26 = vmul.f32 %v15330_v50, %v15326_v6  ;;  %v15332_v13 = vpop.eup %15331  ;;  %v9117_v6 = vld [vmem:[#allocation6 + $0x15f0] sm:$0xff]  ;;  %v9124_v50 = vld [vmem:[#allocation6 + $0x1628] sm:$0xff] }
0x2bcf   :  { %v9043_v23 = vmul.f32 %v15332_v13, %v9041_v47  ;;  %v14134_v47 = vpack.c.bf16 %v9121_v33, %v9117_v6  ;;  %v9126_v13 = vld [vmem:[#allocation6 + $0x1638] sm:$0xff]  ;;  %v17741_v6 = vpack.c.bf16 %v9152_v30, %v9148_v4  ;;  %v17743_v33 = vpack.c.bf16 %v9154_v48, %v9150_v14  ;;  %v9183_v4 = vld [vmem:[#allocation6 + $0x1800] sm:$0xff]  ;;  %v9181_v48 = vld [vmem:[#allocation6 + $0x17f0] sm:$0xff] }
0x2bd0   :  { %v15334_v36 = vpop.eup %15333  ;;  %v17793_v14 = vpack.c.bf16 %v9186_v46, %v9182_v62 }
0x2bd1   :  { %v9045_v44 = vadd.f32 %v9044_v26, %v9043_v23  ;;  %v9128_v26 = vld [vmem:[#allocation6 + $0x1648] sm:$0xff]  ;;  %14135 = vmatpush1.bf16.msra.mxu1 %v14134_v47  ;;  %v9153_v47 = vld [vmem:[#allocation6 + $0x1710] sm:$0xff] }
0x2bd2   :  { %v14104_v23 = vpack.c.bf16 %v9128_v26, %v9124_v50  ;;  %v9149_v50 = vld [vmem:[#allocation6 + $0x16f0] sm:$0xff]  ;;  %v9156_v26 = vld [vmem:[#allocation6 + $0x1728] sm:$0xff] }
0x2bd3   :  { %15335 = vtanh.f32 %v9045_v44  ;;  %v14136_v44 = vpack.c.bf16 %v9130_v8, %v9126_v13  ;;  %v9160_v13 = vld [vmem:[#allocation6 + $0x1748] sm:$0xff]  ;;  %v9158_v8 = vld [vmem:[#allocation6 + $0x1738] sm:$0xff] }
0x2bd4   :  { %14105 = vmatprep.subr.bf16.mxu0 %v14104_v23  ;;  %v9162_v23 = vld [vmem:[#allocation6 + $0x1758] sm:$0xff] }
0x2bd5   :  { %14137 = vmatprep.subr.bf16.mxu1 %v14136_v44  ;;  %v17747_v44 = vpack.c.bf16 %v9151_v61, %v9147_v42  ;;  %v9188_v42 = vld [vmem:[#allocation6 + $0x1828] sm:$0xff] }
0x2bd6   :  { %v9192_v61 = vld [vmem:[#allocation6 + $0x1848] sm:$0xff] }
0x2bdd   :  { %v15336_v3 = vpop.eup %15335 }
0x2bde   :  { %v9047_v38 = vmul.f32 %v15336_v3, %v15334_v36  ;;  %v9123_v36 = vld [vmem:[#allocation6 + $0x1620] sm:$0xff] }
0x2bdf   :  { %v9127_v3 = vld [vmem:[#allocation6 + $0x1640] sm:$0xff] }
0x2be0   :  { %9048 = vst [vmem:[#allocation2] sm:$0x80] %v9047_v38  ;;  %v9125_v38 = vld [vmem:[#allocation6 + $0x1630] sm:$0xff] }
0x2be1   :  { %v14138_v34 = vpack.c.bf16 %v9129_v15, %v9125_v38  ;;  %v9159_v38 = vld [vmem:[#allocation6 + $0x1740] sm:$0xff]  ;;  %v17755_v15 = vpack.c.bf16 %v9162_v23, %v9158_v8  ;;  %v17803_v23 = vpack.c.bf16 %v9192_v61, %v9188_v42 }
0x2be2   :  { %v9191_v8 = vld [vmem:[#allocation6 + $0x1840] sm:$0xff] }
0x2be3   :  { %14139 = vmatpush1.bf16.msra.mxu1 %v14138_v34  ;;  %v9164_v34 = vld [vmem:[#allocation6 + $0x1768] sm:$0xff] }
0x2be4   :  { %14141 = vmatprep.subr.bf16.mxu1 %v14140_v17  ;;  %v17763_v17 = vpack.c.bf16 %v9161_v32, %v9157_v49  ;;  %v9193_v49 = vld [vmem:[#allocation6 + $0x1850] sm:$0xff]  ;;  %v9196_v32 = vld [vmem:[#allocation6 + $0x1868] sm:$0xff] }
0x2be7   :  { %v17725_v41 = vld [vmem:[#allocation2] sm:$0xff]  ;;  %14143 = vmatpush1.bf16.msra.mxu1 %v14142_v59  ;;  %v9174_v59 = vld [vmem:[#allocation6 + $0x17b8] sm:$0xff] }
0x2be8   :  { %9052 = vadd.xlane.f32.xlu0 %v17725_v41  ;;  %v9055_v22 = vmul.f32 %v17725_v41, %v17725_v41  ;;  %14177 = vmatprep.subr.bf16.mxu1 %v17732_v11 }
0x2bea   :  { %9056 = vadd.xlane.f32.xlu1 %v9055_v22  ;;  %v14106_v22 = vpack.c.bf16 %v9127_v3, %v9123_v36  ;;  %v17749_v36 = vpack.c.bf16 %v9153_v47, %v9149_v50  ;;  %v9155_v3 = vld [vmem:[#allocation6 + $0x1720] sm:$0xff]  ;;  %v9194_v50 = vld [vmem:[#allocation6 + $0x1858] sm:$0xff]  ;;  %v17797_v47 = vpack.c.bf16 %v9183_v4, %v9179_v60 }
0x2beb   :  { %v17761_v58 = vpack.c.bf16 %v9159_v38, %v9155_v3  ;;  %v9189_v38 = vld [vmem:[#allocation6 + $0x1830] sm:$0xff] }
0x2bec   :  { %14107 = vmatpush1.bf16.msra.mxu0 %v14106_v22  ;;  %v17753_v22 = vpack.c.bf16 %v9160_v13, %v9156_v26  ;;  %v9187_v13 = vld [vmem:[#allocation6 + $0x1820] sm:$0xff] }
0x2bed   :  { %14109 = vmatprep.subr.bf16.mxu0 %v14108_v27  ;;  %v9168_v27 = vld [vmem:[#allocation6 + $0x1788] sm:$0xff]  ;;  %v17809_v24 = vpack.c.bf16 %v9191_v8, %v9187_v13 }
0x2bee   :  { %v17767_v35 = vpack.c.bf16 %v9168_v27, %v9164_v34  ;;  %v9200_v34 = vld [vmem:[#allocation6 + $0x1888] sm:$0xff]  ;;  %v9198_v27 = vld [vmem:[#allocation6 + $0x1878] sm:$0xff] }
0x2bf0   :  { %14111 = vmatpush1.bf16.msra.mxu0 %v14110_v63  ;;  %v9172_v63 = vld [vmem:[#allocation6 + $0x17a8] sm:$0xff] }
0x2bf1   :  { %14145 = vmatprep.subr.bf16.mxu0 %v17730_v53 }
0x2c75   :  { %v9053_v12 = vpop.xlane.xlu0 %9052 }
0x2c76   :  { %v9054_v5 = vmul.f32 0.03125, %v9053_v12  ;;  %v9178_v12 = vld [vmem:[#allocation6 + $0x17d8] sm:$0xff] }
0x2c77   :  { %v9057_v10 = vpop.xlane.xlu1 %9056 }
0x2c78   :  { %v9059_v51 = vmul.f32 %v9054_v5, %v9054_v5  ;;  %v9058_v2 = vmul.f32 0.03125, %v9057_v10  ;;  %v9063_v55 = vsub.f32 %v17725_v41, %v9054_v5  ;;  %v17773_v5 = vpack.c.bf16 %v9167_v19, %v9163_v56  ;;  %v9195_v19 = vld [vmem:[#allocation6 + $0x1860] sm:$0xff] }
0x2c79   :  { %v17775_v10 = vpack.c.bf16 %v9169_v18, %v9165_v39  ;;  %v17811_v56 = vpack.c.bf16 %v9193_v49, %v9189_v38  ;;  %v17815_v39 = vpack.c.bf16 %v9200_v34, %v9196_v32  ;;  %v17817_v18 = vpack.c.bf16 %v9202_v28, %v9198_v27 }
0x2c7a   :  { %v9060_v1 = vsub.f32 %v9058_v2, %v9059_v51  ;;  %v9171_v51 = vld [vmem:[#allocation6 + $0x17a0] sm:$0xff] }
0x2c7b   :  { %v9175_v2 = vld [vmem:[#allocation6 + $0x17c0] sm:$0xff] }
0x2c7c   :  { %v9061_v20 = vadd.f32 1e-05, %v9060_v1  ;;  %v17779_v1 = vpack.c.bf16 %v9176_v52, %v9172_v63  ;;  %v9199_v63 = vld [vmem:[#allocation6 + $0x1880] sm:$0xff]  ;;  %v9197_v52 = vld [vmem:[#allocation6 + $0x1870] sm:$0xff] }
0x2c7e   :  { %15337 = vrsqrt.f32 %v9061_v20  ;;  %v17781_v20 = vpack.c.bf16 %v9178_v12, %v9174_v59  ;;  %v9201_v59 = vld [vmem:[#allocation6 + $0x1890] sm:$0xff]  ;;  %v17821_v12 = vpack.c.bf16 %v9199_v63, %v9195_v19 }
0x2c88   :  { %v15338_v54 = vpop.eup %15337 }
0x2c89   :  { %v9064_v25 = vmul.f32 %v15338_v54, %v9063_v55  ;;  %v9173_v55 = vld [vmem:[#allocation6 + $0x17b0] sm:$0xff]  ;;  %v9180_v54 = vld [vmem:[#allocation6 + $0x17e8] sm:$0xff] }
0x2c8b   :  { %v9069_v7 = vmul.f32 %v11119_v43, %v9064_v25  ;;  %v9177_v43 = vld [vmem:[#allocation6 + $0x17d0] sm:$0xff]  ;;  %v17785_v25 = vpack.c.bf16 %v9175_v2, %v9171_v51  ;;  %v17823_v51 = vpack.c.bf16 %v9201_v59, %v9197_v52 }
0x2c8c   :  { %v17787_v16 = vpack.c.bf16 %v9177_v43, %v9173_v55 }
0x2c8d   :  { %v9074_v41 = vadd.f32 %v11120_v40, %v9069_v7  ;;  %v9184_v40 = vld [vmem:[#allocation6 + $0x1808] sm:$0xff]  ;;  %v9185_v7 = vld [vmem:[#allocation6 + $0x1810] sm:$0xff] }
0x2c8e   :  { %v17791_v30 = vpack.c.bf16 %v9184_v40, %v9180_v54  ;;  %v17799_v26 = vpack.c.bf16 %v9185_v7, %v9181_v48  ;;  %v9204_v40 = vld [vmem:[#allocation6 + $0x18a0] ss:$8 sm:$0xf] }
0x2c8f   :  { %9291 = vmatmul.mubr.f32.vlgmr.msra.gmra.mrb[90].mxu0 %v9074_v41  ;;  %9362 = vmatmul.mubr.f32.vlgmr.msra.gmra.mrb[90].mxu1 %v9074_v41  ;;  %v9190_v41 = vld [vmem:[#allocation6 + $0x1838] sm:$0xff]  ;;  %v9209_v62 = vrot.slane %v9204_v40, %v15771_v29  ;;  %v9213_v46 = vrot.slane %v9204_v40, %v15774_v31  ;;  %v9217_v13 = vrot.slane %v9204_v40, %v15779_v37 }
0x2c90   :  { %14147 = vmatpush1.bf16.msra.mxu0 %v17737_v45  ;;  %14179 = vmatpush1.bf16.msra.mxu1 %v17739_v9  ;;  %v17805_v3 = vpack.c.bf16 %v9194_v50, %v9190_v41  ;;  %v9221_v29 = vrot.slane %v9204_v40, %v15789_v57 }
0x2c91   :  { %14149 = vmatprep.subr.bf16.mxu0 %v17741_v6  ;;  %14181 = vmatprep.subr.bf16.mxu1 %v17743_v33 }
0x2c92   :  { %9432 = vmatprep.mubr.f32.mxu0 %v15570_v0  ;;  %9503 = vmatprep.mubr.f32.mxu1 %v15570_v0 }
0x2c94   :  { %14151 = vmatpush1.bf16.msra.mxu0 %v17747_v44  ;;  %14183 = vmatpush1.bf16.msra.mxu1 %v17749_v36 }
0x2c95   :  { %14153 = vmatprep.subr.bf16.mxu0 %v17753_v22  ;;  %14185 = vmatprep.subr.bf16.mxu1 %v17755_v15 }
0x2c98   :  { %14155 = vmatpush1.bf16.msra.mxu0 %v17761_v58  ;;  %14187 = vmatpush1.bf16.msra.mxu1 %v17763_v17 }
0x2c99   :  { %14157 = vmatprep.subr.bf16.mxu0 %v17767_v35  ;;  %14189 = vmatprep.subr.bf16.mxu1 %v17769_v21 }
0x2c9c   :  { %14159 = vmatpush1.bf16.msra.mxu0 %v17773_v5  ;;  %14191 = vmatpush1.bf16.msra.mxu1 %v17775_v10 }
0x2c9d   :  { %14161 = vmatprep.subr.bf16.mxu0 %v17779_v1  ;;  %14193 = vmatprep.subr.bf16.mxu1 %v17781_v20 }
0x2ca0   :  { %14163 = vmatpush1.bf16.msra.mxu0 %v17785_v25  ;;  %14195 = vmatpush1.bf16.msra.mxu1 %v17787_v16 }
0x2ca1   :  { %14165 = vmatprep.subr.bf16.mxu0 %v17791_v30  ;;  %14197 = vmatprep.subr.bf16.mxu1 %v17793_v14 }
0x2ca4   :  { %14167 = vmatpush1.bf16.msra.mxu0 %v17797_v47  ;;  %14199 = vmatpush1.bf16.msra.mxu1 %v17799_v26 }
0x2ca5   :  { %14169 = vmatprep.subr.bf16.mxu0 %v17803_v23  ;;  %14201 = vmatprep.subr.bf16.mxu1 %v17805_v3 }
0x2ca8   :  { %14171 = vmatpush1.bf16.msra.mxu0 %v17809_v24  ;;  %14203 = vmatpush1.bf16.msra.mxu1 %v17811_v56 }
0x2ca9   :  { %14173 = vmatprep.subr.bf16.mxu0 %v17815_v39  ;;  %14205 = vmatprep.subr.bf16.mxu1 %v17817_v18 }
0x2cac   :  { %14175 = vmatpush1.bf16.msra.mxu0 %v17821_v12  ;;  %14207 = vmatpush1.bf16.msra.mxu1 %v17823_v51 }
0x2cad   :  { %14209 = vmatprep.subr.bf16.mxu0 %v17730_v53  ;;  %14241 = vmatprep.subr.bf16.mxu1 %v17732_v11 }
0x2caf   :  { %9433 = vmatmul.mubr.f32.vlgmr.msra.gmra.mrb[92].mxu0 %v15570_v0  ;;  %9504 = vmatmul.mubr.f32.vlgmr.msra.gmra.mrb[92].mxu1 %v15570_v0 }
0x2cb0   :  { %14211 = vmatpush1.bf16.msra.mxu0 %v17737_v45  ;;  %14243 = vmatpush1.bf16.msra.mxu1 %v17739_v9 }
0x2cb1   :  { %14213 = vmatprep.subr.bf16.mxu0 %v17741_v6  ;;  %14245 = vmatprep.subr.bf16.mxu1 %v17743_v33 }
0x2cb2   :  { %9603 = vmatprep.mubr.f32.mxu0 %v15570_v0  ;;  %9674 = vmatprep.mubr.f32.mxu1 %v15570_v0 }
0x2cb4   :  { %14215 = vmatpush1.bf16.msra.mxu0 %v17747_v44  ;;  %14247 = vmatpush1.bf16.msra.mxu1 %v17749_v36 }
0x2cb5   :  { %14217 = vmatprep.subr.bf16.mxu0 %v17753_v22  ;;  %14249 = vmatprep.subr.bf16.mxu1 %v17755_v15 }
0x2cb8   :  { %14219 = vmatpush1.bf16.msra.mxu0 %v17761_v58  ;;  %14251 = vmatpush1.bf16.msra.mxu1 %v17763_v17 }
0x2cb9   :  { %14221 = vmatprep.subr.bf16.mxu0 %v17767_v35  ;;  %14253 = vmatprep.subr.bf16.mxu1 %v17769_v21 }
0x2cbc   :  { %14223 = vmatpush1.bf16.msra.mxu0 %v17773_v5  ;;  %14255 = vmatpush1.bf16.msra.mxu1 %v17775_v10 }
0x2cbd   :  { %14225 = vmatprep.subr.bf16.mxu0 %v17779_v1  ;;  %14257 = vmatprep.subr.bf16.mxu1 %v17781_v20 }
0x2cc0   :  { %14227 = vmatpush1.bf16.msra.mxu0 %v17785_v25  ;;  %14259 = vmatpush1.bf16.msra.mxu1 %v17787_v16 }
0x2cc1   :  { %14229 = vmatprep.subr.bf16.mxu0 %v17791_v30  ;;  %14261 = vmatprep.subr.bf16.mxu1 %v17793_v14 }
0x2cc4   :  { %14231 = vmatpush1.bf16.msra.mxu0 %v17797_v47  ;;  %14263 = vmatpush1.bf16.msra.mxu1 %v17799_v26 }
0x2cc5   :  { %14233 = vmatprep.subr.bf16.mxu0 %v17803_v23  ;;  %14265 = vmatprep.subr.bf16.mxu1 %v17805_v3 }
0x2cc8   :  { %14235 = vmatpush1.bf16.msra.mxu0 %v17809_v24  ;;  %14267 = vmatpush1.bf16.msra.mxu1 %v17811_v56 }
0x2cc9   :  { %14237 = vmatprep.subr.bf16.mxu0 %v17815_v39  ;;  %14269 = vmatprep.subr.bf16.mxu1 %v17817_v18 }
0x2ccc   :  { %14239 = vmatpush1.bf16.msra.mxu0 %v17821_v12  ;;  %14271 = vmatpush1.bf16.msra.mxu1 %v17823_v51 }
0x2ccd   :  { %14273 = vmatprep.subr.bf16.mxu0 %v17730_v53  ;;  %14305 = vmatprep.subr.bf16.mxu1 %v17732_v11 }
0x2d62   :  { %v9292_v2 = vpop.f32.mrb[90].mxu0  ;;  %v9363_v55 = vpop.f32.mrb[90].mxu1 }
0x2d63   :  { %v9294_v43 = vpop.f32.mrb[91].mxu0  ;;  %v9365_v54 = vpop.f32.mrb[91].mxu1  ;;  %v17869_v60 = vadd.f32 %v9292_v2, %v9209_v62  ;;  %v17877_v31 = vadd.f32 %v9363_v55, %v9217_v13 }
0x2d64   :  { %v17871_v4 = vadd.f32 %v9294_v43, %v9213_v46  ;;  %v17880_v32 = vadd.f32 %v9365_v54, %v9221_v29 }
0x2d82   :  { %v9434_v48 = vpop.f32.mrb[92].mxu0  ;;  %v9505_v7 = vpop.f32.mrb[92].mxu1 }
0x2d83   :  { %v9510_v42 = vadd.f32 %v9434_v48, %v17869_v60  ;;  %v9436_v61 = vpop.f32.mrb[93].mxu0  ;;  %v9507_v41 = vpop.f32.mrb[93].mxu1  ;;  %v9512_v49 = vadd.f32 %v9505_v7, %v17877_v31 }
0x2d84   :  { %v9511_v50 = vadd.f32 %v9436_v61, %v17871_v4  ;;  %v9513_v34 = vadd.f32 %v9507_v41, %v17880_v32 }
0x2d85   :  { %v11121_v8 = vmul.f32 -1.442695, %v9510_v42  ;;  %v11123_v27 = vmul.f32 -1.442695, %v9512_v49 }
0x2d86   :  { %v11122_v38 = vmul.f32 -1.442695, %v9511_v50 }
0x2d87   :  { %15339 = vpow2.f32 %v11121_v8 }
0x2d88   :  { %15341 = vpow2.f32 %v11122_v38 }
0x2d89   :  { %15343 = vtanh.f32 %v9513_v34 }
0x2d8a   :  { %15345 = vpow2.f32 %v11123_v27 }
0x2d91   :  { %v15340_v28 = vpop.eup %15339 }
0x2d92   :  { %v9523_v19 = vadd.f32 1.0, %v15340_v28  ;;  %v15342_v63 = vpop.eup %15341 }
0x2d93   :  { %v9524_v37 = vadd.f32 1.0, %v15342_v63  ;;  %v15344_v52 = vpop.eup %15343 }
0x2d94   :  { %15347 = vrcp.f32 %v9523_v19  ;;  %v15346_v57 = vpop.eup %15345 }
0x2d95   :  { %15349 = vrcp.f32 %v9524_v37  ;;  %v9525_v43 = vadd.f32 1.0, %v15346_v57 }
0x2d97   :  { %15351 = vrcp.f32 %v9525_v43 }
0x2d9e   :  { %v15348_v59 = vpop.eup %15347 }
0x2d9f   :  { %v9534_v2 = vmul.f32 %v15348_v59, %v15344_v52  ;;  %v15350_v55 = vpop.eup %15349 }
0x2da0   :  { %v9533_v40 = vmul.f32 0.0, %v15350_v55 }
0x2da1   :  { %v15352_v62 = vpop.eup %15351 }
0x2da2   :  { %v17883_v54 = vadd.f32 %v9534_v2, %v9533_v40 }
0x2da4   :  { %15353 = vtanh.f32 %v17883_v54  ;;  %v9717_v40 = vrot.slane %v17883_v54, 7 }
0x2dae   :  { %v15354_v46 = vpop.eup %15353 }
0x2daf   :  { %v9537_v48 = vmul.f32 %v15354_v46, %v15352_v62 }
0x2db1   :  { %9538 = vst [vmem:[#allocation2] sm:$0x1] %v9537_v48  ;;  %9604 = vmatmul.mubr.f32.vlgmr.msra.gmra.mrb[94].mxu0 %v9537_v48  ;;  %9675 = vmatmul.mubr.f32.vlgmr.msra.gmra.mrb[94].mxu1 %v9537_v48 }
0x2db2   :  { %14275 = vmatpush1.bf16.msra.mxu0 %v17737_v45  ;;  %14307 = vmatpush1.bf16.msra.mxu1 %v17739_v9 }
0x2db3   :  { %14277 = vmatprep.subr.bf16.mxu0 %v17741_v6  ;;  %14309 = vmatprep.subr.bf16.mxu1 %v17743_v33 }
0x2db4   :  { %9792 = vmatprep.mubr.f32.mxu0 %v15570_v0  ;;  %9863 = vmatprep.mubr.f32.mxu1 %v15570_v0 }
0x2db6   :  { %14279 = vmatpush1.bf16.msra.mxu0 %v17747_v44  ;;  %14311 = vmatpush1.bf16.msra.mxu1 %v17749_v36 }
0x2db7   :  { %14281 = vmatprep.subr.bf16.mxu0 %v17753_v22  ;;  %14313 = vmatprep.subr.bf16.mxu1 %v17755_v15 }
0x2dba   :  { %14283 = vmatpush1.bf16.msra.mxu0 %v17761_v58  ;;  %14315 = vmatpush1.bf16.msra.mxu1 %v17763_v17 }
0x2dbb   :  { %14285 = vmatprep.subr.bf16.mxu0 %v17767_v35  ;;  %14317 = vmatprep.subr.bf16.mxu1 %v17769_v21 }
0x2dbe   :  { %14287 = vmatpush1.bf16.msra.mxu0 %v17773_v5  ;;  %14319 = vmatpush1.bf16.msra.mxu1 %v17775_v10 }
0x2dbf   :  { %14289 = vmatprep.subr.bf16.mxu0 %v17779_v1  ;;  %14321 = vmatprep.subr.bf16.mxu1 %v17781_v20 }
0x2dc2   :  { %14291 = vmatpush1.bf16.msra.mxu0 %v17785_v25  ;;  %14323 = vmatpush1.bf16.msra.mxu1 %v17787_v16 }
0x2dc3   :  { %14293 = vmatprep.subr.bf16.mxu0 %v17791_v30  ;;  %14325 = vmatprep.subr.bf16.mxu1 %v17793_v14 }
0x2dc6   :  { %14295 = vmatpush1.bf16.msra.mxu0 %v17797_v47  ;;  %14327 = vmatpush1.bf16.msra.mxu1 %v17799_v26 }
0x2dc7   :  { %14297 = vmatprep.subr.bf16.mxu0 %v17803_v23  ;;  %14329 = vmatprep.subr.bf16.mxu1 %v17805_v3 }
0x2dca   :  { %14299 = vmatpush1.bf16.msra.mxu0 %v17809_v24  ;;  %14331 = vmatpush1.bf16.msra.mxu1 %v17811_v56 }
0x2dcb   :  { %14301 = vmatprep.subr.bf16.mxu0 %v17815_v39  ;;  %14333 = vmatprep.subr.bf16.mxu1 %v17817_v18 }
0x2dce   :  { %14303 = vmatpush1.bf16.msra.mxu0 %v17821_v12  ;;  %14335 = vmatpush1.bf16.msra.mxu1 %v17823_v51 }
0x2dcf   :  { %14337 = vmatprep.subr.bf16.mxu0 %v17730_v53  ;;  %14369 = vmatprep.subr.bf16.mxu1 %v17732_v11 }
0x2e84   :  { %v9605_v7 = vpop.f32.mrb[94].mxu0  ;;  %v9676_v42 = vpop.f32.mrb[94].mxu1 }
0x2e85   :  { %v9685_v61 = vrot.slane %v9605_v7, 7  ;;  %v9607_v41 = vpop.f32.mrb[95].mxu0  ;;  %v9678_v50 = vpop.f32.mrb[95].mxu1  ;;  %v9687_v34 = vrot.slane %v9676_v42, 7 }
0x2e86   :  { %v9686_v13 = vrot.slane %v9607_v41, 7  ;;  %v9688_v27 = vrot.slane %v9678_v50, 7 }
0x2e87   :  { %v9693_v8 = vadd.f32 %v9685_v61, %v17869_v60  ;;  %v9695_v28 = vadd.f32 %v9687_v34, %v17877_v31 }
0x2e88   :  { %v9694_v38 = vadd.f32 %v9686_v13, %v17871_v4  ;;  %v9696_v19 = vadd.f32 %v9688_v27, %v17880_v32 }
0x2e89   :  { %v11124_v29 = vmul.f32 -1.442695, %v9693_v8  ;;  %v11126_v63 = vmul.f32 -1.442695, %v9695_v28 }
0x2e8a   :  { %v11125_v49 = vmul.f32 -1.442695, %v9694_v38 }
0x2e8b   :  { %15355 = vpow2.f32 %v11124_v29 }
0x2e8c   :  { %15357 = vpow2.f32 %v11125_v49 }
0x2e8d   :  { %15359 = vtanh.f32 %v9696_v19 }
0x2e8e   :  { %15361 = vpow2.f32 %v11126_v63 }
0x2e95   :  { %v15356_v37 = vpop.eup %15355 }
0x2e96   :  { %v9706_v52 = vadd.f32 1.0, %v15356_v37  ;;  %v15358_v57 = vpop.eup %15357 }
0x2e97   :  { %v9707_v59 = vadd.f32 1.0, %v15358_v57  ;;  %v15360_v2 = vpop.eup %15359 }
0x2e98   :  { %15363 = vrcp.f32 %v9706_v52  ;;  %v15362_v55 = vpop.eup %15361 }
0x2e99   :  { %15365 = vrcp.f32 %v9707_v59  ;;  %v9708_v48 = vadd.f32 1.0, %v15362_v55 }
0x2e9b   :  { %15367 = vrcp.f32 %v9708_v48 }
0x2ea2   :  { %v15364_v43 = vpop.eup %15363 }
0x2ea3   :  { %v9720_v62 = vmul.f32 %v15364_v43, %v15360_v2  ;;  %v15366_v46 = vpop.eup %15365 }
0x2ea4   :  { %v9719_v7 = vmul.f32 %v15366_v46, %v9717_v40 }
0x2ea5   :  { %v15368_v61 = vpop.eup %15367 }
0x2ea6   :  { %v17925_v42 = vadd.f32 %v9720_v62, %v9719_v7 }
0x2ea8   :  { %15369 = vtanh.f32 %v17925_v42 }
0x2eb2   :  { %v15370_v41 = vpop.eup %15369 }
0x2eb3   :  { %v9723_v50 = vmul.f32 %v15370_v41, %v15368_v61  ;;  %v9906_v61 = vrot.slane %v17925_v42, 7 }
0x2eb5   :  { %v9726_v13 = vrot.slane %v9723_v50, 1  ;;  %9724 = vst [vmem:[#allocation2] sm:$0x2] %v9723_v50 }
0x2eb7   :  { %9793 = vmatmul.mubr.f32.vlgmr.msra.gmra.mrb[96].mxu0 %v9726_v13  ;;  %9864 = vmatmul.mubr.f32.vlgmr.msra.gmra.mrb[96].mxu1 %v9726_v13 }
0x2eb8   :  { %14339 = vmatpush1.bf16.msra.mxu0 %v17737_v45  ;;  %14371 = vmatpush1.bf16.msra.mxu1 %v17739_v9 }
0x2eb9   :  { %14341 = vmatprep.subr.bf16.mxu0 %v17741_v6  ;;  %14373 = vmatprep.subr.bf16.mxu1 %v17743_v33 }
0x2eba   :  { %9981 = vmatprep.mubr.f32.mxu0 %v15570_v0  ;;  %10052 = vmatprep.mubr.f32.mxu1 %v15570_v0 }
0x2ebc   :  { %14343 = vmatpush1.bf16.msra.mxu0 %v17747_v44  ;;  %14375 = vmatpush1.bf16.msra.mxu1 %v17749_v36 }
0x2ebd   :  { %14345 = vmatprep.subr.bf16.mxu0 %v17753_v22  ;;  %14377 = vmatprep.subr.bf16.mxu1 %v17755_v15 }
0x2ec0   :  { %14347 = vmatpush1.bf16.msra.mxu0 %v17761_v58  ;;  %14379 = vmatpush1.bf16.msra.mxu1 %v17763_v17 }
0x2ec1   :  { %14349 = vmatprep.subr.bf16.mxu0 %v17767_v35  ;;  %14381 = vmatprep.subr.bf16.mxu1 %v17769_v21 }
0x2ec4   :  { %14351 = vmatpush1.bf16.msra.mxu0 %v17773_v5  ;;  %14383 = vmatpush1.bf16.msra.mxu1 %v17775_v10 }
0x2ec5   :  { %14353 = vmatprep.subr.bf16.mxu0 %v17779_v1  ;;  %14385 = vmatprep.subr.bf16.mxu1 %v17781_v20 }
0x2ec8   :  { %14355 = vmatpush1.bf16.msra.mxu0 %v17785_v25  ;;  %14387 = vmatpush1.bf16.msra.mxu1 %v17787_v16 }
0x2ec9   :  { %14357 = vmatprep.subr.bf16.mxu0 %v17791_v30  ;;  %14389 = vmatprep.subr.bf16.mxu1 %v17793_v14 }
0x2ecc   :  { %14359 = vmatpush1.bf16.msra.mxu0 %v17797_v47  ;;  %14391 = vmatpush1.bf16.msra.mxu1 %v17799_v26 }
0x2ecd   :  { %14361 = vmatprep.subr.bf16.mxu0 %v17803_v23  ;;  %14393 = vmatprep.subr.bf16.mxu1 %v17805_v3 }
0x2ed0   :  { %14363 = vmatpush1.bf16.msra.mxu0 %v17809_v24  ;;  %14395 = vmatpush1.bf16.msra.mxu1 %v17811_v56 }
0x2ed1   :  { %14365 = vmatprep.subr.bf16.mxu0 %v17815_v39  ;;  %14397 = vmatprep.subr.bf16.mxu1 %v17817_v18 }
0x2ed4   :  { %14367 = vmatpush1.bf16.msra.mxu0 %v17821_v12  ;;  %14399 = vmatpush1.bf16.msra.mxu1 %v17823_v51 }
0x2ed5   :  { %14401 = vmatprep.subr.bf16.mxu0 %v17730_v53  ;;  %14433 = vmatprep.subr.bf16.mxu1 %v17732_v11 }
0x2f8a   :  { %v9794_v54 = vpop.f32.mrb[96].mxu0  ;;  %v9865_v8 = vpop.f32.mrb[96].mxu1 }
0x2f8b   :  { %v9874_v38 = vrot.slane %v9794_v54, 6  ;;  %v9796_v29 = vpop.f32.mrb[97].mxu0  ;;  %v9867_v49 = vpop.f32.mrb[97].mxu1  ;;  %v9876_v37 = vrot.slane %v9865_v8, 6 }
0x2f8c   :  { %v9875_v34 = vrot.slane %v9796_v29, 6  ;;  %v9877_v52 = vrot.slane %v9867_v49, 6 }
0x2f8d   :  { %v9882_v27 = vadd.f32 %v9874_v38, %v17869_v60  ;;  %v9884_v57 = vadd.f32 %v9876_v37, %v17877_v31 }
0x2f8e   :  { %v9883_v28 = vadd.f32 %v9875_v34, %v17871_v4  ;;  %v9885_v59 = vadd.f32 %v9877_v52, %v17880_v32 }
0x2f8f   :  { %v11127_v19 = vmul.f32 -1.442695, %v9882_v27  ;;  %v11129_v2 = vmul.f32 -1.442695, %v9884_v57 }
0x2f90   :  { %v11128_v63 = vmul.f32 -1.442695, %v9883_v28 }
0x2f91   :  { %15371 = vpow2.f32 %v11127_v19 }
0x2f92   :  { %15373 = vpow2.f32 %v11128_v63 }
0x2f93   :  { %15375 = vtanh.f32 %v9885_v59 }
0x2f94   :  { %15377 = vpow2.f32 %v11129_v2 }
0x2f9b   :  { %v15372_v55 = vpop.eup %15371 }
0x2f9c   :  { %v9895_v43 = vadd.f32 1.0, %v15372_v55  ;;  %v15374_v40 = vpop.eup %15373 }
0x2f9d   :  { %v9896_v62 = vadd.f32 1.0, %v15374_v40  ;;  %v15376_v46 = vpop.eup %15375 }
0x2f9e   :  { %15379 = vrcp.f32 %v9895_v43  ;;  %v15378_v48 = vpop.eup %15377 }
0x2f9f   :  { %15381 = vrcp.f32 %v9896_v62  ;;  %v9897_v13 = vadd.f32 1.0, %v15378_v48 }
0x2fa1   :  { %15383 = vrcp.f32 %v9897_v13 }
0x2fa8   :  { %v15380_v7 = vpop.eup %15379 }
0x2fa9   :  { %v9909_v41 = vmul.f32 %v15380_v7, %v15376_v46  ;;  %v15382_v50 = vpop.eup %15381 }
0x2faa   :  { %v9908_v54 = vmul.f32 %v15382_v50, %v9906_v61 }
0x2fab   :  { %v15384_v38 = vpop.eup %15383 }
0x2fac   :  { %v17967_v8 = vadd.f32 %v9909_v41, %v9908_v54 }
0x2fae   :  { %15385 = vtanh.f32 %v17967_v8 }
0x2fb8   :  { %v15386_v29 = vpop.eup %15385 }
0x2fb9   :  { %v9912_v49 = vmul.f32 %v15386_v29, %v15384_v38  ;;  %v10095_v38 = vrot.slane %v17967_v8, 7 }
0x2fbb   :  { %v9915_v34 = vrot.slane %v9912_v49, 2  ;;  %9913 = vst [vmem:[#allocation2] sm:$0x4] %v9912_v49 }
0x2fbd   :  { %9982 = vmatmul.mubr.f32.vlgmr.msra.gmra.mrb[98].mxu0 %v9915_v34  ;;  %10053 = vmatmul.mubr.f32.vlgmr.msra.gmra.mrb[98].mxu1 %v9915_v34 }
0x2fbe   :  { %14403 = vmatpush1.bf16.msra.mxu0 %v17737_v45  ;;  %14435 = vmatpush1.bf16.msra.mxu1 %v17739_v9 }
0x2fbf   :  { %14405 = vmatprep.subr.bf16.mxu0 %v17741_v6  ;;  %14437 = vmatprep.subr.bf16.mxu1 %v17743_v33 }
0x2fc0   :  { %10170 = vmatprep.mubr.f32.mxu0 %v15570_v0  ;;  %10241 = vmatprep.mubr.f32.mxu1 %v15570_v0 }
0x2fc2   :  { %14407 = vmatpush1.bf16.msra.mxu0 %v17747_v44  ;;  %14439 = vmatpush1.bf16.msra.mxu1 %v17749_v36 }
0x2fc3   :  { %14409 = vmatprep.subr.bf16.mxu0 %v17753_v22  ;;  %14441 = vmatprep.subr.bf16.mxu1 %v17755_v15 }
0x2fc6   :  { %14411 = vmatpush1.bf16.msra.mxu0 %v17761_v58  ;;  %14443 = vmatpush1.bf16.msra.mxu1 %v17763_v17 }
0x2fc7   :  { %14413 = vmatprep.subr.bf16.mxu0 %v17767_v35  ;;  %14445 = vmatprep.subr.bf16.mxu1 %v17769_v21 }
0x2fca   :  { %14415 = vmatpush1.bf16.msra.mxu0 %v17773_v5  ;;  %14447 = vmatpush1.bf16.msra.mxu1 %v17775_v10 }
0x2fcb   :  { %14417 = vmatprep.subr.bf16.mxu0 %v17779_v1  ;;  %14449 = vmatprep.subr.bf16.mxu1 %v17781_v20 }
0x2fce   :  { %14419 = vmatpush1.bf16.msra.mxu0 %v17785_v25  ;;  %14451 = vmatpush1.bf16.msra.mxu1 %v17787_v16 }
0x2fcf   :  { %14421 = vmatprep.subr.bf16.mxu0 %v17791_v30  ;;  %14453 = vmatprep.subr.bf16.mxu1 %v17793_v14 }
0x2fd2   :  { %14423 = vmatpush1.bf16.msra.mxu0 %v17797_v47  ;;  %14455 = vmatpush1.bf16.msra.mxu1 %v17799_v26 }
0x2fd3   :  { %14425 = vmatprep.subr.bf16.mxu0 %v17803_v23  ;;  %14457 = vmatprep.subr.bf16.mxu1 %v17805_v3 }
0x2fd6   :  { %14427 = vmatpush1.bf16.msra.mxu0 %v17809_v24  ;;  %14459 = vmatpush1.bf16.msra.mxu1 %v17811_v56 }
0x2fd7   :  { %14429 = vmatprep.subr.bf16.mxu0 %v17815_v39  ;;  %14461 = vmatprep.subr.bf16.mxu1 %v17817_v18 }
0x2fda   :  { %14431 = vmatpush1.bf16.msra.mxu0 %v17821_v12  ;;  %14463 = vmatpush1.bf16.msra.mxu1 %v17823_v51 }
0x2fdb   :  { %14465 = vmatprep.subr.bf16.mxu0 %v17730_v53  ;;  %14497 = vmatprep.subr.bf16.mxu1 %v17732_v11 }
0x3090   :  { %v9983_v42 = vpop.f32.mrb[98].mxu0  ;;  %v10054_v27 = vpop.f32.mrb[98].mxu1 }
0x3091   :  { %v10063_v28 = vrot.slane %v9983_v42, 5  ;;  %v9985_v19 = vpop.f32.mrb[99].mxu0  ;;  %v10056_v63 = vpop.f32.mrb[99].mxu1  ;;  %v10065_v55 = vrot.slane %v10054_v27, 5 }
0x3092   :  { %v10064_v37 = vrot.slane %v9985_v19, 5  ;;  %v10066_v43 = vrot.slane %v10056_v63, 5 }
0x3093   :  { %v10071_v52 = vadd.f32 %v10063_v28, %v17869_v60  ;;  %v10073_v40 = vadd.f32 %v10065_v55, %v17877_v31 }
0x3094   :  { %v10072_v57 = vadd.f32 %v10064_v37, %v17871_v4  ;;  %v10074_v62 = vadd.f32 %v10066_v43, %v17880_v32 }
0x3095   :  { %v11130_v59 = vmul.f32 -1.442695, %v10071_v52  ;;  %v11132_v46 = vmul.f32 -1.442695, %v10073_v40 }
0x3096   :  { %v11131_v2 = vmul.f32 -1.442695, %v10072_v57 }
0x3097   :  { %15387 = vpow2.f32 %v11130_v59 }
0x3098   :  { %15389 = vpow2.f32 %v11131_v2 }
0x3099   :  { %15391 = vtanh.f32 %v10074_v62 }
0x309a   :  { %15393 = vpow2.f32 %v11132_v46 }
0x30a1   :  { %v15388_v48 = vpop.eup %15387 }
0x30a2   :  { %v10084_v7 = vadd.f32 1.0, %v15388_v48  ;;  %v15390_v61 = vpop.eup %15389 }
0x30a3   :  { %v10085_v41 = vadd.f32 1.0, %v15390_v61  ;;  %v15392_v50 = vpop.eup %15391 }
0x30a4   :  { %15395 = vrcp.f32 %v10084_v7  ;;  %v15394_v13 = vpop.eup %15393 }
0x30a5   :  { %15397 = vrcp.f32 %v10085_v41  ;;  %v10086_v34 = vadd.f32 1.0, %v15394_v13 }
0x30a7   :  { %15399 = vrcp.f32 %v10086_v34 }
0x30ae   :  { %v15396_v54 = vpop.eup %15395 }
0x30af   :  { %v10098_v29 = vmul.f32 %v15396_v54, %v15392_v50  ;;  %v15398_v49 = vpop.eup %15397 }
0x30b0   :  { %v10097_v42 = vmul.f32 %v15398_v49, %v10095_v38 }
0x30b1   :  { %v15400_v28 = vpop.eup %15399 }
0x30b2   :  { %v18009_v27 = vadd.f32 %v10098_v29, %v10097_v42 }
0x30b4   :  { %15401 = vtanh.f32 %v18009_v27 }
0x30be   :  { %v15402_v19 = vpop.eup %15401 }
0x30bf   :  { %v10101_v63 = vmul.f32 %v15402_v19, %v15400_v28  ;;  %v10284_v28 = vrot.slane %v18009_v27, 7 }
0x30c1   :  { %v10104_v37 = vrot.slane %v10101_v63, 3  ;;  %10102 = vst [vmem:[#allocation2] sm:$0x8] %v10101_v63 }
0x30c3   :  { %10171 = vmatmul.mubr.f32.vlgmr.msra.gmra.mrb[100].mxu0 %v10104_v37  ;;  %10242 = vmatmul.mubr.f32.vlgmr.msra.gmra.mrb[100].mxu1 %v10104_v37 }
0x30c4   :  { %14467 = vmatpush1.bf16.msra.mxu0 %v17737_v45  ;;  %14499 = vmatpush1.bf16.msra.mxu1 %v17739_v9 }
0x30c5   :  { %14469 = vmatprep.subr.bf16.mxu0 %v17741_v6  ;;  %14501 = vmatprep.subr.bf16.mxu1 %v17743_v33 }
0x30c6   :  { %10359 = vmatprep.mubr.f32.mxu0 %v15570_v0  ;;  %10430 = vmatprep.mubr.f32.mxu1 %v15570_v0 }
0x30c8   :  { %14471 = vmatpush1.bf16.msra.mxu0 %v17747_v44  ;;  %14503 = vmatpush1.bf16.msra.mxu1 %v17749_v36 }
0x30c9   :  { %14473 = vmatprep.subr.bf16.mxu0 %v17753_v22  ;;  %14505 = vmatprep.subr.bf16.mxu1 %v17755_v15 }
0x30cc   :  { %14475 = vmatpush1.bf16.msra.mxu0 %v17761_v58  ;;  %14507 = vmatpush1.bf16.msra.mxu1 %v17763_v17 }
0x30cd   :  { %14477 = vmatprep.subr.bf16.mxu0 %v17767_v35  ;;  %14509 = vmatprep.subr.bf16.mxu1 %v17769_v21 }
0x30d0   :  { %14479 = vmatpush1.bf16.msra.mxu0 %v17773_v5  ;;  %14511 = vmatpush1.bf16.msra.mxu1 %v17775_v10 }
0x30d1   :  { %14481 = vmatprep.subr.bf16.mxu0 %v17779_v1  ;;  %14513 = vmatprep.subr.bf16.mxu1 %v17781_v20 }
0x30d4   :  { %14483 = vmatpush1.bf16.msra.mxu0 %v17785_v25  ;;  %14515 = vmatpush1.bf16.msra.mxu1 %v17787_v16 }
0x30d5   :  { %14485 = vmatprep.subr.bf16.mxu0 %v17791_v30  ;;  %14517 = vmatprep.subr.bf16.mxu1 %v17793_v14 }
0x30d8   :  { %14487 = vmatpush1.bf16.msra.mxu0 %v17797_v47  ;;  %14519 = vmatpush1.bf16.msra.mxu1 %v17799_v26 }
0x30d9   :  { %14489 = vmatprep.subr.bf16.mxu0 %v17803_v23  ;;  %14521 = vmatprep.subr.bf16.mxu1 %v17805_v3 }
0x30dc   :  { %14491 = vmatpush1.bf16.msra.mxu0 %v17809_v24  ;;  %14523 = vmatpush1.bf16.msra.mxu1 %v17811_v56 }
0x30dd   :  { %14493 = vmatprep.subr.bf16.mxu0 %v17815_v39  ;;  %14525 = vmatprep.subr.bf16.mxu1 %v17817_v18 }
0x30e0   :  { %14495 = vmatpush1.bf16.msra.mxu0 %v17821_v12  ;;  %14527 = vmatpush1.bf16.msra.mxu1 %v17823_v51 }
0x30e1   :  { %14529 = vmatprep.subr.bf16.mxu0 %v17730_v53  ;;  %14561 = vmatprep.subr.bf16.mxu1 %v17732_v11 }
0x3196   :  { %v10172_v8 = vpop.f32.mrb[100].mxu0  ;;  %v10243_v52 = vpop.f32.mrb[100].mxu1 }
0x3197   :  { %v10252_v57 = vrot.slane %v10172_v8, 4  ;;  %v10174_v59 = vpop.f32.mrb[101].mxu0  ;;  %v10245_v2 = vpop.f32.mrb[101].mxu1  ;;  %v10254_v48 = vrot.slane %v10243_v52, 4 }
0x3198   :  { %v10253_v55 = vrot.slane %v10174_v59, 4  ;;  %v10255_v7 = vrot.slane %v10245_v2, 4 }
0x3199   :  { %v10260_v43 = vadd.f32 %v10252_v57, %v17869_v60  ;;  %v10262_v61 = vadd.f32 %v10254_v48, %v17877_v31 }
0x319a   :  { %v10261_v40 = vadd.f32 %v10253_v55, %v17871_v4  ;;  %v10263_v41 = vadd.f32 %v10255_v7, %v17880_v32 }
0x319b   :  { %v11133_v62 = vmul.f32 -1.442695, %v10260_v43  ;;  %v11135_v50 = vmul.f32 -1.442695, %v10262_v61 }
0x319c   :  { %v11134_v46 = vmul.f32 -1.442695, %v10261_v40 }
0x319d   :  { %15403 = vpow2.f32 %v11133_v62 }
0x319e   :  { %15405 = vpow2.f32 %v11134_v46 }
0x319f   :  { %15407 = vtanh.f32 %v10263_v41 }
0x31a0   :  { %15409 = vpow2.f32 %v11135_v50 }
0x31a7   :  { %v15404_v13 = vpop.eup %15403 }
0x31a8   :  { %v10273_v54 = vadd.f32 1.0, %v15404_v13  ;;  %v15406_v38 = vpop.eup %15405 }
0x31a9   :  { %v10274_v29 = vadd.f32 1.0, %v15406_v38  ;;  %v15408_v49 = vpop.eup %15407 }
0x31aa   :  { %15411 = vrcp.f32 %v10273_v54  ;;  %v15410_v34 = vpop.eup %15409 }
0x31ab   :  { %15413 = vrcp.f32 %v10274_v29  ;;  %v10275_v37 = vadd.f32 1.0, %v15410_v34 }
0x31ad   :  { %15415 = vrcp.f32 %v10275_v37 }
0x31b4   :  { %v15412_v42 = vpop.eup %15411 }
0x31b5   :  { %v10287_v19 = vmul.f32 %v15412_v42, %v15408_v49  ;;  %v15414_v63 = vpop.eup %15413 }
0x31b6   :  { %v10286_v8 = vmul.f32 %v15414_v63, %v10284_v28 }
0x31b7   :  { %v15416_v57 = vpop.eup %15415 }
0x31b8   :  { %v18051_v52 = vadd.f32 %v10287_v19, %v10286_v8 }
0x31ba   :  { %15417 = vtanh.f32 %v18051_v52  ;;  %v10473_v37 = vrot.slane %v18051_v52, 7 }
0x31c4   :  { %v15418_v59 = vpop.eup %15417 }
0x31c5   :  { %v10290_v2 = vmul.f32 %v15418_v59, %v15416_v57 }
0x31c7   :  { %v10293_v55 = vrot.slane %v10290_v2, 4  ;;  %10291 = vst [vmem:[#allocation2] sm:$0x10] %v10290_v2 }
0x31c9   :  { %10360 = vmatmul.mubr.f32.vlgmr.msra.gmra.mrb[102].mxu0 %v10293_v55  ;;  %10431 = vmatmul.mubr.f32.vlgmr.msra.gmra.mrb[102].mxu1 %v10293_v55 }
0x31ca   :  { %14531 = vmatpush1.bf16.msra.mxu0 %v17737_v45  ;;  %14563 = vmatpush1.bf16.msra.mxu1 %v17739_v9 }
0x31cb   :  { %14533 = vmatprep.subr.bf16.mxu0 %v17741_v6  ;;  %14565 = vmatprep.subr.bf16.mxu1 %v17743_v33 }
0x31cc   :  { %10548 = vmatprep.mubr.f32.mxu0 %v15570_v0  ;;  %10619 = vmatprep.mubr.f32.mxu1 %v15570_v0 }
0x31ce   :  { %14535 = vmatpush1.bf16.msra.mxu0 %v17747_v44  ;;  %14567 = vmatpush1.bf16.msra.mxu1 %v17749_v36 }
0x31cf   :  { %14537 = vmatprep.subr.bf16.mxu0 %v17753_v22  ;;  %14569 = vmatprep.subr.bf16.mxu1 %v17755_v15 }
0x31d2   :  { %14539 = vmatpush1.bf16.msra.mxu0 %v17761_v58  ;;  %14571 = vmatpush1.bf16.msra.mxu1 %v17763_v17 }
0x31d3   :  { %14541 = vmatprep.subr.bf16.mxu0 %v17767_v35  ;;  %14573 = vmatprep.subr.bf16.mxu1 %v17769_v21 }
0x31d6   :  { %14543 = vmatpush1.bf16.msra.mxu0 %v17773_v5  ;;  %14575 = vmatpush1.bf16.msra.mxu1 %v17775_v10 }
0x31d7   :  { %14545 = vmatprep.subr.bf16.mxu0 %v17779_v1  ;;  %14577 = vmatprep.subr.bf16.mxu1 %v17781_v20 }
0x31da   :  { %14547 = vmatpush1.bf16.msra.mxu0 %v17785_v25  ;;  %14579 = vmatpush1.bf16.msra.mxu1 %v17787_v16 }
0x31db   :  { %14549 = vmatprep.subr.bf16.mxu0 %v17791_v30  ;;  %14581 = vmatprep.subr.bf16.mxu1 %v17793_v14 }
0x31de   :  { %14551 = vmatpush1.bf16.msra.mxu0 %v17797_v47  ;;  %14583 = vmatpush1.bf16.msra.mxu1 %v17799_v26 }
0x31df   :  { %14553 = vmatprep.subr.bf16.mxu0 %v17803_v23  ;;  %14585 = vmatprep.subr.bf16.mxu1 %v17805_v3 }
0x31e2   :  { %14555 = vmatpush1.bf16.msra.mxu0 %v17809_v24  ;;  %14587 = vmatpush1.bf16.msra.mxu1 %v17811_v56 }
0x31e3   :  { %14557 = vmatprep.subr.bf16.mxu0 %v17815_v39  ;;  %14589 = vmatprep.subr.bf16.mxu1 %v17817_v18 }
0x31e6   :  { %14559 = vmatpush1.bf16.msra.mxu0 %v17821_v12  ;;  %14591 = vmatpush1.bf16.msra.mxu1 %v17823_v51 }
0x31e7   :  { %14593 = vmatprep.subr.bf16.mxu0 %v17730_v53  ;;  %14625 = vmatprep.subr.bf16.mxu1 %v17732_v11 }
0x329c   :  { %v10361_v27 = vpop.f32.mrb[102].mxu0  ;;  %v10432_v43 = vpop.f32.mrb[102].mxu1 }
0x329d   :  { %v10441_v40 = vrot.slane %v10361_v27, 3  ;;  %v10363_v62 = vpop.f32.mrb[103].mxu0  ;;  %v10434_v46 = vpop.f32.mrb[103].mxu1  ;;  %v10443_v13 = vrot.slane %v10432_v43, 3 }
0x329e   :  { %v10442_v48 = vrot.slane %v10363_v62, 3  ;;  %v10444_v54 = vrot.slane %v10434_v46, 3 }
0x329f   :  { %v10449_v7 = vadd.f32 %v10441_v40, %v17869_v60  ;;  %v10451_v53 = vadd.f32 %v10443_v13, %v17877_v31  ;;  %v10888_v13 = vld [vmem:[#allocation8 + $0x18] sm:$0xff] }
0x32a0   :  { %v10450_v61 = vadd.f32 %v10442_v48, %v17871_v4  ;;  %v10452_v11 = vadd.f32 %v10444_v54, %v17880_v32  ;;  %v10885_v48 = vld [vmem:[#allocation8] sm:$0xff] }
0x32a1   :  { %v11136_v41 = vmul.f32 -1.442695, %v10449_v7  ;;  %v11138_v38 = vmul.f32 -1.442695, %v10451_v53  ;;  %v10886_v7 = vld [vmem:[#allocation8 + $0x8] sm:$0xff] }
0x32a2   :  { %v11137_v50 = vmul.f32 -1.442695, %v10450_v61  ;;  %v10887_v61 = vld [vmem:[#allocation8 + $0x10] sm:$0xff] }
0x32a3   :  { %15419 = vpow2.f32 %v11136_v41  ;;  %v15571_v41 = vmov 0.0|0.0   ;;  %v14660_v54 = vpack.c.bf16 %v10888_v13, %v10887_v61 }
0x32a4   :  { %15421 = vpow2.f32 %v11137_v50  ;;  %v14657_v50 = vpack.c.bf16 %v10886_v7, %v10885_v48 }
0x32a5   :  { %15423 = vtanh.f32 %v10452_v11 }
0x32a6   :  { %15425 = vpow2.f32 %v11138_v38 }
0x32ad   :  { %v15420_v29 = vpop.eup %15419 }
0x32ae   :  { %v10462_v49 = vadd.f32 1.0, %v15420_v29  ;;  %v15422_v34 = vpop.eup %15421 }
0x32af   :  { %v10463_v42 = vadd.f32 1.0, %v15422_v34  ;;  %v15424_v28 = vpop.eup %15423 }
0x32b0   :  { %15427 = vrcp.f32 %v10462_v49  ;;  %v15426_v19 = vpop.eup %15425 }
0x32b1   :  { %15429 = vrcp.f32 %v10463_v42  ;;  %v10464_v59 = vadd.f32 1.0, %v15426_v19 }
0x32b3   :  { %15431 = vrcp.f32 %v10464_v59 }
0x32ba   :  { %v15428_v63 = vpop.eup %15427 }
0x32bb   :  { %v10476_v8 = vmul.f32 %v15428_v63, %v15424_v28  ;;  %v15430_v57 = vpop.eup %15429 }
0x32bc   :  { %v10475_v2 = vmul.f32 %v15430_v57, %v10473_v37 }
0x32bd   :  { %v15432_v27 = vpop.eup %15431 }
0x32be   :  { %v18093_v55 = vadd.f32 %v10476_v8, %v10475_v2 }
0x32c0   :  { %15433 = vtanh.f32 %v18093_v55 }
0x32ca   :  { %v15434_v43 = vpop.eup %15433 }
0x32cb   :  { %v10479_v40 = vmul.f32 %v15434_v43, %v15432_v27 }
0x32cd   :  { %v10482_v62 = vrot.slane %v10479_v40, 5  ;;  %10480 = vst [vmem:[#allocation2] sm:$0x20] %v10479_v40 }
0x32cf   :  { %10549 = vmatmul.mubr.f32.vlgmr.msra.gmra.mrb[104].mxu0 %v10482_v62  ;;  %10620 = vmatmul.mubr.f32.vlgmr.msra.gmra.mrb[104].mxu1 %v10482_v62 }
0x32d0   :  { %14595 = vmatpush1.bf16.msra.mxu0 %v17737_v45  ;;  %14627 = vmatpush1.bf16.msra.mxu1 %v17739_v9 }
0x32d1   :  { %14597 = vmatprep.subr.bf16.mxu0 %v17741_v6  ;;  %14629 = vmatprep.subr.bf16.mxu1 %v17743_v33 }
0x32d2   :  { %10737 = vmatprep.mubr.f32.mxu0 %v15570_v0  ;;  %10808 = vmatprep.mubr.f32.mxu1 %v15570_v0 }
0x32d4   :  { %14599 = vmatpush1.bf16.msra.mxu0 %v17747_v44  ;;  %14631 = vmatpush1.bf16.msra.mxu1 %v17749_v36 }
0x32d5   :  { %14601 = vmatprep.subr.bf16.mxu0 %v17753_v22  ;;  %14633 = vmatprep.subr.bf16.mxu1 %v17755_v15 }
0x32d8   :  { %14603 = vmatpush1.bf16.msra.mxu0 %v17761_v58  ;;  %14635 = vmatpush1.bf16.msra.mxu1 %v17763_v17 }
0x32d9   :  { %14605 = vmatprep.subr.bf16.mxu0 %v17767_v35  ;;  %14637 = vmatprep.subr.bf16.mxu1 %v17769_v21 }
0x32dc   :  { %14607 = vmatpush1.bf16.msra.mxu0 %v17773_v5  ;;  %14639 = vmatpush1.bf16.msra.mxu1 %v17775_v10 }
0x32dd   :  { %14609 = vmatprep.subr.bf16.mxu0 %v17779_v1  ;;  %14641 = vmatprep.subr.bf16.mxu1 %v17781_v20 }
0x32e0   :  { %14611 = vmatpush1.bf16.msra.mxu0 %v17785_v25  ;;  %14643 = vmatpush1.bf16.msra.mxu1 %v17787_v16 }
0x32e1   :  { %14613 = vmatprep.subr.bf16.mxu0 %v17791_v30  ;;  %14645 = vmatprep.subr.bf16.mxu1 %v17793_v14 }
0x32e4   :  { %14615 = vmatpush1.bf16.msra.mxu0 %v17797_v47  ;;  %14647 = vmatpush1.bf16.msra.mxu1 %v17799_v26 }
0x32e5   :  { %14617 = vmatprep.subr.bf16.mxu0 %v17803_v23  ;;  %14649 = vmatprep.subr.bf16.mxu1 %v17805_v3  ;;  %v10662_v23 = vrot.slane %v18093_v55, 7 }
0x32e8   :  { %14619 = vmatpush1.bf16.msra.mxu0 %v17809_v24  ;;  %14651 = vmatpush1.bf16.msra.mxu1 %v17811_v56 }
0x32e9   :  { %14621 = vmatprep.subr.bf16.mxu0 %v17815_v39  ;;  %14653 = vmatprep.subr.bf16.mxu1 %v17817_v18 }
0x32ec   :  { %14623 = vmatpush1.bf16.msra.mxu0 %v17821_v12  ;;  %14655 = vmatpush1.bf16.msra.mxu1 %v17823_v51 }
0x32ed   :  { %14656 = vmatprep.subr.bf16.mxu0 %v15571_v41 }
0x33a2   :  { %v10550_v45 = vpop.f32.mrb[104].mxu0  ;;  %v10621_v9 = vpop.f32.mrb[104].mxu1 }
0x33a3   :  { %v10630_v6 = vrot.slane %v10550_v45, 2  ;;  %v10552_v33 = vpop.f32.mrb[105].mxu0  ;;  %v10623_v44 = vpop.f32.mrb[105].mxu1  ;;  %v10632_v35 = vrot.slane %v10621_v9, 2 }
0x33a4   :  { %v10631_v36 = vrot.slane %v10552_v33, 2  ;;  %v10633_v21 = vrot.slane %v10623_v44, 2 }
0x33a5   :  { %v10638_v22 = vadd.f32 %v10630_v6, %v17869_v60  ;;  %v10640_v5 = vadd.f32 %v10632_v35, %v17877_v31  ;;  %v10890_v35 = vld [vmem:[#allocation8 + $0x28] sm:$0xff] }
0x33a6   :  { %v10639_v15 = vadd.f32 %v10631_v36, %v17871_v4  ;;  %v10641_v10 = vadd.f32 %v10633_v21, %v17880_v32 }
0x33a7   :  { %v11139_v58 = vmul.f32 -1.442695, %v10638_v22  ;;  %v11141_v1 = vmul.f32 -1.442695, %v10640_v5  ;;  %v10891_v5 = vld [vmem:[#allocation8 + $0x30] sm:$0xff] }
0x33a8   :  { %v11140_v17 = vmul.f32 -1.442695, %v10639_v15 }
0x33a9   :  { %15435 = vpow2.f32 %v11139_v58 }
0x33aa   :  { %15437 = vpow2.f32 %v11140_v17  ;;  %v10889_v17 = vld [vmem:[#allocation8 + $0x20] sm:$0xff] }
0x33ab   :  { %15439 = vtanh.f32 %v10641_v10  ;;  %v14663_v21 = vpack.c.bf16 %v10890_v35, %v10889_v17  ;;  %v10892_v10 = vld [vmem:[#allocation8 + $0x38] sm:$0xff] }
0x33ac   :  { %15441 = vpow2.f32 %v11141_v1  ;;  %v14666_v1 = vpack.c.bf16 %v10892_v10, %v10891_v5 }
0x33b3   :  { %v15436_v20 = vpop.eup %15435 }
0x33b4   :  { %v10651_v25 = vadd.f32 1.0, %v15436_v20  ;;  %v15438_v16 = vpop.eup %15437  ;;  %v10893_v20 = vld [vmem:[#allocation8 + $0x40] sm:$0xff] }
0x33b5   :  { %v10652_v30 = vadd.f32 1.0, %v15438_v16  ;;  %v15440_v14 = vpop.eup %15439 }
0x33b6   :  { %15443 = vrcp.f32 %v10651_v25  ;;  %v15442_v47 = vpop.eup %15441  ;;  %v10894_v25 = vld [vmem:[#allocation8 + $0x48] sm:$0xff] }
0x33b7   :  { %15445 = vrcp.f32 %v10652_v30  ;;  %v10653_v56 = vadd.f32 1.0, %v15442_v47  ;;  %v14669_v16 = vpack.c.bf16 %v10894_v25, %v10893_v20  ;;  %v10895_v30 = vld [vmem:[#allocation8 + $0x50] sm:$0xff] }
0x33b9   :  { %15447 = vrcp.f32 %v10653_v56  ;;  %v10900_v56 = vld [vmem:[#allocation8 + $0x78] sm:$0xff] }
0x33c0   :  { %v15444_v26 = vpop.eup %15443 }
0x33c1   :  { %v10665_v3 = vmul.f32 %v15444_v26, %v15440_v14  ;;  %v15446_v24 = vpop.eup %15445  ;;  %v10896_v14 = vld [vmem:[#allocation8 + $0x58] sm:$0xff]  ;;  %v10897_v26 = vld [vmem:[#allocation8 + $0x60] sm:$0xff] }
0x33c2   :  { %v10664_v39 = vmul.f32 %v15446_v24, %v10662_v23  ;;  %v14672_v47 = vpack.c.bf16 %v10896_v14, %v10895_v30  ;;  %v10898_v23 = vld [vmem:[#allocation8 + $0x68] sm:$0xff]  ;;  %v10899_v24 = vld [vmem:[#allocation8 + $0x70] sm:$0xff] }
0x33c3   :  { %v15448_v12 = vpop.eup %15447 }
0x33c4   :  { %v10666_v18 = vadd.f32 %v10665_v3, %v10664_v39  ;;  %v14675_v3 = vpack.c.bf16 %v10898_v23, %v10897_v26  ;;  %v14678_v39 = vpack.c.bf16 %v10900_v56, %v10899_v24 }
0x33c6   :  { %15449 = vtanh.f32 %v10666_v18  ;;  %v10851_v45 = vrot.slane %v10666_v18, 7 }
0x33d0   :  { %v15450_v51 = vpop.eup %15449 }
0x33d1   :  { %v10668_v52 = vmul.f32 %v15450_v51, %v15448_v12 }
0x33d3   :  { %v10671_v46 = vrot.slane %v10668_v52, 6  ;;  %10669 = vst [vmem:[#allocation2] sm:$0x40] %v10668_v52 }
0x33d5   :  { %10738 = vmatmul.mubr.f32.vlgmr.msra.gmra.mrb[106].mxu0 %v10671_v46  ;;  %10809 = vmatmul.mubr.f32.vlgmr.msra.gmra.mrb[106].mxu1 %v10671_v46 }
0x33d6   :  { %14658 = vmatpush3.bf16.msra.mxu0 %v14657_v50  ;;  %11197 = vmatprep.mubr.msk.f32.mxu0 %vm15572_vm0, %v15570_v0  ;;  %v11145_v50 = vld [vmem:[#allocation8 + $0xc0] ss:$0 sm:$0xff] }
0x33d7   :  { %14659 = vmatprep.subr.bf16.mxu0 %v15571_v41 }
0x33da   :  { %14661 = vmatpush3.bf16.msra.mxu0 %v14660_v54  ;;  %v11146_v54 = vld [vmem:[#allocation8 + $0xc8] ss:$0 sm:$0xff] }
0x33db   :  { %14662 = vmatprep.subr.bf16.mxu0 %v15571_v41 }
0x33de   :  { %14664 = vmatpush3.bf16.msra.mxu0 %v14663_v21 }
0x33df   :  { %14665 = vmatprep.subr.bf16.mxu0 %v15571_v41 }
0x33e2   :  { %14667 = vmatpush3.bf16.msra.mxu0 %v14666_v1 }
0x33e3   :  { %14668 = vmatprep.subr.bf16.mxu0 %v15571_v41 }
0x33e6   :  { %14670 = vmatpush3.bf16.msra.mxu0 %v14669_v16 }
0x33e7   :  { %14671 = vmatprep.subr.bf16.mxu0 %v15571_v41 }
0x33ea   :  { %14673 = vmatpush3.bf16.msra.mxu0 %v14672_v47 }
0x33eb   :  { %14674 = vmatprep.subr.bf16.mxu0 %v15571_v41 }
0x33ee   :  { %14676 = vmatpush3.bf16.msra.mxu0 %v14675_v3 }
0x33ef   :  { %14677 = vmatprep.subr.bf16.mxu0 %v15571_v41 }
0x33f2   :  { %14679 = vmatpush3.bf16.msra.mxu0 %v14678_v39 }
0x34a8   :  { %v10739_v53 = vpop.f32.mrb[106].mxu0  ;;  %v10810_v11 = vpop.f32.mrb[106].mxu1 }
0x34a9   :  { %v10819_v38 = vrot.slane %v10739_v53, 1  ;;  %v10741_v29 = vpop.f32.mrb[107].mxu0  ;;  %v10812_v49 = vpop.f32.mrb[107].mxu1  ;;  %v10821_v37 = vrot.slane %v10810_v11, 1 }
0x34aa   :  { %v10820_v34 = vrot.slane %v10741_v29, 1  ;;  %v10822_v8 = vrot.slane %v10812_v49, 1 }
0x34ab   :  { %v10827_v42 = vadd.f32 %v10819_v38, %v17869_v60  ;;  %v10829_v57 = vadd.f32 %v10821_v37, %v17877_v31  ;;  %v11147_v38 = vld [vmem:[#allocation8 + $0xd0] ss:$0 sm:$0xff] }
0x34ac   :  { %v10828_v28 = vadd.f32 %v10820_v34, %v17871_v4  ;;  %v10830_v59 = vadd.f32 %v10822_v8, %v17880_v32 }
0x34ad   :  { %v11142_v19 = vmul.f32 -1.442695, %v10827_v42  ;;  %v11144_v2 = vmul.f32 -1.442695, %v10829_v57 }
0x34ae   :  { %v11143_v63 = vmul.f32 -1.442695, %v10828_v28 }
0x34af   :  { %15451 = vpow2.f32 %v11142_v19 }
0x34b0   :  { %15453 = vpow2.f32 %v11143_v63 }
0x34b1   :  { %15455 = vtanh.f32 %v10830_v59 }
0x34b2   :  { %15457 = vpow2.f32 %v11144_v2 }
0x34b9   :  { %v15452_v55 = vpop.eup %15451 }
0x34ba   :  { %v10840_v27 = vadd.f32 1.0, %v15452_v55  ;;  %v15454_v43 = vpop.eup %15453 }
0x34bb   :  { %v10841_v60 = vadd.f32 1.0, %v15454_v43  ;;  %v15456_v4 = vpop.eup %15455 }
0x34bc   :  { %15459 = vrcp.f32 %v10840_v27  ;;  %v15458_v40 = vpop.eup %15457 }
0x34bd   :  { %15461 = vrcp.f32 %v10841_v60  ;;  %v10842_v33 = vadd.f32 1.0, %v15458_v40 }
0x34bf   :  { %15463 = vrcp.f32 %v10842_v33 }
0x34c6   :  { %v15460_v62 = vpop.eup %15459 }
0x34c7   :  { %v10854_v9 = vmul.f32 %v15460_v62, %v15456_v4  ;;  %v15462_v6 = vpop.eup %15461 }
0x34c8   :  { %v10853_v44 = vmul.f32 %v15462_v6, %v10851_v45 }
0x34c9   :  { %v15464_v32 = vpop.eup %15463 }
0x34ca   :  { %v10855_v31 = vadd.f32 %v10854_v9, %v10853_v44 }
0x34cc   :  { %15465 = vtanh.f32 %v10855_v31 }
0x34d6   :  { %v15466_v36 = vpop.eup %15465 }
0x34d7   :  { %v10857_v22 = vmul.f32 %v15466_v36, %v15464_v32 }
0x34d9   :  { %10858 = vst [vmem:[#allocation2] sm:$0x80] %v10857_v22 }
0x34e0   :  { %v10859_v15 = vld [vmem:[#allocation2] sm:$0xff] }
0x34e1   :  { %10862 = vadd.xlane.f32.xlu0 %v10859_v15  ;;  %v10865_v58 = vmul.f32 %v10859_v15, %v10859_v15 }
0x34e3   :  { %10866 = vadd.xlane.f32.xlu1 %v10865_v58 }
0x356e   :  { %v10863_v18 = vpop.xlane.xlu0 %10862 }
0x356f   :  { %v10864_v12 = vmul.f32 0.0078125, %v10863_v18 }
0x3570   :  { %v10867_v0 = vpop.xlane.xlu1 %10866 }
0x3571   :  { %v10869_v51 = vmul.f32 %v10864_v12, %v10864_v12  ;;  %v10868_v52 = vmul.f32 0.0078125, %v10867_v0  ;;  %v10873_v7 = vsub.f32 %v10859_v15, %v10864_v12 }
0x3573   :  { %v10870_v46 = vsub.f32 %v10868_v52, %v10869_v51 }
0x3575   :  { %v10871_v48 = vadd.f32 1e-05, %v10870_v46 }
0x3577   :  { %15467 = vrsqrt.f32 %v10871_v48 }
0x3581   :  { %v15468_v61 = vpop.eup %15467 }
0x3582   :  { %v10874_v13 = vmul.f32 %v15468_v61, %v10873_v7 }
0x3584   :  { %v10879_v53 = vmul.f32 %v11145_v50, %v10874_v13 }
0x3586   :  { %v10884_v11 = vadd.f32 %v11146_v54, %v10879_v53 }
0x3588   :  { %11198 = vmatmul.mubr.f32.vlgmr.msra.gmra.mrb[108].mxu0 %v10884_v11 }
0x365b   :  { %v10972_v41 = vpop.f32.mrb[108].mxu0 }
0x365c   :  { %v10973_v29 = vadd.f32 %v11147_v38, %v10972_v41  ;;  %v11199_v49 = vpop.f32.mrb[109].mxu0 }
0x365e   :  { %10976 = vst [vmem:[#allocation9] sm:$0xff] %v10973_v29 }
0x365f   :  { %15546 = shalt.err (!%p15543_p0)
}
0x3660   :  { %s15547_s27 = scalar_lea.hbm %s18161_s3, 128 }
0x3661   :  { %p15548_p1 = scmp.ne.s32.totalorder %s18161_s3, %s15547_s27  ;;  %p15551_p2 = scmp.lt.u32.totalorder %s15547_s27, %s18161_s3 }
0x3663   :  { %p15553_p3 = pnand %p15551_p2, %p15548_p1 }
0x3665   :  { %15556 = shalt.err (!%p15553_p3)
}
0x3666   :  { %10986 = dma.vmem_to_hbm [thread:$0]  %s10984_s23, 128, %s18161_s3, [#allocation5]  }
0x3667   :  { %15561 = dma.done.wait [#allocation5], 128  }
0x3668   :  { %15562 = vsyncadd [#allocation5], 4294967168 }
0x3669   :  { %10990 = vsyncpa [#allocation4], 1 }
0x366a   :  { %10991 = vsyncpa [#allocation7], 1 }
0x366b   :  { %10992 = vsyncpa [#allocation5], 1 }

</bundles_post_ra>
